<compile_context>
chip_gen: v7x
topology: tpu7x:2x2x1
jax: 0.10.0
libtpu: 0.0.40
codegen_flags: <defaults>
</compile_context>

<pallas_src>
import functools

import jax
import jax.numpy as jnp
from jax.experimental import pallas as pl
from jax.experimental.pallas import tpu as pltpu

KH = KW = 3   # conv kernel size
CPAD = 8      # input channels zero-padded to one full f32 sublane group


def _binary_cnn_kernel(TB, CHUNK, FP, H, W,
                       x_ref, wc_ref, bc_ref, wf_ref, bf_ref, o_ref,
                       conv_scr, pat_scr, logit_scr):
    """One grid step = TB samples, processed CHUNK samples per MXU matmul.

    x_ref:     (TB, CPAD, S) f32           flat zero-padded (H+2)x(W+2) spatial on lanes
    wc_ref:    (COUT, KH*KW*CPAD) bf16     conv weight, im2col row order
    bc_ref:    (COUT, 1) f32               conv bias
    wf_ref:    (COUT, L) f32               fc weight scattered onto the conv grid
    bf_ref:    (1, 1) f32                  fc bias
    o_ref:     (1, 1, TB) f32              sigmoid outputs, batch on lanes
    conv_scr:  (COUT, CHUNK*FP) f32        ReLU(conv) for one chunk (reused per chunk)
    pat_scr:   (KH*KW*CPAD, CHUNK*FP) bf16 im2col patches for one chunk (reused)
    logit_scr: (1, TB) f32                 per-sample logits for this batch block
    """
    Wp2 = W + 2
    F = H * Wp2              # real conv positions per sample (padded-width grid)
    L = F - Wp2 - 1          # pooled-view length (max-of-4-offsets window)

    # hoisted loop invariants (avoid re-issuing vlds / broadcasts per unrolled sample)
    wc = wc_ref[...]         # (COUT, 72) bf16
    bias = bc_ref[...]       # (COUT, 1)  f32
    wf = wf_ref[...]         # (COUT, L)  f32

    for c0 in range(0, TB, CHUNK):
        # ---- im2col: 9 sublane-aligned shifted views per sample, staged as bf16 ----
        for s in range(CHUNK):
            tb = c0 + s
            taps = [x_ref[tb, :, pl.ds(dy * Wp2 + dx, FP)]
                    for dy in range(KH) for dx in range(KW)]      # 9 x (CPAD, FP) f32
            pat_scr[:, pl.ds(s * FP, FP)] = (
                jnp.concatenate(taps, axis=0).astype(jnp.bfloat16))

        # ---- Conv2d(3,16,3,s1,p1): one bf16 MXU matmul for the whole chunk ----
        acc = jnp.dot(wc, pat_scr[...], preferred_element_type=jnp.float32)
        conv_scr[...] = jnp.maximum(acc + bias, 0.0)              # bias + ReLU

        # ---- MaxPool2d(2,2) + Flatten + Linear(COUT*HP*WP, 1) per sample ----
        for s in range(CHUNK):
            tb = c0 + s
            base = s * FP                                          # 128-lane aligned
            p00 = conv_scr[:, pl.ds(base, L)]
            p01 = conv_scr[:, pl.ds(base + 1, L)]
            p10 = conv_scr[:, pl.ds(base + Wp2, L)]
            p11 = conv_scr[:, pl.ds(base + Wp2 + 1, L)]
            pooled = jnp.maximum(jnp.maximum(p00, p01), jnp.maximum(p10, p11))
            prod = pooled * wf                                     # fc weights mask junk
            col = jnp.sum(prod, axis=0, keepdims=True)             # sublane reduce first
            logit_scr[:, tb:tb + 1] = jnp.sum(col, axis=1, keepdims=True)

    # ---- Sigmoid on the whole batch block at once (EUP exp + approx reciprocal) ----
    lv = logit_scr[...] + bf_ref[...]                              # (1, TB)
    y = pl.reciprocal(1.0 + jnp.exp(-lv), approx=True)
    o_ref[...] = y.reshape(1, 1, TB).astype(o_ref.dtype)


def _ceil_to(v, m):
    return -(-v // m) * m


def binary_cnn_forward(x_nchw, conv_w, conv_b, fc_w, fc_b, *, batch_block=32):
    """x_nchw: (N, 3, H, W) float32 (PyTorch layout). Returns (N, 1) sigmoid probs."""
    N, CIN, H, W = x_nchw.shape
    COUT = conv_w.shape[0]
    assert H % 2 == 0 and W % 2 == 0
    HP, WP = H // 2, W // 2
    Wp2 = W + 2
    F = H * Wp2                               # conv positions (incl. 2 junk cols / row)
    FP = _ceil_to(F, 128)                     # lane-aligned per-sample span in scratch
    L = F - Wp2 - 1
    max_off = (KH - 1) * Wp2 + (KW - 1)       # largest im2col tap shift
    S = _ceil_to(max_off + FP, 128)           # flat input length: every tap slice fits

    # batch tiling: big TB amortizes per-step overhead; NB >= 2 keeps both v7x TCs busy
    CHUNK = 8                                 # samples per MXU matmul
    tb_cap = -(-N // 2) if N >= 2 else 1
    TB = max(1, min(batch_block, tb_cap))
    chunk = CHUNK if TB >= CHUNK else TB
    TB = (TB // chunk) * chunk
    NB = -(-N // TB)
    NPAD = NB * TB

    # ---- glue: layout conversion / zero padding only (plain JAX, no arithmetic) ----
    x = x_nchw.astype(jnp.float32)
    if NPAD != N:
        x = jnp.pad(x, ((0, NPAD - N), (0, 0), (0, 0), (0, 0)))
    x = jnp.pad(x, ((0, 0), (0, 0), (1, 1), (1, 1)))              # conv zero padding
    x = x.reshape(NPAD, CIN, (H + 2) * Wp2)                       # flatten spatial
    x = jnp.pad(x, ((0, 0), (0, CPAD - CIN), (0, S - (H + 2) * Wp2)))   # (NPAD, 8, S)

    # conv weight -> (COUT, KH*KW*CPAD) bf16 in the kernel's im2col row order
    wc = jnp.transpose(conv_w.astype(jnp.float32), (0, 2, 3, 1))        # (COUT,KH,KW,CIN)
    wc = jnp.pad(wc, ((0, 0), (0, 0), (0, 0), (0, CPAD - CIN)))
    wc = wc.reshape(COUT, KH * KW * CPAD).astype(jnp.bfloat16)
    bc = conv_b.reshape(COUT, 1).astype(jnp.float32)

    # fc weight (PyTorch NCHW flatten order c*HP*WP + h2*WP + w2) scattered onto the
    # conv grid at the even (h, w) positions where the pooled values live.
    wf3 = fc_w.reshape(COUT, HP, WP).astype(jnp.float32)
    wf = jnp.zeros((COUT, H, Wp2), jnp.float32).at[:, ::2, 0:W:2].set(wf3)
    wf = wf.reshape(COUT, F)[:, :L]
    bf = fc_b.reshape(1, 1).astype(jnp.float32)

    kernel = functools.partial(_binary_cnn_kernel, TB, chunk, FP, H, W)
    out = pl.pallas_call(
        kernel,
        out_shape=jax.ShapeDtypeStruct((NB, 1, TB), jnp.float32),
        grid=(NB,),
        in_specs=[
            pl.BlockSpec((TB, CPAD, S), lambda i: (i, 0, 0)),
            pl.BlockSpec((COUT, KH * KW * CPAD), lambda i: (0, 0)),
            pl.BlockSpec((COUT, 1), lambda i: (0, 0)),
            pl.BlockSpec((COUT, L), lambda i: (0, 0)),
            pl.BlockSpec((1, 1), lambda i: (0, 0)),
        ],
        out_specs=pl.BlockSpec((1, 1, TB), lambda i: (i, 0, 0)),
        scratch_shapes=[
            pltpu.VMEM((COUT, chunk * FP), jnp.float32),              # ReLU(conv) chunk
            pltpu.VMEM((KH * KW * CPAD, chunk * FP), jnp.bfloat16),   # im2col patches
            pltpu.VMEM((1, TB), jnp.float32),                         # per-sample logits
        ],
        compiler_params=pltpu.CompilerParams(
            dimension_semantics=("parallel",),
            vmem_limit_bytes=48 * 1024 * 1024),
    )(x, wc, bc, wf, bf)
    return out.reshape(NPAD, 1)[:N]


def reference_forward(x, conv_w, conv_b, fc_w, fc_b):
    """Pure-JAX reference matching the PyTorch module semantics (NCHW)."""
    y = jax.lax.conv_general_dilated(
        x, conv_w, window_strides=(1, 1), padding=((1, 1), (1, 1)),
        dimension_numbers=("NCHW", "OIHW", "NCHW"))
    y = y + conv_b.reshape(1, -1, 1, 1)
    y = jnp.maximum(y, 0.0)
    N, C, H, W = y.shape
    y = y.reshape(N, C, H // 2, 2, W // 2, 2).max(axis=(3, 5))
    flat = y.reshape(N, -1)                        # NCHW flatten, matches torch
    logit = flat @ fc_w.T + fc_b
    return jax.nn.sigmoid(logit)


if __name__ == "__main__":
    N, CIN, H, W, COUT = 16, 3, 32, 32, 16
    key = jax.random.PRNGKey(0)
    k1, k2, k3, k4, k5 = jax.random.split(key, 5)

    x = jax.random.normal(k1, (N, CIN, H, W), jnp.float32)
    conv_w = 0.1 * jax.random.normal(k2, (COUT, CIN, KH, KW), jnp.float32)
    conv_b = 0.1 * jax.random.normal(k3, (COUT,), jnp.float32)
    fc_in = COUT * (H // 2) * (W // 2)
    fc_w = 0.02 * jax.random.normal(k4, (1, fc_in), jnp.float32)
    fc_b = 0.02 * jax.random.normal(k5, (1,), jnp.float32)

    out = binary_cnn_forward(x, conv_w, conv_b, fc_w, fc_b)
    out = jax.block_until_ready(out)

    ref = reference_forward(x, conv_w, conv_b, fc_w, fc_b)
    assert out.shape == (N, 1), f"bad output shape {out.shape}"
    assert out.dtype == jnp.float32
    if not jnp.allclose(out, ref, atol=2e-2):
        raise AssertionError(f"mismatch:\npallas={out}\nref={ref}")
    print("KERNEL_OK")
</pallas_src>

<mosaic_0001>
module attributes {stable_mosaic.version = 11 : i64} {
  func.func @_binary_cnn_kernel(%arg0: i32, %arg1: memref<8x8x1280xf32, #tpu.memory_space<vmem>>, %arg2: memref<16x72xbf16, #tpu.memory_space<vmem>>, %arg3: memref<16x1xf32, #tpu.memory_space<vmem>>, %arg4: memref<16x1053xf32, #tpu.memory_space<vmem>>, %arg5: memref<1x1xf32, #tpu.memory_space<vmem>>, %arg6: memref<1x1x8xf32, #tpu.memory_space<vmem>>, %arg7: memref<16x9216xf32, #tpu.memory_space<vmem>>, %arg8: memref<72x9216xbf16, #tpu.memory_space<vmem>>, %arg9: memref<1x8xf32, #tpu.memory_space<vmem>>) attributes {dimension_semantics = [#tpu.dimension_semantics<parallel>], iteration_bounds = array<i64: 2>, scalar_prefetch = 0 : i64, scratch_operands = 3 : i64, tpu.core_type = #tpu.core_type<tc>, window_params = [{transform_indices = @transform_0, window_bounds = array<i64: 8, 8, 1280>}, {pipeline_mode = #tpu.pipeline_mode<synchronous>, transform_indices = @transform_1, window_bounds = array<i64: 16, 72>}, {pipeline_mode = #tpu.pipeline_mode<synchronous>, transform_indices = @transform_2, window_bounds = array<i64: 16, 1>}, {pipeline_mode = #tpu.pipeline_mode<synchronous>, transform_indices = @transform_3, window_bounds = array<i64: 16, 1053>}, {pipeline_mode = #tpu.pipeline_mode<synchronous>, transform_indices = @transform_4, window_bounds = array<i64: 1, 1>}, {transform_indices = @transform_5, window_bounds = array<i64: 1, 1, 8>}]} {
    %c0 = arith.constant 0 : index
    %c0_0 = arith.constant 0 : index
    %0 = vector.load %arg2[%c0, %c0_0] : memref<16x72xbf16, #tpu.memory_space<vmem>>, vector<16x72xbf16>
    %c0_1 = arith.constant 0 : index
    %c0_2 = arith.constant 0 : index
    %1 = vector.load %arg3[%c0_1, %c0_2] : memref<16x1xf32, #tpu.memory_space<vmem>>, vector<16x1xf32>
    %c0_3 = arith.constant 0 : index
    %c0_4 = arith.constant 0 : index
    %2 = vector.load %arg4[%c0_3, %c0_4] : memref<16x1053xf32, #tpu.memory_space<vmem>>, vector<16x1053xf32>
    %c0_5 = arith.constant 0 : index
    %c0_6 = arith.constant 0 : index
    %c0_7 = arith.constant 0 : index
    %3 = vector.load %arg1[%c0_5, %c0_6, %c0_7] : memref<8x8x1280xf32, #tpu.memory_space<vmem>>, vector<1x8x1152xf32>
    %4 = vector.shape_cast %3 : vector<1x8x1152xf32> to vector<8x1152xf32>
    %c0_8 = arith.constant 0 : index
    %c0_9 = arith.constant 0 : index
    %c1 = arith.constant 1 : index
    %5 = vector.load %arg1[%c0_8, %c0_9, %c1] : memref<8x8x1280xf32, #tpu.memory_space<vmem>>, vector<1x8x1152xf32>
    %6 = vector.shape_cast %5 : vector<1x8x1152xf32> to vector<8x1152xf32>
    %c0_10 = arith.constant 0 : index
    %c0_11 = arith.constant 0 : index
    %c2 = arith.constant 2 : index
    %7 = vector.load %arg1[%c0_10, %c0_11, %c2] : memref<8x8x1280xf32, #tpu.memory_space<vmem>>, vector<1x8x1152xf32>
    %8 = vector.shape_cast %7 : vector<1x8x1152xf32> to vector<8x1152xf32>
    %c0_12 = arith.constant 0 : index
    %c0_13 = arith.constant 0 : index
    %c34 = arith.constant 34 : index
    %9 = vector.load %arg1[%c0_12, %c0_13, %c34] : memref<8x8x1280xf32, #tpu.memory_space<vmem>>, vector<1x8x1152xf32>
    %10 = vector.shape_cast %9 : vector<1x8x1152xf32> to vector<8x1152xf32>
    %c0_14 = arith.constant 0 : index
    %c0_15 = arith.constant 0 : index
    %c35 = arith.constant 35 : index
    %11 = vector.load %arg1[%c0_14, %c0_15, %c35] : memref<8x8x1280xf32, #tpu.memory_space<vmem>>, vector<1x8x1152xf32>
    %12 = vector.shape_cast %11 : vector<1x8x1152xf32> to vector<8x1152xf32>
    %c0_16 = arith.constant 0 : index
    %c0_17 = arith.constant 0 : index
    %c36 = arith.constant 36 : index
    %13 = vector.load %arg1[%c0_16, %c0_17, %c36] : memref<8x8x1280xf32, #tpu.memory_space<vmem>>, vector<1x8x1152xf32>
    %14 = vector.shape_cast %13 : vector<1x8x1152xf32> to vector<8x1152xf32>
    %c0_18 = arith.constant 0 : index
    %c0_19 = arith.constant 0 : index
    %c68 = arith.constant 68 : index
    %15 = vector.load %arg1[%c0_18, %c0_19, %c68] : memref<8x8x1280xf32, #tpu.memory_space<vmem>>, vector<1x8x1152xf32>
    %16 = vector.shape_cast %15 : vector<1x8x1152xf32> to vector<8x1152xf32>
    %c0_20 = arith.constant 0 : index
    %c0_21 = arith.constant 0 : index
    %c69 = arith.constant 69 : index
    %17 = vector.load %arg1[%c0_20, %c0_21, %c69] : memref<8x8x1280xf32, #tpu.memory_space<vmem>>, vector<1x8x1152xf32>
    %18 = vector.shape_cast %17 : vector<1x8x1152xf32> to vector<8x1152xf32>
    %c0_22 = arith.constant 0 : index
    %c0_23 = arith.constant 0 : index
    %c70 = arith.constant 70 : index
    %19 = vector.load %arg1[%c0_22, %c0_23, %c70] : memref<8x8x1280xf32, #tpu.memory_space<vmem>>, vector<1x8x1152xf32>
    %20 = vector.shape_cast %19 : vector<1x8x1152xf32> to vector<8x1152xf32>
    %21 = tpu.concatenate %4, %6, %8, %10, %12, %14, %16, %18, %20 in 0 : vector<8x1152xf32>, vector<8x1152xf32>, vector<8x1152xf32>, vector<8x1152xf32>, vector<8x1152xf32>, vector<8x1152xf32>, vector<8x1152xf32>, vector<8x1152xf32>, vector<8x1152xf32> -> vector<72x1152xf32>
    %22 = arith.truncf %21 : vector<72x1152xf32> to vector<72x1152xbf16>
    %c0_24 = arith.constant 0 : index
    %c0_25 = arith.constant 0 : index
    %23 = vector.load %arg8[%c0_24, %c0_25] : memref<72x9216xbf16, #tpu.memory_space<vmem>>, vector<72x1152xbf16>
    tpu.vector_store %arg8[%c0_24, %c0_25], %22 {strides = array<i32>} : memref<72x9216xbf16, #tpu.memory_space<vmem>>, vector<72x1152xbf16>,
    %c1_26 = arith.constant 1 : index
    %c0_27 = arith.constant 0 : index
    %c0_28 = arith.constant 0 : index
    %24 = vector.load %arg1[%c1_26, %c0_27, %c0_28] : memref<8x8x1280xf32, #tpu.memory_space<vmem>>, vector<1x8x1152xf32>
    %25 = vector.shape_cast %24 : vector<1x8x1152xf32> to vector<8x1152xf32>
    %c1_29 = arith.constant 1 : index
    %c0_30 = arith.constant 0 : index
    %c1_31 = arith.constant 1 : index
    %26 = vector.load %arg1[%c1_29, %c0_30, %c1_31] : memref<8x8x1280xf32, #tpu.memory_space<vmem>>, vector<1x8x1152xf32>
    %27 = vector.shape_cast %26 : vector<1x8x1152xf32> to vector<8x1152xf32>
    %c1_32 = arith.constant 1 : index
    %c0_33 = arith.constant 0 : index
    %c2_34 = arith.constant 2 : index
    %28 = vector.load %arg1[%c1_32, %c0_33, %c2_34] : memref<8x8x1280xf32, #tpu.memory_space<vmem>>, vector<1x8x1152xf32>
    %29 = vector.shape_cast %28 : vector<1x8x1152xf32> to vector<8x1152xf32>
    %c1_35 = arith.constant 1 : index
    %c0_36 = arith.constant 0 : index
    %c34_37 = arith.constant 34 : index
    %30 = vector.load %arg1[%c1_35, %c0_36, %c34_37] : memref<8x8x1280xf32, #tpu.memory_space<vmem>>, vector<1x8x1152xf32>
    %31 = vector.shape_cast %30 : vector<1x8x1152xf32> to vector<8x1152xf32>
    %c1_38 = arith.constant 1 : index
    %c0_39 = arith.constant 0 : index
    %c35_40 = arith.constant 35 : index
    %32 = vector.load %arg1[%c1_38, %c0_39, %c35_40] : memref<8x8x1280xf32, #tpu.memory_space<vmem>>, vector<1x8x1152xf32>
    %33 = vector.shape_cast %32 : vector<1x8x1152xf32> to vector<8x1152xf32>
    %c1_41 = arith.constant 1 : index
    %c0_42 = arith.constant 0 : index
    %c36_43 = arith.constant 36 : index
    %34 = vector.load %arg1[%c1_41, %c0_42, %c36_43] : memref<8x8x1280xf32, #tpu.memory_space<vmem>>, vector<1x8x1152xf32>
    %35 = vector.shape_cast %34 : vector<1x8x1152xf32> to vector<8x1152xf32>
    %c1_44 = arith.constant 1 : index
    %c0_45 = arith.constant 0 : index
    %c68_46 = arith.constant 68 : index
    %36 = vector.load %arg1[%c1_44, %c0_45, %c68_46] : memref<8x8x1280xf32, #tpu.memory_space<vmem>>, vector<1x8x1152xf32>
    %37 = vector.shape_cast %36 : vector<1x8x1152xf32> to vector<8x1152xf32>
    %c1_47 = arith.constant 1 : index
    %c0_48 = arith.constant 0 : index
    %c69_49 = arith.constant 69 : index
    %38 = vector.load %arg1[%c1_47, %c0_48, %c69_49] : memref<8x8x1280xf32, #tpu.memory_space<vmem>>, vector<1x8x1152xf32>
    %39 = vector.shape_cast %38 : vector<1x8x1152xf32> to vector<8x1152xf32>
    %c1_50 = arith.constant 1 : index
    %c0_51 = arith.constant 0 : index
    %c70_52 = arith.constant 70 : index
    %40 = vector.load %arg1[%c1_50, %c0_51, %c70_52] : memref<8x8x1280xf32, #tpu.memory_space<vmem>>, vector<1x8x1152xf32>
    %41 = vector.shape_cast %40 : vector<1x8x1152xf32> to vector<8x1152xf32>
    %42 = tpu.concatenate %25, %27, %29, %31, %33, %35, %37, %39, %41 in 0 : vector<8x1152xf32>, vector<8x1152xf32>, vector<8x1152xf32>, vector<8x1152xf32>, vector<8x1152xf32>, vector<8x1152xf32>, vector<8x1152xf32>, vector<8x1152xf32>, vector<8x1152xf32> -> vector<72x1152xf32>
    %43 = arith.truncf %42 : vector<72x1152xf32> to vector<72x1152xbf16>
    %c0_53 = arith.constant 0 : index
    %c1152 = arith.constant 1152 : index
    %44 = vector.load %arg8[%c0_53, %c1152] : memref<72x9216xbf16, #tpu.memory_space<vmem>>, vector<72x1152xbf16>
    tpu.vector_store %arg8[%c0_53, %c1152], %43 {strides = array<i32>} : memref<72x9216xbf16, #tpu.memory_space<vmem>>, vector<72x1152xbf16>,
    %c2_54 = arith.constant 2 : index
    %c0_55 = arith.constant 0 : index
    %c0_56 = arith.constant 0 : index
    %45 = vector.load %arg1[%c2_54, %c0_55, %c0_56] : memref<8x8x1280xf32, #tpu.memory_space<vmem>>, vector<1x8x1152xf32>
    %46 = vector.shape_cast %45 : vector<1x8x1152xf32> to vector<8x1152xf32>
    %c2_57 = arith.constant 2 : index
    %c0_58 = arith.constant 0 : index
    %c1_59 = arith.constant 1 : index
    %47 = vector.load %arg1[%c2_57, %c0_58, %c1_59] : memref<8x8x1280xf32, #tpu.memory_space<vmem>>, vector<1x8x1152xf32>
    %48 = vector.shape_cast %47 : vector<1x8x1152xf32> to vector<8x1152xf32>
    %c2_60 = arith.constant 2 : index
    %c0_61 = arith.constant 0 : index
    %c2_62 = arith.constant 2 : index
    %49 = vector.load %arg1[%c2_60, %c0_61, %c2_62] : memref<8x8x1280xf32, #tpu.memory_space<vmem>>, vector<1x8x1152xf32>
    %50 = vector.shape_cast %49 : vector<1x8x1152xf32> to vector<8x1152xf32>
    %c2_63 = arith.constant 2 : index
    %c0_64 = arith.constant 0 : index
    %c34_65 = arith.constant 34 : index
    %51 = vector.load %arg1[%c2_63, %c0_64, %c34_65] : memref<8x8x1280xf32, #tpu.memory_space<vmem>>, vector<1x8x1152xf32>
    %52 = vector.shape_cast %51 : vector<1x8x1152xf32> to vector<8x1152xf32>
    %c2_66 = arith.constant 2 : index
    %c0_67 = arith.constant 0 : index
    %c35_68 = arith.constant 35 : index
    %53 = vector.load %arg1[%c2_66, %c0_67, %c35_68] : memref<8x8x1280xf32, #tpu.memory_space<vmem>>, vector<1x8x1152xf32>
    %54 = vector.shape_cast %53 : vector<1x8x1152xf32> to vector<8x1152xf32>
    %c2_69 = arith.constant 2 : index
    %c0_70 = arith.constant 0 : index
    %c36_71 = arith.constant 36 : index
    %55 = vector.load %arg1[%c2_69, %c0_70, %c36_71] : memref<8x8x1280xf32, #tpu.memory_space<vmem>>, vector<1x8x1152xf32>
    %56 = vector.shape_cast %55 : vector<1x8x1152xf32> to vector<8x1152xf32>
    %c2_72 = arith.constant 2 : index
    %c0_73 = arith.constant 0 : index
    %c68_74 = arith.constant 68 : index
    %57 = vector.load %arg1[%c2_72, %c0_73, %c68_74] : memref<8x8x1280xf32, #tpu.memory_space<vmem>>, vector<1x8x1152xf32>
    %58 = vector.shape_cast %57 : vector<1x8x1152xf32> to vector<8x1152xf32>
    %c2_75 = arith.constant 2 : index
    %c0_76 = arith.constant 0 : index
    %c69_77 = arith.constant 69 : index
    %59 = vector.load %arg1[%c2_75, %c0_76, %c69_77] : memref<8x8x1280xf32, #tpu.memory_space<vmem>>, vector<1x8x1152xf32>
    %60 = vector.shape_cast %59 : vector<1x8x1152xf32> to vector<8x1152xf32>
    %c2_78 = arith.constant 2 : index
    %c0_79 = arith.constant 0 : index
    %c70_80 = arith.constant 70 : index
    %61 = vector.load %arg1[%c2_78, %c0_79, %c70_80] : memref<8x8x1280xf32, #tpu.memory_space<vmem>>, vector<1x8x1152xf32>
    %62 = vector.shape_cast %61 : vector<1x8x1152xf32> to vector<8x1152xf32>
    %63 = tpu.concatenate %46, %48, %50, %52, %54, %56, %58, %60, %62 in 0 : vector<8x1152xf32>, vector<8x1152xf32>, vector<8x1152xf32>, vector<8x1152xf32>, vector<8x1152xf32>, vector<8x1152xf32>, vector<8x1152xf32>, vector<8x1152xf32>, vector<8x1152xf32> -> vector<72x1152xf32>
    %64 = arith.truncf %63 : vector<72x1152xf32> to vector<72x1152xbf16>
    %c0_81 = arith.constant 0 : index
    %c2304 = arith.constant 2304 : index
    %65 = vector.load %arg8[%c0_81, %c2304] : memref<72x9216xbf16, #tpu.memory_space<vmem>>, vector<72x1152xbf16>
    tpu.vector_store %arg8[%c0_81, %c2304], %64 {strides = array<i32>} : memref<72x9216xbf16, #tpu.memory_space<vmem>>, vector<72x1152xbf16>,
    %c3 = arith.constant 3 : index
    %c0_82 = arith.constant 0 : index
    %c0_83 = arith.constant 0 : index
    %66 = vector.load %arg1[%c3, %c0_82, %c0_83] : memref<8x8x1280xf32, #tpu.memory_space<vmem>>, vector<1x8x1152xf32>
    %67 = vector.shape_cast %66 : vector<1x8x1152xf32> to vector<8x1152xf32>
    %c3_84 = arith.constant 3 : index
    %c0_85 = arith.constant 0 : index
    %c1_86 = arith.constant 1 : index
    %68 = vector.load %arg1[%c3_84, %c0_85, %c1_86] : memref<8x8x1280xf32, #tpu.memory_space<vmem>>, vector<1x8x1152xf32>
    %69 = vector.shape_cast %68 : vector<1x8x1152xf32> to vector<8x1152xf32>
    %c3_87 = arith.constant 3 : index
    %c0_88 = arith.constant 0 : index
    %c2_89 = arith.constant 2 : index
    %70 = vector.load %arg1[%c3_87, %c0_88, %c2_89] : memref<8x8x1280xf32, #tpu.memory_space<vmem>>, vector<1x8x1152xf32>
    %71 = vector.shape_cast %70 : vector<1x8x1152xf32> to vector<8x1152xf32>
    %c3_90 = arith.constant 3 : index
    %c0_91 = arith.constant 0 : index
    %c34_92 = arith.constant 34 : index
    %72 = vector.load %arg1[%c3_90, %c0_91, %c34_92] : memref<8x8x1280xf32, #tpu.memory_space<vmem>>, vector<1x8x1152xf32>
    %73 = vector.shape_cast %72 : vector<1x8x1152xf32> to vector<8x1152xf32>
    %c3_93 = arith.constant 3 : index
    %c0_94 = arith.constant 0 : index
    %c35_95 = arith.constant 35 : index
    %74 = vector.load %arg1[%c3_93, %c0_94, %c35_95] : memref<8x8x1280xf32, #tpu.memory_space<vmem>>, vector<1x8x1152xf32>
    %75 = vector.shape_cast %74 : vector<1x8x1152xf32> to vector<8x1152xf32>
    %c3_96 = arith.constant 3 : index
    %c0_97 = arith.constant 0 : index
    %c36_98 = arith.constant 36 : index
    %76 = vector.load %arg1[%c3_96, %c0_97, %c36_98] : memref<8x8x1280xf32, #tpu.memory_space<vmem>>, vector<1x8x1152xf32>
    %77 = vector.shape_cast %76 : vector<1x8x1152xf32> to vector<8x1152xf32>
    %c3_99 = arith.constant 3 : index
    %c0_100 = arith.constant 0 : index
    %c68_101 = arith.constant 68 : index
    %78 = vector.load %arg1[%c3_99, %c0_100, %c68_101] : memref<8x8x1280xf32, #tpu.memory_space<vmem>>, vector<1x8x1152xf32>
    %79 = vector.shape_cast %78 : vector<1x8x1152xf32> to vector<8x1152xf32>
    %c3_102 = arith.constant 3 : index
    %c0_103 = arith.constant 0 : index
    %c69_104 = arith.constant 69 : index
    %80 = vector.load %arg1[%c3_102, %c0_103, %c69_104] : memref<8x8x1280xf32, #tpu.memory_space<vmem>>, vector<1x8x1152xf32>
    %81 = vector.shape_cast %80 : vector<1x8x1152xf32> to vector<8x1152xf32>
    %c3_105 = arith.constant 3 : index
    %c0_106 = arith.constant 0 : index
    %c70_107 = arith.constant 70 : index
    %82 = vector.load %arg1[%c3_105, %c0_106, %c70_107] : memref<8x8x1280xf32, #tpu.memory_space<vmem>>, vector<1x8x1152xf32>
    %83 = vector.shape_cast %82 : vector<1x8x1152xf32> to vector<8x1152xf32>
    %84 = tpu.concatenate %67, %69, %71, %73, %75, %77, %79, %81, %83 in 0 : vector<8x1152xf32>, vector<8x1152xf32>, vector<8x1152xf32>, vector<8x1152xf32>, vector<8x1152xf32>, vector<8x1152xf32>, vector<8x1152xf32>, vector<8x1152xf32>, vector<8x1152xf32> -> vector<72x1152xf32>
    %85 = arith.truncf %84 : vector<72x1152xf32> to vector<72x1152xbf16>
    %c0_108 = arith.constant 0 : index
    %c3456 = arith.constant 3456 : index
    %86 = vector.load %arg8[%c0_108, %c3456] : memref<72x9216xbf16, #tpu.memory_space<vmem>>, vector<72x1152xbf16>
    tpu.vector_store %arg8[%c0_108, %c3456], %85 {strides = array<i32>} : memref<72x9216xbf16, #tpu.memory_space<vmem>>, vector<72x1152xbf16>,
    %c4 = arith.constant 4 : index
    %c0_109 = arith.constant 0 : index
    %c0_110 = arith.constant 0 : index
    %87 = vector.load %arg1[%c4, %c0_109, %c0_110] : memref<8x8x1280xf32, #tpu.memory_space<vmem>>, vector<1x8x1152xf32>
    %88 = vector.shape_cast %87 : vector<1x8x1152xf32> to vector<8x1152xf32>
    %c4_111 = arith.constant 4 : index
    %c0_112 = arith.constant 0 : index
    %c1_113 = arith.constant 1 : index
    %89 = vector.load %arg1[%c4_111, %c0_112, %c1_113] : memref<8x8x1280xf32, #tpu.memory_space<vmem>>, vector<1x8x1152xf32>
    %90 = vector.shape_cast %89 : vector<1x8x1152xf32> to vector<8x1152xf32>
    %c4_114 = arith.constant 4 : index
    %c0_115 = arith.constant 0 : index
    %c2_116 = arith.constant 2 : index
    %91 = vector.load %arg1[%c4_114, %c0_115, %c2_116] : memref<8x8x1280xf32, #tpu.memory_space<vmem>>, vector<1x8x1152xf32>
    %92 = vector.shape_cast %91 : vector<1x8x1152xf32> to vector<8x1152xf32>
    %c4_117 = arith.constant 4 : index
    %c0_118 = arith.constant 0 : index
    %c34_119 = arith.constant 34 : index
    %93 = vector.load %arg1[%c4_117, %c0_118, %c34_119] : memref<8x8x1280xf32, #tpu.memory_space<vmem>>, vector<1x8x1152xf32>
    %94 = vector.shape_cast %93 : vector<1x8x1152xf32> to vector<8x1152xf32>
    %c4_120 = arith.constant 4 : index
    %c0_121 = arith.constant 0 : index
    %c35_122 = arith.constant 35 : index
    %95 = vector.load %arg1[%c4_120, %c0_121, %c35_122] : memref<8x8x1280xf32, #tpu.memory_space<vmem>>, vector<1x8x1152xf32>
    %96 = vector.shape_cast %95 : vector<1x8x1152xf32> to vector<8x1152xf32>
    %c4_123 = arith.constant 4 : index
    %c0_124 = arith.constant 0 : index
    %c36_125 = arith.constant 36 : index
    %97 = vector.load %arg1[%c4_123, %c0_124, %c36_125] : memref<8x8x1280xf32, #tpu.memory_space<vmem>>, vector<1x8x1152xf32>
    %98 = vector.shape_cast %97 : vector<1x8x1152xf32> to vector<8x1152xf32>
    %c4_126 = arith.constant 4 : index
    %c0_127 = arith.constant 0 : index
    %c68_128 = arith.constant 68 : index
    %99 = vector.load %arg1[%c4_126, %c0_127, %c68_128] : memref<8x8x1280xf32, #tpu.memory_space<vmem>>, vector<1x8x1152xf32>
    %100 = vector.shape_cast %99 : vector<1x8x1152xf32> to vector<8x1152xf32>
    %c4_129 = arith.constant 4 : index
    %c0_130 = arith.constant 0 : index
    %c69_131 = arith.constant 69 : index
    %101 = vector.load %arg1[%c4_129, %c0_130, %c69_131] : memref<8x8x1280xf32, #tpu.memory_space<vmem>>, vector<1x8x1152xf32>
    %102 = vector.shape_cast %101 : vector<1x8x1152xf32> to vector<8x1152xf32>
    %c4_132 = arith.constant 4 : index
    %c0_133 = arith.constant 0 : index
    %c70_134 = arith.constant 70 : index
    %103 = vector.load %arg1[%c4_132, %c0_133, %c70_134] : memref<8x8x1280xf32, #tpu.memory_space<vmem>>, vector<1x8x1152xf32>
    %104 = vector.shape_cast %103 : vector<1x8x1152xf32> to vector<8x1152xf32>
    %105 = tpu.concatenate %88, %90, %92, %94, %96, %98, %100, %102, %104 in 0 : vector<8x1152xf32>, vector<8x1152xf32>, vector<8x1152xf32>, vector<8x1152xf32>, vector<8x1152xf32>, vector<8x1152xf32>, vector<8x1152xf32>, vector<8x1152xf32>, vector<8x1152xf32> -> vector<72x1152xf32>
    %106 = arith.truncf %105 : vector<72x1152xf32> to vector<72x1152xbf16>
    %c0_135 = arith.constant 0 : index
    %c4608 = arith.constant 4608 : index
    %107 = vector.load %arg8[%c0_135, %c4608] : memref<72x9216xbf16, #tpu.memory_space<vmem>>, vector<72x1152xbf16>
    tpu.vector_store %arg8[%c0_135, %c4608], %106 {strides = array<i32>} : memref<72x9216xbf16, #tpu.memory_space<vmem>>, vector<72x1152xbf16>,
    %c5 = arith.constant 5 : index
    %c0_136 = arith.constant 0 : index
    %c0_137 = arith.constant 0 : index
    %108 = vector.load %arg1[%c5, %c0_136, %c0_137] : memref<8x8x1280xf32, #tpu.memory_space<vmem>>, vector<1x8x1152xf32>
    %109 = vector.shape_cast %108 : vector<1x8x1152xf32> to vector<8x1152xf32>
    %c5_138 = arith.constant 5 : index
    %c0_139 = arith.constant 0 : index
    %c1_140 = arith.constant 1 : index
    %110 = vector.load %arg1[%c5_138, %c0_139, %c1_140] : memref<8x8x1280xf32, #tpu.memory_space<vmem>>, vector<1x8x1152xf32>
    %111 = vector.shape_cast %110 : vector<1x8x1152xf32> to vector<8x1152xf32>
    %c5_141 = arith.constant 5 : index
    %c0_142 = arith.constant 0 : index
    %c2_143 = arith.constant 2 : index
    %112 = vector.load %arg1[%c5_141, %c0_142, %c2_143] : memref<8x8x1280xf32, #tpu.memory_space<vmem>>, vector<1x8x1152xf32>
    %113 = vector.shape_cast %112 : vector<1x8x1152xf32> to vector<8x1152xf32>
    %c5_144 = arith.constant 5 : index
    %c0_145 = arith.constant 0 : index
    %c34_146 = arith.constant 34 : index
    %114 = vector.load %arg1[%c5_144, %c0_145, %c34_146] : memref<8x8x1280xf32, #tpu.memory_space<vmem>>, vector<1x8x1152xf32>
    %115 = vector.shape_cast %114 : vector<1x8x1152xf32> to vector<8x1152xf32>
    %c5_147 = arith.constant 5 : index
    %c0_148 = arith.constant 0 : index
    %c35_149 = arith.constant 35 : index
    %116 = vector.load %arg1[%c5_147, %c0_148, %c35_149] : memref<8x8x1280xf32, #tpu.memory_space<vmem>>, vector<1x8x1152xf32>
    %117 = vector.shape_cast %116 : vector<1x8x1152xf32> to vector<8x1152xf32>
    %c5_150 = arith.constant 5 : index
    %c0_151 = arith.constant 0 : index
    %c36_152 = arith.constant 36 : index
    %118 = vector.load %arg1[%c5_150, %c0_151, %c36_152] : memref<8x8x1280xf32, #tpu.memory_space<vmem>>, vector<1x8x1152xf32>
    %119 = vector.shape_cast %118 : vector<1x8x1152xf32> to vector<8x1152xf32>
    %c5_153 = arith.constant 5 : index
    %c0_154 = arith.constant 0 : index
    %c68_155 = arith.constant 68 : index
    %120 = vector.load %arg1[%c5_153, %c0_154, %c68_155] : memref<8x8x1280xf32, #tpu.memory_space<vmem>>, vector<1x8x1152xf32>
    %121 = vector.shape_cast %120 : vector<1x8x1152xf32> to vector<8x1152xf32>
    %c5_156 = arith.constant 5 : index
    %c0_157 = arith.constant 0 : index
    %c69_158 = arith.constant 69 : index
    %122 = vector.load %arg1[%c5_156, %c0_157, %c69_158] : memref<8x8x1280xf32, #tpu.memory_space<vmem>>, vector<1x8x1152xf32>
    %123 = vector.shape_cast %122 : vector<1x8x1152xf32> to vector<8x1152xf32>
    %c5_159 = arith.constant 5 : index
    %c0_160 = arith.constant 0 : index
    %c70_161 = arith.constant 70 : index
    %124 = vector.load %arg1[%c5_159, %c0_160, %c70_161] : memref<8x8x1280xf32, #tpu.memory_space<vmem>>, vector<1x8x1152xf32>
    %125 = vector.shape_cast %124 : vector<1x8x1152xf32> to vector<8x1152xf32>
    %126 = tpu.concatenate %109, %111, %113, %115, %117, %119, %121, %123, %125 in 0 : vector<8x1152xf32>, vector<8x1152xf32>, vector<8x1152xf32>, vector<8x1152xf32>, vector<8x1152xf32>, vector<8x1152xf32>, vector<8x1152xf32>, vector<8x1152xf32>, vector<8x1152xf32> -> vector<72x1152xf32>
    %127 = arith.truncf %126 : vector<72x1152xf32> to vector<72x1152xbf16>
    %c0_162 = arith.constant 0 : index
    %c5760 = arith.constant 5760 : index
    %128 = vector.load %arg8[%c0_162, %c5760] : memref<72x9216xbf16, #tpu.memory_space<vmem>>, vector<72x1152xbf16>
    tpu.vector_store %arg8[%c0_162, %c5760], %127 {strides = array<i32>} : memref<72x9216xbf16, #tpu.memory_space<vmem>>, vector<72x1152xbf16>,
    %c6 = arith.constant 6 : index
    %c0_163 = arith.constant 0 : index
    %c0_164 = arith.constant 0 : index
    %129 = vector.load %arg1[%c6, %c0_163, %c0_164] : memref<8x8x1280xf32, #tpu.memory_space<vmem>>, vector<1x8x1152xf32>
    %130 = vector.shape_cast %129 : vector<1x8x1152xf32> to vector<8x1152xf32>
    %c6_165 = arith.constant 6 : index
    %c0_166 = arith.constant 0 : index
    %c1_167 = arith.constant 1 : index
    %131 = vector.load %arg1[%c6_165, %c0_166, %c1_167] : memref<8x8x1280xf32, #tpu.memory_space<vmem>>, vector<1x8x1152xf32>
    %132 = vector.shape_cast %131 : vector<1x8x1152xf32> to vector<8x1152xf32>
    %c6_168 = arith.constant 6 : index
    %c0_169 = arith.constant 0 : index
    %c2_170 = arith.constant 2 : index
    %133 = vector.load %arg1[%c6_168, %c0_169, %c2_170] : memref<8x8x1280xf32, #tpu.memory_space<vmem>>, vector<1x8x1152xf32>
    %134 = vector.shape_cast %133 : vector<1x8x1152xf32> to vector<8x1152xf32>
    %c6_171 = arith.constant 6 : index
    %c0_172 = arith.constant 0 : index
    %c34_173 = arith.constant 34 : index
    %135 = vector.load %arg1[%c6_171, %c0_172, %c34_173] : memref<8x8x1280xf32, #tpu.memory_space<vmem>>, vector<1x8x1152xf32>
    %136 = vector.shape_cast %135 : vector<1x8x1152xf32> to vector<8x1152xf32>
    %c6_174 = arith.constant 6 : index
    %c0_175 = arith.constant 0 : index
    %c35_176 = arith.constant 35 : index
    %137 = vector.load %arg1[%c6_174, %c0_175, %c35_176] : memref<8x8x1280xf32, #tpu.memory_space<vmem>>, vector<1x8x1152xf32>
    %138 = vector.shape_cast %137 : vector<1x8x1152xf32> to vector<8x1152xf32>
    %c6_177 = arith.constant 6 : index
    %c0_178 = arith.constant 0 : index
    %c36_179 = arith.constant 36 : index
    %139 = vector.load %arg1[%c6_177, %c0_178, %c36_179] : memref<8x8x1280xf32, #tpu.memory_space<vmem>>, vector<1x8x1152xf32>
    %140 = vector.shape_cast %139 : vector<1x8x1152xf32> to vector<8x1152xf32>
    %c6_180 = arith.constant 6 : index
    %c0_181 = arith.constant 0 : index
    %c68_182 = arith.constant 68 : index
    %141 = vector.load %arg1[%c6_180, %c0_181, %c68_182] : memref<8x8x1280xf32, #tpu.memory_space<vmem>>, vector<1x8x1152xf32>
    %142 = vector.shape_cast %141 : vector<1x8x1152xf32> to vector<8x1152xf32>
    %c6_183 = arith.constant 6 : index
    %c0_184 = arith.constant 0 : index
    %c69_185 = arith.constant 69 : index
    %143 = vector.load %arg1[%c6_183, %c0_184, %c69_185] : memref<8x8x1280xf32, #tpu.memory_space<vmem>>, vector<1x8x1152xf32>
    %144 = vector.shape_cast %143 : vector<1x8x1152xf32> to vector<8x1152xf32>
    %c6_186 = arith.constant 6 : index
    %c0_187 = arith.constant 0 : index
    %c70_188 = arith.constant 70 : index
    %145 = vector.load %arg1[%c6_186, %c0_187, %c70_188] : memref<8x8x1280xf32, #tpu.memory_space<vmem>>, vector<1x8x1152xf32>
    %146 = vector.shape_cast %145 : vector<1x8x1152xf32> to vector<8x1152xf32>
    %147 = tpu.concatenate %130, %132, %134, %136, %138, %140, %142, %144, %146 in 0 : vector<8x1152xf32>, vector<8x1152xf32>, vector<8x1152xf32>, vector<8x1152xf32>, vector<8x1152xf32>, vector<8x1152xf32>, vector<8x1152xf32>, vector<8x1152xf32>, vector<8x1152xf32> -> vector<72x1152xf32>
    %148 = arith.truncf %147 : vector<72x1152xf32> to vector<72x1152xbf16>
    %c0_189 = arith.constant 0 : index
    %c6912 = arith.constant 6912 : index
    %149 = vector.load %arg8[%c0_189, %c6912] : memref<72x9216xbf16, #tpu.memory_space<vmem>>, vector<72x1152xbf16>
    tpu.vector_store %arg8[%c0_189, %c6912], %148 {strides = array<i32>} : memref<72x9216xbf16, #tpu.memory_space<vmem>>, vector<72x1152xbf16>,
    %c7 = arith.constant 7 : index
    %c0_190 = arith.constant 0 : index
    %c0_191 = arith.constant 0 : index
    %150 = vector.load %arg1[%c7, %c0_190, %c0_191] : memref<8x8x1280xf32, #tpu.memory_space<vmem>>, vector<1x8x1152xf32>
    %151 = vector.shape_cast %150 : vector<1x8x1152xf32> to vector<8x1152xf32>
    %c7_192 = arith.constant 7 : index
    %c0_193 = arith.constant 0 : index
    %c1_194 = arith.constant 1 : index
    %152 = vector.load %arg1[%c7_192, %c0_193, %c1_194] : memref<8x8x1280xf32, #tpu.memory_space<vmem>>, vector<1x8x1152xf32>
    %153 = vector.shape_cast %152 : vector<1x8x1152xf32> to vector<8x1152xf32>
    %c7_195 = arith.constant 7 : index
    %c0_196 = arith.constant 0 : index
    %c2_197 = arith.constant 2 : index
    %154 = vector.load %arg1[%c7_195, %c0_196, %c2_197] : memref<8x8x1280xf32, #tpu.memory_space<vmem>>, vector<1x8x1152xf32>
    %155 = vector.shape_cast %154 : vector<1x8x1152xf32> to vector<8x1152xf32>
    %c7_198 = arith.constant 7 : index
    %c0_199 = arith.constant 0 : index
    %c34_200 = arith.constant 34 : index
    %156 = vector.load %arg1[%c7_198, %c0_199, %c34_200] : memref<8x8x1280xf32, #tpu.memory_space<vmem>>, vector<1x8x1152xf32>
    %157 = vector.shape_cast %156 : vector<1x8x1152xf32> to vector<8x1152xf32>
    %c7_201 = arith.constant 7 : index
    %c0_202 = arith.constant 0 : index
    %c35_203 = arith.constant 35 : index
    %158 = vector.load %arg1[%c7_201, %c0_202, %c35_203] : memref<8x8x1280xf32, #tpu.memory_space<vmem>>, vector<1x8x1152xf32>
    %159 = vector.shape_cast %158 : vector<1x8x1152xf32> to vector<8x1152xf32>
    %c7_204 = arith.constant 7 : index
    %c0_205 = arith.constant 0 : index
    %c36_206 = arith.constant 36 : index
    %160 = vector.load %arg1[%c7_204, %c0_205, %c36_206] : memref<8x8x1280xf32, #tpu.memory_space<vmem>>, vector<1x8x1152xf32>
    %161 = vector.shape_cast %160 : vector<1x8x1152xf32> to vector<8x1152xf32>
    %c7_207 = arith.constant 7 : index
    %c0_208 = arith.constant 0 : index
    %c68_209 = arith.constant 68 : index
    %162 = vector.load %arg1[%c7_207, %c0_208, %c68_209] : memref<8x8x1280xf32, #tpu.memory_space<vmem>>, vector<1x8x1152xf32>
    %163 = vector.shape_cast %162 : vector<1x8x1152xf32> to vector<8x1152xf32>
    %c7_210 = arith.constant 7 : index
    %c0_211 = arith.constant 0 : index
    %c69_212 = arith.constant 69 : index
    %164 = vector.load %arg1[%c7_210, %c0_211, %c69_212] : memref<8x8x1280xf32, #tpu.memory_space<vmem>>, vector<1x8x1152xf32>
    %165 = vector.shape_cast %164 : vector<1x8x1152xf32> to vector<8x1152xf32>
    %c7_213 = arith.constant 7 : index
    %c0_214 = arith.constant 0 : index
    %c70_215 = arith.constant 70 : index
    %166 = vector.load %arg1[%c7_213, %c0_214, %c70_215] : memref<8x8x1280xf32, #tpu.memory_space<vmem>>, vector<1x8x1152xf32>
    %167 = vector.shape_cast %166 : vector<1x8x1152xf32> to vector<8x1152xf32>
    %168 = tpu.concatenate %151, %153, %155, %157, %159, %161, %163, %165, %167 in 0 : vector<8x1152xf32>, vector<8x1152xf32>, vector<8x1152xf32>, vector<8x1152xf32>, vector<8x1152xf32>, vector<8x1152xf32>, vector<8x1152xf32>, vector<8x1152xf32>, vector<8x1152xf32> -> vector<72x1152xf32>
    %169 = arith.truncf %168 : vector<72x1152xf32> to vector<72x1152xbf16>
    %c0_216 = arith.constant 0 : index
    %c8064 = arith.constant 8064 : index
    %170 = vector.load %arg8[%c0_216, %c8064] : memref<72x9216xbf16, #tpu.memory_space<vmem>>, vector<72x1152xbf16>
    tpu.vector_store %arg8[%c0_216, %c8064], %169 {strides = array<i32>} : memref<72x9216xbf16, #tpu.memory_space<vmem>>, vector<72x1152xbf16>,
    %c0_217 = arith.constant 0 : index
    %c0_218 = arith.constant 0 : index
    %171 = vector.load %arg8[%c0_217, %c0_218] : memref<72x9216xbf16, #tpu.memory_space<vmem>>, vector<72x9216xbf16>
    %cst = arith.constant dense<0.000000e+00> : vector<16x9216xf32>
    %172 = tpu.matmul %0, %171, %cst {dimension_numbers = #tpu.dot_dimension_numbers<[1], [0], [0], [1], [0, 0, 1, 1], [], []>} : vector<16x72xbf16>, vector<72x9216xbf16>, vector<16x9216xf32> -> vector<16x9216xf32>
    %173 = vector.broadcast %1 : vector<16x1xf32> to vector<16x9216xf32>
    %174 = arith.addf %172, %173 : vector<16x9216xf32>
    %cst_219 = arith.constant 0.000000e+00 : f32
    %175 = vector.broadcast %cst_219 : f32 to vector<16x9216xf32>
    %176 = arith.maximumf %174, %175 : vector<16x9216xf32>
    %c0_220 = arith.constant 0 : index
    %c0_221 = arith.constant 0 : index
    %177 = vector.load %arg7[%c0_220, %c0_221] : memref<16x9216xf32, #tpu.memory_space<vmem>>, vector<16x9216xf32>
    tpu.vector_store %arg7[%c0_220, %c0_221], %176 {strides = array<i32>} : memref<16x9216xf32, #tpu.memory_space<vmem>>, vector<16x9216xf32>,
    %c0_222 = arith.constant 0 : index
    %c0_223 = arith.constant 0 : index
    %178 = vector.load %arg7[%c0_222, %c0_223] : memref<16x9216xf32, #tpu.memory_space<vmem>>, vector<16x1053xf32>
    %c0_224 = arith.constant 0 : index
    %c1_225 = arith.constant 1 : index
    %179 = vector.load %arg7[%c0_224, %c1_225] : memref<16x9216xf32, #tpu.memory_space<vmem>>, vector<16x1053xf32>
    %c0_226 = arith.constant 0 : index
    %c34_227 = arith.constant 34 : index
    %180 = vector.load %arg7[%c0_226, %c34_227] : memref<16x9216xf32, #tpu.memory_space<vmem>>, vector<16x1053xf32>
    %c0_228 = arith.constant 0 : index
    %c35_229 = arith.constant 35 : index
    %181 = vector.load %arg7[%c0_228, %c35_229] : memref<16x9216xf32, #tpu.memory_space<vmem>>, vector<16x1053xf32>
    %182 = arith.maximumf %178, %179 : vector<16x1053xf32>
    %183 = arith.maximumf %180, %181 : vector<16x1053xf32>
    %184 = arith.maximumf %182, %183 : vector<16x1053xf32>
    %185 = arith.mulf %184, %2 : vector<16x1053xf32>
    %cst_230 = arith.constant dense<0.000000e+00> : vector<1053xf32>
    %186 = vector.multi_reduction <add>, %185, %cst_230 [0] : vector<16x1053xf32> to vector<1053xf32>
    %187 = vector.shape_cast %186 : vector<1053xf32> to vector<1x1053xf32>
    %cst_231 = arith.constant dense<0.000000e+00> : vector<1xf32>
    %188 = vector.multi_reduction <add>, %187, %cst_231 [1] : vector<1x1053xf32> to vector<1xf32>
    %189 = vector.shape_cast %188 : vector<1xf32> to vector<1x1xf32>
    %c0_232 = arith.constant 0 : index
    %c0_233 = arith.constant 0 : index
    %190 = vector.load %arg9[%c0_232, %c0_233] : memref<1x8xf32, #tpu.memory_space<vmem>>, vector<1x1xf32>
    tpu.vector_store %arg9[%c0_232, %c0_233], %189 {strides = array<i32>} : memref<1x8xf32, #tpu.memory_space<vmem>>, vector<1x1xf32>,
    %c0_234 = arith.constant 0 : index
    %c1152_235 = arith.constant 1152 : index
    %191 = vector.load %arg7[%c0_234, %c1152_235] : memref<16x9216xf32, #tpu.memory_space<vmem>>, vector<16x1053xf32>
    %c0_236 = arith.constant 0 : index
    %c1153 = arith.constant 1153 : index
    %192 = vector.load %arg7[%c0_236, %c1153] : memref<16x9216xf32, #tpu.memory_space<vmem>>, vector<16x1053xf32>
    %c0_237 = arith.constant 0 : index
    %c1186 = arith.constant 1186 : index
    %193 = vector.load %arg7[%c0_237, %c1186] : memref<16x9216xf32, #tpu.memory_space<vmem>>, vector<16x1053xf32>
    %c0_238 = arith.constant 0 : index
    %c1187 = arith.constant 1187 : index
    %194 = vector.load %arg7[%c0_238, %c1187] : memref<16x9216xf32, #tpu.memory_space<vmem>>, vector<16x1053xf32>
    %195 = arith.maximumf %191, %192 : vector<16x1053xf32>
    %196 = arith.maximumf %193, %194 : vector<16x1053xf32>
    %197 = arith.maximumf %195, %196 : vector<16x1053xf32>
    %198 = arith.mulf %197, %2 : vector<16x1053xf32>
    %cst_239 = arith.constant dense<0.000000e+00> : vector<1053xf32>
    %199 = vector.multi_reduction <add>, %198, %cst_239 [0] : vector<16x1053xf32> to vector<1053xf32>
    %200 = vector.shape_cast %199 : vector<1053xf32> to vector<1x1053xf32>
    %cst_240 = arith.constant dense<0.000000e+00> : vector<1xf32>
    %201 = vector.multi_reduction <add>, %200, %cst_240 [1] : vector<1x1053xf32> to vector<1xf32>
    %202 = vector.shape_cast %201 : vector<1xf32> to vector<1x1xf32>
    %c0_241 = arith.constant 0 : index
    %c1_242 = arith.constant 1 : index
    %203 = vector.load %arg9[%c0_241, %c1_242] : memref<1x8xf32, #tpu.memory_space<vmem>>, vector<1x1xf32>
    tpu.vector_store %arg9[%c0_241, %c1_242], %202 {strides = array<i32>} : memref<1x8xf32, #tpu.memory_space<vmem>>, vector<1x1xf32>,
    %c0_243 = arith.constant 0 : index
    %c2304_244 = arith.constant 2304 : index
    %204 = vector.load %arg7[%c0_243, %c2304_244] : memref<16x9216xf32, #tpu.memory_space<vmem>>, vector<16x1053xf32>
    %c0_245 = arith.constant 0 : index
    %c2305 = arith.constant 2305 : index
    %205 = vector.load %arg7[%c0_245, %c2305] : memref<16x9216xf32, #tpu.memory_space<vmem>>, vector<16x1053xf32>
    %c0_246 = arith.constant 0 : index
    %c2338 = arith.constant 2338 : index
    %206 = vector.load %arg7[%c0_246, %c2338] : memref<16x9216xf32, #tpu.memory_space<vmem>>, vector<16x1053xf32>
    %c0_247 = arith.constant 0 : index
    %c2339 = arith.constant 2339 : index
    %207 = vector.load %arg7[%c0_247, %c2339] : memref<16x9216xf32, #tpu.memory_space<vmem>>, vector<16x1053xf32>
    %208 = arith.maximumf %204, %205 : vector<16x1053xf32>
    %209 = arith.maximumf %206, %207 : vector<16x1053xf32>
    %210 = arith.maximumf %208, %209 : vector<16x1053xf32>
    %211 = arith.mulf %210, %2 : vector<16x1053xf32>
    %cst_248 = arith.constant dense<0.000000e+00> : vector<1053xf32>
    %212 = vector.multi_reduction <add>, %211, %cst_248 [0] : vector<16x1053xf32> to vector<1053xf32>
    %213 = vector.shape_cast %212 : vector<1053xf32> to vector<1x1053xf32>
    %cst_249 = arith.constant dense<0.000000e+00> : vector<1xf32>
    %214 = vector.multi_reduction <add>, %213, %cst_249 [1] : vector<1x1053xf32> to vector<1xf32>
    %215 = vector.shape_cast %214 : vector<1xf32> to vector<1x1xf32>
    %c0_250 = arith.constant 0 : index
    %c2_251 = arith.constant 2 : index
    %216 = vector.load %arg9[%c0_250, %c2_251] : memref<1x8xf32, #tpu.memory_space<vmem>>, vector<1x1xf32>
    tpu.vector_store %arg9[%c0_250, %c2_251], %215 {strides = array<i32>} : memref<1x8xf32, #tpu.memory_space<vmem>>, vector<1x1xf32>,
    %c0_252 = arith.constant 0 : index
    %c3456_253 = arith.constant 3456 : index
    %217 = vector.load %arg7[%c0_252, %c3456_253] : memref<16x9216xf32, #tpu.memory_space<vmem>>, vector<16x1053xf32>
    %c0_254 = arith.constant 0 : index
    %c3457 = arith.constant 3457 : index
    %218 = vector.load %arg7[%c0_254, %c3457] : memref<16x9216xf32, #tpu.memory_space<vmem>>, vector<16x1053xf32>
    %c0_255 = arith.constant 0 : index
    %c3490 = arith.constant 3490 : index
    %219 = vector.load %arg7[%c0_255, %c3490] : memref<16x9216xf32, #tpu.memory_space<vmem>>, vector<16x1053xf32>
    %c0_256 = arith.constant 0 : index
    %c3491 = arith.constant 3491 : index
    %220 = vector.load %arg7[%c0_256, %c3491] : memref<16x9216xf32, #tpu.memory_space<vmem>>, vector<16x1053xf32>
    %221 = arith.maximumf %217, %218 : vector<16x1053xf32>
    %222 = arith.maximumf %219, %220 : vector<16x1053xf32>
    %223 = arith.maximumf %221, %222 : vector<16x1053xf32>
    %224 = arith.mulf %223, %2 : vector<16x1053xf32>
    %cst_257 = arith.constant dense<0.000000e+00> : vector<1053xf32>
    %225 = vector.multi_reduction <add>, %224, %cst_257 [0] : vector<16x1053xf32> to vector<1053xf32>
    %226 = vector.shape_cast %225 : vector<1053xf32> to vector<1x1053xf32>
    %cst_258 = arith.constant dense<0.000000e+00> : vector<1xf32>
    %227 = vector.multi_reduction <add>, %226, %cst_258 [1] : vector<1x1053xf32> to vector<1xf32>
    %228 = vector.shape_cast %227 : vector<1xf32> to vector<1x1xf32>
    %c0_259 = arith.constant 0 : index
    %c3_260 = arith.constant 3 : index
    %229 = vector.load %arg9[%c0_259, %c3_260] : memref<1x8xf32, #tpu.memory_space<vmem>>, vector<1x1xf32>
    tpu.vector_store %arg9[%c0_259, %c3_260], %228 {strides = array<i32>} : memref<1x8xf32, #tpu.memory_space<vmem>>, vector<1x1xf32>,
    %c0_261 = arith.constant 0 : index
    %c4608_262 = arith.constant 4608 : index
    %230 = vector.load %arg7[%c0_261, %c4608_262] : memref<16x9216xf32, #tpu.memory_space<vmem>>, vector<16x1053xf32>
    %c0_263 = arith.constant 0 : index
    %c4609 = arith.constant 4609 : index
    %231 = vector.load %arg7[%c0_263, %c4609] : memref<16x9216xf32, #tpu.memory_space<vmem>>, vector<16x1053xf32>
    %c0_264 = arith.constant 0 : index
    %c4642 = arith.constant 4642 : index
    %232 = vector.load %arg7[%c0_264, %c4642] : memref<16x9216xf32, #tpu.memory_space<vmem>>, vector<16x1053xf32>
    %c0_265 = arith.constant 0 : index
    %c4643 = arith.constant 4643 : index
    %233 = vector.load %arg7[%c0_265, %c4643] : memref<16x9216xf32, #tpu.memory_space<vmem>>, vector<16x1053xf32>
    %234 = arith.maximumf %230, %231 : vector<16x1053xf32>
    %235 = arith.maximumf %232, %233 : vector<16x1053xf32>
    %236 = arith.maximumf %234, %235 : vector<16x1053xf32>
    %237 = arith.mulf %236, %2 : vector<16x1053xf32>
    %cst_266 = arith.constant dense<0.000000e+00> : vector<1053xf32>
    %238 = vector.multi_reduction <add>, %237, %cst_266 [0] : vector<16x1053xf32> to vector<1053xf32>
    %239 = vector.shape_cast %238 : vector<1053xf32> to vector<1x1053xf32>
    %cst_267 = arith.constant dense<0.000000e+00> : vector<1xf32>
    %240 = vector.multi_reduction <add>, %239, %cst_267 [1] : vector<1x1053xf32> to vector<1xf32>
    %241 = vector.shape_cast %240 : vector<1xf32> to vector<1x1xf32>
    %c0_268 = arith.constant 0 : index
    %c4_269 = arith.constant 4 : index
    %242 = vector.load %arg9[%c0_268, %c4_269] : memref<1x8xf32, #tpu.memory_space<vmem>>, vector<1x1xf32>
    tpu.vector_store %arg9[%c0_268, %c4_269], %241 {strides = array<i32>} : memref<1x8xf32, #tpu.memory_space<vmem>>, vector<1x1xf32>,
    %c0_270 = arith.constant 0 : index
    %c5760_271 = arith.constant 5760 : index
    %243 = vector.load %arg7[%c0_270, %c5760_271] : memref<16x9216xf32, #tpu.memory_space<vmem>>, vector<16x1053xf32>
    %c0_272 = arith.constant 0 : index
    %c5761 = arith.constant 5761 : index
    %244 = vector.load %arg7[%c0_272, %c5761] : memref<16x9216xf32, #tpu.memory_space<vmem>>, vector<16x1053xf32>
    %c0_273 = arith.constant 0 : index
    %c5794 = arith.constant 5794 : index
    %245 = vector.load %arg7[%c0_273, %c5794] : memref<16x9216xf32, #tpu.memory_space<vmem>>, vector<16x1053xf32>
    %c0_274 = arith.constant 0 : index
    %c5795 = arith.constant 5795 : index
    %246 = vector.load %arg7[%c0_274, %c5795] : memref<16x9216xf32, #tpu.memory_space<vmem>>, vector<16x1053xf32>
    %247 = arith.maximumf %243, %244 : vector<16x1053xf32>
    %248 = arith.maximumf %245, %246 : vector<16x1053xf32>
    %249 = arith.maximumf %247, %248 : vector<16x1053xf32>
    %250 = arith.mulf %249, %2 : vector<16x1053xf32>
    %cst_275 = arith.constant dense<0.000000e+00> : vector<1053xf32>
    %251 = vector.multi_reduction <add>, %250, %cst_275 [0] : vector<16x1053xf32> to vector<1053xf32>
    %252 = vector.shape_cast %251 : vector<1053xf32> to vector<1x1053xf32>
    %cst_276 = arith.constant dense<0.000000e+00> : vector<1xf32>
    %253 = vector.multi_reduction <add>, %252, %cst_276 [1] : vector<1x1053xf32> to vector<1xf32>
    %254 = vector.shape_cast %253 : vector<1xf32> to vector<1x1xf32>
    %c0_277 = arith.constant 0 : index
    %c5_278 = arith.constant 5 : index
    %255 = vector.load %arg9[%c0_277, %c5_278] : memref<1x8xf32, #tpu.memory_space<vmem>>, vector<1x1xf32>
    tpu.vector_store %arg9[%c0_277, %c5_278], %254 {strides = array<i32>} : memref<1x8xf32, #tpu.memory_space<vmem>>, vector<1x1xf32>,
    %c0_279 = arith.constant 0 : index
    %c6912_280 = arith.constant 6912 : index
    %256 = vector.load %arg7[%c0_279, %c6912_280] : memref<16x9216xf32, #tpu.memory_space<vmem>>, vector<16x1053xf32>
    %c0_281 = arith.constant 0 : index
    %c6913 = arith.constant 6913 : index
    %257 = vector.load %arg7[%c0_281, %c6913] : memref<16x9216xf32, #tpu.memory_space<vmem>>, vector<16x1053xf32>
    %c0_282 = arith.constant 0 : index
    %c6946 = arith.constant 6946 : index
    %258 = vector.load %arg7[%c0_282, %c6946] : memref<16x9216xf32, #tpu.memory_space<vmem>>, vector<16x1053xf32>
    %c0_283 = arith.constant 0 : index
    %c6947 = arith.constant 6947 : index
    %259 = vector.load %arg7[%c0_283, %c6947] : memref<16x9216xf32, #tpu.memory_space<vmem>>, vector<16x1053xf32>
    %260 = arith.maximumf %256, %257 : vector<16x1053xf32>
    %261 = arith.maximumf %258, %259 : vector<16x1053xf32>
    %262 = arith.maximumf %260, %261 : vector<16x1053xf32>
    %263 = arith.mulf %262, %2 : vector<16x1053xf32>
    %cst_284 = arith.constant dense<0.000000e+00> : vector<1053xf32>
    %264 = vector.multi_reduction <add>, %263, %cst_284 [0] : vector<16x1053xf32> to vector<1053xf32>
    %265 = vector.shape_cast %264 : vector<1053xf32> to vector<1x1053xf32>
    %cst_285 = arith.constant dense<0.000000e+00> : vector<1xf32>
    %266 = vector.multi_reduction <add>, %265, %cst_285 [1] : vector<1x1053xf32> to vector<1xf32>
    %267 = vector.shape_cast %266 : vector<1xf32> to vector<1x1xf32>
    %c0_286 = arith.constant 0 : index
    %c6_287 = arith.constant 6 : index
    %268 = vector.load %arg9[%c0_286, %c6_287] : memref<1x8xf32, #tpu.memory_space<vmem>>, vector<1x1xf32>
    tpu.vector_store %arg9[%c0_286, %c6_287], %267 {strides = array<i32>} : memref<1x8xf32, #tpu.memory_space<vmem>>, vector<1x1xf32>,
    %c0_288 = arith.constant 0 : index
    %c8064_289 = arith.constant 8064 : index
    %269 = vector.load %arg7[%c0_288, %c8064_289] : memref<16x9216xf32, #tpu.memory_space<vmem>>, vector<16x1053xf32>
    %c0_290 = arith.constant 0 : index
    %c8065 = arith.constant 8065 : index
    %270 = vector.load %arg7[%c0_290, %c8065] : memref<16x9216xf32, #tpu.memory_space<vmem>>, vector<16x1053xf32>
    %c0_291 = arith.constant 0 : index
    %c8098 = arith.constant 8098 : index
    %271 = vector.load %arg7[%c0_291, %c8098] : memref<16x9216xf32, #tpu.memory_space<vmem>>, vector<16x1053xf32>
    %c0_292 = arith.constant 0 : index
    %c8099 = arith.constant 8099 : index
    %272 = vector.load %arg7[%c0_292, %c8099] : memref<16x9216xf32, #tpu.memory_space<vmem>>, vector<16x1053xf32>
    %273 = arith.maximumf %269, %270 : vector<16x1053xf32>
    %274 = arith.maximumf %271, %272 : vector<16x1053xf32>
    %275 = arith.maximumf %273, %274 : vector<16x1053xf32>
    %276 = arith.mulf %275, %2 : vector<16x1053xf32>
    %cst_293 = arith.constant dense<0.000000e+00> : vector<1053xf32>
    %277 = vector.multi_reduction <add>, %276, %cst_293 [0] : vector<16x1053xf32> to vector<1053xf32>
    %278 = vector.shape_cast %277 : vector<1053xf32> to vector<1x1053xf32>
    %cst_294 = arith.constant dense<0.000000e+00> : vector<1xf32>
    %279 = vector.multi_reduction <add>, %278, %cst_294 [1] : vector<1x1053xf32> to vector<1xf32>
    %280 = vector.shape_cast %279 : vector<1xf32> to vector<1x1xf32>
    %c0_295 = arith.constant 0 : index
    %c7_296 = arith.constant 7 : index
    %281 = vector.load %arg9[%c0_295, %c7_296] : memref<1x8xf32, #tpu.memory_space<vmem>>, vector<1x1xf32>
    tpu.vector_store %arg9[%c0_295, %c7_296], %280 {strides = array<i32>} : memref<1x8xf32, #tpu.memory_space<vmem>>, vector<1x1xf32>,
    %c0_297 = arith.constant 0 : index
    %c0_298 = arith.constant 0 : index
    %282 = vector.load %arg9[%c0_297, %c0_298] : memref<1x8xf32, #tpu.memory_space<vmem>>, vector<1x8xf32>
    %c0_299 = arith.constant 0 : index
    %c0_300 = arith.constant 0 : index
    %283 = vector.load %arg5[%c0_299, %c0_300] : memref<1x1xf32, #tpu.memory_space<vmem>>, vector<1x1xf32>
    %284 = vector.broadcast %283 : vector<1x1xf32> to vector<1x8xf32>
    %285 = arith.addf %282, %284 : vector<1x8xf32>
    %cst_301 = arith.constant 0.000000e+00 : f32
    %286 = vector.broadcast %cst_301 : f32 to vector<1x8xf32>
    %287 = arith.subf %286, %285 : vector<1x8xf32>
    %288 = math.exp %287 : vector<1x8xf32>
    %cst_302 = arith.constant 1.000000e+00 : f32
    %289 = vector.broadcast %cst_302 : f32 to vector<1x8xf32>
    %290 = arith.addf %289, %288 : vector<1x8xf32>
    %291 = tpu.reciprocal %290 {approx = true} : vector<1x8xf32> -> vector<1x8xf32>
    %292 = vector.shape_cast %291 : vector<1x8xf32> to vector<1x1x8xf32>
    %c0_303 = arith.constant 0 : index
    %c0_304 = arith.constant 0 : index
    %c0_305 = arith.constant 0 : index
    %293 = vector.load %arg6[%c0_303, %c0_304, %c0_305] : memref<1x1x8xf32, #tpu.memory_space<vmem>>, vector<1x1x8xf32>
    tpu.vector_store %arg6[%c0_303, %c0_304, %c0_305], %292 {strides = array<i32>} : memref<1x1x8xf32, #tpu.memory_space<vmem>>, vector<1x1x8xf32>,
    return
  }
  func.func @transform_0(%arg0: i32) -> (i32, i32, i32) {
    %c0_i32 = arith.constant 0 : i32
    %c0_i32_0 = arith.constant 0 : i32
    %c0_i32_1 = arith.constant 0 : i32
    return %arg0, %c0_i32, %c0_i32_0 : i32, i32, i32
  }
  func.func @transform_1(%arg0: i32) -> (i32, i32) {
    %c0_i32 = arith.constant 0 : i32
    %c0_i32_0 = arith.constant 0 : i32
    %c0_i32_1 = arith.constant 0 : i32
    return %c0_i32, %c0_i32_0 : i32, i32
  }
  func.func @transform_2(%arg0: i32) -> (i32, i32) {
    %c0_i32 = arith.constant 0 : i32
    %c0_i32_0 = arith.constant 0 : i32
    %c0_i32_1 = arith.constant 0 : i32
    return %c0_i32, %c0_i32_0 : i32, i32
  }
  func.func @transform_3(%arg0: i32) -> (i32, i32) {
    %c0_i32 = arith.constant 0 : i32
    %c0_i32_0 = arith.constant 0 : i32
    %c0_i32_1 = arith.constant 0 : i32
    return %c0_i32, %c0_i32_0 : i32, i32
  }
  func.func @transform_4(%arg0: i32) -> (i32, i32) {
    %c0_i32 = arith.constant 0 : i32
    %c0_i32_0 = arith.constant 0 : i32
    %c0_i32_1 = arith.constant 0 : i32
    return %c0_i32, %c0_i32_0 : i32, i32
  }
  func.func @transform_5(%arg0: i32) -> (i32, i32, i32) {
    %c0_i32 = arith.constant 0 : i32
    %c0_i32_0 = arith.constant 0 : i32
    %c0_i32_1 = arith.constant 0 : i32
    return %arg0, %c0_i32, %c0_i32_0 : i32, i32, i32
  }
}

</mosaic_0001>

<bundles_post_ra>
// kernel: tpu_custom_call.1
= control target key start
LH: loop header
LB: loop body
LE: loop exit
PB: predicated region body
PF: predicated region fallthrough
CT: control target
= control target key end

     0   :  { %s21038_s0 = inlined_call_operand.hbm [shape: f32[16,8,1280], index: 0, kind: input, shape index: {}]   ;;  %s21039_s1 = inlined_call_operand.vmem [shape: bf16[16,72], index: 1, kind: input, shape index: {}]   ;;  %s21040_s2 = inlined_call_operand.vmem [shape: f32[16,1], index: 2, kind: input, shape index: {}]   ;;  %s21041_s3 = inlined_call_operand.hbm [shape: f32[16,1053], index: 3, kind: input, shape index: {}]   ;;  %s21042_s4 = inlined_call_operand.<no memory space> [shape: f32[1,1], index: 4, kind: input, shape index: {}]   ;;  %s21043_s5 = inlined_call_operand.hbm [shape: f32[2,1,8], index: 5, kind: output, shape index: {}]  }
   0x1   :  { %v10_v0 = vstv %s21042_s4 }
   0x2   :  { %11 = vst [vmem:[#allocation5] sm:$0x1] %v10_v0 }
   0x3   :  { %12 = vsyncpa [#allocation7], 0 }
   0x4   :  { %14 = vsyncpa [#allocation7 + $0x1], 0 }
   0x5   :  { %15 = vsyncpa [#allocation10], 0 }
   0x6   :  { %16 = vsyncpa [#allocation8], 0 }
   0x7   :  { %18 = vsyncpa [#allocation8 + $0x1], 0  ;;  %s15410_s20 = smov 0   ;;  %s15412_s21 = smov 0  }
   0x8   :  { %s15414_s22 = smov 0   ;;  %s15416_s23 = smov 0  }
   0x9 LB: > { %s15431_s4 = sadd.s32 4294967295, %s15359_s23   ;;  %s12072_s24 = sadd.s32 4294967294, %s15359_s23   ;;  %s15359_s23 = sphi %s15416_s23, %s21772_s23   ;;  %s15355_s22 = sphi %s15414_s22, %s21771_s22   ;;  %s15351_s21 = sphi %s15412_s21, %s21770_s21   ;;  %s15347_s20 = sphi %s15410_s20, %s21769_s20  }
   0xa   : > { %p44_p0 = scmp.ne.s32.totalorder %s15351_s21, %s15347_s20  ;;  %p21044_p1 = scmp.eq.s32.totalorder %s15431_s4, 0 }
   0xb   : > { %p158_p3 = scmp.eq.s32.totalorder %s12072_s24, 1  ;;  %p12073_p5 = scmp.ge.s32.totalorder %s15359_s23, 1 }
   0xc   : > { %p15440_p4 = por %p21044_p1, %p44_p0  ;;  %p165_p7 = scmp.lt.s32.totalorder %s15359_s23, 3 }
   0xd   : > { %p15445_p6 = por %p158_p3, %p44_p0  ;;  %s15361_s28 = smov [#allocation9]  }
   0xe   : > { %s21243_s25 = scalar_select %p15440_p4, 1, 0 }
   0xf   : > { %s21244_s26 = scalar_select %p15445_p6, 1, 0 }
  0x10   : > { %p15450_p8 = pnand %p12073_p5, %p165_p7  ;;  %s183_s29 = sshll.u32 %s15361_s28, 4  ;;  %s15454_s29 = int_to_ptr.vmem [resolvable:$true] %s183_s29 }
  0x11   : > { %s15466_s6 = sadd.s32 1, %s15359_s23   ;;  %s31_s7 = sadd.s32 1, %s15355_s22 }
  0x12   : > { %s21245_s27 = scalar_select %p15450_p8, 1, 0 }
  0x13   : > { %p13318_p9 = pneg %p15450_p8  ;;  %s28_s8 = ssub.s32 %s15359_s23, %s15466_s6 }
  0x14   : > { %s15231_s11 = scalar_lea.hbm %s21041_s3, 2304 }
  0x15   : > { %p15461_p11 = pnand %p13318_p9, %p21044_p1  ;;  %p15232_p12 = scmp.ne.s32.totalorder %s21041_s3, %s15231_s11 }
  0x16   : > { %p15238_p5 = scmp.lt.u32.totalorder %s15231_s11, %s21041_s3 }
  0x17   : > { %p15233_p13 = pneg %p15461_p11 }
  0x19   : > { %p15234_p0 = pnand %p15233_p13, %p15232_p12 }
  0x1b   : > { %p15235_p3 = pneg %p15234_p0 }
  0x1d   : > { %p15240_p7 = pnand %p15238_p5, %p15235_p3 }
  0x1f   : > { %15243 = shalt.err (!%p15240_p7)
}
  0x20   : > { %s15244_s16 = scalar_lea.vmem %s15454_s29, 2304  ;;  %p15252_p2 = scmp.lt.s32.totalorder %s15454_s29, %s15454_s29 }
  0x21   : > { %p15245_p9 = scmp.ne.s32.totalorder %s15454_s29, %s15244_s16  ;;  %p15253_p6 = scmp.lt.s32.totalorder %s15244_s16, %s15244_s16 }
  0x23   : > { %p15247_p10 = pnand %p15245_p9, %p15233_p13  ;;  %p15254_p4 = por %p15253_p6, %p15252_p2 }
  0x25   : > { %p15248_p1 = pneg %p15247_p10 }
  0x27   : > { %p15255_p8 = pnand %p15254_p4, %p15248_p1 }
  0x29   : > { %15258 = shalt.err (!%p15255_p8)
}
  0x2a   : > { %s15362_s17 = smov 1152   ;;  %s15363_s18 = smov 72  }
  0x2b   : > { %13321 = dma.hbm_to_vmem [thread:$0]  (!%p15461_p11), %s21041_s3, 2304, %s15454_s29, [#allocation10], %s15362_s17, %s15362_s17, %s15363_s18  }
  0x2c   : > { %p29_p2 = scmp.eq.s32.totalorder %s28_s8, 0  ;;  %p38_p1 = scmp.ne.s32.totalorder %s15355_s22, %s15351_s21 }
  0x2d   : > { %p39_p4 = scmp.eq.s32.totalorder %s15359_s23, 0  ;;  %p13331_p6 = scmp.lt.s32.totalorder %s15359_s23, 2 }
  0x2e   : > { %s15497_s28 = scalar_select %p29_p2, %s15355_s22, %s31_s7  }
  0x2f   : > { %p40_p8 = por %p39_p4, %p38_p1  ;;  %p21247_p10 = scmp.eq.s32.totalorder %s15431_s4, 1 }
  0x30   : > { %s200_s10 = sand.u32 1, %s15355_s22   ;;  %s13308_s11 = smul.u32 10240, %s15359_s23 }
  0x31   : > { %p15501_p12 = por %p21247_p10, %p38_p1  ;;  %s13307_s12 = smul.u32 640, %s200_s10 }
  0x32   : > { %s15510_s14 = scalar_lea.hbm %s21038_s0, %s13308_s11  ;;  %p15512_p11 = pnand %p13331_p6, %p40_p8 }
  0x33   : > { %s204_s7 = scalar_lea.vmem [#allocation6], %s13307_s12  ;;  %s15518_s15 = scalar_lea.sflag [#allocation7], %s200_s10 }
  0x34   : > { %s212_s8 = sshll.u32 %s204_s7, 4  ;;  %s15259_s16 = scalar_lea.hbm %s15510_s14, 10240  ;;  %s15516_s8 = int_to_ptr.vmem [resolvable:$true] %s212_s8 }
  0x35   : > { %p15260_p13 = scmp.ne.s32.totalorder %s15510_s14, %s15259_s16  ;;  %p15261_p0 = pneg %p15512_p11 }
  0x36   : > { %s15264_s19 = scalar_lea.hbm %s21038_s0, 20480  ;;  %p15265_p7 = scmp.lt.u32.totalorder %s15510_s14, %s21038_s0 }
  0x37   : > { %p15262_p3 = pnand %p15261_p0, %p15260_p13  ;;  %p15266_p9 = scmp.lt.u32.totalorder %s15264_s19, %s15259_s16 }
  0x38   : > { %p15268_p1 = scmp.lt.u32.totalorder %s15259_s16, %s15510_s14 }
  0x39   : > { %p15263_p5 = pneg %p15262_p3  ;;  %p15267_p2 = por %p15266_p9, %p15265_p7 }
  0x3b   : > { %p15269_p4 = por %p15268_p1, %p15267_p2 }
  0x3d   : > { %p15270_p6 = pnand %p15269_p4, %p15263_p5 }
  0x3f   : > { %15273 = shalt.err (!%p15270_p6)
}
  0x40   : > { %s15274_s10 = scalar_lea.vmem %s15516_s8, 10240  ;;  %s15364_s12 = smov [#allocation6]  }
  0x41   : > { %p15275_p8 = scmp.ne.s32.totalorder %s15516_s8, %s15274_s10  ;;  %s15279_s30 = sshll.u32 %s15364_s12, 4  ;;  %s15280_s30 = int_to_ptr.vmem [resolvable:$false] %s15279_s30 }
  0x42   : > { %s15281_s13 = scalar_lea.vmem %s15280_s30, 20480  ;;  %p15282_p3 = scmp.lt.s32.totalorder %s15516_s8, %s15280_s30 }
  0x43   : > { %p15277_p10 = pnand %p15275_p8, %p15261_p0  ;;  %p15283_p7 = scmp.lt.s32.totalorder %s15281_s13, %s15274_s10 }
  0x45   : > { %p15278_p13 = pneg %p15277_p10  ;;  %p15284_p9 = por %p15283_p7, %p15282_p3 }
  0x47   : > { %p15285_p2 = pnand %p15284_p9, %p15278_p13 }
  0x49   : > { %15288 = shalt.err (!%p15285_p2)
}
  0x4a   : > { %s15365_s7 = smov 1280   ;;  %s15366_s16 = smov 80  }
  0x4b   : > { %13325 = dma.hbm_to_vmem [thread:$0]  (!%p15512_p11), %s15510_s14, 10240, %s15516_s8, %s15518_s15, %s15365_s7, %s15365_s7, %s15366_s16  }
  0x4c   : > { %p21250_p0 = scmp.ne.s32.totalorder %s21245_s27, 0 }
  0x4e   : > { %224 = sbr.rel (%p21250_p0) target bundleno = 2986 (0xbaa), region = 40 }
  0x55   : > { %s15549_s17 = sand.u32 1, %s15351_s21   ;;  %p21251_p5 = scmp.ne.s32.totalorder %s21243_s25, 0 }
  0x56   : > { %s13309_s18 = smul.u32 640, %s15549_s17  ;;  %s227_s19 = scalar_lea.sflag [#allocation7], %s15549_s17 }
  0x58   : > { %s15553_s24 = scalar_lea.vmem [#allocation6], %s13309_s18 }
  0x59   : > { %15334 = dma.done.wait (%p21251_p5), %s227_s19, 10240  }
  0x5a   : > { %15336 = vsyncadd (%p21251_p5), %s227_s19, 4294957056  ;;  %p21252_p11 = scmp.eq.s32.totalorder %s15431_s4, 0 }
  0x5c   : > { %15338 = dma.done.wait (%p21252_p11), [#allocation10], 2304   ;;  %p21253_p1 = pmov %p21252_p11 }
  0x5d   : > { %v288_v1 = vld [vmem:[%s15553_s24 + $0x20] sm:$0xff]  ;;  %v289_v2 = vld [vmem:[%s15553_s24 + $0x28] sm:$0xff]  ;;  %v290_v6 = vld [vmem:[%s15553_s24 + $0x30] sm:$0xff]  ;;  %s15367_s25 = smov 127   ;;  %s15368_s27 = smov 126   ;;  %v21047_v22 = vmov 0  }
  0x5e   : > { %15340 = vsyncadd (%p21253_p1), [#allocation10], 4294964992  ;;  %v15566_v3 = vld [vmem:[%s15553_s24] sm:$0xff]  ;;  %v13390_v4 = vpack.i.bf16 %v289_v2, %v288_v1  ;;  %v15569_v5 = vld [vmem:[%s15553_s24 + $0x8] sm:$0xff]  ;;  %v12949_v16 = vpack.c.bf16 %v289_v2, %v288_v1  ;;  %s15369_s14 = smov 94   ;;  %s15370_s29 = smov 93   ;;  %7551 = vmatprep.mubr.bf16.mxu0 %v21047_v22  ;;  %7594 = vmatprep.mubr.bf16.mxu1 %v21047_v22 }
  0x5f   : > { %v291_v7 = vld [vmem:[%s15553_s24 + $0x38] sm:$0xff]  ;;  %v13380_v8 = vpack.i.bf16 %v15569_v5, %v15566_v3  ;;  %v15576_v9 = vld [vmem:[%s15553_s24 + $0x10] sm:$0xff]  ;;  %v15588_v13 = vld [vmem:[%s15553_s24 + $0x40] sm:$0xff]  ;;  %s15371_s8 = smov 92   ;;  %s15372_s15 = smov 60   ;;  %14981 = vset.pattern.permute.xlu1 %v21047_v22  ;;  %14980 = vset.pattern.permute.xlu0 %v21047_v22  ;;  %vm324_vm0 = vcmask 1039360  }
  0x60   : > { %v15579_v10 = vld [vmem:[%s15553_s24 + $0x18] sm:$0xff]  ;;  %13391 = vrot.lane.b32.xlu1 %v13390_v4, %s15367_s25  ;;  %v15582_v11 = vpack.i.bf16 %v291_v7, %v290_v6  ;;  %v293_v14 = vld [vmem:[%s15553_s24 + $0x48] sm:$0xff]  ;;  %v12950_v17 = vpack.c.bf16 %v291_v7, %v290_v6  ;;  %879 = vst [vmem:[#allocation3 + $0x10] sm:$0xff] %v12949_v16  ;;  %s15373_s11 = smov 59   ;;  %s15374_s10 = smov 58   ;;  %v12128_v18 = vld [vmem:[%s15553_s24 + $0x60] sm:$0xff]  ;;  %v12951_v23 = vpack.c.bf16 %v15588_v13, %v15588_v13 }
  0x61   : > { %13381 = vrot.lane.b32.xlu0 %v13380_v8, %s15367_s25  ;;  %v13385_v12 = vpack.i.bf16 %v15579_v10, %v15576_v9  ;;  %v13400_v15 = vpack.i.bf16 %v293_v14, %v15588_v13  ;;  %v12129_v19 = vld [vmem:[%s15553_s24 + $0x68] sm:$0xff]  ;;  %v12126_v20 = vld [vmem:[%s15553_s24 + $0x50] sm:$0xff]  ;;  %v12127_v21 = vld [vmem:[%s15553_s24 + $0x58] sm:$0xff]  ;;  %vm363_vm1 = vcmask 1031168   ;;  %vm402_vm2 = vcmask 769024   ;;  %s11984_s19 = scalar_lea.sflag [#allocation8], %s15549_s17 }
  0x62   : > { %880 = vst [vmem:[#allocation3 + $0x18] sm:$0xff] %v12950_v17  ;;  %v12992_v24 = vpack.c.bf16 %v12127_v21, %v12126_v20  ;;  %v15646_v25 = vpack.i.bf16 %v12129_v19, %v12128_v18  ;;  %v12132_v26 = vld [vmem:[%s15553_s24 + $0x80] sm:$0xff]  ;;  %881 = vst [vmem:[#allocation3 + $0x20] sm:$0xf] %v12951_v23  ;;  %v15651_v27 = vpack.i.bf16 %v12127_v21, %v12126_v20  ;;  %v12133_v28 = vld [vmem:[%s15553_s24 + $0x88] sm:$0xff]  ;;  %vm441_vm3 = vcmask 760832  }
  0x63   : > { %v12130_v29 = vld [vmem:[%s15553_s24 + $0x70] sm:$0xff]  ;;  %v12131_v30 = vld [vmem:[%s15553_s24 + $0x78] sm:$0xff]  ;;  %v12993_v31 = vpack.c.bf16 %v12129_v19, %v12128_v18  ;;  %v15658_v33 = vpack.i.bf16 %v12133_v28, %v12132_v26  ;;  %v12995_v37 = vpack.c.bf16 %v12133_v28, %v12132_v26  ;;  %vm480_vm4 = vcmask 752640  }
  0x64   : > { %13396 = vrot.lane.b32.xlu1 %v15582_v11, %s15367_s25  ;;  %1508 = vst [vmem:[#allocation3 + $0x24] sm:$0xff] %v12992_v24  ;;  %v12994_v32 = vpack.c.bf16 %v12131_v30, %v12130_v29  ;;  %v15662_v34 = vpack.i.bf16 %v12131_v30, %v12130_v29  ;;  %v12134_v35 = vld [vmem:[%s15553_s24 + $0x90] sm:$0xff]  ;;  %v12135_v36 = vld [vmem:[%s15553_s24 + $0x98] sm:$0xff]  ;;  %vm519_vm5 = vcmask 490496   ;;  %vm558_vm6 = vcmask 482304  }
  0x65   : > { %13386 = vrot.lane.b32.xlu0 %v13385_v12, %s15367_s25  ;;  %1509 = vst [vmem:[#allocation3 + $0x2c] sm:$0xff] %v12993_v31  ;;  %v12996_v38 = vpack.c.bf16 %v12134_v35, %v12134_v35  ;;  %1511 = vst [vmem:[#allocation3 + $0x3c] sm:$0xff] %v12995_v37  ;;  %v15670_v39 = vpack.i.bf16 %v12135_v36, %v12134_v35  ;;  %vm597_vm7 = vcmask 474112   ;;  %vm7302_vm8 = vcmask 1043456  }
  0x66   : > { %1510 = vst [vmem:[#allocation3 + $0x34] sm:$0xff] %v12994_v32  ;;  %vm7298_vm9 = vcmask 588800   ;;  %vm9659_vm10 = vcmask 236544   ;;  %vm9680_vm11 = vcmask 0   ;;  %vm10006_vm12 = vcmask 8200  }
  0x67   : > { %1512 = vst [vmem:[#allocation3 + $0x44] sm:$0xf] %v12996_v38  ;;  %vm10332_vm13 = vcmask 16400   ;;  %vm10658_vm14 = vcmask 24600   ;;  %vm10984_vm15 = vcmask 32800  }
  0x68   : > { %13406 = vrot.lane.b32.xlu1 %v13380_v8, %s15368_s27 }
  0x69   : > { %13401 = vrot.lane.b32.xlu0 %v13400_v15, %s15367_s25 }
  0x6c   : > { %13416 = vrot.lane.b32.xlu1 %v13390_v4, %s15368_s27 }
  0x6d   : > { %13411 = vrot.lane.b32.xlu0 %v13385_v12, %s15368_s27 }
  0x70   : > { %13426 = vrot.lane.b32.xlu1 %v13400_v15, %s15368_s27 }
  0x71   : > { %13421 = vrot.lane.b32.xlu0 %v15582_v11, %s15368_s27 }
  0x74   : > { %13436 = vrot.lane.b32.xlu1 %v13385_v12, %s15369_s14 }
  0x75   : > { %13431 = vrot.lane.b32.xlu0 %v13380_v8, %s15369_s14 }
  0x78   : > { %13446 = vrot.lane.b32.xlu1 %v15582_v11, %s15369_s14 }
  0x79   : > { %13441 = vrot.lane.b32.xlu0 %v13390_v4, %s15369_s14 }
  0x7c   : > { %13456 = vrot.lane.b32.xlu1 %v13380_v8, %s15370_s29 }
  0x7d   : > { %13451 = vrot.lane.b32.xlu0 %v13400_v15, %s15369_s14 }
  0x80   : > { %13466 = vrot.lane.b32.xlu1 %v13390_v4, %s15370_s29 }
  0x81   : > { %13461 = vrot.lane.b32.xlu0 %v13385_v12, %s15370_s29 }
  0x84   : > { %13476 = vrot.lane.b32.xlu1 %v13400_v15, %s15370_s29 }
  0x85   : > { %13471 = vrot.lane.b32.xlu0 %v15582_v11, %s15370_s29 }
  0x88   : > { %13486 = vrot.lane.b32.xlu1 %v13385_v12, %s15371_s8 }
  0x89   : > { %13481 = vrot.lane.b32.xlu0 %v13380_v8, %s15371_s8 }
  0x8c   : > { %13496 = vrot.lane.b32.xlu1 %v15582_v11, %s15371_s8 }
  0x8d   : > { %13491 = vrot.lane.b32.xlu0 %v13390_v4, %s15371_s8 }
  0x90   : > { %13506 = vrot.lane.b32.xlu1 %v13380_v8, %s15372_s15 }
  0x91   : > { %13501 = vrot.lane.b32.xlu0 %v13400_v15, %s15371_s8 }
  0x94   : > { %13516 = vrot.lane.b32.xlu1 %v13390_v4, %s15372_s15 }
  0x95   : > { %13511 = vrot.lane.b32.xlu0 %v13385_v12, %s15372_s15 }
  0x98   : > { %13526 = vrot.lane.b32.xlu1 %v13400_v15, %s15372_s15 }
  0x99   : > { %13521 = vrot.lane.b32.xlu0 %v15582_v11, %s15372_s15 }
  0x9c   : > { %13536 = vrot.lane.b32.xlu1 %v13385_v12, %s15373_s11 }
  0x9d   : > { %13531 = vrot.lane.b32.xlu0 %v13380_v8, %s15373_s11 }
  0xa0   : > { %13546 = vrot.lane.b32.xlu1 %v15582_v11, %s15373_s11 }
  0xa1   : > { %13541 = vrot.lane.b32.xlu0 %v13390_v4, %s15373_s11 }
  0xa4   : > { %13556 = vrot.lane.b32.xlu1 %v13380_v8, %s15374_s10 }
  0xa5   : > { %13551 = vrot.lane.b32.xlu0 %v13400_v15, %s15373_s11 }
  0xa8   : > { %13566 = vrot.lane.b32.xlu1 %v13390_v4, %s15374_s10 }
  0xa9   : > { %13561 = vrot.lane.b32.xlu0 %v13385_v12, %s15374_s10 }
  0xac   : > { %13576 = vrot.lane.b32.xlu1 %v13400_v15, %s15374_s10 }
  0xad   : > { %13571 = vrot.lane.b32.xlu0 %v15582_v11, %s15374_s10 }
  0xb0   : > { %13586 = vrot.lane.b32.xlu1 %v15646_v25, %s15367_s25 }
  0xb1   : > { %13581 = vrot.lane.b32.xlu0 %v15651_v27, %s15367_s25 }
  0xb4   : > { %13596 = vrot.lane.b32.xlu1 %v15658_v33, %s15367_s25 }
  0xb5   : > { %13591 = vrot.lane.b32.xlu0 %v15662_v34, %s15367_s25 }
  0xb8   : > { %13606 = vrot.lane.b32.xlu1 %v15651_v27, %s15368_s27 }
  0xb9   : > { %13601 = vrot.lane.b32.xlu0 %v15670_v39, %s15367_s25 }
  0xbc   : > { %13616 = vrot.lane.b32.xlu1 %v15662_v34, %s15368_s27 }
  0xbd   : > { %13611 = vrot.lane.b32.xlu0 %v15646_v25, %s15368_s27 }
  0xc0   : > { %13626 = vrot.lane.b32.xlu1 %v15670_v39, %s15368_s27 }
  0xc1   : > { %13621 = vrot.lane.b32.xlu0 %v15658_v33, %s15368_s27 }
  0xc4   : > { %13636 = vrot.lane.b32.xlu1 %v15646_v25, %s15369_s14 }
  0xc5   : > { %13631 = vrot.lane.b32.xlu0 %v15651_v27, %s15369_s14 }
  0xc8   : > { %13646 = vrot.lane.b32.xlu1 %v15658_v33, %s15369_s14 }
  0xc9   : > { %13641 = vrot.lane.b32.xlu0 %v15662_v34, %s15369_s14 }
  0xcc   : > { %13656 = vrot.lane.b32.xlu1 %v15651_v27, %s15370_s29 }
  0xcd   : > { %13651 = vrot.lane.b32.xlu0 %v15670_v39, %s15369_s14 }
  0xd0   : > { %13666 = vrot.lane.b32.xlu1 %v15662_v34, %s15370_s29 }
  0xd1   : > { %13661 = vrot.lane.b32.xlu0 %v15646_v25, %s15370_s29 }
  0xd2   : > { %v13392_v40 = vpop.permute.xlu1 %13391 }
  0xd3   : > { %v13394_v41 = vunpack.i.h.bf16 %v13392_v40  ;;  %v13382_v42 = vpop.permute.xlu0 %13381  ;;  %v13393_v43 = vunpack.i.l.bf16 %v13392_v40 }
  0xd4   : > { %13676 = vrot.lane.b32.xlu1 %v15670_v39, %s15370_s29  ;;  %v13384_v44 = vunpack.i.h.bf16 %v13382_v42  ;;  %v13383_v45 = vunpack.i.l.bf16 %v13382_v42 }
  0xd5   : > { %13671 = vrot.lane.b32.xlu0 %v15658_v33, %s15370_s29  ;;  %v329_v47 = vsel %vm324_vm0, %v13393_v43, %v13394_v41 }
  0xd6   : > { %v13397_v46 = vpop.permute.xlu1 %13396  ;;  %v325_v53 = vsel %vm324_vm0, %v13383_v45, %v13384_v44 }
  0xd7   : > { %v13399_v48 = vunpack.i.h.bf16 %v13397_v46  ;;  %v13398_v49 = vunpack.i.l.bf16 %v13397_v46  ;;  %v13387_v50 = vpop.permute.xlu0 %13386  ;;  %v15101_v6 = vpack.c.bf16 %v325_v53, %v15566_v3 }
  0xd8   : > { %v13389_v51 = vunpack.i.h.bf16 %v13387_v50  ;;  %v13388_v52 = vunpack.i.l.bf16 %v13387_v50  ;;  %13686 = vrot.lane.b32.xlu1 %v15646_v25, %s15371_s8 }
  0xd9   : > { %v330_v54 = vsel %vm324_vm0, %v13394_v41, %v13398_v49  ;;  %13681 = vrot.lane.b32.xlu0 %v15651_v27, %s15371_s8  ;;  %v331_v60 = vsel %vm324_vm0, %v13398_v49, %v13399_v48 }
  0xda   : > { %v15711_v55 = vpack.c.bf16 %v330_v54, %v329_v47  ;;  %v328_v56 = vsel %vm324_vm0, %v13389_v51, %v13393_v43  ;;  %v326_v57 = vsel %vm324_vm0, %v13384_v44, %v13388_v52  ;;  %v327_v58 = vsel %vm324_vm0, %v13388_v52, %v13389_v51  ;;  %v13407_v59 = vpop.permute.xlu1 %13406 }
  0xdb   : > { %v13402_v61 = vpop.permute.xlu0 %13401  ;;  %v13409_v62 = vunpack.i.h.bf16 %v13407_v59  ;;  %v13408_v63 = vunpack.i.l.bf16 %v13407_v59  ;;  %v15099_v2 = vpack.c.bf16 %v326_v57, %v15569_v5  ;;  %v15100_v4 = vpack.c.bf16 %v328_v56, %v15579_v10 }
  0xdc   : > { %v13404_v0 = vunpack.i.h.bf16 %v13402_v61  ;;  %v13403_v1 = vunpack.i.l.bf16 %v13402_v61  ;;  %13696 = vrot.lane.b32.xlu1 %v15658_v33, %s15371_s8  ;;  %v15102_v12 = vpack.c.bf16 %v327_v58, %v15576_v9 }
  0xdd   : > { %13691 = vrot.lane.b32.xlu0 %v15662_v34, %s15371_s8  ;;  %7519 = vmatprep.subr.bf16.mxu0 %v15099_v2  ;;  %v364_v5 = vsel %vm363_vm1, %v13408_v63, %v13409_v62 }
  0xde   : > { %v332_v7 = vsel %vm324_vm0, %v13399_v48, %v13403_v1  ;;  %v333_v8 = vsel %vm324_vm0, %v13403_v1, %v13404_v0  ;;  %v13417_v11 = vpop.permute.xlu1 %13416  ;;  %7562 = vmatprep.subr.bf16.mxu1 %v15100_v4  ;;  %7520 = vmatpush1.bf16.msra.mxu0 %v15101_v6 }
  0xdf   : > { %v15727_v13 = vpack.c.bf16 %v332_v7, %v331_v60  ;;  %v12956_v14 = vpack.c.bf16 %v333_v8, %v333_v8  ;;  %v13418_v15 = vunpack.i.l.bf16 %v13417_v11  ;;  %v13412_v16 = vpop.permute.xlu0 %13411  ;;  %v13419_v17 = vunpack.i.h.bf16 %v13417_v11  ;;  %7563 = vmatpush1.bf16.msra.mxu1 %v15102_v12 }
  0xe0   : > { %v13414_v10 = vunpack.i.h.bf16 %v13412_v16  ;;  %v13413_v18 = vunpack.i.l.bf16 %v13412_v16  ;;  %13706 = vrot.lane.b32.xlu1 %v15651_v27, %s15372_s15 }
  0xe1   : > { %886 = vst [vmem:[#allocation3 + $0x140] sm:$0xf] %v12956_v14  ;;  %13701 = vrot.lane.b32.xlu0 %v15670_v39, %s15371_s8  ;;  %v15742_v26 = vsel %vm363_vm1, %v13418_v15, %v13419_v17 }
  0xe2   : > { %v15735_v3 = vsel %vm363_vm1, %v13414_v10, %v13418_v15  ;;  %v365_v9 = vsel %vm363_vm1, %v13409_v62, %v13413_v18  ;;  %v15739_v19 = vsel %vm363_vm1, %v13413_v18, %v13414_v10  ;;  %v13427_v20 = vpop.permute.xlu1 %13426 }
  0xe3   : > { %v13429_v21 = vunpack.i.h.bf16 %v13427_v20  ;;  %v13428_v23 = vunpack.i.l.bf16 %v13427_v20  ;;  %v13422_v24 = vpop.permute.xlu0 %13421 }
  0xe4   : > { %v13424_v28 = vunpack.i.h.bf16 %v13422_v24  ;;  %v13423_v29 = vunpack.i.l.bf16 %v13422_v24  ;;  %13716 = vrot.lane.b32.xlu1 %v15662_v34, %s15372_s15 }
  0xe5   : > { %v372_v30 = vsel %vm363_vm1, %v13428_v23, %v13429_v21  ;;  %13711 = vrot.lane.b32.xlu0 %v15646_v25, %s15372_s15 }
  0xe6   : > { %v12961_v31 = vpack.c.bf16 %v372_v30, %v372_v30  ;;  %v15750_v32 = vsel %vm363_vm1, %v13424_v28, %v13428_v23  ;;  %v15753_v35 = vsel %vm363_vm1, %v13419_v17, %v13423_v29  ;;  %v15756_v36 = vsel %vm363_vm1, %v13423_v29, %v13424_v28  ;;  %v13437_v37 = vpop.permute.xlu1 %13436  ;;  %v15812_v29 = vld [vmem:[%s15553_s24 + $0xb0] sm:$0xff]  ;;  %v15815_v30 = vld [vmem:[%s15553_s24 + $0xb8] sm:$0xff] }
  0xe7   : > { %v13438_v38 = vunpack.i.l.bf16 %v13437_v37  ;;  %v13432_v40 = vpop.permute.xlu0 %13431  ;;  %v13439_v41 = vunpack.i.h.bf16 %v13437_v37 }
  0xe8   : > { %891 = vst [vmem:[#allocation3 + $0x260] sm:$0xf] %v12961_v31  ;;  %v13434_v42 = vunpack.i.h.bf16 %v13432_v40  ;;  %v13433_v43 = vunpack.i.l.bf16 %v13432_v40  ;;  %13726 = vrot.lane.b32.xlu1 %v15670_v39, %s15372_s15 }
  0xe9   : > { %13721 = vrot.lane.b32.xlu0 %v15658_v33, %s15372_s15  ;;  %v405_v50 = vsel %vm402_vm2, %v13438_v38, %v13439_v41 }
  0xea   : > { %v404_v44 = vsel %vm402_vm2, %v13434_v42, %v13438_v38  ;;  %v403_v45 = vsel %vm402_vm2, %v13433_v43, %v13434_v42  ;;  %v13447_v46 = vpop.permute.xlu1 %13446  ;;  %v15106_v4 = vpack.c.bf16 %v405_v50, %v15739_v19  ;;  %v12182_v42 = vld [vmem:[%s15553_s24 + $0xa8] sm:$0xff]  ;;  %v15842_v50 = vld [vmem:[%s15553_s24 + $0xd8] sm:$0xff] }
  0xeb   : > { %v13449_v47 = vunpack.i.h.bf16 %v13447_v46  ;;  %v13448_v48 = vunpack.i.l.bf16 %v13447_v46  ;;  %v13442_v49 = vpop.permute.xlu0 %13441  ;;  %v15103_v53 = vpack.c.bf16 %v404_v44, %v365_v9  ;;  %v15104_v54 = vpack.c.bf16 %v403_v45, %v364_v5 }
  0xec   : > { %v13444_v51 = vunpack.i.h.bf16 %v13442_v49  ;;  %v13443_v52 = vunpack.i.l.bf16 %v13442_v49  ;;  %13736 = vrot.lane.b32.xlu1 %v15646_v25, %s15373_s11  ;;  %v15839_v49 = vld [vmem:[%s15553_s24 + $0xd0] sm:$0xff] }
  0xed   : > { %13731 = vrot.lane.b32.xlu0 %v15651_v27, %s15373_s11  ;;  %v15777_v60 = vsel %vm402_vm2, %v13448_v48, %v13449_v47  ;;  %7521 = vmatprep.subr.bf16.mxu0 %v15103_v53 }
  0xee   : > { %v15770_v56 = vsel %vm402_vm2, %v13444_v51, %v13448_v48  ;;  %v406_v57 = vsel %vm402_vm2, %v13439_v41, %v13443_v52  ;;  %v15774_v58 = vsel %vm402_vm2, %v13443_v52, %v13444_v51  ;;  %v13457_v59 = vpop.permute.xlu1 %13456  ;;  %7522 = vmatpush1.bf16.msra.mxu0 %v15104_v54  ;;  %v12181_v41 = vld [vmem:[%s15553_s24 + $0xa0] sm:$0xff] }
  0xef   : > { %v13452_v61 = vpop.permute.xlu0 %13451  ;;  %v13459_v62 = vunpack.i.h.bf16 %v13457_v59  ;;  %v13458_v63 = vunpack.i.l.bf16 %v13457_v59  ;;  %v15105_v2 = vpack.c.bf16 %v406_v57, %v15735_v3  ;;  %v15836_v48 = vpack.i.bf16 %v12182_v42, %v12181_v41  ;;  %v15850_v57 = vld [vmem:[%s15553_s24 + $0xc8] sm:$0xff] }
  0xf0   : > { %v13454_v0 = vunpack.i.h.bf16 %v13452_v61  ;;  %v13453_v1 = vunpack.i.l.bf16 %v13452_v61  ;;  %13746 = vrot.lane.b32.xlu1 %v15658_v33, %s15373_s11  ;;  %v13037_v51 = vpack.c.bf16 %v12182_v42, %v12181_v41 }
  0xf1   : > { %13741 = vrot.lane.b32.xlu0 %v15662_v34, %s15373_s11  ;;  %7564 = vmatprep.subr.bf16.mxu1 %v15105_v2  ;;  %v15790_v15 = vsel %vm441_vm3, %v13458_v63, %v13459_v62 }
  0xf2   : > { %v15786_v6 = vsel %vm402_vm2, %v13449_v47, %v13453_v1  ;;  %v411_v7 = vsel %vm402_vm2, %v13453_v1, %v13454_v0  ;;  %v13467_v8 = vpop.permute.xlu1 %13466  ;;  %7565 = vmatpush1.bf16.msra.mxu1 %v15106_v4  ;;  %v15832_v47 = vpack.i.bf16 %v15815_v30, %v15812_v29  ;;  %2139 = vst [vmem:[#allocation3 + $0x48] sm:$0xff] %v13037_v51 }
  0xf3   : > { %v12966_v11 = vpack.c.bf16 %v411_v7, %v411_v7  ;;  %v13468_v12 = vunpack.i.l.bf16 %v13467_v8  ;;  %v13462_v14 = vpop.permute.xlu0 %13461  ;;  %v13469_v16 = vunpack.i.h.bf16 %v13467_v8  ;;  %v15857_v1 = vpack.i.bf16 %v15842_v50, %v15839_v49 }
  0xf4   : > { %v13464_v5 = vunpack.i.h.bf16 %v13462_v14  ;;  %v13463_v17 = vunpack.i.l.bf16 %v13462_v14  ;;  %13756 = vrot.lane.b32.xlu1 %v15651_v27, %s15374_s10 }
  0xf5   : > { %896 = vst [vmem:[#allocation3 + $0x380] sm:$0xf] %v12966_v11  ;;  %13751 = vrot.lane.b32.xlu0 %v15670_v39, %s15373_s11  ;;  %v15804_v21 = vsel %vm441_vm3, %v13468_v12, %v13469_v16 }
  0xf6   : > { %v15797_v10 = vsel %vm441_vm3, %v13464_v5, %v13468_v12  ;;  %v443_v18 = vsel %vm441_vm3, %v13459_v62, %v13463_v17  ;;  %v15801_v3 = vsel %vm441_vm3, %v13463_v17, %v13464_v5  ;;  %v13477_v9 = vpop.permute.xlu1 %13476  ;;  %v12190_v5 = vld [vmem:[%s15553_s24 + $0xe8] sm:$0xff] }
  0xf7   : > { %v13479_v19 = vunpack.i.h.bf16 %v13477_v9  ;;  %v13478_v20 = vunpack.i.l.bf16 %v13477_v9  ;;  %v13472_v27 = vpop.permute.xlu0 %13471 }
  0xf8   : > { %v13474_v23 = vunpack.i.h.bf16 %v13472_v27  ;;  %v13473_v24 = vunpack.i.l.bf16 %v13472_v27  ;;  %13766 = vrot.lane.b32.xlu1 %v15662_v34, %s15374_s10  ;;  %v13038_v27 = vpack.c.bf16 %v15815_v30, %v15812_v29 }
  0xf9   : > { %v450_v28 = vsel %vm441_vm3, %v13478_v20, %v13479_v19  ;;  %13761 = vrot.lane.b32.xlu0 %v15646_v25, %s15374_s10 }
  0xfa   : > { %v12971_v31 = vpack.c.bf16 %v450_v28, %v450_v28  ;;  %v15818_v37 = vsel %vm441_vm3, %v13474_v23, %v13478_v20  ;;  %v15821_v38 = vsel %vm441_vm3, %v13469_v16, %v13473_v24  ;;  %v15824_v40 = vsel %vm441_vm3, %v13473_v24, %v13474_v23  ;;  %v13487_v34 = vpop.permute.xlu1 %13486  ;;  %v15874_v16 = vld [vmem:[%s15553_s24 + $0xe0] sm:$0xff]  ;;  %2140 = vst [vmem:[#allocation3 + $0x50] sm:$0xff] %v13038_v27 }
  0xfb   : > { %v13488_v25 = vunpack.i.l.bf16 %v13487_v34  ;;  %v13482_v43 = vpop.permute.xlu0 %13481  ;;  %v13489_v44 = vunpack.i.h.bf16 %v13487_v34  ;;  %v15887_v23 = vpack.i.bf16 %v12190_v5, %v15874_v16 }
  0xfc   : > { %901 = vst [vmem:[#allocation3 + $0x4a0] sm:$0xf] %v12971_v31  ;;  %v13484_v45 = vunpack.i.h.bf16 %v13482_v43  ;;  %v13483_v46 = vunpack.i.l.bf16 %v13482_v43  ;;  %13776 = vrot.lane.b32.xlu1 %v15670_v39, %s15374_s10  ;;  %v15847_v39 = vld [vmem:[%s15553_s24 + $0xc0] sm:$0xff] }
  0xfd   : > { %13771 = vrot.lane.b32.xlu0 %v15658_v33, %s15374_s10  ;;  %v483_v62 = vsel %vm480_vm4, %v13488_v25, %v13489_v44  ;;  %v15863_v2 = vpack.i.bf16 %v15850_v57, %v15847_v39 }
  0xfe   : > { %v482_v52 = vsel %vm480_vm4, %v13484_v45, %v13488_v25  ;;  %v481_v53 = vsel %vm480_vm4, %v13483_v46, %v13484_v45  ;;  %v13497_v54 = vpop.permute.xlu1 %13496  ;;  %v15110_v28 = vpack.c.bf16 %v483_v62, %v15801_v3  ;;  %v13039_v62 = vpack.c.bf16 %v15850_v57, %v15847_v39 }
  0xff   : > { %v13499_v59 = vunpack.i.h.bf16 %v13497_v54  ;;  %v13498_v61 = vunpack.i.l.bf16 %v13497_v54  ;;  %v13492_v33 = vpop.permute.xlu0 %13491  ;;  %v15107_v4 = vpack.c.bf16 %v482_v52, %v443_v18  ;;  %v15108_v7 = vpack.c.bf16 %v481_v53, %v15790_v15 }
 0x100   : > { %v13494_v63 = vunpack.i.h.bf16 %v13492_v33  ;;  %v13493_v0 = vunpack.i.l.bf16 %v13492_v33  ;;  %13786 = vrot.lane.b32.xlu1 %v15832_v47, %s15367_s25  ;;  %2141 = vst [vmem:[#allocation3 + $0x58] sm:$0xff] %v13039_v62 }
 0x101   : > { %13781 = vrot.lane.b32.xlu0 %v15836_v48, %s15367_s25  ;;  %v15878_v17 = vsel %vm480_vm4, %v13498_v61, %v13499_v59  ;;  %7523 = vmatprep.subr.bf16.mxu0 %v15107_v4 }
 0x102   : > { %v15867_v8 = vsel %vm480_vm4, %v13494_v63, %v13498_v61  ;;  %v484_v11 = vsel %vm480_vm4, %v13489_v44, %v13493_v0  ;;  %v15871_v12 = vsel %vm480_vm4, %v13493_v0, %v13494_v63  ;;  %v13507_v14 = vpop.permute.xlu1 %13506  ;;  %7524 = vmatpush1.bf16.msra.mxu0 %v15108_v7 }
 0x103   : > { %v13509_v9 = vunpack.i.h.bf16 %v13507_v14  ;;  %v13502_v19 = vpop.permute.xlu0 %13501  ;;  %v13508_v18 = vunpack.i.l.bf16 %v13507_v14  ;;  %v15109_v24 = vpack.c.bf16 %v484_v11, %v15797_v10 }
 0x104   : > { %v13504_v15 = vunpack.i.h.bf16 %v13502_v19  ;;  %v13503_v20 = vunpack.i.l.bf16 %v13502_v19  ;;  %13796 = vrot.lane.b32.xlu1 %v15857_v1, %s15367_s25 }
 0x105   : > { %13791 = vrot.lane.b32.xlu0 %v15863_v2, %s15367_s25  ;;  %7566 = vmatprep.subr.bf16.mxu1 %v15109_v24  ;;  %v15896_v25 = vsel %vm519_vm5, %v13508_v18, %v13509_v9  ;;  %v13040_v18 = vpack.c.bf16 %v15842_v50, %v15839_v49 }
 0x106   : > { %v15892_v31 = vsel %vm480_vm4, %v13499_v59, %v13503_v20  ;;  %v489_v34 = vsel %vm480_vm4, %v13503_v20, %v13504_v15  ;;  %v13517_v41 = vpop.permute.xlu1 %13516  ;;  %7567 = vmatpush1.bf16.msra.mxu1 %v15110_v28 }
 0x107   : > { %v12976_v42 = vpack.c.bf16 %v489_v34, %v489_v34  ;;  %v13518_v29 = vunpack.i.l.bf16 %v13517_v41  ;;  %v13512_v30 = vpop.permute.xlu0 %13511  ;;  %v13519_v43 = vunpack.i.h.bf16 %v13517_v41  ;;  %2142 = vst [vmem:[#allocation3 + $0x60] sm:$0xff] %v13040_v18 }
 0x108   : > { %v13514_v44 = vunpack.i.h.bf16 %v13512_v30  ;;  %v13513_v45 = vunpack.i.l.bf16 %v13512_v30  ;;  %13806 = vrot.lane.b32.xlu1 %v15836_v48, %s15368_s27 }
 0x109   : > { %906 = vst [vmem:[#allocation3 + $0x5c0] sm:$0xf] %v12976_v42  ;;  %13801 = vrot.lane.b32.xlu0 %v15887_v23, %s15367_s25  ;;  %v15910_v59 = vsel %vm519_vm5, %v13518_v29, %v13519_v43 }
 0x10a   : > { %v15903_v10 = vsel %vm519_vm5, %v13514_v44, %v13518_v29  ;;  %v521_v3 = vsel %vm519_vm5, %v13509_v9, %v13513_v45  ;;  %v15907_v46 = vsel %vm519_vm5, %v13513_v45, %v13514_v44  ;;  %v13527_v51 = vpop.permute.xlu1 %13526 }
 0x10b   : > { %v13529_v52 = vunpack.i.h.bf16 %v13527_v51  ;;  %v13528_v53 = vunpack.i.l.bf16 %v13527_v51  ;;  %v13522_v54 = vpop.permute.xlu0 %13521 }
 0x10c   : > { %v13524_v61 = vunpack.i.h.bf16 %v13522_v54  ;;  %v13523_v33 = vunpack.i.l.bf16 %v13522_v54  ;;  %13816 = vrot.lane.b32.xlu1 %v15863_v2, %s15368_s27 }
 0x10d   : > { %v528_v63 = vsel %vm519_vm5, %v13528_v53, %v13529_v52  ;;  %13811 = vrot.lane.b32.xlu0 %v15832_v47, %s15368_s27 }
 0x10e   : > { %v12981_v0 = vpack.c.bf16 %v528_v63, %v528_v63  ;;  %v15920_v4 = vsel %vm519_vm5, %v13524_v61, %v13528_v53  ;;  %v15923_v7 = vsel %vm519_vm5, %v13519_v43, %v13523_v33  ;;  %v15926_v11 = vsel %vm519_vm5, %v13523_v33, %v13524_v61  ;;  %v13537_v14 = vpop.permute.xlu1 %13536 }
 0x10f   : > { %v13538_v5 = vunpack.i.l.bf16 %v13537_v14  ;;  %v13532_v39 = vpop.permute.xlu0 %13531  ;;  %v13539_v57 = vunpack.i.h.bf16 %v13537_v14 }
 0x110   : > { %911 = vst [vmem:[#allocation3 + $0x6e0] sm:$0xf] %v12981_v0  ;;  %v13534_v9 = vunpack.i.h.bf16 %v13532_v39  ;;  %v13533_v19 = vunpack.i.l.bf16 %v13532_v39  ;;  %13826 = vrot.lane.b32.xlu1 %v15887_v23, %s15368_s27 }
 0x111   : > { %13821 = vrot.lane.b32.xlu0 %v15857_v1, %s15368_s27  ;;  %v561_v41 = vsel %vm558_vm6, %v13538_v5, %v13539_v57 }
 0x112   : > { %v560_v15 = vsel %vm558_vm6, %v13534_v9, %v13538_v5  ;;  %v559_v20 = vsel %vm558_vm6, %v13533_v19, %v13534_v9  ;;  %v13547_v27 = vpop.permute.xlu1 %13546  ;;  %v15114_v33 = vpack.c.bf16 %v561_v41, %v15907_v46 }
 0x113   : > { %v13549_v24 = vunpack.i.h.bf16 %v13547_v27  ;;  %v13548_v28 = vunpack.i.l.bf16 %v13547_v27  ;;  %v13542_v34 = vpop.permute.xlu0 %13541  ;;  %v15111_v49 = vpack.c.bf16 %v560_v15, %v521_v3  ;;  %v15112_v50 = vpack.c.bf16 %v559_v20, %v15896_v25 }
 0x114   : > { %v13544_v42 = vunpack.i.h.bf16 %v13542_v34  ;;  %v13543_v29 = vunpack.i.l.bf16 %v13542_v34  ;;  %13836 = vrot.lane.b32.xlu1 %v15832_v47, %s15369_s14 }
 0x115   : > { %13831 = vrot.lane.b32.xlu0 %v15836_v48, %s15369_s14  ;;  %v15950_v51 = vsel %vm558_vm6, %v13548_v28, %v13549_v24  ;;  %7525 = vmatprep.subr.bf16.mxu0 %v15111_v49 }
 0x116   : > { %v15943_v30 = vsel %vm558_vm6, %v13544_v42, %v13548_v28  ;;  %v562_v43 = vsel %vm558_vm6, %v13539_v57, %v13543_v29  ;;  %v15947_v44 = vsel %vm558_vm6, %v13543_v29, %v13544_v42  ;;  %v13557_v45 = vpop.permute.xlu1 %13556  ;;  %7526 = vmatpush1.bf16.msra.mxu0 %v15112_v50  ;;  %v15027_v29 = vld [vmem:[#allocation3 + $0x10] sm:$0xff] }
 0x117   : > { %v13552_v52 = vpop.permute.xlu0 %13551  ;;  %v13559_v53 = vunpack.i.h.bf16 %v13557_v45  ;;  %v13558_v54 = vunpack.i.l.bf16 %v13557_v45  ;;  %v15113_v25 = vpack.c.bf16 %v562_v43, %v15903_v10  ;;  %v12517_v49 = vcombine.high %v15027_v29, %v15711_v55 }
 0x118   : > { %v13554_v61 = vunpack.i.h.bf16 %v13552_v52  ;;  %v13553_v3 = vunpack.i.l.bf16 %v13552_v52  ;;  %13846 = vrot.lane.b32.xlu1 %v15857_v1, %s15369_s14 }
 0x119   : > { %13841 = vrot.lane.b32.xlu0 %v15863_v2, %s15369_s14  ;;  %7568 = vmatprep.subr.bf16.mxu1 %v15113_v25  ;;  %v598_v57 = vsel %vm597_vm7, %v13558_v54, %v13559_v53 }
 0x11a   : > { %v15959_v62 = vsel %vm558_vm6, %v13549_v24, %v13553_v3  ;;  %v567_v63 = vsel %vm558_vm6, %v13553_v3, %v13554_v61  ;;  %v13567_v0 = vpop.permute.xlu1 %13566  ;;  %7569 = vmatpush1.bf16.msra.mxu1 %v15114_v33  ;;  %v15117_v52 = vpack.c.bf16 %v598_v57, %v598_v57 }
 0x11b   : > { %v12986_v14 = vpack.c.bf16 %v567_v63, %v567_v63  ;;  %v13568_v5 = vunpack.i.l.bf16 %v13567_v0  ;;  %v13562_v39 = vpop.permute.xlu0 %13561  ;;  %v13569_v9 = vunpack.i.h.bf16 %v13567_v0 }
 0x11c   : > { %v13564_v19 = vunpack.i.h.bf16 %v13562_v39  ;;  %v13563_v18 = vunpack.i.l.bf16 %v13562_v39  ;;  %13856 = vrot.lane.b32.xlu1 %v15836_v48, %s15370_s29  ;;  %v7304_v39 = vsel %vm7302_vm8, %v15117_v52, 0 }
 0x11d   : > { %916 = vst [vmem:[#allocation3 + $0x800] sm:$0xf] %v12986_v14  ;;  %13851 = vrot.lane.b32.xlu0 %v15887_v23, %s15369_s14  ;;  %v15971_v34 = vsel %vm597_vm7, %v13568_v5, %v13569_v9 }
 0x11e   : > { %v601_v10 = vsel %vm597_vm7, %v13564_v19, %v13568_v5  ;;  %v599_v46 = vsel %vm597_vm7, %v13559_v53, %v13563_v18  ;;  %v600_v15 = vsel %vm597_vm7, %v13563_v18, %v13564_v19  ;;  %v13577_v20 = vpop.permute.xlu1 %13576 }
 0x11f   : > { %v13579_v27 = vunpack.i.h.bf16 %v13577_v20  ;;  %v13578_v24 = vunpack.i.l.bf16 %v13577_v20  ;;  %v13572_v28 = vpop.permute.xlu0 %13571  ;;  %v15115_v43 = vpack.c.bf16 %v599_v46, %v599_v46  ;;  %v15116_v45 = vpack.c.bf16 %v601_v10, %v601_v10  ;;  %v15028_v20 = vld [vmem:[#allocation3 + $0x18] sm:$0xff] }
 0x120   : > { %v13574_v41 = vunpack.i.h.bf16 %v13572_v28  ;;  %v13573_v42 = vunpack.i.l.bf16 %v13572_v28  ;;  %13866 = vrot.lane.b32.xlu1 %v15863_v2, %s15370_s29  ;;  %v15118_v57 = vpack.c.bf16 %v600_v15, %v600_v15  ;;  %v12519_v15 = vcombine.high %v15028_v20, %v15727_v13 }
 0x121   : > { %v606_v50 = vsel %vm597_vm7, %v13578_v24, %v13579_v27  ;;  %13861 = vrot.lane.b32.xlu0 %v15832_v47, %s15370_s29  ;;  %12872 = vmatprep.subr.msk.bf16.mxu0 %vm7302_vm8, %v15115_v43  ;;  %v12518_v52 = vcombine.low %v15028_v20, %v15727_v13 }
 0x122   : > { %v12991_v53 = vpack.c.bf16 %v606_v50, %v606_v50  ;;  %v15980_v54 = vsel %vm597_vm7, %v13574_v41, %v13578_v24  ;;  %v15983_v61 = vsel %vm597_vm7, %v13569_v9, %v13573_v42  ;;  %v15986_v3 = vsel %vm597_vm7, %v13573_v42, %v13574_v41  ;;  %v13587_v25 = vpop.permute.xlu1 %13586  ;;  %12874 = vmatprep.subr.msk.bf16.mxu1 %vm7302_vm8, %v15116_v45  ;;  %v15998_v9 = vld [vmem:[%s21039_s1] sm:$0xff]  }
 0x123   : > { %v13589_v33 = vunpack.i.h.bf16 %v13587_v25  ;;  %v13588_v63 = vunpack.i.l.bf16 %v13587_v25  ;;  %v13582_v0 = vpop.permute.xlu0 %13581  ;;  %7528 = vmatpush1.bf16.msra.mxu0 %v7304_v39  ;;  %v7310_v46 = vsel %vm7302_vm8, %v15118_v57, 0  ;;  %v12516_v42 = vcombine.low %v15027_v29, %v15711_v55 }
 0x124   : > { %921 = vst [vmem:[#allocation3 + $0x920] sm:$0xf] %v12991_v53  ;;  %v13584_v14 = vunpack.i.h.bf16 %v13582_v0  ;;  %v13583_v5 = vunpack.i.l.bf16 %v13582_v0  ;;  %13876 = vrot.lane.b32.xlu1 %v15887_v23, %s15370_s29  ;;  %7605 = vmatprep.subr.bf16.mxu0 %v12517_v49  ;;  %v15119_v55 = vpack.c.bf16 %v15774_v58, %v15742_v26  ;;  %v15120_v29 = vpack.c.bf16 %v15770_v56, %v15753_v35 }
 0x125   : > { %13871 = vrot.lane.b32.xlu0 %v15857_v1, %s15370_s29  ;;  %7571 = vmatpush1.bf16.msra.mxu1 %v7310_v46  ;;  %v965_v50 = vsel %vm324_vm0, %v13588_v63, %v13589_v33  ;;  %v15121_v49 = vpack.c.bf16 %v15786_v6, %v15750_v32 }
 0x126   : > { %v964_v19 = vsel %vm324_vm0, %v13584_v14, %v13588_v63  ;;  %v963_v18 = vsel %vm324_vm0, %v13583_v5, %v13584_v14  ;;  %v13597_v10 = vpop.permute.xlu1 %13596  ;;  %7648 = vmatprep.subr.bf16.mxu1 %v12519_v15  ;;  %12873 = vmatmul.mubr.msk.bf16.vlgmr.msra.gmra.mrb[0].mxu0 %vm7298_vm9, %v15998_v9  ;;  %v15123_v5 = vpack.c.bf16 %v15867_v8, %v15821_v38 }
 0x127   : > { %v12997_v27 = vpack.c.bf16 %v964_v19, %v963_v18  ;;  %v13599_v24 = vunpack.i.h.bf16 %v13597_v10  ;;  %v13598_v28 = vunpack.i.l.bf16 %v13597_v10  ;;  %v13592_v41 = vpop.permute.xlu0 %13591  ;;  %7606 = vmatpush1.bf16.msra.mxu0 %v12516_v42  ;;  %7637 = vmatprep.mubr.bf16.mxu0 %v21047_v22  ;;  %v15124_v18 = vpack.c.bf16 %v15892_v31, %v15818_v37 }
 0x128   : > { %v13594_v43 = vunpack.i.h.bf16 %v13592_v41  ;;  %v13593_v45 = vunpack.i.l.bf16 %v13592_v41  ;;  %13886 = vrot.lane.b32.xlu1 %v15832_v47, %s15371_s8  ;;  %12875 = vmatmul.mubr.msk.bf16.vlgmr.msra.gmra.mrb[0].mxu1 %vm7298_vm9, %v15998_v9  ;;  %v15126_v37 = vpack.c.bf16 %v15878_v17, %v15824_v40  ;;  %v15129_v31 = vpack.c.bf16 %v15950_v51, %v15926_v11 }
 0x129   : > { %1513 = vst [vmem:[#allocation3 + $0x144] sm:$0xff] %v12997_v27  ;;  %13881 = vrot.lane.b32.xlu0 %v15836_v48, %s15371_s8  ;;  %v969_v0 = vsel %vm324_vm0, %v13598_v28, %v13599_v24  ;;  %7649 = vmatpush1.bf16.msra.mxu1 %v12518_v52  ;;  %v15130_v40 = vpack.c.bf16 %v15959_v62, %v15920_v4 }
 0x12a   : > { %v968_v53 = vsel %vm324_vm0, %v13594_v43, %v13598_v28  ;;  %v966_v13 = vsel %vm324_vm0, %v13589_v33, %v13593_v45  ;;  %v967_v25 = vsel %vm324_vm0, %v13593_v45, %v13594_v43  ;;  %v13607_v63 = vpop.permute.xlu1 %13606  ;;  %7607 = vmatprep.subr.bf16.mxu0 %v15120_v29  ;;  %7650 = vmatprep.subr.bf16.mxu1 %v15121_v49 }
 0x12b   : > { %v12998_v26 = vpack.c.bf16 %v966_v13, %v965_v50  ;;  %v12999_v58 = vpack.c.bf16 %v968_v53, %v967_v25  ;;  %v13602_v14 = vpop.permute.xlu0 %13601  ;;  %v13609_v35 = vunpack.i.h.bf16 %v13607_v63  ;;  %v13608_v32 = vunpack.i.l.bf16 %v13607_v63  ;;  %7608 = vmatpush1.bf16.msra.mxu0 %v15119_v55  ;;  %7680 = vmatprep.mubr.bf16.mxu1 %v21047_v22  ;;  %v5343_v13 = vld [vmem:[#allocation3 + $0x20] sm:$0xff] }
 0x12c   : > { %v13604_v56 = vunpack.i.h.bf16 %v13602_v14  ;;  %v13603_v6 = vunpack.i.l.bf16 %v13602_v14  ;;  %13896 = vrot.lane.b32.xlu1 %v15857_v1, %s15371_s8  ;;  %v15122_v33 = vpack.c.bf16 %v15777_v60, %v15756_v36  ;;  %v15125_v60 = vpack.c.bf16 %v15871_v12, %v15804_v21  ;;  %7609 = vmatprep.subr.bf16.mxu0 %v15123_v5 }
 0x12d   : > { %1514 = vst [vmem:[#allocation3 + $0x14c] sm:$0xff] %v12998_v26  ;;  %1515 = vst [vmem:[#allocation3 + $0x154] sm:$0xff] %v12999_v58  ;;  %13891 = vrot.lane.b32.xlu0 %v15863_v2, %s15371_s8  ;;  %v1001_v38 = vsel %vm363_vm1, %v13608_v32, %v13609_v35  ;;  %v15127_v21 = vpack.c.bf16 %v15947_v44, %v15910_v59  ;;  %v15128_v12 = vpack.c.bf16 %v15943_v30, %v15923_v7 }
 0x12e   : > { %v970_v39 = vsel %vm324_vm0, %v13599_v24, %v13603_v6  ;;  %v971_v57 = vsel %vm324_vm0, %v13603_v6, %v13604_v56  ;;  %v13617_v19 = vpop.permute.xlu1 %13616  ;;  %7651 = vmatpush1.bf16.msra.mxu1 %v15122_v33  ;;  %v15131_v51 = vpack.c.bf16 %v15983_v61, %v15983_v61  ;;  %v15132_v62 = vpack.c.bf16 %v15980_v54, %v15980_v54 }
 0x12f   : > { %v13000_v10 = vpack.c.bf16 %v970_v39, %v969_v0  ;;  %v13001_v46 = vpack.c.bf16 %v971_v57, %v971_v57  ;;  %v13618_v20 = vunpack.i.l.bf16 %v13617_v19  ;;  %v13612_v36 = vpop.permute.xlu0 %13611  ;;  %v13619_v8 = vunpack.i.h.bf16 %v13617_v19  ;;  %7652 = vmatprep.subr.bf16.mxu1 %v15124_v18  ;;  %7610 = vmatpush1.bf16.msra.mxu0 %v15125_v60 }
 0x130   : > { %v13614_v15 = vunpack.i.h.bf16 %v13612_v36  ;;  %v13613_v27 = vunpack.i.l.bf16 %v13612_v36  ;;  %13906 = vrot.lane.b32.xlu1 %v15836_v48, %s15372_s15  ;;  %7611 = vmatprep.subr.bf16.mxu0 %v15128_v12  ;;  %v15133_v45 = vpack.c.bf16 %v15971_v34, %v15971_v34  ;;  %v15134_v52 = vpack.c.bf16 %v15986_v3, %v15986_v3  ;;  %v5379_v25 = vld [vmem:[#allocation3 + $0x140] sm:$0xff]  ;;  %v5344_v34 = vld [vmem:[#allocation3 + $0x28] sm:$0xff] }
 0x131   : > { %1516 = vst [vmem:[#allocation3 + $0x15c] sm:$0xff] %v13000_v10  ;;  %1517 = vst [vmem:[#allocation3 + $0x164] sm:$0xf] %v13001_v46  ;;  %13901 = vrot.lane.b32.xlu0 %v15887_v23, %s15371_s8  ;;  %v1005_v7 = vsel %vm363_vm1, %v13618_v20, %v13619_v8  ;;  %v12521_v56 = vcombine.high %v5343_v13, %v5379_v25 }
 0x132   : > { %v1004_v24 = vsel %vm363_vm1, %v13614_v15, %v13618_v20  ;;  %v1002_v28 = vsel %vm363_vm1, %v13609_v35, %v13613_v27  ;;  %v1003_v41 = vsel %vm363_vm1, %v13613_v27, %v13614_v15  ;;  %v13627_v42 = vpop.permute.xlu1 %13626  ;;  %7653 = vmatpush1.bf16.msra.mxu1 %v15126_v37  ;;  %v7316_v32 = vsel %vm7302_vm8, %v15133_v45, 0 }
 0x133   : > { %v13002_v17 = vpack.c.bf16 %v1002_v28, %v1001_v38  ;;  %v13003_v50 = vpack.c.bf16 %v1004_v24, %v1003_v41  ;;  %v13629_v59 = vunpack.i.h.bf16 %v13627_v42  ;;  %v13628_v44 = vunpack.i.l.bf16 %v13627_v42  ;;  %v13622_v43 = vpop.permute.xlu0 %13621  ;;  %7654 = vmatprep.subr.bf16.mxu1 %v15130_v40  ;;  %7612 = vmatpush1.bf16.msra.mxu0 %v15127_v21 }
 0x134   : > { %v13624_v11 = vunpack.i.h.bf16 %v13622_v43  ;;  %v13623_v30 = vunpack.i.l.bf16 %v13622_v43  ;;  %13916 = vrot.lane.b32.xlu1 %v15863_v2, %s15372_s15  ;;  %12876 = vmatprep.subr.msk.bf16.mxu0 %vm7302_vm8, %v15131_v51  ;;  %v5380_v3 = vld [vmem:[#allocation3 + $0x148] sm:$0xff]  ;;  %v7322_v39 = vsel %vm7302_vm8, %v15134_v52, 0  ;;  %v12520_v38 = vcombine.low %v5343_v13, %v5379_v25 }
 0x135   : > { %1518 = vst [vmem:[#allocation3 + $0x264] sm:$0xff] %v13002_v17  ;;  %1519 = vst [vmem:[#allocation3 + $0x26c] sm:$0xff] %v13003_v50  ;;  %v1009_v4 = vsel %vm363_vm1, %v13628_v44, %v13629_v59  ;;  %13911 = vrot.lane.b32.xlu0 %v15832_v47, %s15372_s15  ;;  %v12523_v57 = vcombine.high %v5344_v34, %v5380_v3 }
 0x136   : > { %v13006_v55 = vpack.c.bf16 %v1009_v4, %v1009_v4  ;;  %v1008_v29 = vsel %vm363_vm1, %v13624_v11, %v13628_v44  ;;  %v1006_v61 = vsel %vm363_vm1, %v13619_v8, %v13623_v30  ;;  %v1007_v49 = vsel %vm363_vm1, %v13623_v30, %v13624_v11  ;;  %v13637_v53 = vpop.permute.xlu1 %13636  ;;  %7655 = vmatpush1.bf16.msra.mxu1 %v15129_v31 }
 0x137   : > { %v13004_v63 = vpack.c.bf16 %v1006_v61, %v1005_v7  ;;  %v13005_v0 = vpack.c.bf16 %v1008_v29, %v1007_v49  ;;  %v13638_v54 = vunpack.i.l.bf16 %v13637_v53  ;;  %v13632_v26 = vpop.permute.xlu0 %13631  ;;  %v13639_v58 = vunpack.i.h.bf16 %v13637_v53  ;;  %12878 = vmatprep.subr.msk.bf16.mxu1 %vm7302_vm8, %v15132_v62  ;;  %7614 = vmatpush1.bf16.msra.mxu0 %v7316_v32 }
 0x138   : > { %1522 = vst [vmem:[#allocation3 + $0x284] sm:$0xf] %v13006_v55  ;;  %v13634_v14 = vunpack.i.h.bf16 %v13632_v26  ;;  %v13633_v35 = vunpack.i.l.bf16 %v13632_v26  ;;  %13926 = vrot.lane.b32.xlu1 %v15887_v23, %s15372_s15  ;;  %7691 = vmatprep.subr.bf16.mxu0 %v12521_v56  ;;  %v12522_v8 = vcombine.low %v5344_v34, %v5380_v3 }
 0x139   : > { %1520 = vst [vmem:[#allocation3 + $0x274] sm:$0xff] %v13004_v63  ;;  %1521 = vst [vmem:[#allocation3 + $0x27c] sm:$0xff] %v13005_v0  ;;  %13921 = vrot.lane.b32.xlu0 %v15857_v1, %s15372_s15  ;;  %v1041_v20 = vsel %vm402_vm2, %v13638_v54, %v13639_v58 }
 0x13a   : > { %v1040_v6 = vsel %vm402_vm2, %v13634_v14, %v13638_v54  ;;  %v1039_v33 = vsel %vm402_vm2, %v13633_v35, %v13634_v14  ;;  %v13647_v5 = vpop.permute.xlu1 %13646  ;;  %7657 = vmatpush1.bf16.msra.mxu1 %v7322_v39  ;;  %12877 = vmatmul.mubr.msk.bf16.vlgmr.msra.gmra.mrb[4].mxu0 %vm7298_vm9, %v15998_v9 }
 0x13b   : > { %v13007_v19 = vpack.c.bf16 %v1040_v6, %v1039_v33  ;;  %v13649_v18 = vunpack.i.h.bf16 %v13647_v5  ;;  %v13648_v10 = vunpack.i.l.bf16 %v13647_v5  ;;  %v13642_v46 = vpop.permute.xlu0 %13641  ;;  %7734 = vmatprep.subr.bf16.mxu1 %v12523_v57  ;;  %7692 = vmatpush1.bf16.msra.mxu0 %v12520_v38  ;;  %v16122_v6 = vld [vmem:[%s15553_s24 + $0x100] sm:$0xff]  ;;  %v16125_v33 = vld [vmem:[%s15553_s24 + $0x108] sm:$0xff] }
 0x13c   : > { %v13644_v36 = vunpack.i.h.bf16 %v13642_v46  ;;  %v13643_v60 = vunpack.i.l.bf16 %v13642_v46  ;;  %13936 = vrot.lane.b32.xlu1 %v15832_v47, %s15373_s11  ;;  %7723 = vmatprep.mubr.bf16.mxu0 %v21047_v22  ;;  %v5415_v45 = vld [vmem:[#allocation3 + $0x260] sm:$0xff] }
 0x13d   : > { %1523 = vst [vmem:[#allocation3 + $0x384] sm:$0xff] %v13007_v19  ;;  %13931 = vrot.lane.b32.xlu0 %v15836_v48, %s15373_s11  ;;  %12879 = vmatmul.mubr.msk.bf16.vlgmr.msra.gmra.mrb[4].mxu1 %vm7298_vm9, %v15998_v9  ;;  %v1045_v12 = vsel %vm402_vm2, %v13648_v10, %v13649_v18 }
 0x13e   : > { %v1044_v15 = vsel %vm402_vm2, %v13644_v36, %v13648_v10  ;;  %v1042_v27 = vsel %vm402_vm2, %v13639_v58, %v13643_v60  ;;  %v1043_v37 = vsel %vm402_vm2, %v13643_v60, %v13644_v36  ;;  %v13657_v21 = vpop.permute.xlu1 %13656  ;;  %7735 = vmatpush1.bf16.msra.mxu1 %v12522_v8  ;;  %7766 = vmatprep.mubr.bf16.mxu1 %v21047_v22  ;;  %v5416_v58 = vld [vmem:[#allocation3 + $0x268] sm:$0xff]  ;;  %v12237_v10 = vld [vmem:[%s15553_s24 + $0xf8] sm:$0xff] }
 0x13f   : > { %v13008_v31 = vpack.c.bf16 %v1042_v27, %v1041_v20  ;;  %v13009_v24 = vpack.c.bf16 %v1044_v15, %v1043_v37  ;;  %v13652_v28 = vpop.permute.xlu0 %13651  ;;  %v13659_v41 = vunpack.i.h.bf16 %v13657_v21  ;;  %v13658_v42 = vunpack.i.l.bf16 %v13657_v21  ;;  %v16139_v27 = vld [vmem:[%s15553_s24 + $0x120] sm:$0xff]  ;;  %v16142_v37 = vld [vmem:[%s15553_s24 + $0x128] sm:$0xff] }
 0x140   : > { %v13654_v40 = vunpack.i.h.bf16 %v13652_v28  ;;  %v13653_v17 = vunpack.i.l.bf16 %v13652_v28  ;;  %13946 = vrot.lane.b32.xlu1 %v15857_v1, %s15373_s11  ;;  %v16136_v15 = vpack.i.bf16 %v16125_v33, %v16122_v6  ;;  %v12241_v28 = vld [vmem:[%s15553_s24 + $0x118] sm:$0xff] }
 0x141   : > { %1524 = vst [vmem:[#allocation3 + $0x38c] sm:$0xff] %v13008_v31  ;;  %1525 = vst [vmem:[#allocation3 + $0x394] sm:$0xff] %v13009_v24  ;;  %13941 = vrot.lane.b32.xlu0 %v15863_v2, %s15373_s11  ;;  %v1077_v30 = vsel %vm441_vm3, %v13658_v42, %v13659_v41  ;;  %v12240_v24 = vld [vmem:[%s15553_s24 + $0x110] sm:$0xff] }
 0x142   : > { %v1046_v9 = vsel %vm402_vm2, %v13649_v18, %v13653_v17  ;;  %v1047_v50 = vsel %vm402_vm2, %v13653_v17, %v13654_v40  ;;  %v13667_v59 = vpop.permute.xlu1 %13666  ;;  %v12236_v18 = vld [vmem:[%s15553_s24 + $0xf0] sm:$0xff] }
 0x143   : > { %v13010_v44 = vpack.c.bf16 %v1046_v9, %v1045_v12  ;;  %v13011_v43 = vpack.c.bf16 %v1047_v50, %v1047_v50  ;;  %v13668_v7 = vunpack.i.l.bf16 %v13667_v59  ;;  %v13662_v11 = vpop.permute.xlu0 %13661  ;;  %v13669_v51 = vunpack.i.h.bf16 %v13667_v59 }
 0x144   : > { %v13664_v4 = vunpack.i.h.bf16 %v13662_v11  ;;  %v13663_v62 = vunpack.i.l.bf16 %v13662_v11  ;;  %13956 = vrot.lane.b32.xlu1 %v15836_v48, %s15374_s10  ;;  %v5451_v52 = vld [vmem:[#allocation3 + $0x380] sm:$0xff]  ;;  %v16146_v21 = vpack.i.bf16 %v12237_v10, %v12236_v18  ;;  %v16154_v9 = vpack.i.bf16 %v16142_v37, %v16139_v27 }
 0x145   : > { %1526 = vst [vmem:[#allocation3 + $0x39c] sm:$0xff] %v13010_v44  ;;  %1527 = vst [vmem:[#allocation3 + $0x3a4] sm:$0xf] %v13011_v43  ;;  %13951 = vrot.lane.b32.xlu0 %v15887_v23, %s15373_s11  ;;  %v12592_v55 = vcombine.low %v5415_v45, %v5451_v52  ;;  %v12593_v29 = vcombine.high %v5415_v45, %v5451_v52  ;;  %v1081_v26 = vsel %vm441_vm3, %v13668_v7, %v13669_v51  ;;  %v12244_v45 = vld [vmem:[%s15553_s24 + $0x130] sm:$0xff]  ;;  %v12245_v52 = vld [vmem:[%s15553_s24 + $0x138] sm:$0xff] }
 0x146   : > { %v1080_v61 = vsel %vm441_vm3, %v13664_v4, %v13668_v7  ;;  %v1078_v49 = vsel %vm441_vm3, %v13659_v41, %v13663_v62  ;;  %v1079_v53 = vsel %vm441_vm3, %v13663_v62, %v13664_v4  ;;  %v13677_v13 = vpop.permute.xlu1 %13676  ;;  %v13041_v44 = vpack.c.bf16 %v15874_v16, %v15874_v16 }
 0x147   : > { %v13012_v25 = vpack.c.bf16 %v1078_v49, %v1077_v30  ;;  %v13013_v63 = vpack.c.bf16 %v1080_v61, %v1079_v53  ;;  %v13679_v0 = vunpack.i.h.bf16 %v13677_v13  ;;  %v13678_v48 = vunpack.i.l.bf16 %v13677_v13  ;;  %v13672_v54 = vpop.permute.xlu0 %13671  ;;  %7693 = vmatprep.subr.bf16.mxu0 %v12593_v29 }
 0x148   : > { %v13674_v34 = vunpack.i.h.bf16 %v13672_v54  ;;  %v13673_v3 = vunpack.i.l.bf16 %v13672_v54  ;;  %7694 = vmatpush1.bf16.msra.mxu0 %v12592_v55  ;;  %13966 = vrot.lane.b32.xlu1 %v15863_v2, %s15374_s10  ;;  %v5452_v14 = vld [vmem:[#allocation3 + $0x388] sm:$0xff]  ;;  %v16163_v43 = vpack.i.bf16 %v12241_v28, %v12240_v24  ;;  %v13082_v7 = vpack.c.bf16 %v12237_v10, %v12236_v18  ;;  %2143 = vst [vmem:[#allocation3 + $0x68] sm:$0xf] %v13041_v44 }
 0x149   : > { %1528 = vst [vmem:[#allocation3 + $0x4a4] sm:$0xff] %v13012_v25  ;;  %1529 = vst [vmem:[#allocation3 + $0x4ac] sm:$0xff] %v13013_v63  ;;  %v1085_v35 = vsel %vm441_vm3, %v13678_v48, %v13679_v0  ;;  %13961 = vrot.lane.b32.xlu0 %v15832_v47, %s15374_s10  ;;  %v12594_v32 = vcombine.low %v5416_v58, %v5452_v14  ;;  %v12595_v56 = vcombine.high %v5416_v58, %v5452_v14 }
 0x14a   : > { %v13016_v5 = vpack.c.bf16 %v1085_v35, %v1085_v35  ;;  %v1084_v2 = vsel %vm441_vm3, %v13674_v34, %v13678_v48  ;;  %v1082_v39 = vsel %vm441_vm3, %v13669_v51, %v13673_v3  ;;  %v1083_v57 = vsel %vm441_vm3, %v13673_v3, %v13674_v34  ;;  %v13687_v19 = vpop.permute.xlu1 %13686  ;;  %2770 = vst [vmem:[#allocation3 + $0x6c] sm:$0xff] %v13082_v7 }
 0x14b   : > { %v13014_v46 = vpack.c.bf16 %v1082_v39, %v1081_v26  ;;  %v13015_v47 = vpack.c.bf16 %v1084_v2, %v1083_v57  ;;  %v13688_v20 = vunpack.i.l.bf16 %v13687_v19  ;;  %v13682_v36 = vpop.permute.xlu0 %13681  ;;  %7736 = vmatprep.subr.bf16.mxu1 %v12595_v56  ;;  %v13689_v60 = vunpack.i.h.bf16 %v13687_v19 }
 0x14c   : > { %1532 = vst [vmem:[#allocation3 + $0x4c4] sm:$0xf] %v13016_v5  ;;  %v13684_v38 = vunpack.i.h.bf16 %v13682_v36  ;;  %v13683_v8 = vunpack.i.l.bf16 %v13682_v36  ;;  %7737 = vmatpush1.bf16.msra.mxu1 %v12594_v32  ;;  %13976 = vrot.lane.b32.xlu1 %v15887_v23, %s15374_s10  ;;  %v13083_v25 = vpack.c.bf16 %v16125_v33, %v16122_v6  ;;  %v13084_v63 = vpack.c.bf16 %v12241_v28, %v12240_v24 }
 0x14d   : > { %1530 = vst [vmem:[#allocation3 + $0x4b4] sm:$0xff] %v13014_v46  ;;  %1531 = vst [vmem:[#allocation3 + $0x4bc] sm:$0xff] %v13015_v47  ;;  %13971 = vrot.lane.b32.xlu0 %v15857_v1, %s15374_s10  ;;  %v1117_v1 = vsel %vm480_vm4, %v13688_v20, %v13689_v60  ;;  %v16177_v0 = vpack.i.bf16 %v12245_v52, %v12244_v45  ;;  %v13085_v2 = vpack.c.bf16 %v16142_v37, %v16139_v27 }
 0x14e   : > { %v1116_v12 = vsel %vm480_vm4, %v13684_v38, %v13688_v20  ;;  %v1115_v31 = vsel %vm480_vm4, %v13683_v8, %v13684_v38  ;;  %v13697_v23 = vpop.permute.xlu1 %13696  ;;  %2771 = vst [vmem:[#allocation3 + $0x74] sm:$0xff] %v13083_v25  ;;  %2772 = vst [vmem:[#allocation3 + $0x7c] sm:$0xff] %v13084_v63  ;;  %v13086_v39 = vpack.c.bf16 %v12244_v45, %v12244_v45 }
 0x14f   : > { %v13017_v41 = vpack.c.bf16 %v1116_v12, %v1115_v31  ;;  %v13699_v42 = vunpack.i.h.bf16 %v13697_v23  ;;  %v13698_v40 = vunpack.i.l.bf16 %v13697_v23  ;;  %v13692_v17 = vpop.permute.xlu0 %13691  ;;  %2773 = vst [vmem:[#allocation3 + $0x84] sm:$0xff] %v13085_v2 }
 0x150   : > { %v13694_v50 = vunpack.i.h.bf16 %v13692_v17  ;;  %v13693_v59 = vunpack.i.l.bf16 %v13692_v17  ;;  %13986 = vrot.lane.b32.xlu1 %v16136_v15, %s15367_s25  ;;  %v5487_v33 = vld [vmem:[#allocation3 + $0x4a0] sm:$0xff]  ;;  %2774 = vst [vmem:[#allocation3 + $0x8c] sm:$0xf] %v13086_v39  ;;  %v5488_v31 = vld [vmem:[#allocation3 + $0x4a8] sm:$0xff] }
 0x151   : > { %1533 = vst [vmem:[#allocation3 + $0x5c4] sm:$0xff] %v13017_v41  ;;  %13981 = vrot.lane.b32.xlu0 %v16146_v21, %s15367_s25  ;;  %v1121_v11 = vsel %vm480_vm4, %v13698_v40, %v13699_v42 }
 0x152   : > { %v1120_v30 = vsel %vm480_vm4, %v13694_v50, %v13698_v40  ;;  %v1118_v51 = vsel %vm480_vm4, %v13689_v60, %v13693_v59  ;;  %v1119_v4 = vsel %vm480_vm4, %v13693_v59, %v13694_v50  ;;  %v13707_v62 = vpop.permute.xlu1 %13706 }
 0x153   : > { %v13018_v16 = vpack.c.bf16 %v1118_v51, %v1117_v1  ;;  %v13019_v55 = vpack.c.bf16 %v1120_v30, %v1119_v4  ;;  %v13709_v29 = vunpack.i.h.bf16 %v13707_v62  ;;  %v13708_v61 = vunpack.i.l.bf16 %v13707_v62  ;;  %v13702_v49 = vpop.permute.xlu0 %13701 }
 0x154   : > { %v13704_v53 = vunpack.i.h.bf16 %v13702_v49  ;;  %v13703_v13 = vunpack.i.l.bf16 %v13702_v49  ;;  %13996 = vrot.lane.b32.xlu1 %v16154_v9, %s15367_s25 }
 0x155   : > { %1534 = vst [vmem:[#allocation3 + $0x5cc] sm:$0xff] %v13018_v16  ;;  %1535 = vst [vmem:[#allocation3 + $0x5d4] sm:$0xff] %v13019_v55  ;;  %13991 = vrot.lane.b32.xlu0 %v16163_v43, %s15367_s25  ;;  %v1153_v48 = vsel %vm519_vm5, %v13708_v61, %v13709_v29 }
 0x156   : > { %v1122_v54 = vsel %vm480_vm4, %v13699_v42, %v13703_v13  ;;  %v1123_v26 = vsel %vm480_vm4, %v13703_v13, %v13704_v53  ;;  %v13717_v34 = vpop.permute.xlu1 %13716 }
 0x157   : > { %v13020_v3 = vpack.c.bf16 %v1122_v54, %v1121_v11  ;;  %v13021_v58 = vpack.c.bf16 %v1123_v26, %v1123_v26  ;;  %v13719_v14 = vunpack.i.h.bf16 %v13717_v34  ;;  %v13718_v35 = vunpack.i.l.bf16 %v13717_v34  ;;  %v13712_v32 = vpop.permute.xlu0 %13711 }
 0x158   : > { %v13714_v56 = vunpack.i.h.bf16 %v13712_v32  ;;  %v13713_v6 = vunpack.i.l.bf16 %v13712_v32  ;;  %14006 = vrot.lane.b32.xlu1 %v16146_v21, %s15368_s27  ;;  %v5523_v5 = vld [vmem:[#allocation3 + $0x5c0] sm:$0xff] }
 0x159   : > { %1536 = vst [vmem:[#allocation3 + $0x5dc] sm:$0xff] %v13020_v3  ;;  %1537 = vst [vmem:[#allocation3 + $0x5e4] sm:$0xf] %v13021_v58  ;;  %14001 = vrot.lane.b32.xlu0 %v16177_v0, %s15367_s25  ;;  %v12664_v57 = vcombine.low %v5487_v33, %v5523_v5  ;;  %v12665_v19 = vcombine.high %v5487_v33, %v5523_v5  ;;  %v1157_v27 = vsel %vm519_vm5, %v13718_v35, %v13719_v14 }
 0x15a   : > { %v1156_v18 = vsel %vm519_vm5, %v13714_v56, %v13718_v35  ;;  %v1154_v10 = vsel %vm519_vm5, %v13709_v29, %v13713_v6  ;;  %v1155_v46 = vsel %vm519_vm5, %v13713_v6, %v13714_v56  ;;  %v13727_v47 = vpop.permute.xlu1 %13726 }
 0x15b   : > { %v13022_v20 = vpack.c.bf16 %v1154_v10, %v1153_v48  ;;  %v13023_v36 = vpack.c.bf16 %v1156_v18, %v1155_v46  ;;  %v13729_v60 = vunpack.i.h.bf16 %v13727_v47  ;;  %v13728_v38 = vunpack.i.l.bf16 %v13727_v47  ;;  %v13722_v8 = vpop.permute.xlu0 %13721  ;;  %7695 = vmatprep.subr.bf16.mxu0 %v12665_v19 }
 0x15c   : > { %v13724_v37 = vunpack.i.h.bf16 %v13722_v8  ;;  %v13723_v12 = vunpack.i.l.bf16 %v13722_v8  ;;  %7696 = vmatpush1.bf16.msra.mxu0 %v12664_v57  ;;  %14016 = vrot.lane.b32.xlu1 %v16163_v43, %s15368_s27  ;;  %v5524_v23 = vld [vmem:[#allocation3 + $0x5c8] sm:$0xff] }
 0x15d   : > { %1538 = vst [vmem:[#allocation3 + $0x6e4] sm:$0xff] %v13022_v20  ;;  %1539 = vst [vmem:[#allocation3 + $0x6ec] sm:$0xff] %v13023_v36  ;;  %v1161_v24 = vsel %vm519_vm5, %v13728_v38, %v13729_v60  ;;  %14011 = vrot.lane.b32.xlu0 %v16136_v15, %s15368_s27  ;;  %v12666_v28 = vcombine.low %v5488_v31, %v5524_v23  ;;  %v12667_v41 = vcombine.high %v5488_v31, %v5524_v23 }
 0x15e   : > { %v13026_v42 = vpack.c.bf16 %v1161_v24, %v1161_v24  ;;  %v1160_v40 = vsel %vm519_vm5, %v13724_v37, %v13728_v38  ;;  %v1158_v17 = vsel %vm519_vm5, %v13719_v14, %v13723_v12  ;;  %v1159_v1 = vsel %vm519_vm5, %v13723_v12, %v13724_v37  ;;  %v13737_v50 = vpop.permute.xlu1 %13736 }
 0x15f   : > { %v13024_v59 = vpack.c.bf16 %v1158_v17, %v1157_v27  ;;  %v13025_v44 = vpack.c.bf16 %v1160_v40, %v1159_v1  ;;  %v13738_v7 = vunpack.i.l.bf16 %v13737_v50  ;;  %v13732_v11 = vpop.permute.xlu0 %13731  ;;  %7738 = vmatprep.subr.bf16.mxu1 %v12667_v41  ;;  %v13739_v30 = vunpack.i.h.bf16 %v13737_v50 }
 0x160   : > { %1542 = vst [vmem:[#allocation3 + $0x704] sm:$0xf] %v13026_v42  ;;  %v13734_v51 = vunpack.i.h.bf16 %v13732_v11  ;;  %v13733_v4 = vunpack.i.l.bf16 %v13732_v11  ;;  %7739 = vmatpush1.bf16.msra.mxu1 %v12666_v28  ;;  %14026 = vrot.lane.b32.xlu1 %v16177_v0, %s15368_s27 }
 0x161   : > { %1540 = vst [vmem:[#allocation3 + $0x6f4] sm:$0xff] %v13024_v59  ;;  %1541 = vst [vmem:[#allocation3 + $0x6fc] sm:$0xff] %v13025_v44  ;;  %14021 = vrot.lane.b32.xlu0 %v16154_v9, %s15368_s27  ;;  %v1193_v49 = vsel %vm558_vm6, %v13738_v7, %v13739_v30 }
 0x162   : > { %v1192_v62 = vsel %vm558_vm6, %v13734_v51, %v13738_v7  ;;  %v1191_v45 = vsel %vm558_vm6, %v13733_v4, %v13734_v51  ;;  %v13747_v52 = vpop.permute.xlu1 %13746 }
 0x163   : > { %v13027_v16 = vpack.c.bf16 %v1192_v62, %v1191_v45  ;;  %v13749_v55 = vunpack.i.h.bf16 %v13747_v52  ;;  %v13748_v29 = vunpack.i.l.bf16 %v13747_v52  ;;  %v13742_v61 = vpop.permute.xlu0 %13741 }
 0x164   : > { %v13744_v53 = vunpack.i.h.bf16 %v13742_v61  ;;  %v13743_v13 = vunpack.i.l.bf16 %v13742_v61  ;;  %14036 = vrot.lane.b32.xlu1 %v16136_v15, %s15369_s14  ;;  %v5559_v20 = vld [vmem:[#allocation3 + $0x6e0] sm:$0xff]  ;;  %v5560_v1 = vld [vmem:[#allocation3 + $0x6e8] sm:$0xff] }
 0x165   : > { %1543 = vst [vmem:[#allocation3 + $0x804] sm:$0xff] %v13027_v16  ;;  %14031 = vrot.lane.b32.xlu0 %v16146_v21, %s15369_s14  ;;  %v1197_v26 = vsel %vm558_vm6, %v13748_v29, %v13749_v55 }
 0x166   : > { %v1196_v25 = vsel %vm558_vm6, %v13744_v53, %v13748_v29  ;;  %v1194_v63 = vsel %vm558_vm6, %v13739_v30, %v13743_v13  ;;  %v1195_v48 = vsel %vm558_vm6, %v13743_v13, %v13744_v53  ;;  %v13757_v54 = vpop.permute.xlu1 %13756  ;;  %v16242_v53 = vld [vmem:[#allocation3 + $0x30] sm:$0xff] }
 0x167   : > { %v13028_v34 = vpack.c.bf16 %v1194_v63, %v1193_v49  ;;  %v13029_v3 = vpack.c.bf16 %v1196_v25, %v1195_v48  ;;  %v13752_v58 = vpop.permute.xlu0 %13751  ;;  %v13759_v14 = vunpack.i.h.bf16 %v13757_v54  ;;  %v13758_v35 = vunpack.i.l.bf16 %v13757_v54  ;;  %v16244_v13 = vld [vmem:[#allocation3 + $0x150] sm:$0xff] }
 0x168   : > { %v13754_v32 = vunpack.i.h.bf16 %v13752_v58  ;;  %v13753_v56 = vunpack.i.l.bf16 %v13752_v58  ;;  %14046 = vrot.lane.b32.xlu1 %v16154_v9, %s15369_s14 }
 0x169   : > { %1544 = vst [vmem:[#allocation3 + $0x80c] sm:$0xff] %v13028_v34  ;;  %1545 = vst [vmem:[#allocation3 + $0x814] sm:$0xff] %v13029_v3  ;;  %14041 = vrot.lane.b32.xlu0 %v16163_v43, %s15369_s14  ;;  %v1229_v18 = vsel %vm597_vm7, %v13758_v35, %v13759_v14 }
 0x16a   : > { %v1198_v6 = vsel %vm558_vm6, %v13749_v55, %v13753_v56  ;;  %v1199_v33 = vsel %vm558_vm6, %v13753_v56, %v13754_v32  ;;  %v13767_v5 = vpop.permute.xlu1 %13766 }
 0x16b   : > { %v13030_v2 = vpack.c.bf16 %v1198_v6, %v1197_v26  ;;  %v13031_v39 = vpack.c.bf16 %v1199_v33, %v1199_v33  ;;  %v13768_v57 = vunpack.i.l.bf16 %v13767_v5  ;;  %v13762_v19 = vpop.permute.xlu0 %13761  ;;  %v13769_v10 = vunpack.i.h.bf16 %v13767_v5 }
 0x16c   : > { %v13764_v46 = vunpack.i.h.bf16 %v13762_v19  ;;  %v13763_v47 = vunpack.i.l.bf16 %v13762_v19  ;;  %14056 = vrot.lane.b32.xlu1 %v16146_v21, %s15370_s29  ;;  %v5595_v36 = vld [vmem:[#allocation3 + $0x800] sm:$0xff]  ;;  %v12525_v6 = vcombine.high %v16242_v53, %v16244_v13 }
 0x16d   : > { %1546 = vst [vmem:[#allocation3 + $0x81c] sm:$0xff] %v13030_v2  ;;  %1547 = vst [vmem:[#allocation3 + $0x824] sm:$0xf] %v13031_v39  ;;  %14051 = vrot.lane.b32.xlu0 %v16177_v0, %s15369_s14  ;;  %v12736_v60 = vcombine.low %v5559_v20, %v5595_v36  ;;  %v12737_v38 = vcombine.high %v5559_v20, %v5595_v36  ;;  %v1233_v42 = vsel %vm597_vm7, %v13768_v57, %v13769_v10  ;;  %v5382_v20 = vld [vmem:[#allocation3 + $0x158] sm:$0xff] }
 0x16e   : > { %v1232_v8 = vsel %vm597_vm7, %v13764_v46, %v13768_v57  ;;  %v1230_v27 = vsel %vm597_vm7, %v13759_v14, %v13763_v47  ;;  %v1231_v37 = vsel %vm597_vm7, %v13763_v47, %v13764_v46  ;;  %v13777_v12 = vpop.permute.xlu1 %13776  ;;  %v5346_v47 = vld [vmem:[#allocation3 + $0x38] sm:$0xff] }
 0x16f   : > { %v13032_v31 = vpack.c.bf16 %v1230_v27, %v1229_v18  ;;  %v13033_v23 = vpack.c.bf16 %v1232_v8, %v1231_v37  ;;  %v13779_v24 = vunpack.i.h.bf16 %v13777_v12  ;;  %v13778_v28 = vunpack.i.l.bf16 %v13777_v12  ;;  %v13772_v41 = vpop.permute.xlu0 %13771  ;;  %7697 = vmatprep.subr.bf16.mxu0 %v12737_v38 }
 0x170   : > { %v13774_v40 = vunpack.i.h.bf16 %v13772_v41  ;;  %v13773_v17 = vunpack.i.l.bf16 %v13772_v41  ;;  %7698 = vmatpush1.bf16.msra.mxu0 %v12736_v60  ;;  %14066 = vrot.lane.b32.xlu1 %v16163_v43, %s15370_s29  ;;  %v5596_v50 = vld [vmem:[#allocation3 + $0x808] sm:$0xff]  ;;  %v12527_v41 = vcombine.high %v5346_v47, %v5382_v20 }
 0x171   : > { %1548 = vst [vmem:[#allocation3 + $0x924] sm:$0xff] %v13032_v31  ;;  %1549 = vst [vmem:[#allocation3 + $0x92c] sm:$0xff] %v13033_v23  ;;  %v1237_v59 = vsel %vm597_vm7, %v13778_v28, %v13779_v24  ;;  %14061 = vrot.lane.b32.xlu0 %v16136_v15, %s15370_s29  ;;  %v12738_v44 = vcombine.low %v5560_v1, %v5596_v50  ;;  %v12739_v7 = vcombine.high %v5560_v1, %v5596_v50  ;;  %v5453_v24 = vld [vmem:[#allocation3 + $0x390] sm:$0xff] }
 0x172   : > { %v13036_v11 = vpack.c.bf16 %v1237_v59, %v1237_v59  ;;  %v1236_v30 = vsel %vm597_vm7, %v13774_v40, %v13778_v28  ;;  %v1234_v51 = vsel %vm597_vm7, %v13769_v10, %v13773_v17  ;;  %v1235_v4 = vsel %vm597_vm7, %v13773_v17, %v13774_v40  ;;  %v13787_v62 = vpop.permute.xlu1 %13786  ;;  %v5417_v50 = vld [vmem:[#allocation3 + $0x270] sm:$0xff]  ;;  %v5454_v59 = vld [vmem:[#allocation3 + $0x398] sm:$0xff] }
 0x173   : > { %v13034_v45 = vpack.c.bf16 %v1234_v51, %v1233_v42  ;;  %v13035_v52 = vpack.c.bf16 %v1236_v30, %v1235_v4  ;;  %v13788_v16 = vunpack.i.l.bf16 %v13787_v62  ;;  %v13782_v55 = vpop.permute.xlu0 %13781  ;;  %7740 = vmatprep.subr.bf16.mxu1 %v12739_v7  ;;  %v13789_v29 = vunpack.i.h.bf16 %v13787_v62 }
 0x174   : > { %1552 = vst [vmem:[#allocation3 + $0x944] sm:$0xf] %v13036_v11  ;;  %v13784_v61 = vunpack.i.h.bf16 %v13782_v55  ;;  %v13783_v49 = vunpack.i.l.bf16 %v13782_v55  ;;  %7741 = vmatpush1.bf16.msra.mxu1 %v12738_v44  ;;  %14076 = vrot.lane.b32.xlu1 %v16177_v0, %s15370_s29  ;;  %v12524_v28 = vcombine.low %v16242_v53, %v16244_v13  ;;  %v12526_v17 = vcombine.low %v5346_v47, %v5382_v20  ;;  %v5418_v55 = vld [vmem:[#allocation3 + $0x278] sm:$0xff]  ;;  %v5525_v53 = vld [vmem:[#allocation3 + $0x5d0] sm:$0xff] }
 0x175   : > { %1550 = vst [vmem:[#allocation3 + $0x934] sm:$0xff] %v13034_v45  ;;  %1551 = vst [vmem:[#allocation3 + $0x93c] sm:$0xff] %v13035_v52  ;;  %14071 = vrot.lane.b32.xlu0 %v16154_v9, %s15370_s29  ;;  %v1596_v58 = vsel %vm324_vm0, %v13788_v16, %v13789_v29  ;;  %v12596_v51 = vcombine.low %v5417_v50, %v5453_v24  ;;  %v5598_v20 = vld [vmem:[#allocation3 + $0x818] sm:$0xff] }
 0x176   : > { %v1595_v25 = vsel %vm324_vm0, %v13784_v61, %v13788_v16  ;;  %v1594_v63 = vsel %vm324_vm0, %v13783_v49, %v13784_v61  ;;  %v13797_v48 = vpop.permute.xlu1 %13796  ;;  %v16281_v16 = vld [vmem:[%s21039_s1] sm:$0xff]   ;;  %v12598_v61 = vcombine.low %v5418_v55, %v5454_v59  ;;  %v12599_v49 = vcombine.high %v5418_v55, %v5454_v59 }
 0x177   : > { %v16248_v54 = vpack.c.bf16 %v1595_v25, %v1594_v63  ;;  %v13799_v26 = vunpack.i.h.bf16 %v13797_v48  ;;  %v13798_v34 = vunpack.i.l.bf16 %v13797_v48  ;;  %v13792_v3 = vpop.permute.xlu0 %13791 }
 0x178   : > { %v13794_v14 = vunpack.i.h.bf16 %v13792_v3  ;;  %v13793_v35 = vunpack.i.l.bf16 %v13792_v3  ;;  %14086 = vrot.lane.b32.xlu1 %v16136_v15, %s15371_s8  ;;  %v5631_v32 = vld [vmem:[#allocation3 + $0x920] sm:$0xff]  ;;  %v5632_v56 = vld [vmem:[#allocation3 + $0x928] sm:$0xff] }
 0x179   : > { %v1600_v33 = vsel %vm324_vm0, %v13798_v34, %v13799_v26  ;;  %14081 = vrot.lane.b32.xlu0 %v16146_v21, %s15371_s8  ;;  %v12809_v5 = vcombine.high %v5631_v32, %v5631_v32  ;;  %v12811_v2 = vcombine.high %v5632_v56, %v5632_v56  ;;  %v12808_v39 = vcombine.low %v5631_v32, %v5631_v32 }
 0x17a   : > { %v1599_v57 = vsel %vm324_vm0, %v13794_v14, %v13798_v34  ;;  %v1597_v19 = vsel %vm324_vm0, %v13789_v29, %v13793_v35  ;;  %v1598_v18 = vsel %vm324_vm0, %v13793_v35, %v13794_v14  ;;  %v13807_v10 = vpop.permute.xlu1 %13806  ;;  %v12810_v46 = vcombine.low %v5632_v56, %v5632_v56  ;;  %v5489_v14 = vld [vmem:[#allocation3 + $0x4b0] sm:$0xff] }
 0x17b   : > { %v16261_v36 = vpack.c.bf16 %v1597_v19, %v1596_v58  ;;  %v13044_v60 = vpack.c.bf16 %v1599_v57, %v1598_v18  ;;  %v13809_v38 = vunpack.i.h.bf16 %v13807_v10  ;;  %v13808_v8 = vunpack.i.l.bf16 %v13807_v10  ;;  %v13802_v27 = vpop.permute.xlu0 %13801  ;;  %12880 = vmatprep.subr.msk.bf16.mxu0 %vm7302_vm8, %v12809_v5  ;;  %12882 = vmatprep.subr.msk.bf16.mxu1 %vm7302_vm8, %v12811_v2  ;;  %v5597_v57 = vld [vmem:[#allocation3 + $0x810] sm:$0xff] }
 0x17c   : > { %v13804_v37 = vunpack.i.h.bf16 %v13802_v27  ;;  %v13803_v12 = vunpack.i.l.bf16 %v13802_v27  ;;  %v7328_v31 = vsel %vm7302_vm8, %v12808_v39, 0  ;;  %v7334_v23 = vsel %vm7302_vm8, %v12810_v46, 0  ;;  %14096 = vrot.lane.b32.xlu1 %v16154_v9, %s15371_s8  ;;  %v5561_v27 = vld [vmem:[#allocation3 + $0x6f0] sm:$0xff] }
 0x17d   : > { %2146 = vst [vmem:[#allocation3 + $0x178] sm:$0xff] %v13044_v60  ;;  %7700 = vmatpush1.bf16.msra.mxu0 %v7328_v31  ;;  %7743 = vmatpush1.bf16.msra.mxu1 %v7334_v23  ;;  %v16276_v4 = vsel %vm363_vm1, %v13808_v8, %v13809_v38  ;;  %v12597_v29 = vcombine.high %v5417_v50, %v5453_v24 }
 0x17e   : > { %v1601_v42 = vsel %vm324_vm0, %v13799_v26, %v13803_v12  ;;  %v1602_v40 = vsel %vm324_vm0, %v13803_v12, %v13804_v37  ;;  %14091 = vrot.lane.b32.xlu0 %v16163_v43, %s15371_s8  ;;  %7777 = vmatprep.subr.bf16.mxu0 %v12525_v6  ;;  %v13817_v1 = vpop.permute.xlu1 %13816  ;;  %v5526_v26 = vld [vmem:[#allocation3 + $0x5d8] sm:$0xff]  ;;  %v12668_v6 = vcombine.low %v5489_v14, %v5525_v53  ;;  %v5633_v37 = vld [vmem:[#allocation3 + $0x930] sm:$0xff] }
 0x17f   : > { %v13045_v44 = vpack.c.bf16 %v1601_v42, %v1600_v33  ;;  %v13046_v7 = vpack.c.bf16 %v1602_v40, %v1602_v40  ;;  %7820 = vmatprep.subr.bf16.mxu1 %v12527_v41  ;;  %v13818_v11 = vunpack.i.l.bf16 %v13817_v1  ;;  %v13812_v30 = vpop.permute.xlu0 %13811  ;;  %v13819_v62 = vunpack.i.h.bf16 %v13817_v1  ;;  %v5490_v33 = vld [vmem:[#allocation3 + $0x4b8] sm:$0xff] }
 0x180   : > { %v13814_v45 = vunpack.i.h.bf16 %v13812_v30  ;;  %v13813_v52 = vunpack.i.l.bf16 %v13812_v30  ;;  %12881 = vmatmul.mubr.msk.bf16.vlgmr.msra.gmra.mrb[8].mxu0 %vm7298_vm9, %v16281_v16  ;;  %12883 = vmatmul.mubr.msk.bf16.vlgmr.msra.gmra.mrb[8].mxu1 %vm7298_vm9, %v16281_v16  ;;  %v12669_v2 = vcombine.high %v5489_v14, %v5525_v53  ;;  %v12671_v39 = vcombine.high %v5490_v33, %v5526_v26  ;;  %v5634_v41 = vld [vmem:[#allocation3 + $0x938] sm:$0xff] }
 0x181   : > { %2147 = vst [vmem:[#allocation3 + $0x180] sm:$0xff] %v13045_v44  ;;  %2148 = vst [vmem:[#allocation3 + $0x188] sm:$0xf] %v13046_v7  ;;  %7778 = vmatpush1.bf16.msra.mxu0 %v12524_v28  ;;  %7821 = vmatpush1.bf16.msra.mxu1 %v12526_v17  ;;  %v16301_v35 = vsel %vm363_vm1, %v13818_v11, %v13819_v62  ;;  %v12670_v60 = vcombine.low %v5490_v33, %v5526_v26  ;;  %v5562_v28 = vld [vmem:[#allocation3 + $0x6f8] sm:$0xff]  ;;  %v5347_v7 = vld [vmem:[#allocation3 + $0x40] sm:$0xff] }
 0x182   : > { %v16288_v13 = vsel %vm363_vm1, %v13814_v45, %v13818_v11  ;;  %v16291_v25 = vsel %vm363_vm1, %v13809_v38, %v13813_v52  ;;  %v16294_v63 = vsel %vm363_vm1, %v13813_v52, %v13814_v45  ;;  %14106 = vrot.lane.b32.xlu1 %v16146_v21, %s15372_s15  ;;  %14101 = vrot.lane.b32.xlu0 %v16177_v0, %s15371_s8  ;;  %v13827_v48 = vpop.permute.xlu1 %13826  ;;  %v5383_v11 = vld [vmem:[#allocation3 + $0x160] sm:$0xff] }
 0x183   : > { %7779 = vmatprep.subr.bf16.mxu0 %v12597_v29  ;;  %7822 = vmatprep.subr.bf16.mxu1 %v12599_v49  ;;  %v13829_v34 = vunpack.i.h.bf16 %v13827_v48  ;;  %v13828_v3 = vunpack.i.l.bf16 %v13827_v48  ;;  %v13822_v58 = vpop.permute.xlu0 %13821  ;;  %v12741_v24 = vcombine.high %v5561_v27, %v5597_v57  ;;  %v12740_v42 = vcombine.low %v5561_v27, %v5597_v57 }
 0x184   : > { %v13824_v32 = vunpack.i.h.bf16 %v13822_v58  ;;  %v13823_v56 = vunpack.i.l.bf16 %v13822_v58  ;;  %7809 = vmatprep.mubr.bf16.mxu0 %v21047_v22  ;;  %7852 = vmatprep.mubr.bf16.mxu1 %v21047_v22  ;;  %v12742_v40 = vcombine.low %v5562_v28, %v5598_v20  ;;  %v12743_v17 = vcombine.high %v5562_v28, %v5598_v20  ;;  %v5419_v20 = vld [vmem:[#allocation3 + $0x280] sm:$0xff] }
 0x185   : > { %v1640_v5 = vsel %vm363_vm1, %v13828_v3, %v13829_v34  ;;  %7780 = vmatpush1.bf16.msra.mxu0 %v12596_v51  ;;  %7823 = vmatpush1.bf16.msra.mxu1 %v12598_v61  ;;  %v12812_v44 = vcombine.low %v5633_v37, %v5633_v37  ;;  %v12814_v45 = vcombine.low %v5634_v41, %v5634_v41 }
 0x186   : > { %v13051_v19 = vpack.c.bf16 %v1640_v5, %v1640_v5  ;;  %v16307_v18 = vsel %vm363_vm1, %v13824_v32, %v13828_v3  ;;  %v16310_v10 = vsel %vm363_vm1, %v13819_v62, %v13823_v56  ;;  %v16313_v46 = vsel %vm363_vm1, %v13823_v56, %v13824_v32  ;;  %14116 = vrot.lane.b32.xlu1 %v16163_v43, %s15372_s15  ;;  %v13837_v47 = vpop.permute.xlu1 %13836 }
 0x187   : > { %14111 = vrot.lane.b32.xlu0 %v16136_v15, %s15372_s15  ;;  %7781 = vmatprep.subr.bf16.mxu0 %v12669_v2  ;;  %v13838_v38 = vunpack.i.l.bf16 %v13837_v47  ;;  %v13832_v8 = vpop.permute.xlu0 %13831  ;;  %v13839_v12 = vunpack.i.h.bf16 %v13837_v47  ;;  %v12813_v61 = vcombine.high %v5633_v37, %v5633_v37  ;;  %v12815_v49 = vcombine.high %v5634_v41, %v5634_v41 }
 0x188   : > { %2153 = vst [vmem:[#allocation3 + $0x2a8] sm:$0xf] %v13051_v19  ;;  %7824 = vmatprep.subr.bf16.mxu1 %v12671_v39  ;;  %v13834_v31 = vunpack.i.h.bf16 %v13832_v8  ;;  %v13833_v23 = vunpack.i.l.bf16 %v13832_v8  ;;  %v12529_v53 = vcombine.high %v5347_v7, %v5383_v11  ;;  %v7340_v58 = vsel %vm7302_vm8, %v12812_v44, 0  ;;  %v15030_v19 = vld [vmem:[#allocation3 + $0x48] sm:$0xff] }
 0x189   : > { %7782 = vmatpush1.bf16.msra.mxu0 %v12668_v6  ;;  %7825 = vmatpush1.bf16.msra.mxu1 %v12670_v60  ;;  %v16330_v52 = vsel %vm402_vm2, %v13838_v38, %v13839_v12  ;;  %v7346_v56 = vsel %vm7302_vm8, %v12814_v45, 0  ;;  %v5455_v6 = vld [vmem:[#allocation3 + $0x3a0] sm:$0xff]  ;;  %v12528_v57 = vcombine.low %v5347_v7, %v5383_v11  ;;  %v12531_v47 = vcombine.high %v15030_v19, %v16248_v54 }
 0x18a   : > { %v16320_v1 = vsel %vm402_vm2, %v13834_v31, %v13838_v38  ;;  %v16323_v50 = vsel %vm402_vm2, %v13833_v23, %v13834_v31  ;;  %14126 = vrot.lane.b32.xlu1 %v16177_v0, %s15372_s15  ;;  %7783 = vmatprep.subr.bf16.mxu0 %v12741_v24  ;;  %v13847_v59 = vpop.permute.xlu1 %13846  ;;  %v12601_v27 = vcombine.high %v5419_v20, %v5455_v6  ;;  %v5491_v45 = vld [vmem:[#allocation3 + $0x4c0] sm:$0xff] }
 0x18b   : > { %14121 = vrot.lane.b32.xlu0 %v16154_v9, %s15372_s15  ;;  %7826 = vmatprep.subr.bf16.mxu1 %v12743_v17  ;;  %v13849_v30 = vunpack.i.h.bf16 %v13847_v59  ;;  %v13848_v51 = vunpack.i.l.bf16 %v13847_v59  ;;  %v13842_v62 = vpop.permute.xlu0 %13841  ;;  %v15136_v17 = vpack.c.bf16 %v16320_v1, %v16291_v25 }
 0x18c   : > { %v13844_v55 = vunpack.i.h.bf16 %v13842_v62  ;;  %v13843_v29 = vunpack.i.l.bf16 %v13842_v62 }
 0x18d   : > { %7784 = vmatpush1.bf16.msra.mxu0 %v12740_v42  ;;  %7827 = vmatpush1.bf16.msra.mxu1 %v12742_v40  ;;  %v16346_v14 = vsel %vm402_vm2, %v13848_v51, %v13849_v30  ;;  %v12600_v40 = vcombine.low %v5419_v20, %v5455_v6 }
 0x18e   : > { %v16333_v48 = vsel %vm402_vm2, %v13844_v55, %v13848_v51  ;;  %v16336_v26 = vsel %vm402_vm2, %v13839_v12, %v13843_v29  ;;  %v16339_v34 = vsel %vm402_vm2, %v13843_v29, %v13844_v55  ;;  %14136 = vrot.lane.b32.xlu1 %v16136_v15, %s15373_s11  ;;  %12884 = vmatprep.subr.msk.bf16.mxu0 %vm7302_vm8, %v12813_v61  ;;  %v13857_v3 = vpop.permute.xlu1 %13856  ;;  %v16390_v55 = vld [vmem:[%s15553_s24 + $0x150] sm:$0xff]  ;;  %v5599_v61 = vld [vmem:[#allocation3 + $0x820] sm:$0xff] }
 0x18f   : > { %14131 = vrot.lane.b32.xlu0 %v16146_v21, %s15373_s11  ;;  %12886 = vmatprep.subr.msk.bf16.mxu1 %vm7302_vm8, %v12815_v49  ;;  %v13852_v32 = vpop.permute.xlu0 %13851  ;;  %v13859_v33 = vunpack.i.h.bf16 %v13857_v3  ;;  %v13858_v5 = vunpack.i.l.bf16 %v13857_v3  ;;  %v12530_v12 = vcombine.low %v15030_v19, %v16248_v54  ;;  %v15135_v54 = vpack.c.bf16 %v16323_v50, %v16276_v4  ;;  %v16396_v49 = vld [vmem:[%s15553_s24 + $0x158] sm:$0xff] }
 0x190   : > { %v13854_v2 = vunpack.i.h.bf16 %v13852_v32  ;;  %v13853_v39 = vunpack.i.l.bf16 %v13852_v32 }
 0x191   : > { %7786 = vmatpush1.bf16.msra.mxu0 %v7340_v58  ;;  %7829 = vmatpush1.bf16.msra.mxu1 %v7346_v56  ;;  %v16363_v24 = vsel %vm441_vm3, %v13858_v5, %v13859_v33  ;;  %v16416_v5 = vld [vmem:[%s15553_s24 + $0x170] sm:$0xff] }
 0x192   : > { %v16354_v60 = vsel %vm402_vm2, %v13849_v30, %v13853_v39  ;;  %v1678_v38 = vsel %vm402_vm2, %v13853_v39, %v13854_v2  ;;  %14146 = vrot.lane.b32.xlu1 %v16154_v9, %s15373_s11  ;;  %7863 = vmatprep.subr.bf16.mxu0 %v12529_v53  ;;  %v13867_v8 = vpop.permute.xlu1 %13866  ;;  %v5527_v30 = vld [vmem:[#allocation3 + $0x5e0] sm:$0xff] }
 0x193   : > { %v13056_v37 = vpack.c.bf16 %v1678_v38, %v1678_v38  ;;  %14141 = vrot.lane.b32.xlu0 %v16163_v43, %s15373_s11  ;;  %7906 = vmatprep.subr.bf16.mxu1 %v12531_v47  ;;  %v13868_v31 = vunpack.i.l.bf16 %v13867_v8  ;;  %v13862_v23 = vpop.permute.xlu0 %13861  ;;  %v13869_v28 = vunpack.i.h.bf16 %v13867_v8  ;;  %v12673_v29 = vcombine.high %v5491_v45, %v5527_v30  ;;  %v16399_v53 = vld [vmem:[%s15553_s24 + $0x140] sm:$0xff]  ;;  %v16419_v2 = vld [vmem:[%s15553_s24 + $0x178] sm:$0xff] }
 0x194   : > { %v13864_v41 = vunpack.i.h.bf16 %v13862_v23  ;;  %v13863_v42 = vunpack.i.l.bf16 %v13862_v23  ;;  %12885 = vmatmul.mubr.msk.bf16.vlgmr.msra.gmra.mrb[12].mxu0 %vm7298_vm9, %v16281_v16  ;;  %12887 = vmatmul.mubr.msk.bf16.vlgmr.msra.gmra.mrb[12].mxu1 %vm7298_vm9, %v16281_v16  ;;  %v12672_v39 = vcombine.low %v5491_v45, %v5527_v30  ;;  %v5563_v47 = vld [vmem:[#allocation3 + $0x700] sm:$0xff] }
 0x195   : > { %2158 = vst [vmem:[#allocation3 + $0x3c8] sm:$0xf] %v13056_v37  ;;  %7864 = vmatpush1.bf16.msra.mxu0 %v12528_v57  ;;  %7907 = vmatpush1.bf16.msra.mxu1 %v12530_v12  ;;  %v16387_v50 = vsel %vm441_vm3, %v13868_v31, %v13869_v28  ;;  %v12745_v8 = vcombine.high %v5563_v47, %v5599_v61 }
 0x196   : > { %v16374_v59 = vsel %vm441_vm3, %v13864_v41, %v13868_v31  ;;  %v16377_v44 = vsel %vm441_vm3, %v13859_v33, %v13863_v42  ;;  %v16380_v7 = vsel %vm441_vm3, %v13863_v42, %v13864_v41  ;;  %14156 = vrot.lane.b32.xlu1 %v16146_v21, %s15374_s10  ;;  %7865 = vmatprep.subr.bf16.mxu0 %v12601_v27  ;;  %v13877_v11 = vpop.permute.xlu1 %13876  ;;  %v16413_v33 = vld [vmem:[%s15553_s24 + $0x148] sm:$0xff]  ;;  %v5635_v27 = vld [vmem:[#allocation3 + $0x940] sm:$0xff] }
 0x197   : > { %14151 = vrot.lane.b32.xlu0 %v16177_v0, %s15373_s11  ;;  %v13879_v4 = vunpack.i.h.bf16 %v13877_v11  ;;  %v13878_v25 = vunpack.i.l.bf16 %v13877_v11  ;;  %v13872_v1 = vpop.permute.xlu0 %13871  ;;  %7908 = vmatprep.subr.bf16.mxu1 %v15136_v17  ;;  %v16425_v37 = vpack.i.bf16 %v16396_v49, %v16390_v55  ;;  %v16433_v12 = vpack.i.bf16 %v16419_v2, %v16416_v5  ;;  %v16440_v42 = vld [vmem:[%s15553_s24 + $0x160] sm:$0xff] }
 0x198   : > { %v13874_v51 = vunpack.i.h.bf16 %v13872_v1  ;;  %v13873_v62 = vunpack.i.l.bf16 %v13872_v1  ;;  %7895 = vmatprep.mubr.bf16.mxu0 %v21047_v22  ;;  %7938 = vmatprep.mubr.bf16.mxu1 %v21047_v22  ;;  %v12816_v30 = vcombine.low %v5635_v27, %v5635_v27  ;;  %v12817_v1 = vcombine.high %v5635_v27, %v5635_v27 }
 0x199   : > { %v1716_v21 = vsel %vm441_vm3, %v13878_v25, %v13879_v4  ;;  %7866 = vmatpush1.bf16.msra.mxu0 %v12600_v40  ;;  %7909 = vmatpush1.bf16.msra.mxu1 %v15135_v54  ;;  %v16443_v40 = vld [vmem:[%s15553_s24 + $0x168] sm:$0xff] }
 0x19a   : > { %v13061_v3 = vpack.c.bf16 %v1716_v21, %v1716_v21  ;;  %v16402_v58 = vsel %vm441_vm3, %v13874_v51, %v13878_v25  ;;  %v16405_v32 = vsel %vm441_vm3, %v13869_v28, %v13873_v62  ;;  %v16408_v56 = vsel %vm441_vm3, %v13873_v62, %v13874_v51  ;;  %14166 = vrot.lane.b32.xlu1 %v16163_v43, %s15374_s10  ;;  %v13887_v6 = vpop.permute.xlu1 %13886  ;;  %v15031_v62 = vld [vmem:[#allocation3 + $0x50] sm:$0xff] }
 0x19b   : > { %14161 = vrot.lane.b32.xlu0 %v16136_v15, %s15374_s10  ;;  %7867 = vmatprep.subr.bf16.mxu0 %v12673_v29  ;;  %v13888_v57 = vunpack.i.l.bf16 %v13887_v6  ;;  %v13882_v19 = vpop.permute.xlu0 %13881  ;;  %v13889_v20 = vunpack.i.h.bf16 %v13887_v6  ;;  %v16429_v15 = vpack.i.bf16 %v16413_v33, %v16399_v53  ;;  %v12744_v28 = vcombine.low %v5563_v47, %v5599_v61 }
 0x19c   : > { %2163 = vst [vmem:[#allocation3 + $0x4e8] sm:$0xf] %v13061_v3  ;;  %v13884_v43 = vunpack.i.h.bf16 %v13882_v19  ;;  %v13883_v38 = vunpack.i.l.bf16 %v13882_v19  ;;  %v16452_v51 = vpack.i.bf16 %v16443_v40, %v16440_v42  ;;  %v7352_v19 = vsel %vm7302_vm8, %v12816_v30, 0 }
 0x19d   : > { %7868 = vmatpush1.bf16.msra.mxu0 %v12672_v39  ;;  %v16448_v4 = vsel %vm480_vm4, %v13888_v57, %v13889_v20  ;;  %v16470_v39 = vld [vmem:[%s15553_s24 + $0x180] sm:$0xff]  ;;  %v15139_v30 = vpack.c.bf16 %v16336_v26, %v16288_v13 }
 0x19e   : > { %v1747_v31 = vsel %vm480_vm4, %v13884_v43, %v13888_v57  ;;  %v1746_v23 = vsel %vm480_vm4, %v13883_v38, %v13884_v43  ;;  %14176 = vrot.lane.b32.xlu1 %v16177_v0, %s15374_s10  ;;  %7869 = vmatprep.subr.bf16.mxu0 %v12745_v8  ;;  %v13897_v41 = vpop.permute.xlu1 %13896 }
 0x19f   : > { %14171 = vrot.lane.b32.xlu0 %v16154_v9, %s15374_s10  ;;  %v13899_v54 = vunpack.i.h.bf16 %v13897_v41  ;;  %v13898_v17 = vunpack.i.l.bf16 %v13897_v41  ;;  %v13892_v11 = vpop.permute.xlu0 %13891  ;;  %v12533_v9 = vcombine.high %v15031_v62, %v16261_v36  ;;  %v15137_v45 = vpack.c.bf16 %v1746_v23, %v16363_v24  ;;  %v12300_v24 = vld [vmem:[%s15553_s24 + $0x188] sm:$0xff] }
 0x1a0   : > { %v13894_v25 = vunpack.i.h.bf16 %v13892_v11  ;;  %v13893_v0 = vunpack.i.l.bf16 %v13892_v11  ;;  %v15138_v21 = vpack.c.bf16 %v1747_v31, %v16377_v44  ;;  %v16480_v8 = vpack.i.bf16 %v12300_v24, %v16470_v39 }
 0x1a1   : > { %7870 = vmatpush1.bf16.msra.mxu0 %v12744_v28  ;;  %v16474_v44 = vsel %vm480_vm4, %v13898_v17, %v13899_v54  ;;  %v12532_v23 = vcombine.low %v15031_v62, %v16261_v36  ;;  %v15140_v36 = vpack.c.bf16 %v16330_v52, %v16294_v63 }
 0x1a2   : > { %v16458_v29 = vsel %vm480_vm4, %v13894_v25, %v13898_v17  ;;  %v16461_v61 = vsel %vm480_vm4, %v13889_v20, %v13893_v0  ;;  %v16464_v3 = vsel %vm480_vm4, %v13893_v0, %v13894_v25  ;;  %14186 = vrot.lane.b32.xlu1 %v16425_v37, %s15367_s25  ;;  %12888 = vmatprep.subr.msk.bf16.mxu0 %vm7302_vm8, %v12817_v1  ;;  %v13907_v6 = vpop.permute.xlu1 %13906 }
 0x1a3   : > { %14181 = vrot.lane.b32.xlu0 %v16429_v15, %s15367_s25  ;;  %v13902_v57 = vpop.permute.xlu0 %13901  ;;  %7910 = vmatprep.subr.bf16.mxu1 %v15138_v21  ;;  %v13909_v47 = vunpack.i.h.bf16 %v13907_v6  ;;  %v13908_v20 = vunpack.i.l.bf16 %v13907_v6 }
 0x1a4   : > { %v13904_v43 = vunpack.i.h.bf16 %v13902_v57  ;;  %v13903_v38 = vunpack.i.l.bf16 %v13902_v57  ;;  %7911 = vmatpush1.bf16.msra.mxu1 %v15137_v45 }
 0x1a5   : > { %7872 = vmatpush1.bf16.msra.mxu0 %v7352_v19  ;;  %v15141_v19 = vpack.c.bf16 %v16461_v61, %v16374_v59 }
 0x1a6   : > { %v16483_v27 = vsel %vm480_vm4, %v13899_v54, %v13903_v38  ;;  %v1754_v31 = vsel %vm480_vm4, %v13903_v38, %v13904_v43  ;;  %14196 = vrot.lane.b32.xlu1 %v16433_v12, %s15367_s25  ;;  %7949 = vmatprep.subr.bf16.mxu0 %v12533_v9  ;;  %v13917_v28 = vpop.permute.xlu1 %13916  ;;  %v16494_v54 = vsel %vm519_vm5, %v13908_v20, %v13909_v47 }
 0x1a7   : > { %v13066_v41 = vpack.c.bf16 %v1754_v31, %v1754_v31  ;;  %14191 = vrot.lane.b32.xlu0 %v16452_v51, %s15367_s25  ;;  %v13918_v17 = vunpack.i.l.bf16 %v13917_v28  ;;  %v13912_v11 = vpop.permute.xlu0 %13911  ;;  %v13919_v25 = vunpack.i.h.bf16 %v13917_v28  ;;  %v13128_v20 = vpack.c.bf16 %v16396_v49, %v16390_v55 }
 0x1a8   : > { %v13914_v0 = vunpack.i.h.bf16 %v13912_v11  ;;  %v13913_v1 = vunpack.i.l.bf16 %v13912_v11  ;;  %12889 = vmatmul.mubr.msk.bf16.vlgmr.msra.gmra.mrb[16].mxu0 %vm7298_vm9, %v16281_v16  ;;  %v15142_v55 = vpack.c.bf16 %v16448_v4, %v16380_v7  ;;  %v13130_v7 = vpack.c.bf16 %v16419_v2, %v16416_v5 }
 0x1a9   : > { %2168 = vst [vmem:[#allocation3 + $0x608] sm:$0xf] %v13066_v41  ;;  %7950 = vmatpush1.bf16.msra.mxu0 %v12532_v23  ;;  %7981 = vmatprep.mubr.bf16.mxu0 %v21047_v22  ;;  %v16513_v21 = vsel %vm519_vm5, %v13918_v17, %v13919_v25  ;;  %3402 = vst [vmem:[#allocation3 + $0x98] sm:$0xff] %v13128_v20  ;;  %v13129_v41 = vpack.c.bf16 %v16443_v40, %v16440_v42 }
 0x1aa   : > { %v16502_v62 = vsel %vm519_vm5, %v13914_v0, %v13918_v17  ;;  %v1785_v13 = vsel %vm519_vm5, %v13909_v47, %v13913_v1  ;;  %v16506_v26 = vsel %vm519_vm5, %v13913_v1, %v13914_v0  ;;  %14206 = vrot.lane.b32.xlu1 %v16429_v15, %s15368_s27  ;;  %7951 = vmatprep.subr.bf16.mxu0 %v15139_v30  ;;  %v13927_v9 = vpop.permute.xlu1 %13926 }
 0x1ab   : > { %14201 = vrot.lane.b32.xlu0 %v16480_v8, %s15367_s25  ;;  %v13929_v45 = vunpack.i.h.bf16 %v13927_v9  ;;  %v13928_v63 = vunpack.i.l.bf16 %v13927_v9  ;;  %v13922_v52 = vpop.permute.xlu0 %13921  ;;  %v13127_v47 = vpack.c.bf16 %v16413_v33, %v16399_v53  ;;  %3403 = vst [vmem:[#allocation3 + $0xa0] sm:$0xff] %v13129_v41  ;;  %3404 = vst [vmem:[#allocation3 + $0xa8] sm:$0xff] %v13130_v7 }
 0x1ac   : > { %v13924_v6 = vunpack.i.h.bf16 %v13922_v52  ;;  %v13923_v24 = vunpack.i.l.bf16 %v13922_v52 }
 0x1ad   : > { %v1792_v57 = vsel %vm519_vm5, %v13928_v63, %v13929_v45  ;;  %7952 = vmatpush1.bf16.msra.mxu0 %v15140_v36  ;;  %3401 = vst [vmem:[#allocation3 + $0x90] sm:$0xff] %v13127_v47 }
 0x1ae   : > { %v13071_v43 = vpack.c.bf16 %v1792_v57, %v1792_v57  ;;  %v16523_v38 = vsel %vm519_vm5, %v13924_v6, %v13928_v63  ;;  %v16526_v31 = vsel %vm519_vm5, %v13919_v25, %v13923_v24  ;;  %v16529_v23 = vsel %vm519_vm5, %v13923_v24, %v13924_v6  ;;  %14216 = vrot.lane.b32.xlu1 %v16452_v51, %s15368_s27  ;;  %v13937_v59 = vpop.permute.xlu1 %13936 }
 0x1af   : > { %14211 = vrot.lane.b32.xlu0 %v16425_v37, %s15368_s27  ;;  %v13938_v53 = vunpack.i.l.bf16 %v13937_v59  ;;  %v13932_v33 = vpop.permute.xlu0 %13931  ;;  %7953 = vmatprep.subr.bf16.mxu0 %v15141_v19  ;;  %v13939_v49 = vunpack.i.h.bf16 %v13937_v59 }
 0x1b0   : > { %2173 = vst [vmem:[#allocation3 + $0x728] sm:$0xf] %v13071_v43  ;;  %v13934_v61 = vunpack.i.h.bf16 %v13932_v33  ;;  %v13933_v28 = vunpack.i.l.bf16 %v13932_v33 }
 0x1b1   : > { %7954 = vmatpush1.bf16.msra.mxu0 %v15142_v55  ;;  %v1824_v42 = vsel %vm558_vm6, %v13938_v53, %v13939_v49 }
 0x1b2   : > { %v1823_v17 = vsel %vm558_vm6, %v13934_v61, %v13938_v53  ;;  %v1822_v11 = vsel %vm558_vm6, %v13933_v28, %v13934_v61  ;;  %14226 = vrot.lane.b32.xlu1 %v16480_v8, %s15368_s27  ;;  %v13947_v30 = vpop.permute.xlu1 %13946  ;;  %v15145_v19 = vpack.c.bf16 %v1824_v42, %v16506_v26  ;;  %v5386_v28 = vld [vmem:[#allocation3 + $0x178] sm:$0xff] }
 0x1b3   : > { %14221 = vrot.lane.b32.xlu0 %v16433_v12, %s15368_s27  ;;  %v13949_v4 = vunpack.i.h.bf16 %v13947_v30  ;;  %v13948_v25 = vunpack.i.l.bf16 %v13947_v30  ;;  %v13942_v0 = vpop.permute.xlu0 %13941  ;;  %v15143_v36 = vpack.c.bf16 %v1822_v11, %v16494_v54  ;;  %v15144_v9 = vpack.c.bf16 %v1823_v17, %v1785_v13 }
 0x1b4   : > { %v13944_v40 = vunpack.i.h.bf16 %v13942_v0  ;;  %v13943_v1 = vunpack.i.l.bf16 %v13942_v0 }
 0x1b5   : > { %v16559_v52 = vsel %vm558_vm6, %v13948_v25, %v13949_v4  ;;  %7912 = vmatprep.subr.bf16.mxu1 %v15144_v9 }
 0x1b6   : > { %v16550_v45 = vsel %vm558_vm6, %v13944_v40, %v13948_v25  ;;  %v1825_v5 = vsel %vm558_vm6, %v13939_v49, %v13943_v1  ;;  %v16554_v2 = vsel %vm558_vm6, %v13943_v1, %v13944_v40  ;;  %14236 = vrot.lane.b32.xlu1 %v16425_v37, %s15369_s14  ;;  %v13957_v63 = vpop.permute.xlu1 %13956  ;;  %7913 = vmatpush1.bf16.msra.mxu1 %v15143_v36  ;;  %v15032_v1 = vld [vmem:[#allocation3 + $0x58] sm:$0xff] }
 0x1b7   : > { %14231 = vrot.lane.b32.xlu0 %v16429_v15, %s15369_s14  ;;  %v13952_v54 = vpop.permute.xlu0 %13951  ;;  %v13959_v13 = vunpack.i.h.bf16 %v13957_v63  ;;  %v13958_v6 = vunpack.i.l.bf16 %v13957_v63  ;;  %v15146_v47 = vpack.c.bf16 %v1825_v5, %v16502_v62  ;;  %v12535_v36 = vcombine.high %v15032_v1, %v5386_v28 }
 0x1b8   : > { %v13954_v24 = vunpack.i.h.bf16 %v13952_v54  ;;  %v13953_v57 = vunpack.i.l.bf16 %v13952_v54 }
 0x1b9   : > { %7955 = vmatprep.subr.bf16.mxu0 %v15146_v47  ;;  %v1860_v26 = vsel %vm597_vm7, %v13958_v6, %v13959_v13 }
 0x1ba   : > { %v16566_v20 = vsel %vm558_vm6, %v13949_v4, %v13953_v57  ;;  %v1830_v43 = vsel %vm558_vm6, %v13953_v57, %v13954_v24  ;;  %14246 = vrot.lane.b32.xlu1 %v16433_v12, %s15369_s14  ;;  %v13967_v59 = vpop.permute.xlu1 %13966  ;;  %7956 = vmatpush1.bf16.msra.mxu0 %v15145_v19  ;;  %v15149_v54 = vpack.c.bf16 %v1860_v26, %v1860_v26 }
 0x1bb   : > { %v13076_v53 = vpack.c.bf16 %v1830_v43, %v1830_v43  ;;  %14241 = vrot.lane.b32.xlu0 %v16452_v51, %s15369_s14  ;;  %v13968_v33 = vunpack.i.l.bf16 %v13967_v59  ;;  %v13962_v55 = vpop.permute.xlu0 %13961  ;;  %v13969_v49 = vunpack.i.h.bf16 %v13967_v59 }
 0x1bc   : > { %v13964_v62 = vunpack.i.h.bf16 %v13962_v55  ;;  %v13963_v61 = vunpack.i.l.bf16 %v13962_v55  ;;  %v7358_v26 = vsel %vm7302_vm8, %v15149_v54, 0  ;;  %v15153_v54 = vpack.c.bf16 %v16354_v60, %v16307_v18 }
 0x1bd   : > { %2178 = vst [vmem:[#allocation3 + $0x848] sm:$0xf] %v13076_v53  ;;  %v16582_v0 = vsel %vm597_vm7, %v13968_v33, %v13969_v49  ;;  %v5387_v53 = vld [vmem:[#allocation3 + $0x180] sm:$0xff] }
 0x1be   : > { %v1863_v41 = vsel %vm597_vm7, %v13964_v62, %v13968_v33  ;;  %v1861_v17 = vsel %vm597_vm7, %v13959_v13, %v13963_v61  ;;  %v1862_v11 = vsel %vm597_vm7, %v13963_v61, %v13964_v62  ;;  %14256 = vrot.lane.b32.xlu1 %v16429_v15, %s15370_s29  ;;  %v13977_v30 = vpop.permute.xlu1 %13976  ;;  %v12534_v62 = vcombine.low %v15032_v1, %v5386_v28 }
 0x1bf   : > { %14251 = vrot.lane.b32.xlu0 %v16480_v8, %s15369_s14  ;;  %v13979_v7 = vunpack.i.h.bf16 %v13977_v30  ;;  %v13978_v4 = vunpack.i.l.bf16 %v13977_v30  ;;  %v13972_v25 = vpop.permute.xlu0 %13971  ;;  %v15147_v5 = vpack.c.bf16 %v1861_v17, %v1861_v17  ;;  %v15148_v63 = vpack.c.bf16 %v1863_v41, %v1863_v41 }
 0x1c0   : > { %v13974_v42 = vunpack.i.h.bf16 %v13972_v25  ;;  %v13973_v40 = vunpack.i.l.bf16 %v13972_v25 }
 0x1c1   : > { %v1868_v9 = vsel %vm597_vm7, %v13978_v4, %v13979_v7  ;;  %12890 = vmatprep.subr.msk.bf16.mxu1 %vm7302_vm8, %v15147_v5  ;;  %12892 = vmatprep.subr.msk.bf16.mxu0 %vm7302_vm8, %v15148_v63  ;;  %v15033_v7 = vld [vmem:[#allocation3 + $0x60] sm:$0xff]  ;;  %v15152_v63 = vpack.c.bf16 %v16333_v48, %v16310_v10 }
 0x1c2   : > { %v13081_v13 = vpack.c.bf16 %v1868_v9, %v1868_v9  ;;  %v16586_v6 = vsel %vm597_vm7, %v13974_v42, %v13978_v4  ;;  %v16589_v24 = vsel %vm597_vm7, %v13969_v49, %v13973_v40  ;;  %v16592_v57 = vsel %vm597_vm7, %v13973_v40, %v13974_v42  ;;  %14266 = vrot.lane.b32.xlu1 %v16452_v51, %s15370_s29  ;;  %v13987_v19 = vpop.permute.xlu1 %13986 }
 0x1c3   : > { %14261 = vrot.lane.b32.xlu0 %v16425_v37, %s15370_s29  ;;  %v13989_v47 = vunpack.i.h.bf16 %v13987_v19  ;;  %v13988_v43 = vunpack.i.l.bf16 %v13987_v19  ;;  %v13982_v59 = vpop.permute.xlu0 %13981  ;;  %v15150_v49 = vpack.c.bf16 %v1862_v11, %v1862_v11  ;;  %7915 = vmatpush1.bf16.msra.mxu1 %v7358_v26  ;;  %v12537_v4 = vcombine.high %v15033_v7, %v5387_v53 }
 0x1c4   : > { %2183 = vst [vmem:[#allocation3 + $0x968] sm:$0xf] %v13081_v13  ;;  %v13984_v33 = vunpack.i.h.bf16 %v13982_v59  ;;  %v13983_v55 = vunpack.i.l.bf16 %v13982_v59  ;;  %7992 = vmatprep.subr.bf16.mxu1 %v12535_v36  ;;  %v12536_v40 = vcombine.low %v15033_v7, %v5387_v53  ;;  %v15151_v36 = vpack.c.bf16 %v16339_v34, %v16301_v35 }
 0x1c5   : > { %v7364_v30 = vsel %vm7302_vm8, %v15150_v49, 0  ;;  %v2227_v1 = vsel %vm324_vm0, %v13988_v43, %v13989_v47  ;;  %v15154_v13 = vpack.c.bf16 %v16458_v29, %v16405_v32  ;;  %v15156_v53 = vpack.c.bf16 %v16464_v3, %v16387_v50 }
 0x1c6   : > { %v2226_v61 = vsel %vm324_vm0, %v13984_v33, %v13988_v43  ;;  %v2225_v41 = vsel %vm324_vm0, %v13983_v55, %v13984_v33  ;;  %14276 = vrot.lane.b32.xlu1 %v16480_v8, %s15370_s29  ;;  %v13997_v17 = vpop.permute.xlu1 %13996  ;;  %7958 = vmatpush1.bf16.msra.mxu0 %v7364_v30  ;;  %v15157_v49 = vpack.c.bf16 %v16483_v27, %v16402_v58 }
 0x1c7   : > { %v13087_v25 = vpack.c.bf16 %v2226_v61, %v2225_v41  ;;  %14271 = vrot.lane.b32.xlu0 %v16433_v12, %s15370_s29  ;;  %v13999_v11 = vunpack.i.h.bf16 %v13997_v17  ;;  %v13998_v42 = vunpack.i.l.bf16 %v13997_v17  ;;  %v13992_v28 = vpop.permute.xlu0 %13991  ;;  %8035 = vmatprep.subr.bf16.mxu0 %v12537_v4  ;;  %v15158_v3 = vpack.c.bf16 %v16550_v45, %v16526_v31 }
 0x1c8   : > { %v13994_v9 = vunpack.i.h.bf16 %v13992_v28  ;;  %v13993_v5 = vunpack.i.l.bf16 %v13992_v28  ;;  %12891 = vmatmul.mubr.msk.bf16.vlgmr.msra.gmra.mrb[16].mxu1 %vm7298_vm9, %v16281_v16  ;;  %v15159_v58 = vpack.c.bf16 %v16474_v44, %v16408_v56  ;;  %v15160_v27 = vpack.c.bf16 %v16554_v2, %v16513_v21 }
 0x1c9   : > { %2775 = vst [vmem:[#allocation3 + $0x18c] sm:$0xff] %v13087_v25  ;;  %7993 = vmatpush1.bf16.msra.mxu1 %v12534_v62  ;;  %8024 = vmatprep.mubr.bf16.mxu1 %v21047_v22  ;;  %v2231_v18 = vsel %vm324_vm0, %v13998_v42, %v13999_v11  ;;  %v15161_v7 = vpack.c.bf16 %v16566_v20, %v16523_v38 }
 0x1ca   : > { %v2230_v19 = vsel %vm324_vm0, %v13994_v9, %v13998_v42  ;;  %v2228_v43 = vsel %vm324_vm0, %v13989_v47, %v13993_v5  ;;  %v2229_v59 = vsel %vm324_vm0, %v13993_v5, %v13994_v9  ;;  %14286 = vrot.lane.b32.xlu1 %v16425_v37, %s15371_s8  ;;  %v14007_v35 = vpop.permute.xlu1 %14006  ;;  %12893 = vmatmul.mubr.msk.bf16.vlgmr.msra.gmra.mrb[20].mxu0 %vm7298_vm9, %v16281_v16 }
 0x1cb   : > { %v13088_v10 = vpack.c.bf16 %v2228_v43, %v2227_v1  ;;  %v13089_v48 = vpack.c.bf16 %v2230_v19, %v2229_v59  ;;  %14281 = vrot.lane.b32.xlu0 %v16429_v15, %s15371_s8  ;;  %v14002_v34 = vpop.permute.xlu0 %14001  ;;  %8036 = vmatpush1.bf16.msra.mxu0 %v12536_v40  ;;  %v14009_v60 = vunpack.i.h.bf16 %v14007_v35  ;;  %v14008_v32 = vunpack.i.l.bf16 %v14007_v35  ;;  %v5353_v35 = vld [vmem:[#allocation3 + $0x70] sm:$0xff] }
 0x1cc   : > { %v14004_v29 = vunpack.i.h.bf16 %v14002_v34  ;;  %v14003_v47 = vunpack.i.l.bf16 %v14002_v34  ;;  %7994 = vmatprep.subr.bf16.mxu1 %v15152_v63  ;;  %8037 = vmatprep.subr.bf16.mxu0 %v15153_v54  ;;  %v15155_v16 = vpack.c.bf16 %v16346_v14, %v16313_v46  ;;  %v15162_v31 = vpack.c.bf16 %v16582_v0, %v16582_v0 }
 0x1cd   : > { %2776 = vst [vmem:[#allocation3 + $0x194] sm:$0xff] %v13088_v10  ;;  %2777 = vst [vmem:[#allocation3 + $0x19c] sm:$0xff] %v13089_v48  ;;  %7995 = vmatpush1.bf16.msra.mxu1 %v15151_v36  ;;  %8067 = vmatprep.mubr.bf16.mxu0 %v21047_v22  ;;  %v2263_v61 = vsel %vm363_vm1, %v14008_v32, %v14009_v60  ;;  %v15163_v28 = vpack.c.bf16 %v16559_v52, %v16529_v23  ;;  %v5352_v36 = vld [vmem:[#allocation3 + $0x68] sm:$0xff] }
 0x1ce   : > { %v2232_v33 = vsel %vm324_vm0, %v13999_v11, %v14003_v47  ;;  %v2233_v55 = vsel %vm324_vm0, %v14003_v47, %v14004_v29  ;;  %14296 = vrot.lane.b32.xlu1 %v16433_v12, %s15371_s8  ;;  %v14017_v26 = vpop.permute.xlu1 %14016  ;;  %7996 = vmatprep.subr.bf16.mxu1 %v15154_v13  ;;  %v15164_v1 = vpack.c.bf16 %v16589_v24, %v16589_v24  ;;  %v7370_v59 = vsel %vm7302_vm8, %v15162_v31, 0 }
 0x1cf   : > { %v13090_v62 = vpack.c.bf16 %v2232_v33, %v2231_v18  ;;  %v13091_v46 = vpack.c.bf16 %v2233_v55, %v2233_v55  ;;  %14291 = vrot.lane.b32.xlu0 %v16452_v51, %s15371_s8  ;;  %v14018_v14 = vunpack.i.l.bf16 %v14017_v26  ;;  %v14012_v50 = vpop.permute.xlu0 %14011  ;;  %8038 = vmatpush1.bf16.msra.mxu0 %v15155_v16  ;;  %v14019_v41 = vunpack.i.h.bf16 %v14017_v26 }
 0x1d0   : > { %v14014_v17 = vunpack.i.h.bf16 %v14012_v50  ;;  %v14013_v30 = vunpack.i.l.bf16 %v14012_v50  ;;  %8039 = vmatprep.subr.bf16.mxu0 %v15157_v49  ;;  %v15165_v9 = vpack.c.bf16 %v16586_v6, %v16586_v6  ;;  %v15166_v5 = vpack.c.bf16 %v16592_v57, %v16592_v57  ;;  %v5388_v63 = vld [vmem:[#allocation3 + $0x188] sm:$0xff] }
 0x1d1   : > { %2778 = vst [vmem:[#allocation3 + $0x1a4] sm:$0xff] %v13090_v62  ;;  %2779 = vst [vmem:[#allocation3 + $0x1ac] sm:$0xf] %v13091_v46  ;;  %7997 = vmatpush1.bf16.msra.mxu1 %v15156_v53  ;;  %v2267_v20 = vsel %vm363_vm1, %v14018_v14, %v14019_v41  ;;  %v12538_v62 = vcombine.low %v5352_v36, %v5388_v63 }
 0x1d2   : > { %v2266_v45 = vsel %vm363_vm1, %v14014_v17, %v14018_v14  ;;  %v2264_v4 = vsel %vm363_vm1, %v14009_v60, %v14013_v30  ;;  %v2265_v25 = vsel %vm363_vm1, %v14013_v30, %v14014_v17  ;;  %14306 = vrot.lane.b32.xlu1 %v16429_v15, %s15372_s15  ;;  %v14027_v56 = vpop.permute.xlu1 %14026  ;;  %7998 = vmatprep.subr.bf16.mxu1 %v15158_v3  ;;  %v7376_v16 = vsel %vm7302_vm8, %v15166_v5, 0  ;;  %v16692_v3 = vld [vmem:[%s21039_s1] sm:$0xff]  }
 0x1d3   : > { %v13092_v44 = vpack.c.bf16 %v2264_v4, %v2263_v61  ;;  %v13093_v11 = vpack.c.bf16 %v2266_v45, %v2265_v25  ;;  %14301 = vrot.lane.b32.xlu0 %v16480_v8, %s15371_s8  ;;  %v14029_v21 = vunpack.i.h.bf16 %v14027_v56  ;;  %v14028_v38 = vunpack.i.l.bf16 %v14027_v56  ;;  %v14022_v2 = vpop.permute.xlu0 %14021  ;;  %8040 = vmatpush1.bf16.msra.mxu0 %v15159_v58 }
 0x1d4   : > { %v14024_v0 = vunpack.i.h.bf16 %v14022_v2  ;;  %v14023_v42 = vunpack.i.l.bf16 %v14022_v2  ;;  %8041 = vmatprep.subr.bf16.mxu0 %v15161_v7  ;;  %v5389_v18 = vld [vmem:[#allocation3 + $0x190] sm:$0xff]  ;;  %v12539_v60 = vcombine.high %v5352_v36, %v5388_v63 }
 0x1d5   : > { %2780 = vst [vmem:[#allocation3 + $0x2ac] sm:$0xff] %v13092_v44  ;;  %2781 = vst [vmem:[#allocation3 + $0x2b4] sm:$0xff] %v13093_v11  ;;  %v2271_v40 = vsel %vm363_vm1, %v14028_v38, %v14029_v21  ;;  %7999 = vmatpush1.bf16.msra.mxu1 %v15160_v27  ;;  %v12541_v53 = vcombine.high %v5353_v35, %v5389_v18  ;;  %v12540_v61 = vcombine.low %v5353_v35, %v5389_v18 }
 0x1d6   : > { %v13096_v54 = vpack.c.bf16 %v2271_v40, %v2271_v40  ;;  %v2270_v23 = vsel %vm363_vm1, %v14024_v0, %v14028_v38  ;;  %v2268_v52 = vsel %vm363_vm1, %v14019_v41, %v14023_v42  ;;  %v2269_v13 = vsel %vm363_vm1, %v14023_v42, %v14024_v0  ;;  %14316 = vrot.lane.b32.xlu1 %v16452_v51, %s15372_s15  ;;  %v14037_v19 = vpop.permute.xlu1 %14036 }
 0x1d7   : > { %v13094_v24 = vpack.c.bf16 %v2268_v52, %v2267_v20  ;;  %v13095_v43 = vpack.c.bf16 %v2270_v23, %v2269_v13  ;;  %14311 = vrot.lane.b32.xlu0 %v16425_v37, %s15372_s15  ;;  %v14038_v6 = vunpack.i.l.bf16 %v14037_v19  ;;  %v14032_v57 = vpop.permute.xlu0 %14031  ;;  %8042 = vmatpush1.bf16.msra.mxu0 %v15163_v28  ;;  %v14039_v10 = vunpack.i.h.bf16 %v14037_v19 }
 0x1d8   : > { %2784 = vst [vmem:[#allocation3 + $0x2cc] sm:$0xf] %v13096_v54  ;;  %v14034_v48 = vunpack.i.h.bf16 %v14032_v57  ;;  %v14033_v34 = vunpack.i.l.bf16 %v14032_v57  ;;  %12894 = vmatprep.subr.msk.bf16.mxu1 %vm7302_vm8, %v15164_v1  ;;  %12896 = vmatprep.subr.msk.bf16.mxu0 %vm7302_vm8, %v15165_v9 }
 0x1d9   : > { %2782 = vst [vmem:[#allocation3 + $0x2bc] sm:$0xff] %v13094_v24  ;;  %2783 = vst [vmem:[#allocation3 + $0x2c4] sm:$0xff] %v13095_v43  ;;  %8001 = vmatpush1.bf16.msra.mxu1 %v7370_v59  ;;  %v2303_v46 = vsel %vm402_vm2, %v14038_v6, %v14039_v10 }
 0x1da   : > { %v2302_v32 = vsel %vm402_vm2, %v14034_v48, %v14038_v6  ;;  %v2301_v29 = vsel %vm402_vm2, %v14033_v34, %v14034_v48  ;;  %14326 = vrot.lane.b32.xlu1 %v16480_v8, %s15372_s15  ;;  %v14047_v47 = vpop.permute.xlu1 %14046  ;;  %8078 = vmatprep.subr.bf16.mxu1 %v12539_v60 }
 0x1db   : > { %v13097_v33 = vpack.c.bf16 %v2302_v32, %v2301_v29  ;;  %14321 = vrot.lane.b32.xlu0 %v16433_v12, %s15372_s15  ;;  %v14049_v55 = vunpack.i.h.bf16 %v14047_v47  ;;  %v14048_v26 = vunpack.i.l.bf16 %v14047_v47  ;;  %v14042_v49 = vpop.permute.xlu0 %14041  ;;  %8044 = vmatpush1.bf16.msra.mxu0 %v7376_v16 }
 0x1dc   : > { %v14044_v14 = vunpack.i.h.bf16 %v14042_v49  ;;  %v14043_v50 = vunpack.i.l.bf16 %v14042_v49  ;;  %8121 = vmatprep.subr.bf16.mxu0 %v12541_v53  ;;  %12895 = vmatmul.mubr.msk.bf16.vlgmr.msra.gmra.mrb[20].mxu1 %vm7298_vm9, %v16692_v3  ;;  %v5424_v5 = vld [vmem:[#allocation3 + $0x2a8] sm:$0xff]  ;;  %v5425_v48 = vld [vmem:[#allocation3 + $0x2b0] sm:$0xff] }
 0x1dd   : > { %2785 = vst [vmem:[#allocation3 + $0x3cc] sm:$0xff] %v13097_v33  ;;  %8079 = vmatpush1.bf16.msra.mxu1 %v12538_v62  ;;  %8110 = vmatprep.mubr.bf16.mxu1 %v21047_v22  ;;  %v2307_v27 = vsel %vm402_vm2, %v14048_v26, %v14049_v55 }
 0x1de   : > { %v2306_v41 = vsel %vm402_vm2, %v14044_v14, %v14048_v26  ;;  %v2304_v17 = vsel %vm402_vm2, %v14039_v10, %v14043_v50  ;;  %v2305_v30 = vsel %vm402_vm2, %v14043_v50, %v14044_v14  ;;  %14336 = vrot.lane.b32.xlu1 %v16425_v37, %s15373_s11  ;;  %v14057_v58 = vpop.permute.xlu1 %14056  ;;  %12897 = vmatmul.mubr.msk.bf16.vlgmr.msra.gmra.mrb[24].mxu0 %vm7298_vm9, %v16692_v3  ;;  %v16735_v14 = vld [vmem:[%s15553_s24 + $0x1a8] sm:$0xff] }
 0x1df   : > { %v13098_v7 = vpack.c.bf16 %v2304_v17, %v2303_v46  ;;  %v13099_v31 = vpack.c.bf16 %v2306_v41, %v2305_v30  ;;  %14331 = vrot.lane.b32.xlu0 %v16429_v15, %s15373_s11  ;;  %v14052_v45 = vpop.permute.xlu0 %14051  ;;  %8122 = vmatpush1.bf16.msra.mxu0 %v12540_v61  ;;  %v14059_v4 = vunpack.i.h.bf16 %v14057_v58  ;;  %v14058_v25 = vunpack.i.l.bf16 %v14057_v58  ;;  %v16732_v46 = vld [vmem:[%s15553_s24 + $0x1a0] sm:$0xff]  ;;  %v12347_v41 = vld [vmem:[%s15553_s24 + $0x198] sm:$0xff] }
 0x1e0   : > { %v14054_v56 = vunpack.i.h.bf16 %v14052_v45  ;;  %v14053_v44 = vunpack.i.l.bf16 %v14052_v45  ;;  %8153 = vmatprep.mubr.bf16.mxu0 %v21047_v22 }
 0x1e1   : > { %2786 = vst [vmem:[#allocation3 + $0x3d4] sm:$0xff] %v13098_v7  ;;  %2787 = vst [vmem:[#allocation3 + $0x3dc] sm:$0xff] %v13099_v31  ;;  %v2339_v28 = vsel %vm441_vm3, %v14058_v25, %v14059_v4  ;;  %v16755_v25 = vld [vmem:[%s15553_s24 + $0x1c8] sm:$0xff] }
 0x1e2   : > { %v2308_v11 = vsel %vm402_vm2, %v14049_v55, %v14053_v44  ;;  %v2309_v21 = vsel %vm402_vm2, %v14053_v44, %v14054_v56  ;;  %14346 = vrot.lane.b32.xlu1 %v16433_v12, %s15373_s11  ;;  %v14067_v38 = vpop.permute.xlu1 %14066 }
 0x1e3   : > { %v13100_v2 = vpack.c.bf16 %v2308_v11, %v2307_v27  ;;  %v13101_v20 = vpack.c.bf16 %v2309_v21, %v2309_v21  ;;  %14341 = vrot.lane.b32.xlu0 %v16452_v51, %s15373_s11  ;;  %v14068_v0 = vunpack.i.l.bf16 %v14067_v38  ;;  %v14062_v42 = vpop.permute.xlu0 %14061  ;;  %v14069_v40 = vunpack.i.h.bf16 %v14067_v38  ;;  %v12350_v11 = vld [vmem:[%s15553_s24 + $0x1b0] sm:$0xff] }
 0x1e4   : > { %v14064_v1 = vunpack.i.h.bf16 %v14062_v42  ;;  %v14063_v9 = vunpack.i.l.bf16 %v14062_v42  ;;  %v5460_v36 = vld [vmem:[#allocation3 + $0x3c8] sm:$0xff]  ;;  %v16745_v27 = vpack.i.bf16 %v16735_v14, %v16732_v46 }
 0x1e5   : > { %2788 = vst [vmem:[#allocation3 + $0x3e4] sm:$0xff] %v13100_v2  ;;  %2789 = vst [vmem:[#allocation3 + $0x3ec] sm:$0xf] %v13101_v20  ;;  %v12610_v63 = vcombine.low %v5424_v5, %v5460_v36  ;;  %v12611_v54 = vcombine.high %v5424_v5, %v5460_v36  ;;  %v2343_v35 = vsel %vm441_vm3, %v14068_v0, %v14069_v40 }
 0x1e6   : > { %v2342_v23 = vsel %vm441_vm3, %v14064_v1, %v14068_v0  ;;  %v2340_v52 = vsel %vm441_vm3, %v14059_v4, %v14063_v9  ;;  %v2341_v13 = vsel %vm441_vm3, %v14063_v9, %v14064_v1  ;;  %14356 = vrot.lane.b32.xlu1 %v16429_v15, %s15374_s10  ;;  %v14077_v19 = vpop.permute.xlu1 %14076  ;;  %v16752_v4 = vld [vmem:[%s15553_s24 + $0x1c0] sm:$0xff]  ;;  %v13131_v20 = vpack.c.bf16 %v16470_v39, %v16470_v39  ;;  %v12355_v39 = vld [vmem:[%s15553_s24 + $0x1d8] sm:$0xff] }
 0x1e7   : > { %v13102_v24 = vpack.c.bf16 %v2340_v52, %v2339_v28  ;;  %v13103_v43 = vpack.c.bf16 %v2342_v23, %v2341_v13  ;;  %14351 = vrot.lane.b32.xlu0 %v16480_v8, %s15373_s11  ;;  %v14079_v6 = vunpack.i.h.bf16 %v14077_v19  ;;  %v14078_v57 = vunpack.i.l.bf16 %v14077_v19  ;;  %v14072_v59 = vpop.permute.xlu0 %14071  ;;  %8080 = vmatprep.subr.bf16.mxu1 %v12611_v54  ;;  %v12354_v23 = vld [vmem:[%s15553_s24 + $0x1d0] sm:$0xff] }
 0x1e8   : > { %v14074_v18 = vunpack.i.h.bf16 %v14072_v59  ;;  %v14073_v10 = vunpack.i.l.bf16 %v14072_v59  ;;  %8081 = vmatpush1.bf16.msra.mxu1 %v12610_v63  ;;  %v5461_v34 = vld [vmem:[#allocation3 + $0x3d0] sm:$0xff]  ;;  %3405 = vst [vmem:[#allocation3 + $0xb0] sm:$0xf] %v13131_v20 }
 0x1e9   : > { %2790 = vst [vmem:[#allocation3 + $0x4ec] sm:$0xff] %v13102_v24  ;;  %2791 = vst [vmem:[#allocation3 + $0x4f4] sm:$0xff] %v13103_v43  ;;  %v2347_v15 = vsel %vm441_vm3, %v14078_v57, %v14079_v6  ;;  %v12612_v60 = vcombine.low %v5425_v48, %v5461_v34  ;;  %v12613_v32 = vcombine.high %v5425_v48, %v5461_v34 }
 0x1ea   : > { %v13106_v29 = vpack.c.bf16 %v2347_v15, %v2347_v15  ;;  %v2346_v47 = vsel %vm441_vm3, %v14074_v18, %v14078_v57  ;;  %v2344_v16 = vsel %vm441_vm3, %v14069_v40, %v14073_v10  ;;  %v2345_v53 = vsel %vm441_vm3, %v14073_v10, %v14074_v18  ;;  %14366 = vrot.lane.b32.xlu1 %v16452_v51, %s15374_s10  ;;  %v14087_v33 = vpop.permute.xlu1 %14086  ;;  %v12346_v51 = vld [vmem:[%s15553_s24 + $0x190] sm:$0xff] }
 0x1eb   : > { %v13104_v55 = vpack.c.bf16 %v2344_v16, %v2343_v35  ;;  %v13105_v26 = vpack.c.bf16 %v2346_v47, %v2345_v53  ;;  %14361 = vrot.lane.b32.xlu0 %v16425_v37, %s15374_s10  ;;  %v14088_v49 = vunpack.i.l.bf16 %v14087_v33  ;;  %v14082_v62 = vpop.permute.xlu0 %14081  ;;  %8123 = vmatprep.subr.bf16.mxu0 %v12613_v32  ;;  %v14089_v37 = vunpack.i.h.bf16 %v14087_v33 }
 0x1ec   : > { %2794 = vst [vmem:[#allocation3 + $0x50c] sm:$0xf] %v13106_v29  ;;  %v14084_v50 = vunpack.i.h.bf16 %v14082_v62  ;;  %v14083_v61 = vunpack.i.l.bf16 %v14082_v62  ;;  %8124 = vmatpush1.bf16.msra.mxu0 %v12612_v60  ;;  %v16749_v45 = vpack.i.bf16 %v12347_v41, %v12346_v51  ;;  %v13172_v0 = vpack.c.bf16 %v12347_v41, %v12346_v51 }
 0x1ed   : > { %2792 = vst [vmem:[#allocation3 + $0x4fc] sm:$0xff] %v13104_v55  ;;  %2793 = vst [vmem:[#allocation3 + $0x504] sm:$0xff] %v13105_v26  ;;  %v2379_v21 = vsel %vm480_vm4, %v14088_v49, %v14089_v37  ;;  %v13173_v43 = vpack.c.bf16 %v16735_v14, %v16732_v46  ;;  %v16786_v35 = vpack.i.bf16 %v12355_v39, %v12354_v23 }
 0x1ee   : > { %v2378_v17 = vsel %vm480_vm4, %v14084_v50, %v14088_v49  ;;  %v2377_v30 = vsel %vm480_vm4, %v14083_v61, %v14084_v50  ;;  %14376 = vrot.lane.b32.xlu1 %v16480_v8, %s15374_s10  ;;  %v14097_v58 = vpop.permute.xlu1 %14096  ;;  %v12351_v8 = vld [vmem:[%s15553_s24 + $0x1b8] sm:$0xff]  ;;  %4032 = vst [vmem:[#allocation3 + $0xb4] sm:$0xff] %v13172_v0  ;;  %v13175_v26 = vpack.c.bf16 %v16755_v25, %v16752_v4 }
 0x1ef   : > { %v13107_v7 = vpack.c.bf16 %v2378_v17, %v2377_v30  ;;  %14371 = vrot.lane.b32.xlu0 %v16433_v12, %s15374_s10  ;;  %v14098_v31 = vunpack.i.l.bf16 %v14097_v58  ;;  %v14099_v56 = vunpack.i.h.bf16 %v14097_v58  ;;  %v16764_v12 = vpack.i.bf16 %v16755_v25, %v16752_v4  ;;  %4033 = vst [vmem:[#allocation3 + $0xbc] sm:$0xff] %v13173_v43 }
 0x1f0   : > { %v14092_v44 = vpop.permute.xlu0 %14091  ;;  %v16773_v1 = vpack.i.bf16 %v12351_v8, %v12350_v11  ;;  %v13174_v6 = vpack.c.bf16 %v12351_v8, %v12350_v11  ;;  %v5496_v15 = vld [vmem:[#allocation3 + $0x4e8] sm:$0xff]  ;;  %v13176_v49 = vpack.c.bf16 %v12354_v23, %v12354_v23  ;;  %4035 = vst [vmem:[#allocation3 + $0xcc] sm:$0xff] %v13175_v26  ;;  %v5497_v58 = vld [vmem:[#allocation3 + $0x4f0] sm:$0xff] }
 0x1f1   : > { %2795 = vst [vmem:[#allocation3 + $0x60c] sm:$0xff] %v13107_v7  ;;  %v14094_v38 = vunpack.i.h.bf16 %v14092_v44  ;;  %v14093_v2 = vunpack.i.l.bf16 %v14092_v44  ;;  %v2383_v9 = vsel %vm480_vm4, %v14098_v31, %v14099_v56 }
 0x1f2   : > { %14386 = vrot.lane.b32.xlu1 %v16745_v27, %s15367_s25  ;;  %4034 = vst [vmem:[#allocation3 + $0xc4] sm:$0xff] %v13174_v6  ;;  %4036 = vst [vmem:[#allocation3 + $0xd4] sm:$0xf] %v13176_v49 }
 0x1f3   : > { %v2382_v42 = vsel %vm480_vm4, %v14094_v38, %v14098_v31  ;;  %v2380_v28 = vsel %vm480_vm4, %v14089_v37, %v14093_v2  ;;  %v2381_v40 = vsel %vm480_vm4, %v14093_v2, %v14094_v38  ;;  %14381 = vrot.lane.b32.xlu0 %v16749_v45, %s15367_s25 }
 0x1f4   : > { %v13108_v5 = vpack.c.bf16 %v2380_v28, %v2379_v21  ;;  %v13109_v36 = vpack.c.bf16 %v2382_v42, %v2381_v40  ;;  %v14107_v63 = vpop.permute.xlu1 %14106  ;;  %v14102_v54 = vpop.permute.xlu0 %14101 }
 0x1f5   : > { %v14109_v52 = vunpack.i.h.bf16 %v14107_v63  ;;  %v14108_v13 = vunpack.i.l.bf16 %v14107_v63  ;;  %v14104_v19 = vunpack.i.h.bf16 %v14102_v54  ;;  %v14103_v24 = vunpack.i.l.bf16 %v14102_v54 }
 0x1f6   : > { %2796 = vst [vmem:[#allocation3 + $0x614] sm:$0xff] %v13108_v5  ;;  %2797 = vst [vmem:[#allocation3 + $0x61c] sm:$0xff] %v13109_v36  ;;  %14396 = vrot.lane.b32.xlu1 %v16764_v12, %s15367_s25 }
 0x1f7   : > { %v2384_v57 = vsel %vm480_vm4, %v14099_v56, %v14103_v24  ;;  %v2385_v59 = vsel %vm480_vm4, %v14103_v24, %v14104_v19  ;;  %14391 = vrot.lane.b32.xlu0 %v16773_v1, %s15367_s25  ;;  %v2415_v18 = vsel %vm519_vm5, %v14108_v13, %v14109_v52 }
 0x1f8   : > { %v13110_v10 = vpack.c.bf16 %v2384_v57, %v2383_v9  ;;  %v13111_v48 = vpack.c.bf16 %v2385_v59, %v2385_v59  ;;  %v14117_v34 = vpop.permute.xlu1 %14116  ;;  %v5532_v60 = vld [vmem:[#allocation3 + $0x608] sm:$0xff] }
 0x1f9   : > { %v14119_v32 = vunpack.i.h.bf16 %v14117_v34  ;;  %v14118_v29 = vunpack.i.l.bf16 %v14117_v34  ;;  %v14112_v47 = vpop.permute.xlu0 %14111  ;;  %v12682_v16 = vcombine.low %v5496_v15, %v5532_v60  ;;  %v12683_v53 = vcombine.high %v5496_v15, %v5532_v60 }
 0x1fa   : > { %2798 = vst [vmem:[#allocation3 + $0x624] sm:$0xff] %v13110_v10  ;;  %2799 = vst [vmem:[#allocation3 + $0x62c] sm:$0xf] %v13111_v48  ;;  %v14114_v33 = vunpack.i.h.bf16 %v14112_v47  ;;  %v14113_v55 = vunpack.i.l.bf16 %v14112_v47  ;;  %14406 = vrot.lane.b32.xlu1 %v16749_v45, %s15368_s27 }
 0x1fb   : > { %14401 = vrot.lane.b32.xlu0 %v16786_v35, %s15367_s25  ;;  %8082 = vmatprep.subr.bf16.mxu1 %v12683_v53  ;;  %v2419_v62 = vsel %vm519_vm5, %v14118_v29, %v14119_v32 }
 0x1fc   : > { %v2418_v46 = vsel %vm519_vm5, %v14114_v33, %v14118_v29  ;;  %v2416_v14 = vsel %vm519_vm5, %v14109_v52, %v14113_v55  ;;  %v2417_v50 = vsel %vm519_vm5, %v14113_v55, %v14114_v33  ;;  %v14127_v61 = vpop.permute.xlu1 %14126  ;;  %8083 = vmatpush1.bf16.msra.mxu1 %v12682_v16 }
 0x1fd   : > { %v13112_v51 = vpack.c.bf16 %v2416_v14, %v2415_v18  ;;  %v13113_v41 = vpack.c.bf16 %v2418_v46, %v2417_v50  ;;  %v14129_v37 = vunpack.i.h.bf16 %v14127_v61  ;;  %v14128_v17 = vunpack.i.l.bf16 %v14127_v61  ;;  %v14122_v30 = vpop.permute.xlu0 %14121  ;;  %v5533_v7 = vld [vmem:[#allocation3 + $0x610] sm:$0xff] }
 0x1fe   : > { %v14124_v31 = vunpack.i.h.bf16 %v14122_v30  ;;  %v14123_v4 = vunpack.i.l.bf16 %v14122_v30  ;;  %14416 = vrot.lane.b32.xlu1 %v16773_v1, %s15368_s27  ;;  %v12684_v25 = vcombine.low %v5497_v58, %v5533_v7  ;;  %v12685_v56 = vcombine.high %v5497_v58, %v5533_v7 }
 0x1ff   : > { %2800 = vst [vmem:[#allocation3 + $0x72c] sm:$0xff] %v13112_v51  ;;  %2801 = vst [vmem:[#allocation3 + $0x734] sm:$0xff] %v13113_v41  ;;  %v2423_v44 = vsel %vm519_vm5, %v14128_v17, %v14129_v37  ;;  %14411 = vrot.lane.b32.xlu0 %v16745_v27, %s15368_s27 }
 0x200   : > { %v13116_v11 = vpack.c.bf16 %v2423_v44, %v2423_v44  ;;  %v2422_v8 = vsel %vm519_vm5, %v14124_v31, %v14128_v17  ;;  %v2420_v21 = vsel %vm519_vm5, %v14119_v32, %v14123_v4  ;;  %v2421_v38 = vsel %vm519_vm5, %v14123_v4, %v14124_v31  ;;  %v14137_v2 = vpop.permute.xlu1 %14136  ;;  %8125 = vmatprep.subr.bf16.mxu0 %v12685_v56 }
 0x201   : > { %v13114_v20 = vpack.c.bf16 %v2420_v21, %v2419_v62  ;;  %v13115_v0 = vpack.c.bf16 %v2422_v8, %v2421_v38  ;;  %v14138_v42 = vunpack.i.l.bf16 %v14137_v2  ;;  %v14132_v28 = vpop.permute.xlu0 %14131  ;;  %8126 = vmatpush1.bf16.msra.mxu0 %v12684_v25  ;;  %v14139_v40 = vunpack.i.h.bf16 %v14137_v2 }
 0x202   : > { %2804 = vst [vmem:[#allocation3 + $0x74c] sm:$0xf] %v13116_v11  ;;  %v14134_v9 = vunpack.i.h.bf16 %v14132_v28  ;;  %v14133_v5 = vunpack.i.l.bf16 %v14132_v28  ;;  %14426 = vrot.lane.b32.xlu1 %v16786_v35, %s15368_s27 }
 0x203   : > { %2802 = vst [vmem:[#allocation3 + $0x73c] sm:$0xff] %v13114_v20  ;;  %2803 = vst [vmem:[#allocation3 + $0x744] sm:$0xff] %v13115_v0  ;;  %14421 = vrot.lane.b32.xlu0 %v16764_v12, %s15368_s27  ;;  %v2455_v19 = vsel %vm558_vm6, %v14138_v42, %v14139_v40 }
 0x204   : > { %v2454_v36 = vsel %vm558_vm6, %v14134_v9, %v14138_v42  ;;  %v2453_v63 = vsel %vm558_vm6, %v14133_v5, %v14134_v9  ;;  %v14147_v54 = vpop.permute.xlu1 %14146 }
 0x205   : > { %v13117_v23 = vpack.c.bf16 %v2454_v36, %v2453_v63  ;;  %v14149_v39 = vunpack.i.h.bf16 %v14147_v54  ;;  %v14148_v52 = vunpack.i.l.bf16 %v14147_v54  ;;  %v14142_v13 = vpop.permute.xlu0 %14141 }
 0x206   : > { %v14144_v24 = vunpack.i.h.bf16 %v14142_v13  ;;  %v14143_v43 = vunpack.i.l.bf16 %v14142_v13  ;;  %14436 = vrot.lane.b32.xlu1 %v16745_v27, %s15369_s14  ;;  %v5568_v51 = vld [vmem:[#allocation3 + $0x728] sm:$0xff]  ;;  %v5569_v2 = vld [vmem:[#allocation3 + $0x730] sm:$0xff] }
 0x207   : > { %2805 = vst [vmem:[#allocation3 + $0x84c] sm:$0xff] %v13117_v23  ;;  %14431 = vrot.lane.b32.xlu0 %v16749_v45, %s15369_s14  ;;  %v2459_v10 = vsel %vm558_vm6, %v14148_v52, %v14149_v39 }
 0x208   : > { %v2458_v6 = vsel %vm558_vm6, %v14144_v24, %v14148_v52  ;;  %v2456_v57 = vsel %vm558_vm6, %v14139_v40, %v14143_v43  ;;  %v2457_v59 = vsel %vm558_vm6, %v14143_v43, %v14144_v24  ;;  %v14157_v18 = vpop.permute.xlu1 %14156  ;;  %v16849_v43 = vld [vmem:[#allocation3 + $0x78] sm:$0xff] }
 0x209   : > { %v13118_v48 = vpack.c.bf16 %v2456_v57, %v2455_v19  ;;  %v13119_v34 = vpack.c.bf16 %v2458_v6, %v2457_v59  ;;  %v14152_v15 = vpop.permute.xlu0 %14151  ;;  %v14159_v60 = vunpack.i.h.bf16 %v14157_v18  ;;  %v14158_v32 = vunpack.i.l.bf16 %v14157_v18  ;;  %v16851_v6 = vld [vmem:[#allocation3 + $0x198] sm:$0xff] }
 0x20a   : > { %v14154_v29 = vunpack.i.h.bf16 %v14152_v15  ;;  %v14153_v47 = vunpack.i.l.bf16 %v14152_v15  ;;  %14446 = vrot.lane.b32.xlu1 %v16764_v12, %s15369_s14 }
 0x20b   : > { %2806 = vst [vmem:[#allocation3 + $0x854] sm:$0xff] %v13118_v48  ;;  %2807 = vst [vmem:[#allocation3 + $0x85c] sm:$0xff] %v13119_v34  ;;  %14441 = vrot.lane.b32.xlu0 %v16773_v1, %s15369_s14  ;;  %v2491_v46 = vsel %vm597_vm7, %v14158_v32, %v14159_v60 }
 0x20c   : > { %v2460_v16 = vsel %vm558_vm6, %v14149_v39, %v14153_v47  ;;  %v2461_v53 = vsel %vm558_vm6, %v14153_v47, %v14154_v29  ;;  %v14167_v33 = vpop.permute.xlu1 %14166 }
 0x20d   : > { %v13120_v55 = vpack.c.bf16 %v2460_v16, %v2459_v10  ;;  %v13121_v26 = vpack.c.bf16 %v2461_v53, %v2461_v53  ;;  %v14168_v49 = vunpack.i.l.bf16 %v14167_v33  ;;  %v14162_v62 = vpop.permute.xlu0 %14161  ;;  %v14169_v14 = vunpack.i.h.bf16 %v14167_v33 }
 0x20e   : > { %v14164_v50 = vunpack.i.h.bf16 %v14162_v62  ;;  %v14163_v61 = vunpack.i.l.bf16 %v14162_v62  ;;  %14456 = vrot.lane.b32.xlu1 %v16749_v45, %s15370_s29  ;;  %v5604_v41 = vld [vmem:[#allocation3 + $0x848] sm:$0xff]  ;;  %v12543_v53 = vcombine.high %v16849_v43, %v16851_v6 }
 0x20f   : > { %2808 = vst [vmem:[#allocation3 + $0x864] sm:$0xff] %v13120_v55  ;;  %2809 = vst [vmem:[#allocation3 + $0x86c] sm:$0xf] %v13121_v26  ;;  %14451 = vrot.lane.b32.xlu0 %v16786_v35, %s15369_s14  ;;  %v12754_v37 = vcombine.low %v5568_v51, %v5604_v41  ;;  %v12755_v17 = vcombine.high %v5568_v51, %v5604_v41  ;;  %v2495_v8 = vsel %vm597_vm7, %v14168_v49, %v14169_v14  ;;  %v5355_v51 = vld [vmem:[#allocation3 + $0x80] sm:$0xff] }
 0x210   : > { %v2494_v30 = vsel %vm597_vm7, %v14164_v50, %v14168_v49  ;;  %v2492_v58 = vsel %vm597_vm7, %v14159_v60, %v14163_v61  ;;  %v2493_v7 = vsel %vm597_vm7, %v14163_v61, %v14164_v50  ;;  %v14177_v31 = vpop.permute.xlu1 %14176  ;;  %v5391_v41 = vld [vmem:[#allocation3 + $0x1a0] sm:$0xff] }
 0x211   : > { %v13122_v4 = vpack.c.bf16 %v2492_v58, %v2491_v46  ;;  %v13123_v25 = vpack.c.bf16 %v2494_v30, %v2493_v7  ;;  %v14179_v56 = vunpack.i.h.bf16 %v14177_v31  ;;  %v14178_v44 = vunpack.i.l.bf16 %v14177_v31  ;;  %v14172_v11 = vpop.permute.xlu0 %14171  ;;  %8084 = vmatprep.subr.bf16.mxu1 %v12755_v17 }
 0x212   : > { %v14174_v21 = vunpack.i.h.bf16 %v14172_v11  ;;  %v14173_v38 = vunpack.i.l.bf16 %v14172_v11  ;;  %8085 = vmatpush1.bf16.msra.mxu1 %v12754_v37  ;;  %14466 = vrot.lane.b32.xlu1 %v16773_v1, %s15370_s29  ;;  %v5605_v20 = vld [vmem:[#allocation3 + $0x850] sm:$0xff]  ;;  %v12542_v11 = vcombine.low %v16849_v43, %v16851_v6  ;;  %v5534_v43 = vld [vmem:[#allocation3 + $0x618] sm:$0xff] }
 0x213   : > { %2810 = vst [vmem:[#allocation3 + $0x96c] sm:$0xff] %v13122_v4  ;;  %2811 = vst [vmem:[#allocation3 + $0x974] sm:$0xff] %v13123_v25  ;;  %v2499_v0 = vsel %vm597_vm7, %v14178_v44, %v14179_v56  ;;  %14461 = vrot.lane.b32.xlu0 %v16745_v27, %s15370_s29  ;;  %v12756_v42 = vcombine.low %v5569_v2, %v5605_v20  ;;  %v12757_v28 = vcombine.high %v5569_v2, %v5605_v20 }
 0x214   : > { %v13126_v40 = vpack.c.bf16 %v2499_v0, %v2499_v0  ;;  %v2498_v9 = vsel %vm597_vm7, %v14174_v21, %v14178_v44  ;;  %v2496_v5 = vsel %vm597_vm7, %v14169_v14, %v14173_v38  ;;  %v2497_v36 = vsel %vm597_vm7, %v14173_v38, %v14174_v21  ;;  %v14187_v63 = vpop.permute.xlu1 %14186  ;;  %v5462_v44 = vld [vmem:[#allocation3 + $0x3d8] sm:$0xff] }
 0x215   : > { %v13124_v54 = vpack.c.bf16 %v2496_v5, %v2495_v8  ;;  %v13125_v23 = vpack.c.bf16 %v2498_v9, %v2497_v36  ;;  %v14188_v39 = vunpack.i.l.bf16 %v14187_v63  ;;  %v14182_v52 = vpop.permute.xlu0 %14181  ;;  %8127 = vmatprep.subr.bf16.mxu0 %v12757_v28  ;;  %v14189_v13 = vunpack.i.h.bf16 %v14187_v63  ;;  %v5426_v0 = vld [vmem:[#allocation3 + $0x2b8] sm:$0xff] }
 0x216   : > { %2814 = vst [vmem:[#allocation3 + $0x98c] sm:$0xf] %v13126_v40  ;;  %v14184_v19 = vunpack.i.h.bf16 %v14182_v52  ;;  %v14183_v24 = vunpack.i.l.bf16 %v14182_v52  ;;  %8128 = vmatpush1.bf16.msra.mxu0 %v12756_v42  ;;  %14476 = vrot.lane.b32.xlu1 %v16786_v35, %s15370_s29  ;;  %v12545_v8 = vcombine.high %v5355_v51, %v5391_v41  ;;  %v12544_v2 = vcombine.low %v5355_v51, %v5391_v41  ;;  %v5463_v42 = vld [vmem:[#allocation3 + $0x3e0] sm:$0xff] }
 0x217   : > { %2812 = vst [vmem:[#allocation3 + $0x97c] sm:$0xff] %v13124_v54  ;;  %2813 = vst [vmem:[#allocation3 + $0x984] sm:$0xff] %v13125_v23  ;;  %14471 = vrot.lane.b32.xlu0 %v16764_v12, %s15370_s29  ;;  %v2858_v60 = vsel %vm324_vm0, %v14188_v39, %v14189_v13  ;;  %v12614_v36 = vcombine.low %v5426_v0, %v5462_v44  ;;  %v5427_v52 = vld [vmem:[#allocation3 + $0x2c0] sm:$0xff] }
 0x218   : > { %v2857_v57 = vsel %vm324_vm0, %v14184_v19, %v14188_v39  ;;  %v2856_v59 = vsel %vm324_vm0, %v14183_v24, %v14184_v19  ;;  %v14197_v18 = vpop.permute.xlu1 %14196  ;;  %v12616_v19 = vcombine.low %v5427_v52, %v5463_v42  ;;  %v12617_v24 = vcombine.high %v5427_v52, %v5463_v42  ;;  %v5607_v51 = vld [vmem:[#allocation3 + $0x860] sm:$0xff] }
 0x219   : > { %v16855_v10 = vpack.c.bf16 %v2857_v57, %v2856_v59  ;;  %v14199_v48 = vunpack.i.h.bf16 %v14197_v18  ;;  %v14198_v34 = vunpack.i.l.bf16 %v14197_v18  ;;  %v14192_v15 = vpop.permute.xlu0 %14191  ;;  %v5535_v18 = vld [vmem:[#allocation3 + $0x620] sm:$0xff] }
 0x21a   : > { %v14194_v32 = vunpack.i.h.bf16 %v14192_v15  ;;  %v14193_v29 = vunpack.i.l.bf16 %v14192_v15  ;;  %14486 = vrot.lane.b32.xlu1 %v16745_v27, %s15371_s8  ;;  %v5640_v47 = vld [vmem:[#allocation3 + $0x968] sm:$0xff]  ;;  %v5641_v16 = vld [vmem:[#allocation3 + $0x970] sm:$0xff] }
 0x21b   : > { %v2862_v33 = vsel %vm324_vm0, %v14198_v34, %v14199_v48  ;;  %14481 = vrot.lane.b32.xlu0 %v16749_v45, %s15371_s8  ;;  %v12827_v55 = vcombine.high %v5640_v47, %v5640_v47  ;;  %v12829_v26 = vcombine.high %v5641_v16, %v5641_v16  ;;  %v12826_v49 = vcombine.low %v5640_v47, %v5640_v47 }
 0x21c   : > { %v2861_v62 = vsel %vm324_vm0, %v14194_v32, %v14198_v34  ;;  %v2859_v46 = vsel %vm324_vm0, %v14189_v13, %v14193_v29  ;;  %v2860_v14 = vsel %vm324_vm0, %v14193_v29, %v14194_v32  ;;  %v14207_v50 = vpop.permute.xlu1 %14206  ;;  %v12828_v61 = vcombine.low %v5641_v16, %v5641_v16 }
 0x21d   : > { %v16868_v37 = vpack.c.bf16 %v2859_v46, %v2858_v60  ;;  %v13134_v17 = vpack.c.bf16 %v2861_v62, %v2860_v14  ;;  %v14209_v30 = vunpack.i.h.bf16 %v14207_v50  ;;  %v14208_v58 = vunpack.i.l.bf16 %v14207_v50  ;;  %v14202_v7 = vpop.permute.xlu0 %14201  ;;  %12898 = vmatprep.subr.msk.bf16.mxu1 %vm7302_vm8, %v12827_v55  ;;  %12900 = vmatprep.subr.msk.bf16.mxu0 %vm7302_vm8, %v12829_v26  ;;  %v5498_v60 = vld [vmem:[#allocation3 + $0x4f8] sm:$0xff] }
 0x21e   : > { %v14204_v31 = vunpack.i.h.bf16 %v14202_v7  ;;  %v14203_v4 = vunpack.i.l.bf16 %v14202_v7  ;;  %v7382_v25 = vsel %vm7302_vm8, %v12826_v49, 0  ;;  %v7388_v56 = vsel %vm7302_vm8, %v12828_v61, 0  ;;  %14496 = vrot.lane.b32.xlu1 %v16764_v12, %s15371_s8  ;;  %v5606_v49 = vld [vmem:[#allocation3 + $0x858] sm:$0xff] }
 0x21f   : > { %3408 = vst [vmem:[#allocation3 + $0x1c0] sm:$0xff] %v13134_v17  ;;  %8087 = vmatpush1.bf16.msra.mxu1 %v7382_v25  ;;  %8130 = vmatpush1.bf16.msra.mxu0 %v7388_v56  ;;  %v16883_v63 = vsel %vm363_vm1, %v14208_v58, %v14209_v30  ;;  %v12615_v13 = vcombine.high %v5426_v0, %v5462_v44  ;;  %v5570_v58 = vld [vmem:[#allocation3 + $0x738] sm:$0xff]  ;;  %v5571_v44 = vld [vmem:[#allocation3 + $0x740] sm:$0xff] }
 0x220   : > { %v2863_v21 = vsel %vm324_vm0, %v14199_v48, %v14203_v4  ;;  %v2864_v38 = vsel %vm324_vm0, %v14203_v4, %v14204_v31  ;;  %14491 = vrot.lane.b32.xlu0 %v16773_v1, %s15371_s8  ;;  %8164 = vmatprep.subr.bf16.mxu1 %v12543_v53  ;;  %v14217_v20 = vpop.permute.xlu1 %14216  ;;  %v12686_v16 = vcombine.low %v5498_v60, %v5534_v43  ;;  %v5499_v53 = vld [vmem:[#allocation3 + $0x500] sm:$0xff]  ;;  %v5642_v7 = vld [vmem:[#allocation3 + $0x978] sm:$0xff] }
 0x221   : > { %v13135_v28 = vpack.c.bf16 %v2863_v21, %v2862_v33  ;;  %v13136_v40 = vpack.c.bf16 %v2864_v38, %v2864_v38  ;;  %8207 = vmatprep.subr.bf16.mxu0 %v12545_v8  ;;  %v14218_v9 = vunpack.i.l.bf16 %v14217_v20  ;;  %v14212_v5 = vpop.permute.xlu0 %14211  ;;  %v14219_v54 = vunpack.i.h.bf16 %v14217_v20 }
 0x222   : > { %v14214_v23 = vunpack.i.h.bf16 %v14212_v5  ;;  %v14213_v39 = vunpack.i.l.bf16 %v14212_v5  ;;  %12899 = vmatmul.mubr.msk.bf16.vlgmr.msra.gmra.mrb[24].mxu1 %vm7298_vm9, %v16692_v3  ;;  %12901 = vmatmul.mubr.msk.bf16.vlgmr.msra.gmra.mrb[28].mxu0 %vm7298_vm9, %v16692_v3  ;;  %v12687_v55 = vcombine.high %v5498_v60, %v5534_v43  ;;  %v12689_v26 = vcombine.high %v5499_v53, %v5535_v18 }
 0x223   : > { %3409 = vst [vmem:[#allocation3 + $0x1c8] sm:$0xff] %v13135_v28  ;;  %3410 = vst [vmem:[#allocation3 + $0x1d0] sm:$0xf] %v13136_v40  ;;  %8165 = vmatpush1.bf16.msra.mxu1 %v12542_v11  ;;  %8208 = vmatpush1.bf16.msra.mxu0 %v12544_v2  ;;  %v16903_v32 = vsel %vm363_vm1, %v14218_v9, %v14219_v54  ;;  %v12688_v41 = vcombine.low %v5499_v53, %v5535_v18  ;;  %v5643_v11 = vld [vmem:[#allocation3 + $0x980] sm:$0xff]  ;;  %v5356_v28 = vld [vmem:[#allocation3 + $0x88] sm:$0xff] }
 0x224   : > { %v16890_v6 = vsel %vm363_vm1, %v14214_v23, %v14218_v9  ;;  %v16893_v57 = vsel %vm363_vm1, %v14209_v30, %v14213_v39  ;;  %v16896_v59 = vsel %vm363_vm1, %v14213_v39, %v14214_v23  ;;  %14506 = vrot.lane.b32.xlu1 %v16749_v45, %s15372_s15  ;;  %14501 = vrot.lane.b32.xlu0 %v16786_v35, %s15371_s8  ;;  %v14227_v3 = vpop.permute.xlu1 %14226  ;;  %v5392_v40 = vld [vmem:[#allocation3 + $0x1a8] sm:$0xff] }
 0x225   : > { %8166 = vmatprep.subr.bf16.mxu1 %v12615_v13  ;;  %8209 = vmatprep.subr.bf16.mxu0 %v12617_v24  ;;  %v14229_v48 = vunpack.i.h.bf16 %v14227_v3  ;;  %v14228_v34 = vunpack.i.l.bf16 %v14227_v3  ;;  %v14222_v15 = vpop.permute.xlu0 %14221  ;;  %v12759_v56 = vcombine.high %v5570_v58, %v5606_v49  ;;  %v12758_v8 = vcombine.low %v5570_v58, %v5606_v49  ;;  %v15035_v49 = vld [vmem:[#allocation3 + $0x90] sm:$0xff] }
 0x226   : > { %v14224_v29 = vunpack.i.h.bf16 %v14222_v15  ;;  %v14223_v47 = vunpack.i.l.bf16 %v14222_v15  ;;  %8196 = vmatprep.mubr.bf16.mxu1 %v21047_v22  ;;  %8239 = vmatprep.mubr.bf16.mxu0 %v21047_v22  ;;  %v12760_v21 = vcombine.low %v5571_v44, %v5607_v51  ;;  %v12761_v38 = vcombine.high %v5571_v44, %v5607_v51 }
 0x227   : > { %v2902_v33 = vsel %vm363_vm1, %v14228_v34, %v14229_v48  ;;  %8167 = vmatpush1.bf16.msra.mxu1 %v12614_v36  ;;  %8210 = vmatpush1.bf16.msra.mxu0 %v12616_v19  ;;  %v12830_v42 = vcombine.low %v5642_v7, %v5642_v7  ;;  %v12831_v13 = vcombine.high %v5642_v7, %v5642_v7 }
 0x228   : > { %v13141_v62 = vpack.c.bf16 %v2902_v33, %v2902_v33  ;;  %v16909_v46 = vsel %vm363_vm1, %v14224_v29, %v14228_v34  ;;  %v16912_v14 = vsel %vm363_vm1, %v14219_v54, %v14223_v47  ;;  %v16915_v50 = vsel %vm363_vm1, %v14223_v47, %v14224_v29  ;;  %14516 = vrot.lane.b32.xlu1 %v16773_v1, %s15372_s15  ;;  %v14237_v61 = vpop.permute.xlu1 %14236  ;;  %v5464_v47 = vld [vmem:[#allocation3 + $0x3e8] sm:$0xff] }
 0x229   : > { %14511 = vrot.lane.b32.xlu0 %v16745_v27, %s15372_s15  ;;  %8168 = vmatprep.subr.bf16.mxu1 %v12687_v55  ;;  %v14238_v17 = vunpack.i.l.bf16 %v14237_v61  ;;  %v14232_v30 = vpop.permute.xlu0 %14231  ;;  %v14239_v31 = vunpack.i.h.bf16 %v14237_v61  ;;  %v12832_v54 = vcombine.low %v5643_v11, %v5643_v11  ;;  %v12833_v19 = vcombine.high %v5643_v11, %v5643_v11  ;;  %v5428_v61 = vld [vmem:[#allocation3 + $0x2c8] sm:$0xff] }
 0x22a   : > { %3415 = vst [vmem:[#allocation3 + $0x2f0] sm:$0xf] %v13141_v62  ;;  %8211 = vmatprep.subr.bf16.mxu0 %v12689_v26  ;;  %v14234_v4 = vunpack.i.h.bf16 %v14232_v30  ;;  %v14233_v25 = vunpack.i.l.bf16 %v14232_v30  ;;  %v12547_v24 = vcombine.high %v5356_v28, %v5392_v40  ;;  %v7394_v34 = vsel %vm7302_vm8, %v12830_v42, 0 }
 0x22b   : > { %8169 = vmatpush1.bf16.msra.mxu1 %v12686_v16  ;;  %8212 = vmatpush1.bf16.msra.mxu0 %v12688_v41  ;;  %v16932_v23 = vsel %vm402_vm2, %v14238_v17, %v14239_v31  ;;  %v7400_v29 = vsel %vm7302_vm8, %v12832_v54, 0  ;;  %v12546_v26 = vcombine.low %v5356_v28, %v5392_v40  ;;  %v12549_v62 = vcombine.high %v15035_v49, %v16855_v10  ;;  %v5500_v54 = vld [vmem:[#allocation3 + $0x508] sm:$0xff] }
 0x22c   : > { %v16922_v2 = vsel %vm402_vm2, %v14234_v4, %v14238_v17  ;;  %v16925_v20 = vsel %vm402_vm2, %v14233_v25, %v14234_v4  ;;  %14526 = vrot.lane.b32.xlu1 %v16786_v35, %s15372_s15  ;;  %8170 = vmatprep.subr.bf16.mxu1 %v12759_v56  ;;  %v14247_v0 = vpop.permute.xlu1 %14246  ;;  %v12619_v30 = vcombine.high %v5428_v61, %v5464_v47 }
 0x22d   : > { %14521 = vrot.lane.b32.xlu0 %v16764_v12, %s15372_s15  ;;  %8213 = vmatprep.subr.bf16.mxu0 %v12761_v38  ;;  %v14249_v9 = vunpack.i.h.bf16 %v14247_v0  ;;  %v14248_v5 = vunpack.i.l.bf16 %v14247_v0  ;;  %v14242_v36 = vpop.permute.xlu0 %14241  ;;  %v12548_v7 = vcombine.low %v15035_v49, %v16855_v10  ;;  %v12618_v10 = vcombine.low %v5428_v61, %v5464_v47 }
 0x22e   : > { %v14244_v39 = vunpack.i.h.bf16 %v14242_v36  ;;  %v14243_v52 = vunpack.i.l.bf16 %v14242_v36  ;;  %v15168_v38 = vpack.c.bf16 %v16922_v2, %v16893_v57 }
 0x22f   : > { %8171 = vmatpush1.bf16.msra.mxu1 %v12758_v8  ;;  %8214 = vmatpush1.bf16.msra.mxu0 %v12760_v21  ;;  %v16948_v15 = vsel %vm402_vm2, %v14248_v5, %v14249_v9  ;;  %v16970_v8 = vld [vmem:[%s21039_s1] sm:$0xff]   ;;  %v15167_v21 = vpack.c.bf16 %v16925_v20, %v16883_v63 }
 0x230   : > { %v16935_v43 = vsel %vm402_vm2, %v14244_v39, %v14248_v5  ;;  %v16938_v3 = vsel %vm402_vm2, %v14239_v31, %v14243_v52  ;;  %v16941_v18 = vsel %vm402_vm2, %v14243_v52, %v14244_v39  ;;  %14536 = vrot.lane.b32.xlu1 %v16745_v27, %s15373_s11  ;;  %12902 = vmatprep.subr.msk.bf16.mxu1 %vm7302_vm8, %v12831_v13  ;;  %v14257_v48 = vpop.permute.xlu1 %14256  ;;  %v16997_v39 = vld [vmem:[%s15553_s24 + $0x1f0] sm:$0xff]  ;;  %v5608_v13 = vld [vmem:[#allocation3 + $0x868] sm:$0xff] }
 0x231   : > { %14531 = vrot.lane.b32.xlu0 %v16749_v45, %s15373_s11  ;;  %12904 = vmatprep.subr.msk.bf16.mxu0 %vm7302_vm8, %v12833_v19  ;;  %v14252_v60 = vpop.permute.xlu0 %14251  ;;  %v14259_v16 = vunpack.i.h.bf16 %v14257_v48  ;;  %v14258_v53 = vunpack.i.l.bf16 %v14257_v48  ;;  %v17003_v19 = vld [vmem:[%s15553_s24 + $0x1f8] sm:$0xff] }
 0x232   : > { %v14254_v33 = vunpack.i.h.bf16 %v14252_v60  ;;  %v14253_v55 = vunpack.i.l.bf16 %v14252_v60 }
 0x233   : > { %8173 = vmatpush1.bf16.msra.mxu1 %v7394_v34  ;;  %8216 = vmatpush1.bf16.msra.mxu0 %v7400_v29  ;;  %v16965_v25 = vsel %vm441_vm3, %v14258_v53, %v14259_v16  ;;  %v17023_v53 = vld [vmem:[%s15553_s24 + $0x210] sm:$0xff] }
 0x234   : > { %v16956_v51 = vsel %vm402_vm2, %v14249_v9, %v14253_v55  ;;  %v2940_v41 = vsel %vm402_vm2, %v14253_v55, %v14254_v33  ;;  %14546 = vrot.lane.b32.xlu1 %v16764_v12, %s15373_s11  ;;  %8250 = vmatprep.subr.bf16.mxu1 %v12547_v24  ;;  %v14267_v17 = vpop.permute.xlu1 %14266  ;;  %v5536_v9 = vld [vmem:[#allocation3 + $0x628] sm:$0xff]  ;;  %v17026_v33 = vld [vmem:[%s15553_s24 + $0x218] sm:$0xff] }
 0x235   : > { %v13146_v58 = vpack.c.bf16 %v2940_v41, %v2940_v41  ;;  %14541 = vrot.lane.b32.xlu0 %v16773_v1, %s15373_s11  ;;  %8293 = vmatprep.subr.bf16.mxu0 %v12549_v62  ;;  %v14268_v31 = vunpack.i.l.bf16 %v14267_v17  ;;  %v14262_v4 = vpop.permute.xlu0 %14261  ;;  %v14269_v56 = vunpack.i.h.bf16 %v14267_v17  ;;  %v12691_v52 = vcombine.high %v5500_v54, %v5536_v9  ;;  %v17006_v24 = vld [vmem:[%s15553_s24 + $0x1e0] sm:$0xff] }
 0x236   : > { %v14264_v44 = vunpack.i.h.bf16 %v14262_v4  ;;  %v14263_v11 = vunpack.i.l.bf16 %v14262_v4  ;;  %12903 = vmatmul.mubr.msk.bf16.vlgmr.msra.gmra.mrb[28].mxu1 %vm7298_vm9, %v16970_v8  ;;  %12905 = vmatmul.mubr.msk.bf16.vlgmr.msra.gmra.mrb[32].mxu0 %vm7298_vm9, %v16970_v8  ;;  %v12690_v55 = vcombine.low %v5500_v54, %v5536_v9  ;;  %v5572_v62 = vld [vmem:[#allocation3 + $0x748] sm:$0xff] }
 0x237   : > { %3420 = vst [vmem:[#allocation3 + $0x410] sm:$0xf] %v13146_v58  ;;  %8251 = vmatpush1.bf16.msra.mxu1 %v12546_v26  ;;  %8294 = vmatpush1.bf16.msra.mxu0 %v12548_v7  ;;  %v16994_v20 = vsel %vm441_vm3, %v14268_v31, %v14269_v56  ;;  %v12763_v17 = vcombine.high %v5572_v62, %v5608_v13 }
 0x238   : > { %v16981_v0 = vsel %vm441_vm3, %v14264_v44, %v14268_v31  ;;  %v16984_v42 = vsel %vm441_vm3, %v14259_v16, %v14263_v11  ;;  %v16987_v28 = vsel %vm441_vm3, %v14263_v11, %v14264_v44  ;;  %14556 = vrot.lane.b32.xlu1 %v16749_v45, %s15374_s10  ;;  %8252 = vmatprep.subr.bf16.mxu1 %v12619_v30  ;;  %v14277_v40 = vpop.permute.xlu1 %14276  ;;  %v17020_v16 = vld [vmem:[%s15553_s24 + $0x1e8] sm:$0xff]  ;;  %v17047_v11 = vld [vmem:[%s15553_s24 + $0x200] sm:$0xff] }
 0x239   : > { %14551 = vrot.lane.b32.xlu0 %v16786_v35, %s15373_s11  ;;  %v14279_v63 = vunpack.i.h.bf16 %v14277_v40  ;;  %v14278_v57 = vunpack.i.l.bf16 %v14277_v40  ;;  %v14272_v2 = vpop.permute.xlu0 %14271  ;;  %8295 = vmatprep.subr.bf16.mxu0 %v15168_v38  ;;  %v5644_v30 = vld [vmem:[#allocation3 + $0x988] sm:$0xff]  ;;  %v17032_v58 = vpack.i.bf16 %v17003_v19, %v16997_v39  ;;  %v17040_v7 = vpack.i.bf16 %v17026_v33, %v17023_v53 }
 0x23a   : > { %v14274_v5 = vunpack.i.h.bf16 %v14272_v2  ;;  %v14273_v36 = vunpack.i.l.bf16 %v14272_v2  ;;  %8282 = vmatprep.mubr.bf16.mxu1 %v21047_v22  ;;  %8325 = vmatprep.mubr.bf16.mxu0 %v21047_v22  ;;  %v12834_v9 = vcombine.low %v5644_v30, %v5644_v30  ;;  %v12835_v2 = vcombine.high %v5644_v30, %v5644_v30 }
 0x23b   : > { %v2978_v45 = vsel %vm441_vm3, %v14278_v57, %v14279_v63  ;;  %8253 = vmatpush1.bf16.msra.mxu1 %v12618_v10  ;;  %8296 = vmatpush1.bf16.msra.mxu0 %v15167_v21  ;;  %v17050_v10 = vld [vmem:[%s15553_s24 + $0x208] sm:$0xff] }
 0x23c   : > { %v13151_v48 = vpack.c.bf16 %v2978_v45, %v2978_v45  ;;  %v17009_v34 = vsel %vm441_vm3, %v14274_v5, %v14278_v57  ;;  %v17012_v60 = vsel %vm441_vm3, %v14269_v56, %v14273_v36  ;;  %v17015_v29 = vsel %vm441_vm3, %v14273_v36, %v14274_v5  ;;  %14566 = vrot.lane.b32.xlu1 %v16773_v1, %s15374_s10  ;;  %v14287_v47 = vpop.permute.xlu1 %14286  ;;  %v15037_v36 = vld [vmem:[#allocation3 + $0x98] sm:$0xff] }
 0x23d   : > { %14561 = vrot.lane.b32.xlu0 %v16745_v27, %s15374_s10  ;;  %8254 = vmatprep.subr.bf16.mxu1 %v12691_v52  ;;  %v14288_v26 = vunpack.i.l.bf16 %v14287_v47  ;;  %v14282_v49 = vpop.permute.xlu0 %14281  ;;  %v14289_v61 = vunpack.i.h.bf16 %v14287_v47  ;;  %v17036_v27 = vpack.i.bf16 %v17020_v16, %v17006_v24  ;;  %v12762_v56 = vcombine.low %v5572_v62, %v5608_v13 }
 0x23e   : > { %3425 = vst [vmem:[#allocation3 + $0x530] sm:$0xf] %v13151_v48  ;;  %v14284_v1 = vunpack.i.h.bf16 %v14282_v49  ;;  %v14283_v41 = vunpack.i.l.bf16 %v14282_v49  ;;  %v17059_v5 = vpack.i.bf16 %v17050_v10, %v17047_v11  ;;  %v7406_v49 = vsel %vm7302_vm8, %v12834_v9, 0 }
 0x23f   : > { %8255 = vmatpush1.bf16.msra.mxu1 %v12690_v55  ;;  %v17055_v63 = vsel %vm480_vm4, %v14288_v26, %v14289_v61  ;;  %v17077_v55 = vld [vmem:[%s15553_s24 + $0x220] sm:$0xff]  ;;  %v15171_v9 = vpack.c.bf16 %v16938_v3, %v16890_v6 }
 0x240   : > { %v3009_v31 = vsel %vm480_vm4, %v14284_v1, %v14288_v26  ;;  %v3008_v4 = vsel %vm480_vm4, %v14283_v41, %v14284_v1  ;;  %14576 = vrot.lane.b32.xlu1 %v16786_v35, %s15374_s10  ;;  %8256 = vmatprep.subr.bf16.mxu1 %v12763_v17  ;;  %v14297_v44 = vpop.permute.xlu1 %14296 }
 0x241   : > { %14571 = vrot.lane.b32.xlu0 %v16764_v12, %s15374_s10  ;;  %v14299_v21 = vunpack.i.h.bf16 %v14297_v44  ;;  %v14298_v38 = vunpack.i.l.bf16 %v14297_v44  ;;  %v14292_v40 = vpop.permute.xlu0 %14291  ;;  %v12551_v12 = vcombine.high %v15037_v36, %v16868_v37  ;;  %v15169_v54 = vpack.c.bf16 %v3008_v4, %v16965_v25  ;;  %v12410_v25 = vld [vmem:[%s15553_s24 + $0x228] sm:$0xff] }
 0x242   : > { %v14294_v57 = vunpack.i.h.bf16 %v14292_v40  ;;  %v14293_v35 = vunpack.i.l.bf16 %v14292_v40  ;;  %v15170_v45 = vpack.c.bf16 %v3009_v31, %v16984_v42  ;;  %v17087_v17 = vpack.i.bf16 %v12410_v25, %v17077_v55 }
 0x243   : > { %8257 = vmatpush1.bf16.msra.mxu1 %v12762_v56  ;;  %v17081_v42 = vsel %vm480_vm4, %v14298_v38, %v14299_v21  ;;  %v12550_v4 = vcombine.low %v15037_v36, %v16868_v37  ;;  %v15172_v37 = vpack.c.bf16 %v16932_v23, %v16896_v59 }
 0x244   : > { %v17065_v52 = vsel %vm480_vm4, %v14294_v57, %v14298_v38  ;;  %v17068_v13 = vsel %vm480_vm4, %v14289_v61, %v14293_v35  ;;  %v17071_v48 = vsel %vm480_vm4, %v14293_v35, %v14294_v57  ;;  %14586 = vrot.lane.b32.xlu1 %v17032_v58, %s15367_s25  ;;  %12906 = vmatprep.subr.msk.bf16.mxu1 %vm7302_vm8, %v12835_v2  ;;  %v14307_v47 = vpop.permute.xlu1 %14306 }
 0x245   : > { %14581 = vrot.lane.b32.xlu0 %v17036_v27, %s15367_s25  ;;  %v14302_v26 = vpop.permute.xlu0 %14301  ;;  %8297 = vmatprep.subr.bf16.mxu0 %v15170_v45  ;;  %v14309_v62 = vunpack.i.h.bf16 %v14307_v47  ;;  %v14308_v61 = vunpack.i.l.bf16 %v14307_v47 }
 0x246   : > { %v14304_v1 = vunpack.i.h.bf16 %v14302_v26  ;;  %v14303_v41 = vunpack.i.l.bf16 %v14302_v26  ;;  %8298 = vmatpush1.bf16.msra.mxu0 %v15169_v54  ;;  %v15173_v26 = vpack.c.bf16 %v17068_v13, %v16981_v0 }
 0x247   : > { %8259 = vmatpush1.bf16.msra.mxu1 %v7406_v49 }
 0x248   : > { %v17090_v30 = vsel %vm480_vm4, %v14299_v21, %v14303_v41  ;;  %v3016_v31 = vsel %vm480_vm4, %v14303_v41, %v14304_v1  ;;  %14596 = vrot.lane.b32.xlu1 %v17040_v7, %s15367_s25  ;;  %8336 = vmatprep.subr.bf16.mxu1 %v12551_v12  ;;  %v14317_v56 = vpop.permute.xlu1 %14316  ;;  %v17101_v21 = vsel %vm519_vm5, %v14308_v61, %v14309_v62 }
 0x249   : > { %v13156_v44 = vpack.c.bf16 %v3016_v31, %v3016_v31  ;;  %14591 = vrot.lane.b32.xlu0 %v17059_v5, %s15367_s25  ;;  %v14318_v38 = vunpack.i.l.bf16 %v14317_v56  ;;  %v14312_v40 = vpop.permute.xlu0 %14311  ;;  %v14319_v57 = vunpack.i.h.bf16 %v14317_v56  ;;  %v13218_v61 = vpack.c.bf16 %v17003_v19, %v16997_v39 }
 0x24a   : > { %v14314_v35 = vunpack.i.h.bf16 %v14312_v40  ;;  %v14313_v2 = vunpack.i.l.bf16 %v14312_v40  ;;  %12907 = vmatmul.mubr.msk.bf16.vlgmr.msra.gmra.mrb[32].mxu1 %vm7298_vm9, %v16970_v8  ;;  %v13220_v1 = vpack.c.bf16 %v17026_v33, %v17023_v53  ;;  %v13219_v56 = vpack.c.bf16 %v17050_v10, %v17047_v11 }
 0x24b   : > { %3430 = vst [vmem:[#allocation3 + $0x650] sm:$0xf] %v13156_v44  ;;  %8337 = vmatpush1.bf16.msra.mxu1 %v12550_v4  ;;  %8368 = vmatprep.mubr.bf16.mxu1 %v21047_v22  ;;  %v17120_v45 = vsel %vm519_vm5, %v14318_v38, %v14319_v57  ;;  %4664 = vst [vmem:[#allocation3 + $0xe0] sm:$0xff] %v13218_v61 }
 0x24c   : > { %v17109_v36 = vsel %vm519_vm5, %v14314_v35, %v14318_v38  ;;  %v3047_v6 = vsel %vm519_vm5, %v14309_v62, %v14313_v2  ;;  %v17113_v3 = vsel %vm519_vm5, %v14313_v2, %v14314_v35  ;;  %14606 = vrot.lane.b32.xlu1 %v17036_v27, %s15368_s27  ;;  %8338 = vmatprep.subr.bf16.mxu1 %v15171_v9  ;;  %v14327_v12 = vpop.permute.xlu1 %14326 }
 0x24d   : > { %14601 = vrot.lane.b32.xlu0 %v17087_v17, %s15367_s25  ;;  %v14329_v54 = vunpack.i.h.bf16 %v14327_v12  ;;  %v14328_v59 = vunpack.i.l.bf16 %v14327_v12  ;;  %v14322_v23 = vpop.permute.xlu0 %14321  ;;  %v13217_v62 = vpack.c.bf16 %v17020_v16, %v17006_v24  ;;  %v15174_v16 = vpack.c.bf16 %v17055_v63, %v16987_v28  ;;  %4666 = vst [vmem:[#allocation3 + $0xf0] sm:$0xff] %v13220_v1  ;;  %4665 = vst [vmem:[#allocation3 + $0xe8] sm:$0xff] %v13219_v56 }
 0x24e   : > { %v14324_v47 = vunpack.i.h.bf16 %v14322_v23  ;;  %v14323_v25 = vunpack.i.l.bf16 %v14322_v23 }
 0x24f   : > { %v3054_v49 = vsel %vm519_vm5, %v14328_v59, %v14329_v54  ;;  %8339 = vmatpush1.bf16.msra.mxu1 %v15172_v37  ;;  %4663 = vst [vmem:[#allocation3 + $0xd8] sm:$0xff] %v13217_v62 }
 0x250   : > { %v13161_v41 = vpack.c.bf16 %v3054_v49, %v3054_v49  ;;  %v17132_v31 = vsel %vm519_vm5, %v14324_v47, %v14328_v59  ;;  %v17135_v4 = vsel %vm519_vm5, %v14319_v57, %v14323_v25  ;;  %v17138_v0 = vsel %vm519_vm5, %v14323_v25, %v14324_v47  ;;  %14616 = vrot.lane.b32.xlu1 %v17059_v5, %s15368_s27  ;;  %v14337_v24 = vpop.permute.xlu1 %14336 }
 0x251   : > { %14611 = vrot.lane.b32.xlu0 %v17032_v58, %s15368_s27  ;;  %v14338_v39 = vunpack.i.l.bf16 %v14337_v24  ;;  %v14332_v19 = vpop.permute.xlu0 %14331  ;;  %8340 = vmatprep.subr.bf16.mxu1 %v15173_v26  ;;  %v14339_v53 = vunpack.i.h.bf16 %v14337_v24 }
 0x252   : > { %3435 = vst [vmem:[#allocation3 + $0x770] sm:$0xf] %v13161_v41  ;;  %v14334_v33 = vunpack.i.h.bf16 %v14332_v19  ;;  %v14333_v13 = vunpack.i.l.bf16 %v14332_v19 }
 0x253   : > { %8341 = vmatpush1.bf16.msra.mxu1 %v15174_v16  ;;  %v3086_v57 = vsel %vm558_vm6, %v14338_v39, %v14339_v53 }
 0x254   : > { %v3085_v44 = vsel %vm558_vm6, %v14334_v33, %v14338_v39  ;;  %v3084_v38 = vsel %vm558_vm6, %v14333_v13, %v14334_v33  ;;  %14626 = vrot.lane.b32.xlu1 %v17087_v17, %s15368_s27  ;;  %v14347_v28 = vpop.permute.xlu1 %14346  ;;  %v15177_v49 = vpack.c.bf16 %v3086_v57, %v17113_v3  ;;  %v5395_v33 = vld [vmem:[#allocation3 + $0x1c0] sm:$0xff] }
 0x255   : > { %14621 = vrot.lane.b32.xlu0 %v17040_v7, %s15368_s27  ;;  %v14349_v63 = vunpack.i.h.bf16 %v14347_v28  ;;  %v14348_v40 = vunpack.i.l.bf16 %v14347_v28  ;;  %v14342_v9 = vpop.permute.xlu0 %14341  ;;  %v15175_v11 = vpack.c.bf16 %v3084_v38, %v17101_v21  ;;  %v15176_v10 = vpack.c.bf16 %v3085_v44, %v3047_v6 }
 0x256   : > { %v14344_v35 = vunpack.i.h.bf16 %v14342_v9  ;;  %v14343_v2 = vunpack.i.l.bf16 %v14342_v9 }
 0x257   : > { %v17166_v23 = vsel %vm558_vm6, %v14348_v40, %v14349_v63  ;;  %8299 = vmatprep.subr.bf16.mxu0 %v15176_v10 }
 0x258   : > { %v17157_v37 = vsel %vm558_vm6, %v14344_v35, %v14348_v40  ;;  %v3087_v12 = vsel %vm558_vm6, %v14339_v53, %v14343_v2  ;;  %v17161_v54 = vsel %vm558_vm6, %v14343_v2, %v14344_v35  ;;  %14636 = vrot.lane.b32.xlu1 %v17032_v58, %s15369_s14  ;;  %v14357_v59 = vpop.permute.xlu1 %14356  ;;  %8300 = vmatpush1.bf16.msra.mxu0 %v15175_v11  ;;  %v15038_v2 = vld [vmem:[#allocation3 + $0xa0] sm:$0xff] }
 0x259   : > { %14631 = vrot.lane.b32.xlu0 %v17036_v27, %s15369_s14  ;;  %v14352_v21 = vpop.permute.xlu0 %14351  ;;  %v14359_v6 = vunpack.i.h.bf16 %v14357_v59  ;;  %v14358_v47 = vunpack.i.l.bf16 %v14357_v59  ;;  %v15178_v62 = vpack.c.bf16 %v3087_v12, %v17109_v36  ;;  %v12553_v11 = vcombine.high %v15038_v2, %v5395_v33 }
 0x25a   : > { %v14354_v25 = vunpack.i.h.bf16 %v14352_v21  ;;  %v14353_v26 = vunpack.i.l.bf16 %v14352_v21 }
 0x25b   : > { %8342 = vmatprep.subr.bf16.mxu1 %v15178_v62  ;;  %v3122_v3 = vsel %vm597_vm7, %v14358_v47, %v14359_v6 }
 0x25c   : > { %v17173_v61 = vsel %vm558_vm6, %v14349_v63, %v14353_v26  ;;  %v3092_v1 = vsel %vm558_vm6, %v14353_v26, %v14354_v25  ;;  %14646 = vrot.lane.b32.xlu1 %v17040_v7, %s15369_s14  ;;  %v14367_v41 = vpop.permute.xlu1 %14366  ;;  %8343 = vmatpush1.bf16.msra.mxu1 %v15177_v49  ;;  %v15181_v21 = vpack.c.bf16 %v3122_v3, %v3122_v3 }
 0x25d   : > { %v13166_v24 = vpack.c.bf16 %v3092_v1, %v3092_v1  ;;  %14641 = vrot.lane.b32.xlu0 %v17059_v5, %s15369_s14  ;;  %v14368_v39 = vunpack.i.l.bf16 %v14367_v41  ;;  %v14362_v19 = vpop.permute.xlu0 %14361  ;;  %v14369_v16 = vunpack.i.h.bf16 %v14367_v41 }
 0x25e   : > { %v14364_v36 = vunpack.i.h.bf16 %v14362_v19  ;;  %v14363_v53 = vunpack.i.l.bf16 %v14362_v19  ;;  %v7412_v3 = vsel %vm7302_vm8, %v15181_v21, 0  ;;  %v15185_v21 = vpack.c.bf16 %v16956_v51, %v16909_v46 }
 0x25f   : > { %3440 = vst [vmem:[#allocation3 + $0x890] sm:$0xf] %v13166_v24  ;;  %v17189_v9 = vsel %vm597_vm7, %v14368_v39, %v14369_v16  ;;  %v5396_v24 = vld [vmem:[#allocation3 + $0x1c8] sm:$0xff] }
 0x260   : > { %v3125_v13 = vsel %vm597_vm7, %v14364_v36, %v14368_v39  ;;  %v3123_v56 = vsel %vm597_vm7, %v14359_v6, %v14363_v53  ;;  %v3124_v44 = vsel %vm597_vm7, %v14363_v53, %v14364_v36  ;;  %14656 = vrot.lane.b32.xlu1 %v17036_v27, %s15370_s29  ;;  %v14377_v38 = vpop.permute.xlu1 %14376  ;;  %v12552_v36 = vcombine.low %v15038_v2, %v5395_v33 }
 0x261   : > { %14651 = vrot.lane.b32.xlu0 %v17087_v17, %s15369_s14  ;;  %v14379_v28 = vunpack.i.h.bf16 %v14377_v38  ;;  %v14378_v63 = vunpack.i.l.bf16 %v14377_v38  ;;  %v14372_v40 = vpop.permute.xlu0 %14371  ;;  %v15179_v12 = vpack.c.bf16 %v3123_v56, %v3123_v56  ;;  %v15180_v59 = vpack.c.bf16 %v3125_v13, %v3125_v13 }
 0x262   : > { %v14374_v57 = vunpack.i.h.bf16 %v14372_v40  ;;  %v14373_v35 = vunpack.i.l.bf16 %v14372_v40 }
 0x263   : > { %v3130_v10 = vsel %vm597_vm7, %v14378_v63, %v14379_v28  ;;  %12908 = vmatprep.subr.msk.bf16.mxu0 %vm7302_vm8, %v15179_v12  ;;  %12910 = vmatprep.subr.msk.bf16.mxu1 %vm7302_vm8, %v15180_v59  ;;  %v15039_v28 = vld [vmem:[#allocation3 + $0xa8] sm:$0xff]  ;;  %v15184_v59 = vpack.c.bf16 %v16935_v43, %v16912_v14 }
 0x264   : > { %v13171_v6 = vpack.c.bf16 %v3130_v10, %v3130_v10  ;;  %v17193_v47 = vsel %vm597_vm7, %v14374_v57, %v14378_v63  ;;  %v17196_v25 = vsel %vm597_vm7, %v14369_v16, %v14373_v35  ;;  %v17199_v26 = vsel %vm597_vm7, %v14373_v35, %v14374_v57  ;;  %14666 = vrot.lane.b32.xlu1 %v17059_v5, %s15370_s29  ;;  %v14387_v49 = vpop.permute.xlu1 %14386 }
 0x265   : > { %14661 = vrot.lane.b32.xlu0 %v17032_v58, %s15370_s29  ;;  %v14389_v62 = vunpack.i.h.bf16 %v14387_v49  ;;  %v14388_v1 = vunpack.i.l.bf16 %v14387_v49  ;;  %v14382_v41 = vpop.permute.xlu0 %14381  ;;  %v15182_v16 = vpack.c.bf16 %v3124_v44, %v3124_v44  ;;  %8302 = vmatpush1.bf16.msra.mxu0 %v7412_v3  ;;  %v12555_v63 = vcombine.high %v15039_v28, %v5396_v24 }
 0x266   : > { %3445 = vst [vmem:[#allocation3 + $0x9b0] sm:$0xf] %v13171_v6  ;;  %v14384_v39 = vunpack.i.h.bf16 %v14382_v41  ;;  %v14383_v19 = vunpack.i.l.bf16 %v14382_v41  ;;  %8379 = vmatprep.subr.bf16.mxu0 %v12553_v11  ;;  %v12554_v35 = vcombine.low %v15039_v28, %v5396_v24  ;;  %v15183_v11 = vpack.c.bf16 %v16941_v18, %v16903_v32 }
 0x267   : > { %v7418_v38 = vsel %vm7302_vm8, %v15182_v16, 0  ;;  %v3489_v2 = vsel %vm324_vm0, %v14388_v1, %v14389_v62  ;;  %v15186_v6 = vpack.c.bf16 %v17065_v52, %v17012_v60  ;;  %v15187_v24 = vpack.c.bf16 %v16948_v15, %v16915_v50 }
 0x268   : > { %v3488_v53 = vsel %vm324_vm0, %v14384_v39, %v14388_v1  ;;  %v3487_v13 = vsel %vm324_vm0, %v14383_v19, %v14384_v39  ;;  %14676 = vrot.lane.b32.xlu1 %v17087_v17, %s15370_s29  ;;  %v14397_v56 = vpop.permute.xlu1 %14396  ;;  %8345 = vmatpush1.bf16.msra.mxu1 %v7418_v38  ;;  %v15188_v39 = vpack.c.bf16 %v17071_v48, %v16994_v20 }
 0x269   : > { %v13177_v40 = vpack.c.bf16 %v3488_v53, %v3487_v13  ;;  %14671 = vrot.lane.b32.xlu0 %v17040_v7, %s15370_s29  ;;  %v14399_v44 = vunpack.i.h.bf16 %v14397_v56  ;;  %v14398_v57 = vunpack.i.l.bf16 %v14397_v56  ;;  %v14392_v33 = vpop.permute.xlu0 %14391  ;;  %8422 = vmatprep.subr.bf16.mxu1 %v12555_v63  ;;  %v15190_v48 = vpack.c.bf16 %v17157_v37, %v17135_v4 }
 0x26a   : > { %v14394_v10 = vunpack.i.h.bf16 %v14392_v33  ;;  %v14393_v12 = vunpack.i.l.bf16 %v14392_v33  ;;  %12909 = vmatmul.mubr.msk.bf16.vlgmr.msra.gmra.mrb[36].mxu0 %vm7298_vm9, %v16970_v8  ;;  %v15193_v63 = vpack.c.bf16 %v17173_v61, %v17132_v31  ;;  %v15194_v4 = vpack.c.bf16 %v17189_v9, %v17189_v9 }
 0x26b   : > { %4037 = vst [vmem:[#allocation3 + $0x1d4] sm:$0xff] %v13177_v40  ;;  %8380 = vmatpush1.bf16.msra.mxu0 %v12552_v36  ;;  %8411 = vmatprep.mubr.bf16.mxu0 %v21047_v22  ;;  %v3493_v46 = vsel %vm324_vm0, %v14398_v57, %v14399_v44  ;;  %v15189_v36 = vpack.c.bf16 %v17090_v30, %v17009_v34 }
 0x26c   : > { %v3492_v49 = vsel %vm324_vm0, %v14394_v10, %v14398_v57  ;;  %v3490_v1 = vsel %vm324_vm0, %v14389_v62, %v14393_v12  ;;  %v3491_v41 = vsel %vm324_vm0, %v14393_v12, %v14394_v10  ;;  %14686 = vrot.lane.b32.xlu1 %v17032_v58, %s15371_s8  ;;  %v14407_v32 = vpop.permute.xlu1 %14406  ;;  %12911 = vmatmul.mubr.msk.bf16.vlgmr.msra.gmra.mrb[36].mxu1 %vm7298_vm9, %v16970_v8 }
 0x26d   : > { %v13178_v14 = vpack.c.bf16 %v3490_v1, %v3489_v2  ;;  %v13179_v43 = vpack.c.bf16 %v3492_v49, %v3491_v41  ;;  %14681 = vrot.lane.b32.xlu0 %v17036_v27, %s15371_s8  ;;  %v14402_v18 = vpop.permute.xlu0 %14401  ;;  %8423 = vmatpush1.bf16.msra.mxu1 %v12554_v35  ;;  %v14409_v51 = vunpack.i.h.bf16 %v14407_v32  ;;  %v14408_v60 = vunpack.i.l.bf16 %v14407_v32 }
 0x26e   : > { %v14404_v52 = vunpack.i.h.bf16 %v14402_v18  ;;  %v14403_v62 = vunpack.i.l.bf16 %v14402_v18  ;;  %8381 = vmatprep.subr.bf16.mxu0 %v15184_v59  ;;  %8424 = vmatprep.subr.bf16.mxu1 %v15185_v21  ;;  %v15191_v34 = vpack.c.bf16 %v17081_v42, %v17015_v29  ;;  %v15192_v30 = vpack.c.bf16 %v17161_v54, %v17120_v45  ;;  %v5361_v59 = vld [vmem:[#allocation3 + $0xb0] sm:$0xff] }
 0x26f   : > { %4038 = vst [vmem:[#allocation3 + $0x1dc] sm:$0xff] %v13178_v14  ;;  %4039 = vst [vmem:[#allocation3 + $0x1e4] sm:$0xff] %v13179_v43  ;;  %8382 = vmatpush1.bf16.msra.mxu0 %v15183_v11  ;;  %8454 = vmatprep.mubr.bf16.mxu1 %v21047_v22  ;;  %v3525_v13 = vsel %vm363_vm1, %v14408_v60, %v14409_v51  ;;  %v15195_v35 = vpack.c.bf16 %v17166_v23, %v17138_v0  ;;  %v7424_v32 = vsel %vm7302_vm8, %v15194_v4, 0 }
 0x270   : > { %v3494_v19 = vsel %vm324_vm0, %v14399_v44, %v14403_v62  ;;  %v3495_v3 = vsel %vm324_vm0, %v14403_v62, %v14404_v52  ;;  %14696 = vrot.lane.b32.xlu1 %v17040_v7, %s15371_s8  ;;  %v14417_v16 = vpop.permute.xlu1 %14416  ;;  %8383 = vmatprep.subr.bf16.mxu0 %v15186_v6  ;;  %v15196_v10 = vpack.c.bf16 %v17196_v25, %v17196_v25 }
 0x271   : > { %v13180_v53 = vpack.c.bf16 %v3494_v19, %v3493_v46  ;;  %v13181_v50 = vpack.c.bf16 %v3495_v3, %v3495_v3  ;;  %14691 = vrot.lane.b32.xlu0 %v17059_v5, %s15371_s8  ;;  %v14418_v15 = vunpack.i.l.bf16 %v14417_v16  ;;  %v14412_v20 = vpop.permute.xlu0 %14411  ;;  %8425 = vmatpush1.bf16.msra.mxu1 %v15187_v24  ;;  %v14419_v56 = vunpack.i.h.bf16 %v14417_v16  ;;  %v5362_v46 = vld [vmem:[#allocation3 + $0xb8] sm:$0xff] }
 0x272   : > { %v14414_v38 = vunpack.i.h.bf16 %v14412_v20  ;;  %v14413_v28 = vunpack.i.l.bf16 %v14412_v20  ;;  %8426 = vmatprep.subr.bf16.mxu1 %v15189_v36  ;;  %v15197_v12 = vpack.c.bf16 %v17193_v47, %v17193_v47  ;;  %v15198_v11 = vpack.c.bf16 %v17199_v26, %v17199_v26  ;;  %v5397_v21 = vld [vmem:[#allocation3 + $0x1d0] sm:$0xff] }
 0x273   : > { %4040 = vst [vmem:[#allocation3 + $0x1ec] sm:$0xff] %v13180_v53  ;;  %4041 = vst [vmem:[#allocation3 + $0x1f4] sm:$0xf] %v13181_v50  ;;  %8384 = vmatpush1.bf16.msra.mxu0 %v15188_v39  ;;  %v3529_v61 = vsel %vm363_vm1, %v14418_v15, %v14419_v56  ;;  %v12557_v60 = vcombine.high %v5361_v59, %v5397_v21  ;;  %v12556_v50 = vcombine.low %v5361_v59, %v5397_v21 }
 0x274   : > { %v3528_v37 = vsel %vm363_vm1, %v14414_v38, %v14418_v15  ;;  %v3526_v40 = vsel %vm363_vm1, %v14409_v51, %v14413_v28  ;;  %v3527_v44 = vsel %vm363_vm1, %v14413_v28, %v14414_v38  ;;  %14706 = vrot.lane.b32.xlu1 %v17036_v27, %s15372_s15  ;;  %v14427_v29 = vpop.permute.xlu1 %14426  ;;  %8385 = vmatprep.subr.bf16.mxu0 %v15190_v48  ;;  %v7430_v39 = vsel %vm7302_vm8, %v15198_v11, 0 }
 0x275   : > { %v13182_v42 = vpack.c.bf16 %v3526_v40, %v3525_v13  ;;  %v13183_v57 = vpack.c.bf16 %v3528_v37, %v3527_v44  ;;  %14701 = vrot.lane.b32.xlu0 %v17087_v17, %s15371_s8  ;;  %v14429_v45 = vunpack.i.h.bf16 %v14427_v29  ;;  %v14428_v31 = vunpack.i.l.bf16 %v14427_v29  ;;  %v14422_v54 = vpop.permute.xlu0 %14421  ;;  %8427 = vmatpush1.bf16.msra.mxu1 %v15191_v34 }
 0x276   : > { %v14424_v9 = vunpack.i.h.bf16 %v14422_v54  ;;  %v14423_v33 = vunpack.i.l.bf16 %v14422_v54  ;;  %8428 = vmatprep.subr.bf16.mxu1 %v15193_v63  ;;  %v5398_v14 = vld [vmem:[#allocation3 + $0x1d8] sm:$0xff] }
 0x277   : > { %4042 = vst [vmem:[#allocation3 + $0x2f4] sm:$0xff] %v13182_v42  ;;  %4043 = vst [vmem:[#allocation3 + $0x2fc] sm:$0xff] %v13183_v57  ;;  %v3533_v2 = vsel %vm363_vm1, %v14428_v31, %v14429_v45  ;;  %8386 = vmatpush1.bf16.msra.mxu0 %v15192_v30  ;;  %v12559_v19 = vcombine.high %v5362_v46, %v5398_v14  ;;  %v12558_v13 = vcombine.low %v5362_v46, %v5398_v14 }
 0x278   : > { %v13186_v6 = vpack.c.bf16 %v3533_v2, %v3533_v2  ;;  %v3532_v0 = vsel %vm363_vm1, %v14424_v9, %v14428_v31  ;;  %v3530_v23 = vsel %vm363_vm1, %v14419_v56, %v14423_v33  ;;  %v3531_v49 = vsel %vm363_vm1, %v14423_v33, %v14424_v9  ;;  %14716 = vrot.lane.b32.xlu1 %v17059_v5, %s15372_s15  ;;  %v14437_v1 = vpop.permute.xlu1 %14436 }
 0x279   : > { %v13184_v25 = vpack.c.bf16 %v3530_v23, %v3529_v61  ;;  %v13185_v41 = vpack.c.bf16 %v3532_v0, %v3531_v49  ;;  %14711 = vrot.lane.b32.xlu0 %v17032_v58, %s15372_s15  ;;  %v14438_v47 = vunpack.i.l.bf16 %v14437_v1  ;;  %v14432_v26 = vpop.permute.xlu0 %14431  ;;  %8429 = vmatpush1.bf16.msra.mxu1 %v15195_v35  ;;  %v14439_v43 = vunpack.i.h.bf16 %v14437_v1 }
 0x27a   : > { %4046 = vst [vmem:[#allocation3 + $0x314] sm:$0xf] %v13186_v6  ;;  %v14434_v18 = vunpack.i.h.bf16 %v14432_v26  ;;  %v14433_v51 = vunpack.i.l.bf16 %v14432_v26  ;;  %12912 = vmatprep.subr.msk.bf16.mxu0 %vm7302_vm8, %v15196_v10  ;;  %12914 = vmatprep.subr.msk.bf16.mxu1 %vm7302_vm8, %v15197_v12 }
 0x27b   : > { %4044 = vst [vmem:[#allocation3 + $0x304] sm:$0xff] %v13184_v25  ;;  %4045 = vst [vmem:[#allocation3 + $0x30c] sm:$0xff] %v13185_v41  ;;  %8388 = vmatpush1.bf16.msra.mxu0 %v7424_v32  ;;  %v3565_v15 = vsel %vm402_vm2, %v14438_v47, %v14439_v43 }
 0x27c   : > { %v3564_v52 = vsel %vm402_vm2, %v14434_v18, %v14438_v47  ;;  %v3563_v62 = vsel %vm402_vm2, %v14433_v51, %v14434_v18  ;;  %14726 = vrot.lane.b32.xlu1 %v17087_v17, %s15372_s15  ;;  %v14447_v24 = vpop.permute.xlu1 %14446  ;;  %8465 = vmatprep.subr.bf16.mxu0 %v12557_v60 }
 0x27d   : > { %v13187_v3 = vpack.c.bf16 %v3564_v52, %v3563_v62  ;;  %14721 = vrot.lane.b32.xlu0 %v17040_v7, %s15372_s15  ;;  %v14449_v16 = vunpack.i.h.bf16 %v14447_v24  ;;  %v14448_v36 = vunpack.i.l.bf16 %v14447_v24  ;;  %v14442_v53 = vpop.permute.xlu0 %14441  ;;  %8431 = vmatpush1.bf16.msra.mxu1 %v7430_v39 }
 0x27e   : > { %v14444_v20 = vunpack.i.h.bf16 %v14442_v53  ;;  %v14443_v48 = vunpack.i.l.bf16 %v14442_v53  ;;  %8508 = vmatprep.subr.bf16.mxu1 %v12559_v19  ;;  %12913 = vmatmul.mubr.msk.bf16.vlgmr.msra.gmra.mrb[40].mxu0 %vm7298_vm9, %v16970_v8  ;;  %v5433_v12 = vld [vmem:[#allocation3 + $0x2f0] sm:$0xff] }
 0x27f   : > { %4047 = vst [vmem:[#allocation3 + $0x414] sm:$0xff] %v13187_v3  ;;  %8466 = vmatpush1.bf16.msra.mxu0 %v12556_v50  ;;  %8497 = vmatprep.mubr.bf16.mxu0 %v21047_v22  ;;  %v3569_v30 = vsel %vm402_vm2, %v14448_v36, %v14449_v16  ;;  %v17334_v50 = vld [vmem:[%s15553_s24 + $0x240] sm:$0xff] }
 0x280   : > { %v3568_v56 = vsel %vm402_vm2, %v14444_v20, %v14448_v36  ;;  %v3566_v38 = vsel %vm402_vm2, %v14439_v43, %v14443_v48  ;;  %v3567_v28 = vsel %vm402_vm2, %v14443_v48, %v14444_v20  ;;  %14736 = vrot.lane.b32.xlu1 %v17032_v58, %s15373_s11  ;;  %v14457_v34 = vpop.permute.xlu1 %14456  ;;  %12915 = vmatmul.mubr.msk.bf16.vlgmr.msra.gmra.mrb[40].mxu1 %vm7298_vm9, %v16970_v8  ;;  %v5434_v43 = vld [vmem:[#allocation3 + $0x2f8] sm:$0xff] }
 0x281   : > { %v13188_v63 = vpack.c.bf16 %v3566_v38, %v3565_v15  ;;  %v13189_v4 = vpack.c.bf16 %v3568_v56, %v3567_v28  ;;  %14731 = vrot.lane.b32.xlu0 %v17036_v27, %s15373_s11  ;;  %v14452_v37 = vpop.permute.xlu0 %14451  ;;  %8509 = vmatpush1.bf16.msra.mxu1 %v12558_v13  ;;  %v14459_v40 = vunpack.i.h.bf16 %v14457_v34  ;;  %v14458_v44 = vunpack.i.l.bf16 %v14457_v34  ;;  %v17337_v15 = vld [vmem:[%s15553_s24 + $0x248] sm:$0xff]  ;;  %v12457_v13 = vld [vmem:[%s15553_s24 + $0x238] sm:$0xff] }
 0x282   : > { %v14454_v29 = vunpack.i.h.bf16 %v14452_v37  ;;  %v14453_v42 = vunpack.i.l.bf16 %v14452_v37  ;;  %8540 = vmatprep.mubr.bf16.mxu1 %v21047_v22  ;;  %v17347_v34 = vpack.i.bf16 %v17337_v15, %v17334_v50  ;;  %v17354_v37 = vld [vmem:[%s15553_s24 + $0x260] sm:$0xff] }
 0x283   : > { %4048 = vst [vmem:[#allocation3 + $0x41c] sm:$0xff] %v13188_v63  ;;  %4049 = vst [vmem:[#allocation3 + $0x424] sm:$0xff] %v13189_v4  ;;  %v3601_v33 = vsel %vm441_vm3, %v14458_v44, %v14459_v40 }
 0x284   : > { %v3570_v57 = vsel %vm402_vm2, %v14449_v16, %v14453_v42  ;;  %v3571_v8 = vsel %vm402_vm2, %v14453_v42, %v14454_v29  ;;  %14746 = vrot.lane.b32.xlu1 %v17040_v7, %s15373_s11  ;;  %v14467_v45 = vpop.permute.xlu1 %14466  ;;  %v12460_v42 = vld [vmem:[%s15553_s24 + $0x250] sm:$0xff] }
 0x285   : > { %v13190_v31 = vpack.c.bf16 %v3570_v57, %v3569_v30  ;;  %v13191_v54 = vpack.c.bf16 %v3571_v8, %v3571_v8  ;;  %14741 = vrot.lane.b32.xlu0 %v17059_v5, %s15373_s11  ;;  %v14468_v61 = vunpack.i.l.bf16 %v14467_v45  ;;  %v14462_v9 = vpop.permute.xlu0 %14461  ;;  %v14469_v35 = vunpack.i.h.bf16 %v14467_v45 }
 0x286   : > { %v14464_v2 = vunpack.i.h.bf16 %v14462_v9  ;;  %v14463_v10 = vunpack.i.l.bf16 %v14462_v9  ;;  %v5469_v11 = vld [vmem:[#allocation3 + $0x410] sm:$0xff] }
 0x287   : > { %4050 = vst [vmem:[#allocation3 + $0x42c] sm:$0xff] %v13190_v31  ;;  %4051 = vst [vmem:[#allocation3 + $0x434] sm:$0xf] %v13191_v54  ;;  %v12628_v59 = vcombine.low %v5433_v12, %v5469_v11  ;;  %v12629_v21 = vcombine.high %v5433_v12, %v5469_v11  ;;  %v3605_v32 = vsel %vm441_vm3, %v14468_v61, %v14469_v35 }
 0x288   : > { %v3604_v6 = vsel %vm441_vm3, %v14464_v2, %v14468_v61  ;;  %v3602_v0 = vsel %vm441_vm3, %v14459_v40, %v14463_v10  ;;  %v3603_v23 = vsel %vm441_vm3, %v14463_v10, %v14464_v2  ;;  %14756 = vrot.lane.b32.xlu1 %v17036_v27, %s15374_s10  ;;  %v14477_v49 = vpop.permute.xlu1 %14476  ;;  %v17357_v40 = vld [vmem:[%s15553_s24 + $0x268] sm:$0xff]  ;;  %v13221_v31 = vpack.c.bf16 %v17077_v55, %v17077_v55  ;;  %v12465_v55 = vld [vmem:[%s15553_s24 + $0x278] sm:$0xff] }
 0x289   : > { %v13192_v1 = vpack.c.bf16 %v3602_v0, %v3601_v33  ;;  %v13193_v25 = vpack.c.bf16 %v3604_v6, %v3603_v23  ;;  %14751 = vrot.lane.b32.xlu0 %v17087_v17, %s15373_s11  ;;  %v14479_v41 = vunpack.i.h.bf16 %v14477_v49  ;;  %v14478_v47 = vunpack.i.l.bf16 %v14477_v49  ;;  %v14472_v26 = vpop.permute.xlu0 %14471  ;;  %8467 = vmatprep.subr.bf16.mxu0 %v12629_v21  ;;  %v12464_v21 = vld [vmem:[%s15553_s24 + $0x270] sm:$0xff] }
 0x28a   : > { %v14474_v46 = vunpack.i.h.bf16 %v14472_v26  ;;  %v14473_v14 = vunpack.i.l.bf16 %v14472_v26  ;;  %8468 = vmatpush1.bf16.msra.mxu0 %v12628_v59  ;;  %v5470_v18 = vld [vmem:[#allocation3 + $0x418] sm:$0xff]  ;;  %4667 = vst [vmem:[#allocation3 + $0xf8] sm:$0xf] %v13221_v31  ;;  %v17388_v26 = vpack.i.bf16 %v12465_v55, %v12464_v21 }
 0x28b   : > { %4052 = vst [vmem:[#allocation3 + $0x534] sm:$0xff] %v13192_v1  ;;  %4053 = vst [vmem:[#allocation3 + $0x53c] sm:$0xff] %v13193_v25  ;;  %v3609_v27 = vsel %vm441_vm3, %v14478_v47, %v14479_v41  ;;  %v12630_v51 = vcombine.low %v5434_v43, %v5470_v18  ;;  %v12631_v60 = vcombine.high %v5434_v43, %v5470_v18 }
 0x28c   : > { %v13196_v52 = vpack.c.bf16 %v3609_v27, %v3609_v27  ;;  %v3608_v62 = vsel %vm441_vm3, %v14474_v46, %v14478_v47  ;;  %v3606_v24 = vsel %vm441_vm3, %v14469_v35, %v14473_v14  ;;  %v3607_v39 = vsel %vm441_vm3, %v14473_v14, %v14474_v46  ;;  %14766 = vrot.lane.b32.xlu1 %v17059_v5, %s15374_s10  ;;  %v14487_v19 = vpop.permute.xlu1 %14486  ;;  %v12456_v5 = vld [vmem:[%s15553_s24 + $0x230] sm:$0xff] }
 0x28d   : > { %v13194_v3 = vpack.c.bf16 %v3606_v24, %v3605_v32  ;;  %v13195_v16 = vpack.c.bf16 %v3608_v62, %v3607_v39  ;;  %14761 = vrot.lane.b32.xlu0 %v17032_v58, %s15374_s10  ;;  %v14488_v36 = vunpack.i.l.bf16 %v14487_v19  ;;  %v14482_v53 = vpop.permute.xlu0 %14481  ;;  %8510 = vmatprep.subr.bf16.mxu1 %v12631_v60  ;;  %v14489_v58 = vunpack.i.h.bf16 %v14487_v19 }
 0x28e   : > { %4056 = vst [vmem:[#allocation3 + $0x554] sm:$0xf] %v13196_v52  ;;  %v14484_v20 = vunpack.i.h.bf16 %v14482_v53  ;;  %v14483_v48 = vunpack.i.l.bf16 %v14482_v53  ;;  %8511 = vmatpush1.bf16.msra.mxu1 %v12630_v51  ;;  %v17351_v4 = vpack.i.bf16 %v12457_v13, %v12456_v5  ;;  %v13262_v54 = vpack.c.bf16 %v12457_v13, %v12456_v5 }
 0x28f   : > { %4054 = vst [vmem:[#allocation3 + $0x544] sm:$0xff] %v13194_v3  ;;  %4055 = vst [vmem:[#allocation3 + $0x54c] sm:$0xff] %v13195_v16  ;;  %v3641_v57 = vsel %vm480_vm4, %v14488_v36, %v14489_v58  ;;  %v13263_v1 = vpack.c.bf16 %v17337_v15, %v17334_v50  ;;  %v13265_v3 = vpack.c.bf16 %v17357_v40, %v17354_v37 }
 0x290   : > { %v3640_v56 = vsel %vm480_vm4, %v14484_v20, %v14488_v36  ;;  %v3639_v38 = vsel %vm480_vm4, %v14483_v48, %v14484_v20  ;;  %14776 = vrot.lane.b32.xlu1 %v17087_v17, %s15374_s10  ;;  %v14497_v28 = vpop.permute.xlu1 %14496  ;;  %v12461_v17 = vld [vmem:[%s15553_s24 + $0x258] sm:$0xff]  ;;  %5294 = vst [vmem:[#allocation3 + $0xfc] sm:$0xff] %v13262_v54  ;;  %v13266_v16 = vpack.c.bf16 %v12464_v21, %v12464_v21 }
 0x291   : > { %v13197_v30 = vpack.c.bf16 %v3640_v56, %v3639_v38  ;;  %14771 = vrot.lane.b32.xlu0 %v17040_v7, %s15374_s10  ;;  %v14498_v63 = vunpack.i.l.bf16 %v14497_v28  ;;  %v14499_v44 = vunpack.i.h.bf16 %v14497_v28  ;;  %v17366_v7 = vpack.i.bf16 %v17357_v40, %v17354_v37  ;;  %5295 = vst [vmem:[#allocation3 + $0x104] sm:$0xff] %v13263_v1  ;;  %5297 = vst [vmem:[#allocation3 + $0x114] sm:$0xff] %v13265_v3 }
 0x292   : > { %v14492_v29 = vpop.permute.xlu0 %14491  ;;  %v17375_v35 = vpack.i.bf16 %v12461_v17, %v12460_v42  ;;  %v13264_v25 = vpack.c.bf16 %v12461_v17, %v12460_v42  ;;  %v5505_v18 = vld [vmem:[#allocation3 + $0x530] sm:$0xff]  ;;  %5298 = vst [vmem:[#allocation3 + $0x11c] sm:$0xf] %v13266_v16  ;;  %v5506_v38 = vld [vmem:[#allocation3 + $0x538] sm:$0xff] }
 0x293   : > { %4057 = vst [vmem:[#allocation3 + $0x654] sm:$0xff] %v13197_v30  ;;  %v14494_v8 = vunpack.i.h.bf16 %v14492_v29  ;;  %v14493_v45 = vunpack.i.l.bf16 %v14492_v29  ;;  %v3645_v2 = vsel %vm480_vm4, %v14498_v63, %v14499_v44 }
 0x294   : > { %14786 = vrot.lane.b32.xlu1 %v17347_v34, %s15367_s25  ;;  %5296 = vst [vmem:[#allocation3 + $0x10c] sm:$0xff] %v13264_v25 }
 0x295   : > { %v3644_v61 = vsel %vm480_vm4, %v14494_v8, %v14498_v63  ;;  %v3642_v9 = vsel %vm480_vm4, %v14489_v58, %v14493_v45  ;;  %v3643_v33 = vsel %vm480_vm4, %v14493_v45, %v14494_v8  ;;  %14781 = vrot.lane.b32.xlu0 %v17351_v4, %s15367_s25 }
 0x296   : > { %v13198_v10 = vpack.c.bf16 %v3642_v9, %v3641_v57  ;;  %v13199_v12 = vpack.c.bf16 %v3644_v61, %v3643_v33  ;;  %v14507_v11 = vpop.permute.xlu1 %14506  ;;  %v14502_v59 = vpop.permute.xlu0 %14501 }
 0x297   : > { %v14509_v6 = vunpack.i.h.bf16 %v14507_v11  ;;  %v14508_v0 = vunpack.i.l.bf16 %v14507_v11  ;;  %v14504_v23 = vunpack.i.h.bf16 %v14502_v59  ;;  %v14503_v49 = vunpack.i.l.bf16 %v14502_v59 }
 0x298   : > { %4058 = vst [vmem:[#allocation3 + $0x65c] sm:$0xff] %v13198_v10  ;;  %4059 = vst [vmem:[#allocation3 + $0x664] sm:$0xff] %v13199_v12  ;;  %14796 = vrot.lane.b32.xlu1 %v17366_v7, %s15367_s25 }
 0x299   : > { %v3646_v41 = vsel %vm480_vm4, %v14499_v44, %v14503_v49  ;;  %v3647_v47 = vsel %vm480_vm4, %v14503_v49, %v14504_v23  ;;  %14791 = vrot.lane.b32.xlu0 %v17375_v35, %s15367_s25  ;;  %v3677_v32 = vsel %vm519_vm5, %v14508_v0, %v14509_v6 }
 0x29a   : > { %v13200_v46 = vpack.c.bf16 %v3646_v41, %v3645_v2  ;;  %v13201_v14 = vpack.c.bf16 %v3647_v47, %v3647_v47  ;;  %v14517_v43 = vpop.permute.xlu1 %14516  ;;  %v5541_v27 = vld [vmem:[#allocation3 + $0x650] sm:$0xff] }
 0x29b   : > { %v14519_v51 = vunpack.i.h.bf16 %v14517_v43  ;;  %v14518_v60 = vunpack.i.l.bf16 %v14517_v43  ;;  %v14512_v52 = vpop.permute.xlu0 %14511  ;;  %v12700_v62 = vcombine.low %v5505_v18, %v5541_v27  ;;  %v12701_v24 = vcombine.high %v5505_v18, %v5541_v27 }
 0x29c   : > { %4060 = vst [vmem:[#allocation3 + $0x66c] sm:$0xff] %v13200_v46  ;;  %4061 = vst [vmem:[#allocation3 + $0x674] sm:$0xf] %v13201_v14  ;;  %v14514_v39 = vunpack.i.h.bf16 %v14512_v52  ;;  %v14513_v19 = vunpack.i.l.bf16 %v14512_v52  ;;  %14806 = vrot.lane.b32.xlu1 %v17351_v4, %s15368_s27 }
 0x29d   : > { %14801 = vrot.lane.b32.xlu0 %v17388_v26, %s15367_s25  ;;  %8469 = vmatprep.subr.bf16.mxu0 %v12701_v24  ;;  %v3681_v36 = vsel %vm519_vm5, %v14518_v60, %v14519_v51 }
 0x29e   : > { %v3680_v53 = vsel %vm519_vm5, %v14514_v39, %v14518_v60  ;;  %v3678_v50 = vsel %vm519_vm5, %v14509_v6, %v14513_v19  ;;  %v3679_v15 = vsel %vm519_vm5, %v14513_v19, %v14514_v39  ;;  %v14527_v20 = vpop.permute.xlu1 %14526  ;;  %8470 = vmatpush1.bf16.msra.mxu0 %v12700_v62 }
 0x29f   : > { %v13202_v48 = vpack.c.bf16 %v3678_v50, %v3677_v32  ;;  %v13203_v5 = vpack.c.bf16 %v3680_v53, %v3679_v15  ;;  %v14529_v13 = vunpack.i.h.bf16 %v14527_v20  ;;  %v14528_v58 = vunpack.i.l.bf16 %v14527_v20  ;;  %v14522_v56 = vpop.permute.xlu0 %14521  ;;  %v5542_v28 = vld [vmem:[#allocation3 + $0x658] sm:$0xff] }
 0x2a0   : > { %v14524_v30 = vunpack.i.h.bf16 %v14522_v56  ;;  %v14523_v63 = vunpack.i.l.bf16 %v14522_v56  ;;  %14816 = vrot.lane.b32.xlu1 %v17375_v35, %s15368_s27  ;;  %v12702_v37 = vcombine.low %v5506_v38, %v5542_v28  ;;  %v12703_v40 = vcombine.high %v5506_v38, %v5542_v28 }
 0x2a1   : > { %4062 = vst [vmem:[#allocation3 + $0x774] sm:$0xff] %v13202_v48  ;;  %4063 = vst [vmem:[#allocation3 + $0x77c] sm:$0xff] %v13203_v5  ;;  %v3685_v44 = vsel %vm519_vm5, %v14528_v58, %v14529_v13  ;;  %14811 = vrot.lane.b32.xlu0 %v17347_v34, %s15368_s27 }
 0x2a2   : > { %v13206_v29 = vpack.c.bf16 %v3685_v44, %v3685_v44  ;;  %v3684_v42 = vsel %vm519_vm5, %v14524_v30, %v14528_v58  ;;  %v3682_v17 = vsel %vm519_vm5, %v14519_v51, %v14523_v63  ;;  %v3683_v57 = vsel %vm519_vm5, %v14523_v63, %v14524_v30  ;;  %v14537_v8 = vpop.permute.xlu1 %14536  ;;  %8512 = vmatprep.subr.bf16.mxu1 %v12703_v40 }
 0x2a3   : > { %v13204_v45 = vpack.c.bf16 %v3682_v17, %v3681_v36  ;;  %v13205_v31 = vpack.c.bf16 %v3684_v42, %v3683_v57  ;;  %v14538_v54 = vunpack.i.l.bf16 %v14537_v8  ;;  %v14532_v61 = vpop.permute.xlu0 %14531  ;;  %8513 = vmatpush1.bf16.msra.mxu1 %v12702_v37  ;;  %v14539_v9 = vunpack.i.h.bf16 %v14537_v8 }
 0x2a4   : > { %4066 = vst [vmem:[#allocation3 + $0x794] sm:$0xf] %v13206_v29  ;;  %v14534_v33 = vunpack.i.h.bf16 %v14532_v61  ;;  %v14533_v2 = vunpack.i.l.bf16 %v14532_v61  ;;  %14826 = vrot.lane.b32.xlu1 %v17388_v26, %s15368_s27 }
 0x2a5   : > { %4064 = vst [vmem:[#allocation3 + $0x784] sm:$0xff] %v13204_v45  ;;  %4065 = vst [vmem:[#allocation3 + $0x78c] sm:$0xff] %v13205_v31  ;;  %14821 = vrot.lane.b32.xlu0 %v17366_v7, %s15368_s27  ;;  %v3717_v0 = vsel %vm558_vm6, %v14538_v54, %v14539_v9 }
 0x2a6   : > { %v3716_v10 = vsel %vm558_vm6, %v14534_v33, %v14538_v54  ;;  %v3715_v12 = vsel %vm558_vm6, %v14533_v2, %v14534_v33  ;;  %v14547_v11 = vpop.permute.xlu1 %14546 }
 0x2a7   : > { %v13207_v59 = vpack.c.bf16 %v3716_v10, %v3715_v12  ;;  %v14549_v21 = vunpack.i.h.bf16 %v14547_v11  ;;  %v14548_v55 = vunpack.i.l.bf16 %v14547_v11  ;;  %v14542_v6 = vpop.permute.xlu0 %14541 }
 0x2a8   : > { %v14544_v23 = vunpack.i.h.bf16 %v14542_v6  ;;  %v14543_v49 = vunpack.i.l.bf16 %v14542_v6  ;;  %14836 = vrot.lane.b32.xlu1 %v17347_v34, %s15369_s14  ;;  %v5577_v20 = vld [vmem:[#allocation3 + $0x770] sm:$0xff]  ;;  %v5578_v57 = vld [vmem:[#allocation3 + $0x778] sm:$0xff] }
 0x2a9   : > { %4067 = vst [vmem:[#allocation3 + $0x894] sm:$0xff] %v13207_v59  ;;  %14831 = vrot.lane.b32.xlu0 %v17351_v4, %s15369_s14  ;;  %v3721_v32 = vsel %vm558_vm6, %v14548_v55, %v14549_v21 }
 0x2aa   : > { %v3720_v1 = vsel %vm558_vm6, %v14544_v23, %v14548_v55  ;;  %v3718_v25 = vsel %vm558_vm6, %v14539_v9, %v14543_v49  ;;  %v3719_v41 = vsel %vm558_vm6, %v14543_v49, %v14544_v23  ;;  %v14557_v47 = vpop.permute.xlu1 %14556  ;;  %v17451_v23 = vld [vmem:[#allocation3 + $0xc0] sm:$0xff] }
 0x2ab   : > { %v13208_v46 = vpack.c.bf16 %v3718_v25, %v3717_v0  ;;  %v13209_v14 = vpack.c.bf16 %v3720_v1, %v3719_v41  ;;  %v14552_v43 = vpop.permute.xlu0 %14551  ;;  %v14559_v18 = vunpack.i.h.bf16 %v14557_v47  ;;  %v14558_v27 = vunpack.i.l.bf16 %v14557_v47  ;;  %v17453_v49 = vld [vmem:[#allocation3 + $0x1e0] sm:$0xff] }
 0x2ac   : > { %v14554_v51 = vunpack.i.h.bf16 %v14552_v43  ;;  %v14553_v60 = vunpack.i.l.bf16 %v14552_v43  ;;  %14846 = vrot.lane.b32.xlu1 %v17366_v7, %s15369_s14 }
 0x2ad   : > { %4068 = vst [vmem:[#allocation3 + $0x89c] sm:$0xff] %v13208_v46  ;;  %4069 = vst [vmem:[#allocation3 + $0x8a4] sm:$0xff] %v13209_v14  ;;  %14841 = vrot.lane.b32.xlu0 %v17375_v35, %s15369_s14  ;;  %v3753_v36 = vsel %vm597_vm7, %v14558_v27, %v14559_v18 }
 0x2ae   : > { %v3722_v52 = vsel %vm558_vm6, %v14549_v21, %v14553_v60  ;;  %v3723_v62 = vsel %vm558_vm6, %v14553_v60, %v14554_v51  ;;  %v14567_v24 = vpop.permute.xlu1 %14566 }
 0x2af   : > { %v13210_v39 = vpack.c.bf16 %v3722_v52, %v3721_v32  ;;  %v13211_v19 = vpack.c.bf16 %v3723_v62, %v3723_v62  ;;  %v14568_v3 = vunpack.i.l.bf16 %v14567_v24  ;;  %v14562_v16 = vpop.permute.xlu0 %14561  ;;  %v14569_v53 = vunpack.i.h.bf16 %v14567_v24 }
 0x2b0   : > { %v14564_v50 = vunpack.i.h.bf16 %v14562_v16  ;;  %v14563_v15 = vunpack.i.l.bf16 %v14562_v16  ;;  %14856 = vrot.lane.b32.xlu1 %v17351_v4, %s15370_s29  ;;  %v5613_v48 = vld [vmem:[#allocation3 + $0x890] sm:$0xff]  ;;  %v12561_v52 = vcombine.high %v17451_v23, %v17453_v49 }
 0x2b1   : > { %4070 = vst [vmem:[#allocation3 + $0x8ac] sm:$0xff] %v13210_v39  ;;  %4071 = vst [vmem:[#allocation3 + $0x8b4] sm:$0xf] %v13211_v19  ;;  %14851 = vrot.lane.b32.xlu0 %v17388_v26, %s15369_s14  ;;  %v12772_v5 = vcombine.low %v5577_v20, %v5613_v48  ;;  %v12773_v13 = vcombine.high %v5577_v20, %v5613_v48  ;;  %v3757_v29 = vsel %vm597_vm7, %v14568_v3, %v14569_v53  ;;  %v5400_v20 = vld [vmem:[#allocation3 + $0x1e8] sm:$0xff] }
 0x2b2   : > { %v3756_v58 = vsel %vm597_vm7, %v14564_v50, %v14568_v3  ;;  %v3754_v56 = vsel %vm597_vm7, %v14559_v18, %v14563_v15  ;;  %v3755_v38 = vsel %vm597_vm7, %v14563_v15, %v14564_v50  ;;  %v14577_v28 = vpop.permute.xlu1 %14576  ;;  %v5364_v15 = vld [vmem:[#allocation3 + $0xc8] sm:$0xff] }
 0x2b3   : > { %v13212_v30 = vpack.c.bf16 %v3754_v56, %v3753_v36  ;;  %v13213_v63 = vpack.c.bf16 %v3756_v58, %v3755_v38  ;;  %v14579_v37 = vunpack.i.h.bf16 %v14577_v28  ;;  %v14578_v40 = vunpack.i.l.bf16 %v14577_v28  ;;  %v14572_v44 = vpop.permute.xlu0 %14571  ;;  %8471 = vmatprep.subr.bf16.mxu0 %v12773_v13 }
 0x2b4   : > { %v14574_v42 = vunpack.i.h.bf16 %v14572_v44  ;;  %v14573_v17 = vunpack.i.l.bf16 %v14572_v44  ;;  %8472 = vmatpush1.bf16.msra.mxu0 %v12772_v5  ;;  %14866 = vrot.lane.b32.xlu1 %v17375_v35, %s15370_s29  ;;  %v5614_v8 = vld [vmem:[#allocation3 + $0x898] sm:$0xff]  ;;  %v12563_v44 = vcombine.high %v5364_v15, %v5400_v20 }
 0x2b5   : > { %4072 = vst [vmem:[#allocation3 + $0x9b4] sm:$0xff] %v13212_v30  ;;  %4073 = vst [vmem:[#allocation3 + $0x9bc] sm:$0xff] %v13213_v63  ;;  %v3761_v45 = vsel %vm597_vm7, %v14578_v40, %v14579_v37  ;;  %14861 = vrot.lane.b32.xlu0 %v17347_v34, %s15370_s29  ;;  %v12774_v31 = vcombine.low %v5578_v57, %v5614_v8  ;;  %v12775_v54 = vcombine.high %v5578_v57, %v5614_v8  ;;  %v17478_v37 = vld [vmem:[#allocation3 + $0x420] sm:$0xff] }
 0x2b6   : > { %v13216_v61 = vpack.c.bf16 %v3761_v45, %v3761_v45  ;;  %v3760_v9 = vsel %vm597_vm7, %v14574_v42, %v14578_v40  ;;  %v3758_v33 = vsel %vm597_vm7, %v14569_v53, %v14573_v17  ;;  %v3759_v2 = vsel %vm597_vm7, %v14573_v17, %v14574_v42  ;;  %v14587_v10 = vpop.permute.xlu1 %14586  ;;  %v5435_v8 = vld [vmem:[#allocation3 + $0x300] sm:$0xff]  ;;  %v5472_v45 = vld [vmem:[#allocation3 + $0x428] sm:$0xff] }
 0x2b7   : > { %v13214_v12 = vpack.c.bf16 %v3758_v33, %v3757_v29  ;;  %v13215_v11 = vpack.c.bf16 %v3760_v9, %v3759_v2  ;;  %v14588_v59 = vunpack.i.l.bf16 %v14587_v10  ;;  %v14582_v21 = vpop.permute.xlu0 %14581  ;;  %8514 = vmatprep.subr.bf16.mxu1 %v12775_v54  ;;  %v14589_v55 = vunpack.i.h.bf16 %v14587_v10  ;;  %v17492_v2 = vpop.f32.mrb[0].mxu0 }
 0x2b8   : > { %4076 = vst [vmem:[#allocation3 + $0x9d4] sm:$0xf] %v13216_v61  ;;  %v14584_v6 = vunpack.i.h.bf16 %v14582_v21  ;;  %v14583_v0 = vunpack.i.l.bf16 %v14582_v21  ;;  %8515 = vmatpush1.bf16.msra.mxu1 %v12774_v31  ;;  %14876 = vrot.lane.b32.xlu1 %v17388_v26, %s15370_s29  ;;  %v12560_v40 = vcombine.low %v17451_v23, %v17453_v49  ;;  %v12562_v17 = vcombine.low %v5364_v15, %v5400_v20  ;;  %v17501_v21 = vld [vmem:[%s21039_s1] sm:$0xff]  }
 0x2b9   : > { %4074 = vst [vmem:[#allocation3 + $0x9c4] sm:$0xff] %v13214_v12  ;;  %4075 = vst [vmem:[#allocation3 + $0x9cc] sm:$0xff] %v13215_v11  ;;  %14871 = vrot.lane.b32.xlu0 %v17366_v7, %s15370_s29  ;;  %v4120_v43 = vsel %vm324_vm0, %v14588_v59, %v14589_v55  ;;  %v12632_v33 = vcombine.low %v5435_v8, %v17478_v37  ;;  %v12633_v23 = vcombine.high %v5435_v8, %v17478_v37  ;;  %v5579_v8 = vld [vmem:[#allocation3 + $0x780] sm:$0xff] }
 0x2ba   : > { %v4119_v1 = vsel %vm324_vm0, %v14584_v6, %v14588_v59  ;;  %v4118_v25 = vsel %vm324_vm0, %v14583_v0, %v14584_v6  ;;  %v14597_v41 = vpop.permute.xlu1 %14596  ;;  %v17507_v6 = vpop.f32.mrb[0].mxu1 }
 0x2bb   : > { %v17457_v47 = vpack.c.bf16 %v4119_v1, %v4118_v25  ;;  %v14599_v32 = vunpack.i.h.bf16 %v14597_v41  ;;  %v14598_v46 = vunpack.i.l.bf16 %v14597_v41  ;;  %v14592_v14 = vpop.permute.xlu0 %14591  ;;  %v17509_v0 = vpop.f32.mrb[1].mxu0  ;;  %v5543_v25 = vld [vmem:[#allocation3 + $0x660] sm:$0xff] }
 0x2bc   : > { %v14594_v18 = vunpack.i.h.bf16 %v14592_v14  ;;  %v14593_v27 = vunpack.i.l.bf16 %v14592_v14  ;;  %14886 = vrot.lane.b32.xlu1 %v17347_v34, %s15371_s8  ;;  %v5649_v51 = vld [vmem:[#allocation3 + $0x9b0] sm:$0xff]  ;;  %v5650_v60 = vld [vmem:[#allocation3 + $0x9b8] sm:$0xff]  ;;  %v17512_v41 = vpop.f32.mrb[1].mxu1 }
 0x2bd   : > { %v4124_v62 = vsel %vm324_vm0, %v14598_v46, %v14599_v32  ;;  %14881 = vrot.lane.b32.xlu0 %v17351_v4, %s15371_s8  ;;  %v12845_v24 = vcombine.high %v5649_v51, %v5649_v51  ;;  %v12847_v39 = vcombine.high %v5650_v60, %v5650_v60  ;;  %v12844_v19 = vcombine.low %v5649_v51, %v5649_v51  ;;  %v17529_v51 = vpop.f32.mrb[2].mxu1 }
 0x2be   : > { %v4123_v3 = vsel %vm324_vm0, %v14594_v18, %v14598_v46  ;;  %v4121_v16 = vsel %vm324_vm0, %v14589_v55, %v14593_v27  ;;  %v4122_v36 = vsel %vm324_vm0, %v14593_v27, %v14594_v18  ;;  %v14607_v53 = vpop.permute.xlu1 %14606  ;;  %v12846_v50 = vcombine.low %v5650_v60, %v5650_v60  ;;  %v5436_v55 = vld [vmem:[#allocation3 + $0x308] sm:$0xff] }
 0x2bf   : > { %v17470_v48 = vpack.c.bf16 %v4121_v16, %v4120_v43  ;;  %v13224_v5 = vpack.c.bf16 %v4123_v3, %v4122_v36  ;;  %v14609_v13 = vunpack.i.h.bf16 %v14607_v53  ;;  %v14608_v58 = vunpack.i.l.bf16 %v14607_v53  ;;  %v14602_v56 = vpop.permute.xlu0 %14601  ;;  %12916 = vmatprep.subr.msk.bf16.mxu0 %vm7302_vm8, %v12845_v24  ;;  %12918 = vmatprep.subr.msk.bf16.mxu1 %vm7302_vm8, %v12847_v39  ;;  %v5544_v27 = vld [vmem:[#allocation3 + $0x668] sm:$0xff]  ;;  %v5507_v24 = vld [vmem:[#allocation3 + $0x540] sm:$0xff] }
 0x2c0   : > { %v14604_v38 = vunpack.i.h.bf16 %v14602_v56  ;;  %v14603_v28 = vunpack.i.l.bf16 %v14602_v56  ;;  %v7436_v30 = vsel %vm7302_vm8, %v12844_v19, 0  ;;  %v7442_v63 = vsel %vm7302_vm8, %v12846_v50, 0  ;;  %14896 = vrot.lane.b32.xlu1 %v17366_v7, %s15371_s8  ;;  %v5508_v53 = vld [vmem:[#allocation3 + $0x548] sm:$0xff]  ;;  %v17538_v50 = vpop.f32.mrb[3].mxu1 }
 0x2c1   : > { %4670 = vst [vmem:[#allocation3 + $0x208] sm:$0xff] %v13224_v5  ;;  %8474 = vmatpush1.bf16.msra.mxu0 %v7436_v30  ;;  %8517 = vmatpush1.bf16.msra.mxu1 %v7442_v63  ;;  %v17495_v10 = vsel %vm363_vm1, %v14608_v58, %v14609_v13  ;;  %v12634_v49 = vcombine.low %v5436_v55, %v5472_v45  ;;  %21254 = vst [vmem:[#allocation15_spill] sm:$0xff] %v17538_v50  ;;  %v5615_v58 = vld [vmem:[#allocation3 + $0x8a0] sm:$0xff]  ;;  %v17543_v56 = vpop.f32.mrb[4].mxu1 }
 0x2c2   : > { %v4125_v29 = vsel %vm324_vm0, %v14599_v32, %v14603_v28  ;;  %v4126_v42 = vsel %vm324_vm0, %v14603_v28, %v14604_v38  ;;  %14891 = vrot.lane.b32.xlu0 %v17375_v35, %s15371_s8  ;;  %8551 = vmatprep.subr.bf16.mxu0 %v12561_v52  ;;  %v17486_v57 = vpop.permute.xlu1 %14616  ;;  %v12635_v1 = vcombine.high %v5436_v55, %v5472_v45  ;;  %v17514_v32 = vpop.f32.mrb[2].mxu0  ;;  %v5651_v45 = vld [vmem:[#allocation3 + $0x9c0] sm:$0xff] }
 0x2c3   : > { %v17488_v31 = vpack.c.bf16 %v4125_v29, %v4124_v62  ;;  %v13226_v54 = vpack.c.bf16 %v4126_v42, %v4126_v42  ;;  %8594 = vmatprep.subr.bf16.mxu1 %v12563_v44  ;;  %v14618_v61 = vunpack.i.l.bf16 %v17486_v57  ;;  %v14612_v9 = vpop.permute.xlu0 %14611  ;;  %v14619_v12 = vunpack.i.h.bf16 %v17486_v57  ;;  %v17531_v39 = vpop.f32.mrb[3].mxu0  ;;  %v5616_v44 = vld [vmem:[#allocation3 + $0x8a8] sm:$0xff] }
 0x2c4   : > { %v14614_v11 = vunpack.i.h.bf16 %v14612_v9  ;;  %v14613_v59 = vunpack.i.l.bf16 %v14612_v9  ;;  %12917 = vmatmul.mubr.msk.bf16.vlgmr.msra.gmra.mrb[44].mxu0 %vm7298_vm9, %v17501_v21  ;;  %12919 = vmatmul.mubr.msk.bf16.vlgmr.msra.gmra.mrb[44].mxu1 %vm7298_vm9, %v17501_v21  ;;  %v12704_v36 = vcombine.low %v5507_v24, %v5543_v25  ;;  %v17540_v15 = vpop.f32.mrb[4].mxu0  ;;  %v12705_v5 = vcombine.high %v5507_v24, %v5543_v25  ;;  %v17558_v29 = vpop.f32.mrb[5].mxu1 }
 0x2c5   : > { %4672 = vst [vmem:[#allocation3 + $0x218] sm:$0xf] %v13226_v54  ;;  %8552 = vmatpush1.bf16.msra.mxu0 %v12560_v40  ;;  %8595 = vmatpush1.bf16.msra.mxu1 %v12562_v17  ;;  %v17534_v19 = vsel %vm363_vm1, %v14618_v61, %v14619_v12  ;;  %v17545_v38 = vpop.f32.mrb[5].mxu0  ;;  %v12706_v42 = vcombine.low %v5508_v53, %v5544_v27  ;;  %v17564_v55 = vpop.f32.mrb[6].mxu1 }
 0x2c6   : > { %v17517_v46 = vsel %vm363_vm1, %v14614_v11, %v14618_v61  ;;  %v17520_v14 = vsel %vm363_vm1, %v14609_v13, %v14613_v59  ;;  %v17523_v43 = vsel %vm363_vm1, %v14613_v59, %v14614_v11  ;;  %14906 = vrot.lane.b32.xlu1 %v17351_v4, %s15372_s15  ;;  %14901 = vrot.lane.b32.xlu0 %v17388_v26, %s15371_s8  ;;  %v14627_v18 = vpop.permute.xlu1 %14626  ;;  %v17562_v54 = vpop.f32.mrb[6].mxu0  ;;  %v5580_v11 = vld [vmem:[#allocation3 + $0x788] sm:$0xff] }
 0x2c7   : > { %8553 = vmatprep.subr.bf16.mxu0 %v12633_v23  ;;  %8596 = vmatprep.subr.bf16.mxu1 %v12635_v1  ;;  %v14629_v60 = vunpack.i.h.bf16 %v14627_v18  ;;  %v14628_v52 = vunpack.i.l.bf16 %v14627_v18  ;;  %v14622_v62 = vpop.permute.xlu0 %14621  ;;  %v12707_v13 = vcombine.high %v5508_v53, %v5544_v27  ;;  %21255 = vst [vmem:[#allocation16_spill] sm:$0xff] %v17562_v54  ;;  %v5652_v59 = vld [vmem:[#allocation3 + $0x9c8] sm:$0xff]  ;;  %21256 = vst [vmem:[#allocation17_spill] sm:$0xff] %v17564_v55  ;;  %v17566_v23 = vpop.f32.mrb[7].mxu0 }
 0x2c8   : > { %v14624_v3 = vunpack.i.h.bf16 %v14622_v62  ;;  %v14623_v16 = vunpack.i.l.bf16 %v14622_v62  ;;  %8583 = vmatprep.mubr.bf16.mxu0 %v21047_v22  ;;  %8626 = vmatprep.mubr.bf16.mxu1 %v21047_v22  ;;  %21257 = vst [vmem:[#allocation18_spill] sm:$0xff] %v17566_v23  ;;  %v12778_v1 = vcombine.low %v5580_v11, %v5616_v44  ;;  %v12779_v25 = vcombine.high %v5580_v11, %v5616_v44  ;;  %v17568_v18 = vpop.f32.mrb[7].mxu1  ;;  %v17570_v27 = vpop.f32.mrb[8].mxu0 }
 0x2c9   : > { %v4164_v20 = vsel %vm363_vm1, %v14628_v52, %v14629_v60  ;;  %8554 = vmatpush1.bf16.msra.mxu0 %v12632_v33  ;;  %8597 = vmatpush1.bf16.msra.mxu1 %v12634_v49  ;;  %v12776_v49 = vcombine.low %v5579_v8, %v5615_v58  ;;  %21258 = vst [vmem:[#allocation19_spill] sm:$0xff] %v17568_v18 }
 0x2ca   : > { %v13231_v28 = vpack.c.bf16 %v4164_v20, %v4164_v20  ;;  %v17548_v30 = vsel %vm363_vm1, %v14624_v3, %v14628_v52  ;;  %v17551_v63 = vsel %vm363_vm1, %v14619_v12, %v14623_v16  ;;  %v17554_v37 = vsel %vm363_vm1, %v14623_v16, %v14624_v3  ;;  %14916 = vrot.lane.b32.xlu1 %v17375_v35, %s15372_s15  ;;  %v14637_v40 = vpop.permute.xlu1 %14636  ;;  %v17580_v3 = vld [vmem:[#allocation3 + $0xd0] sm:$0xff] }
 0x2cb   : > { %14911 = vrot.lane.b32.xlu0 %v17347_v34, %s15372_s15  ;;  %8555 = vmatprep.subr.bf16.mxu0 %v12705_v5  ;;  %v14638_v17 = vunpack.i.l.bf16 %v14637_v40  ;;  %v14632_v57 = vpop.permute.xlu0 %14631  ;;  %v14639_v61 = vunpack.i.h.bf16 %v14637_v40  ;;  %v12777_v12 = vcombine.high %v5579_v8, %v5615_v58  ;;  %v12848_v24 = vcombine.low %v5651_v45, %v5651_v45  ;;  %v17582_v16 = vld [vmem:[#allocation3 + $0x1f0] sm:$0xff]  ;;  %v17588_v58 = vpop.f32.mrb[9].mxu0 }
 0x2cc   : > { %4677 = vst [vmem:[#allocation3 + $0x338] sm:$0xf] %v13231_v28  ;;  %8598 = vmatprep.subr.bf16.mxu1 %v12707_v13  ;;  %v14634_v9 = vunpack.i.h.bf16 %v14632_v57  ;;  %v14633_v33 = vunpack.i.l.bf16 %v14632_v57  ;;  %v12850_v13 = vcombine.low %v5652_v59, %v5652_v59  ;;  %21260 = vst [vmem:[#allocation21_spill] sm:$0xff] %v17588_v58  ;;  %v17595_v8 = vpop.f32.mrb[10].mxu0 }
 0x2cd   : > { %8556 = vmatpush1.bf16.msra.mxu0 %v12704_v36  ;;  %8599 = vmatpush1.bf16.msra.mxu1 %v12706_v42  ;;  %v17584_v36 = vpop.f32.mrb[8].mxu1  ;;  %v17591_v28 = vsel %vm402_vm2, %v14638_v17, %v14639_v61  ;;  %v12849_v42 = vcombine.high %v5651_v45, %v5651_v45  ;;  %21262 = vst [vmem:[#allocation23_spill] sm:$0xff] %v17595_v8  ;;  %v17601_v11 = vpop.f32.mrb[11].mxu0 }
 0x2ce   : > { %v17573_v60 = vsel %vm402_vm2, %v14634_v9, %v14638_v17  ;;  %v17576_v52 = vsel %vm402_vm2, %v14633_v33, %v14634_v9  ;;  %14926 = vrot.lane.b32.xlu1 %v17388_v26, %s15372_s15  ;;  %8557 = vmatprep.subr.bf16.mxu0 %v12777_v12  ;;  %v14647_v62 = vpop.permute.xlu1 %14646  ;;  %21259 = vst [vmem:[#allocation20_spill] sm:$0xff] %v17584_v36  ;;  %v17593_v57 = vpop.f32.mrb[9].mxu1  ;;  %21264 = vst [vmem:[#allocation25_spill] sm:$0xff] %v17601_v11 }
 0x2cf   : > { %14921 = vrot.lane.b32.xlu0 %v17366_v7, %s15372_s15  ;;  %8600 = vmatprep.subr.bf16.mxu1 %v12779_v25  ;;  %v14649_v53 = vunpack.i.h.bf16 %v14647_v62  ;;  %v14648_v20 = vunpack.i.l.bf16 %v14647_v62  ;;  %v14642_v5 = vpop.permute.xlu0 %14641  ;;  %21261 = vst [vmem:[#allocation22_spill] sm:$0xff] %v17593_v57  ;;  %v12851_v9 = vcombine.high %v5652_v59, %v5652_v59  ;;  %v12565_v33 = vcombine.high %v17580_v3, %v17582_v16  ;;  %v17599_v12 = vpop.f32.mrb[10].mxu1  ;;  %v5437_v57 = vld [vmem:[#allocation3 + $0x310] sm:$0xff] }
 0x2d0   : > { %v14644_v40 = vunpack.i.h.bf16 %v14642_v5  ;;  %v14643_v44 = vunpack.i.l.bf16 %v14642_v5  ;;  %21263 = vst [vmem:[#allocation24_spill] sm:$0xff] %v17599_v12  ;;  %v7454_v5 = vsel %vm7302_vm8, %v12850_v13, 0  ;;  %v15041_v12 = vld [vmem:[#allocation3 + $0xd8] sm:$0xff] }
 0x2d1   : > { %8558 = vmatpush1.bf16.msra.mxu0 %v12776_v49  ;;  %8601 = vmatpush1.bf16.msra.mxu1 %v12778_v1  ;;  %v7448_v49 = vsel %vm7302_vm8, %v12848_v24, 0  ;;  %v17616_v1 = vpop.f32.mrb[11].mxu1  ;;  %v17619_v62 = vsel %vm402_vm2, %v14648_v20, %v14649_v53  ;;  %v12567_v13 = vcombine.high %v15041_v12, %v17457_v47 }
 0x2d2   : > { %v17604_v17 = vsel %vm402_vm2, %v14644_v40, %v14648_v20  ;;  %v17607_v25 = vsel %vm402_vm2, %v14639_v61, %v14643_v44  ;;  %v17610_v45 = vsel %vm402_vm2, %v14643_v44, %v14644_v40  ;;  %14936 = vrot.lane.b32.xlu1 %v17347_v34, %s15373_s11  ;;  %12920 = vmatprep.subr.msk.bf16.mxu0 %vm7302_vm8, %v12849_v42  ;;  %v14657_v59 = vpop.permute.xlu1 %14656  ;;  %v17625_v40 = vld [vmem:[#allocation3 + $0x430] sm:$0xff]  ;;  %v17627_v44 = vpop.f32.mrb[12].mxu0 }
 0x2d3   : > { %21265 = vst [vmem:[#allocation26_spill] sm:$0xff] %v17616_v1  ;;  %14931 = vrot.lane.b32.xlu0 %v17351_v4, %s15373_s11  ;;  %12922 = vmatprep.subr.msk.bf16.mxu1 %vm7302_vm8, %v12851_v9  ;;  %v14652_v61 = vpop.permute.xlu0 %14651  ;;  %21266 = vst [vmem:[#allocation27_spill] sm:$0xff] %v17627_v44  ;;  %v14659_v42 = vunpack.i.h.bf16 %v14657_v59  ;;  %v14658_v22 = vunpack.i.l.bf16 %v14657_v59  ;;  %v17629_v1 = vpop.f32.mrb[12].mxu1  ;;  %v12564_v9 = vcombine.low %v17580_v3, %v17582_v16 }
 0x2d4   : > { %v14654_v24 = vunpack.i.h.bf16 %v14652_v61  ;;  %v14653_v11 = vunpack.i.l.bf16 %v14652_v61  ;;  %21267 = vst [vmem:[#allocation28_spill] sm:$0xff] %v17629_v1  ;;  %v17631_v20 = vpop.f32.mrb[13].mxu0  ;;  %v17636_v36 = vpop.f32.mrb[13].mxu1  ;;  %v12637_v3 = vcombine.high %v5437_v57, %v17625_v40 }
 0x2d5   : > { %21268 = vst [vmem:[#allocation29_spill] sm:$0xff] %v17631_v20  ;;  %8560 = vmatpush1.bf16.msra.mxu0 %v7448_v49  ;;  %8603 = vmatpush1.bf16.msra.mxu1 %v7454_v5  ;;  %21269 = vst [vmem:[#allocation30_spill] sm:$0xff] %v17636_v36  ;;  %v17638_v44 = vpop.f32.mrb[14].mxu0  ;;  %v17647_v16 = vpop.f32.mrb[14].mxu1 }
 0x2d6   : > { %21270 = vst [vmem:[#allocation31_spill] sm:$0xff] %v17638_v44  ;;  %v17641_v59 = vsel %vm402_vm2, %v14649_v53, %v14653_v11  ;;  %v4202_v61 = vsel %vm402_vm2, %v14653_v11, %v14654_v24  ;;  %14946 = vrot.lane.b32.xlu1 %v17366_v7, %s15373_s11  ;;  %8637 = vmatprep.subr.bf16.mxu0 %v12565_v33  ;;  %v14667_v49 = vpop.permute.xlu1 %14666  ;;  %21271 = vst [vmem:[#allocation32_spill] sm:$0xff] %v17647_v16  ;;  %v17652_v1 = vpop.f32.mrb[15].mxu0 }
 0x2d7   : > { %v13236_v5 = vpack.c.bf16 %v4202_v61, %v4202_v61  ;;  %14941 = vrot.lane.b32.xlu0 %v17375_v35, %s15373_s11  ;;  %v12566_v44 = vcombine.low %v15041_v12, %v17457_v47  ;;  %8680 = vmatprep.subr.bf16.mxu1 %v12567_v13  ;;  %v14668_v53 = vunpack.i.l.bf16 %v14667_v49  ;;  %v14662_v36 = vpop.permute.xlu0 %14661  ;;  %21272 = vst [vmem:[#allocation33_spill] sm:$0xff] %v17652_v1  ;;  %v14669_v33 = vunpack.i.h.bf16 %v14667_v49  ;;  %v17661_v61 = vpop.f32.mrb[15].mxu1 }
 0x2d8   : > { %v17655_v11 = vsel %vm441_vm3, %v14658_v22, %v14659_v42  ;;  %v14664_v24 = vunpack.i.h.bf16 %v14662_v36  ;;  %v14663_v20 = vunpack.i.l.bf16 %v14662_v36  ;;  %12921 = vmatmul.mubr.msk.bf16.vlgmr.msra.gmra.mrb[48].mxu0 %vm7298_vm9, %v17501_v21  ;;  %12923 = vmatmul.mubr.msk.bf16.vlgmr.msra.gmra.mrb[48].mxu1 %vm7298_vm9, %v17501_v21  ;;  %21273 = vst [vmem:[#allocation34_spill] sm:$0xff] %v17661_v61  ;;  %v17663_v47 = vpop.f32.mrb[16].mxu0  ;;  %v12636_v12 = vcombine.low %v5437_v57, %v17625_v40  ;;  %v17670_v13 = vpop.f32.mrb[16].mxu1 }
 0x2d9   : > { %21274 = vst [vmem:[#allocation35_spill] sm:$0xff] %v17663_v47  ;;  %4682 = vst [vmem:[#allocation3 + $0x458] sm:$0xf] %v13236_v5  ;;  %8638 = vmatpush1.bf16.msra.mxu0 %v12564_v9  ;;  %8681 = vmatpush1.bf16.msra.mxu1 %v12566_v44  ;;  %v15199_v22 = vpack.c.bf16 %v17576_v52, %v17495_v10  ;;  %v15200_v36 = vpack.c.bf16 %v17573_v60, %v17520_v14  ;;  %v17672_v49 = vpop.f32.mrb[17].mxu0  ;;  %v5545_v52 = vld [vmem:[#allocation3 + $0x670] sm:$0xff]  ;;  %v17685_v14 = vpop.f32.mrb[17].mxu1 }
 0x2da   : > { %21275 = vst [vmem:[#allocation36_spill] sm:$0xff] %v17670_v13  ;;  %21276 = vst [vmem:[#allocation37_spill] sm:$0xff] %v17672_v49  ;;  %v17675_v16 = vsel %vm441_vm3, %v14664_v24, %v14668_v53  ;;  %v17678_v61 = vsel %vm441_vm3, %v14659_v42, %v14663_v20  ;;  %v17681_v44 = vsel %vm441_vm3, %v14663_v20, %v14664_v24  ;;  %14956 = vrot.lane.b32.xlu1 %v17351_v4, %s15374_s10  ;;  %v14677_v10 = vpop.permute.xlu1 %14676  ;;  %v17689_v42 = vpop.f32.mrb[18].mxu0  ;;  %v5509_v4 = vld [vmem:[#allocation3 + $0x550] sm:$0xff] }
 0x2db   : > { %8639 = vmatprep.subr.bf16.mxu0 %v12637_v3  ;;  %21277 = vst [vmem:[#allocation38_spill] sm:$0xff] %v17685_v14  ;;  %14951 = vrot.lane.b32.xlu0 %v17388_v26, %s15373_s11  ;;  %v14679_v60 = vunpack.i.h.bf16 %v14677_v10  ;;  %v14678_v57 = vunpack.i.l.bf16 %v14677_v10  ;;  %v14672_v40 = vpop.permute.xlu0 %14671  ;;  %21278 = vst [vmem:[#allocation39_spill] sm:$0xff] %v17689_v42  ;;  %v17692_v20 = vsel %vm441_vm3, %v14668_v53, %v14669_v33  ;;  %v21279_v3 = vmov 0   ;;  %v17696_v24 = vpop.f32.mrb[18].mxu1  ;;  %v5617_v13 = vld [vmem:[#allocation3 + $0x8b0] sm:$0xff] }
 0x2dc   : > { %8682 = vmatprep.subr.bf16.mxu1 %v15200_v36  ;;  %v14674_v9 = vunpack.i.h.bf16 %v14672_v40  ;;  %v14673_v5 = vunpack.i.l.bf16 %v14672_v40  ;;  %8669 = vmatprep.mubr.bf16.mxu0 %v21279_v3  ;;  %21280 = vst [vmem:[#allocation40_spill] sm:$0xff] %v17696_v24  ;;  %v17698_v14 = vpop.f32.mrb[19].mxu0  ;;  %v12709_v36 = vcombine.high %v5509_v4, %v5545_v52  ;;  %v17701_v42 = vpop.f32.mrb[19].mxu1  ;;  %v5653_v47 = vld [vmem:[#allocation3 + $0x9d0] sm:$0xff] }
 0x2dd   : > { %8712 = vmatprep.mubr.bf16.mxu1 %v21279_v3  ;;  %21281 = vst [vmem:[#allocation41_spill] sm:$0xff] %v17698_v14  ;;  %v4240_v10 = vsel %vm441_vm3, %v14678_v57, %v14679_v60  ;;  %8640 = vmatpush1.bf16.msra.mxu0 %v12636_v12  ;;  %21282 = vst [vmem:[#allocation42_spill] sm:$0xff] %v17701_v42  ;;  %v17703_v53 = vpop.f32.mrb[20].mxu0  ;;  %v12708_v60 = vcombine.low %v5509_v4, %v5545_v52  ;;  %v5581_v42 = vld [vmem:[#allocation3 + $0x790] sm:$0xff] }
 0x2de   : > { %8683 = vmatpush1.bf16.msra.mxu1 %v15199_v22  ;;  %21283 = vst [vmem:[#allocation43_spill] sm:$0xff] %v17703_v53  ;;  %v13241_v40 = vpack.c.bf16 %v4240_v10, %v4240_v10  ;;  %v17706_v1 = vsel %vm441_vm3, %v14674_v9, %v14678_v57  ;;  %v17709_v49 = vsel %vm441_vm3, %v14669_v33, %v14673_v5  ;;  %v14687_v12 = vpop.permute.xlu1 %14686  ;;  %v17716_v22 = vpop.f32.mrb[20].mxu1 }
 0x2df   : > { %v17712_v24 = vsel %vm441_vm3, %v14673_v5, %v14674_v9  ;;  %14966 = vrot.lane.b32.xlu1 %v17375_v35, %s15374_s10  ;;  %21284 = vst [vmem:[#allocation44_spill] sm:$0xff] %v17716_v22  ;;  %14961 = vrot.lane.b32.xlu0 %v17347_v34, %s15374_s10  ;;  %v14688_v10 = vunpack.i.l.bf16 %v14687_v12  ;;  %v14682_v57 = vpop.permute.xlu0 %14681  ;;  %v17720_v53 = vpop.f32.mrb[21].mxu0  ;;  %v14689_v33 = vunpack.i.h.bf16 %v14687_v12  ;;  %v12781_v14 = vcombine.high %v5581_v42, %v5617_v13 }
 0x2e0   : > { %8641 = vmatprep.subr.bf16.mxu0 %v12709_v36  ;;  %21285 = vst [vmem:[#allocation45_spill] sm:$0xff] %v17720_v53  ;;  %4687 = vst [vmem:[#allocation3 + $0x578] sm:$0xf] %v13241_v40  ;;  %v14684_v9 = vunpack.i.h.bf16 %v14682_v57  ;;  %v14683_v5 = vunpack.i.l.bf16 %v14682_v57  ;;  %v17722_v35 = vpop.f32.mrb[21].mxu1  ;;  %v17724_v58 = vpop.f32.mrb[22].mxu0  ;;  %v12780_v36 = vcombine.low %v5581_v42, %v5617_v13  ;;  %v264_v42 = vld [vmem:[%s21040_s2] sm:$0xff] }
 0x2e1   : > { %21286 = vst [vmem:[#allocation46_spill] sm:$0xff] %v17722_v35  ;;  %21287 = vst [vmem:[#allocation47_spill] sm:$0xff] %v17724_v58  ;;  %8642 = vmatpush1.bf16.msra.mxu0 %v12708_v60  ;;  %v17726_v22 = vpop.f32.mrb[22].mxu1  ;;  %v17728_v34 = vpop.f32.mrb[23].mxu0  ;;  %v12852_v58 = vcombine.low %v5653_v47, %v5653_v47 }
 0x2e2   : > { %21288 = vst [vmem:[#allocation48_spill] sm:$0xff] %v17726_v22  ;;  %21289 = vst [vmem:[#allocation49_spill] sm:$0xff] %v17728_v34  ;;  %v4271_v52 = vsel %vm480_vm4, %v14684_v9, %v14688_v10  ;;  %v4270_v4 = vsel %vm480_vm4, %v14683_v5, %v14684_v9  ;;  %8643 = vmatprep.subr.bf16.mxu0 %v12781_v14  ;;  %v14697_v40 = vpop.permute.xlu1 %14696  ;;  %v17734_v12 = vpop.f32.mrb[23].mxu1  ;;  %v265_v34 = vld [vmem:[%s21040_s2 + $0x8] sm:$0xff] }
 0x2e3   : > { %14976 = vrot.lane.b32.xlu1 %v17388_v26, %s15374_s10  ;;  %21290 = vst [vmem:[#allocation50_spill] sm:$0xff] %v17734_v12  ;;  %14971 = vrot.lane.b32.xlu0 %v17366_v7, %s15374_s10  ;;  %v14699_v60 = vunpack.i.h.bf16 %v14697_v40  ;;  %v14698_v57 = vunpack.i.l.bf16 %v14697_v40  ;;  %v14692_v22 = vpop.permute.xlu0 %14691  ;;  %v17741_v9 = vpop.f32.mrb[24].mxu0  ;;  %v17744_v26 = vsel %vm480_vm4, %v14688_v10, %v14689_v33  ;;  %v12853_v7 = vcombine.high %v5653_v47, %v5653_v47  ;;  %v15042_v40 = vld [vmem:[#allocation3 + $0xe0] sm:$0xff] }
 0x2e4   : > { %21291 = vst [vmem:[#allocation51_spill] sm:$0xff] %v17741_v9  ;;  %v14694_v13 = vunpack.i.h.bf16 %v14692_v22  ;;  %v14693_v14 = vunpack.i.l.bf16 %v14692_v22  ;;  %v17749_v5 = vpop.f32.mrb[25].mxu0  ;;  %v12569_v12 = vcombine.high %v15042_v40, %v17470_v48  ;;  %v15201_v35 = vpack.c.bf16 %v4270_v4, %v17655_v11 }
 0x2e5   : > { %21292 = vst [vmem:[#allocation52_spill] sm:$0xff] %v17749_v5  ;;  %8644 = vmatpush1.bf16.msra.mxu0 %v12780_v36  ;;  %v15202_v9 = vpack.c.bf16 %v4271_v52, %v17678_v61  ;;  %v17754_v53 = vpop.f32.mrb[26].mxu0  ;;  %v17767_v11 = vsel %vm480_vm4, %v14698_v57, %v14699_v60  ;;  %v7460_v52 = vsel %vm7302_vm8, %v12852_v58, 0  ;;  %v15203_v58 = vpack.c.bf16 %v17607_v25, %v17517_v46 }
 0x2e6   : > { %21293 = vst [vmem:[#allocation53_spill] sm:$0xff] %v17754_v53  ;;  %v17757_v10 = vsel %vm480_vm4, %v14694_v13, %v14698_v57  ;;  %v4273_v22 = vsel %vm480_vm4, %v14689_v33, %v14693_v14  ;;  %v17761_v18 = vsel %vm480_vm4, %v14693_v14, %v14694_v13  ;;  %12924 = vmatprep.subr.msk.bf16.mxu0 %vm7302_vm8, %v12853_v7  ;;  %v14707_v47 = vpop.permute.xlu1 %14706  ;;  %v17764_v36 = vpop.f32.mrb[27].mxu0 }
 0x2e7   : > { %5670 = vperm.xlu1 %14981, %v265_v34   ;;  %21294 = vst [vmem:[#allocation54_spill] sm:$0xff] %v17764_v36  ;;  %5665 = vperm.xlu0 %14980, %v264_v42   ;;  %v14702_v61 = vpop.permute.xlu0 %14701  ;;  %v14709_v4 = vunpack.i.h.bf16 %v14707_v47  ;;  %v14708_v53 = vunpack.i.l.bf16 %v14707_v47  ;;  %v12568_v14 = vcombine.low %v15042_v40, %v17470_v48  ;;  %v15204_v25 = vpack.c.bf16 %v17591_v28, %v17523_v43 }
 0x2e8   : > { %8684 = vmatprep.subr.bf16.mxu1 %v15202_v9  ;;  %v14704_v33 = vunpack.i.h.bf16 %v14702_v61  ;;  %v14703_v5 = vunpack.i.l.bf16 %v14702_v61 }
 0x2e9   : > { %8685 = vmatpush1.bf16.msra.mxu1 %v15201_v35  ;;  %8646 = vmatpush1.bf16.msra.mxu0 %v7460_v52  ;;  %v17778_v9 = vsel %vm519_vm5, %v14708_v53, %v14709_v4 }
 0x2ea   : > { %v17771_v34 = vsel %vm480_vm4, %v14699_v60, %v14703_v5  ;;  %v4278_v13 = vsel %vm480_vm4, %v14703_v5, %v14704_v33  ;;  %8723 = vmatprep.subr.bf16.mxu0 %v12569_v12  ;;  %v14717_v57 = vpop.permute.xlu1 %14716 }
 0x2eb   : > { %v13246_v42 = vpack.c.bf16 %v4278_v13, %v4278_v13  ;;  %v14718_v7 = vunpack.i.l.bf16 %v14717_v57  ;;  %v14712_v36 = vpop.permute.xlu0 %14711  ;;  %v14719_v35 = vunpack.i.h.bf16 %v14717_v57  ;;  %v15205_v13 = vpack.c.bf16 %v4273_v22, %v17675_v16 }
 0x2ec   : > { %v14714_v47 = vunpack.i.h.bf16 %v14712_v36  ;;  %v14713_v61 = vunpack.i.l.bf16 %v14712_v36  ;;  %12925 = vmatmul.mubr.msk.bf16.vlgmr.msra.gmra.mrb[52].mxu0 %vm7298_vm9, %v17501_v21  ;;  %v15206_v16 = vpack.c.bf16 %v17744_v26, %v17681_v44 }
 0x2ed   : > { %4692 = vst [vmem:[#allocation3 + $0x698] sm:$0xf] %v13246_v42  ;;  %8724 = vmatpush1.bf16.msra.mxu0 %v12568_v14  ;;  %8755 = vmatprep.mubr.bf16.mxu0 %v21279_v3  ;;  %v17793_v36 = vsel %vm519_vm5, %v14718_v7, %v14719_v35 }
 0x2ee   : > { %v17784_v48 = vsel %vm519_vm5, %v14714_v47, %v14718_v7  ;;  %v4309_v12 = vsel %vm519_vm5, %v14709_v4, %v14713_v61  ;;  %v17788_v46 = vsel %vm519_vm5, %v14713_v61, %v14714_v47  ;;  %8725 = vmatprep.subr.bf16.mxu0 %v15203_v58  ;;  %v14727_v53 = vpop.permute.xlu1 %14726 }
 0x2ef   : > { %v14729_v60 = vunpack.i.h.bf16 %v14727_v53  ;;  %v14728_v5 = vunpack.i.l.bf16 %v14727_v53  ;;  %v14722_v40 = vpop.permute.xlu0 %14721 }
 0x2f0   : > { %v14724_v52 = vunpack.i.h.bf16 %v14722_v40  ;;  %v14723_v33 = vunpack.i.l.bf16 %v14722_v40 }
 0x2f1   : > { %v4316_v4 = vsel %vm519_vm5, %v14728_v5, %v14729_v60  ;;  %8726 = vmatpush1.bf16.msra.mxu0 %v15204_v25 }
 0x2f2   : > { %v13251_v14 = vpack.c.bf16 %v4316_v4, %v4316_v4  ;;  %v17798_v57 = vsel %vm519_vm5, %v14724_v52, %v14728_v5  ;;  %v17801_v43 = vsel %vm519_vm5, %v14719_v35, %v14723_v33  ;;  %v17804_v28 = vsel %vm519_vm5, %v14723_v33, %v14724_v52  ;;  %v14737_v42 = vpop.permute.xlu1 %14736  ;;  %8727 = vmatprep.subr.bf16.mxu0 %v15205_v13 }
 0x2f3   : > { %v14738_v7 = vunpack.i.l.bf16 %v14737_v42  ;;  %v14732_v58 = vpop.permute.xlu0 %14731  ;;  %v14739_v22 = vunpack.i.h.bf16 %v14737_v42 }
 0x2f4   : > { %4697 = vst [vmem:[#allocation3 + $0x7b8] sm:$0xf] %v13251_v14  ;;  %v14734_v47 = vunpack.i.h.bf16 %v14732_v58  ;;  %v14733_v61 = vunpack.i.l.bf16 %v14732_v58 }
 0x2f5   : > { %8728 = vmatpush1.bf16.msra.mxu0 %v15206_v16  ;;  %v17808_v25 = vpop.f32.mrb[24].mxu1  ;;  %v17810_v53 = vpop.f32.mrb[28].mxu0  ;;  %v4348_v26 = vsel %vm558_vm6, %v14738_v7, %v14739_v22 }
 0x2f6   : > { %21295 = vst [vmem:[#allocation55_spill] sm:$0xff] %v17808_v25  ;;  %21296 = vst [vmem:[#allocation56_spill] sm:$0xff] %v17810_v53  ;;  %v4347_v35 = vsel %vm558_vm6, %v14734_v47, %v14738_v7  ;;  %v4346_v60 = vsel %vm558_vm6, %v14733_v61, %v14734_v47  ;;  %v14747_v5 = vpop.permute.xlu1 %14746  ;;  %v17814_v40 = vpop.f32.mrb[25].mxu1 }
 0x2f7   : > { %21297 = vst [vmem:[#allocation57_spill] sm:$0xff] %v17814_v40  ;;  %v14749_v52 = vunpack.i.h.bf16 %v14747_v5  ;;  %v14748_v33 = vunpack.i.l.bf16 %v14747_v5  ;;  %v14742_v13 = vpop.permute.xlu0 %14741  ;;  %v17816_v44 = vpop.f32.mrb[26].mxu1  ;;  %v15207_v16 = vpack.c.bf16 %v4346_v60, %v17778_v9  ;;  %v15208_v53 = vpack.c.bf16 %v4347_v35, %v4309_v12 }
 0x2f8   : > { %21298 = vst [vmem:[#allocation58_spill] sm:$0xff] %v17816_v44  ;;  %v14744_v4 = vunpack.i.h.bf16 %v14742_v13  ;;  %v14743_v14 = vunpack.i.l.bf16 %v14742_v13  ;;  %v17819_v42 = vpop.f32.mrb[27].mxu1  ;;  %v17821_v58 = vpop.f32.mrb[29].mxu0 }
 0x2f9   : > { %21299 = vst [vmem:[#allocation59_spill] sm:$0xff] %v17819_v42  ;;  %21300 = vst [vmem:[#allocation60_spill] sm:$0xff] %v17821_v58  ;;  %v17824_v47 = vpop.f32.mrb[30].mxu0  ;;  %v17836_v13 = vsel %vm558_vm6, %v14748_v33, %v14749_v52  ;;  %8686 = vmatprep.subr.bf16.mxu1 %v15208_v53 }
 0x2fa   : > { %21301 = vst [vmem:[#allocation61_spill] sm:$0xff] %v17824_v47  ;;  %v17827_v61 = vsel %vm558_vm6, %v14744_v4, %v14748_v33  ;;  %v4349_v5 = vsel %vm558_vm6, %v14739_v22, %v14743_v14  ;;  %v17831_v40 = vsel %vm558_vm6, %v14743_v14, %v14744_v4  ;;  %v14757_v7 = vpop.permute.xlu1 %14756  ;;  %v17833_v44 = vpop.f32.mrb[31].mxu0  ;;  %8687 = vmatpush1.bf16.msra.mxu1 %v15207_v16 }
 0x2fb   : > { %21302 = vst [vmem:[#allocation62_spill] sm:$0xff] %v17833_v44  ;;  %v14752_v42 = vpop.permute.xlu0 %14751  ;;  %v14759_v9 = vunpack.i.h.bf16 %v14757_v7  ;;  %v14758_v12 = vunpack.i.l.bf16 %v14757_v7  ;;  %v15209_v47 = vpack.c.bf16 %v4348_v26, %v17788_v46  ;;  %v15210_v22 = vpack.c.bf16 %v4349_v5, %v17784_v48  ;;  %v5404_v46 = vld [vmem:[#allocation3 + $0x208] sm:$0xff] }
 0x2fc   : > { %v14754_v35 = vunpack.i.h.bf16 %v14752_v42  ;;  %v14753_v60 = vunpack.i.l.bf16 %v14752_v42 }
 0x2fd   : > { %8729 = vmatprep.subr.bf16.mxu0 %v15210_v22  ;;  %v4384_v53 = vsel %vm597_vm7, %v14758_v12, %v14759_v9 }
 0x2fe   : > { %v17841_v4 = vsel %vm558_vm6, %v14749_v52, %v14753_v60  ;;  %v4354_v14 = vsel %vm558_vm6, %v14753_v60, %v14754_v35  ;;  %v14767_v44 = vpop.permute.xlu1 %14766  ;;  %8730 = vmatpush1.bf16.msra.mxu0 %v15209_v47  ;;  %v15213_v55 = vpack.c.bf16 %v4384_v53, %v4384_v53 }
 0x2ff   : > { %v13256_v58 = vpack.c.bf16 %v4354_v14, %v4354_v14  ;;  %v14768_v33 = vunpack.i.l.bf16 %v14767_v44  ;;  %v14762_v25 = vpop.permute.xlu0 %14761  ;;  %v14769_v7 = vunpack.i.h.bf16 %v14767_v44  ;;  %v15043_v14 = vld [vmem:[#allocation3 + $0xe8] sm:$0xff] }
 0x300   : > { %v14764_v8 = vunpack.i.h.bf16 %v14762_v25  ;;  %v14763_v42 = vunpack.i.l.bf16 %v14762_v25  ;;  %v12571_v25 = vcombine.high %v15043_v14, %v5404_v46 }
 0x301   : > { %4702 = vst [vmem:[#allocation3 + $0x8d8] sm:$0xf] %v13256_v58  ;;  %v17849_v22 = vsel %vm597_vm7, %v14768_v33, %v14769_v7 }
 0x302   : > { %v4387_v48 = vsel %vm597_vm7, %v14764_v8, %v14768_v33  ;;  %v4385_v52 = vsel %vm597_vm7, %v14759_v9, %v14763_v42  ;;  %v4386_v26 = vsel %vm597_vm7, %v14763_v42, %v14764_v8  ;;  %v14777_v16 = vpop.permute.xlu1 %14776 }
 0x303   : > { %v14779_v5 = vunpack.i.h.bf16 %v14777_v16  ;;  %v14778_v35 = vunpack.i.l.bf16 %v14777_v16  ;;  %v14772_v60 = vpop.permute.xlu0 %14771  ;;  %v15211_v47 = vpack.c.bf16 %v4385_v52, %v4385_v52  ;;  %v15212_v23 = vpack.c.bf16 %v4387_v48, %v4387_v48 }
 0x304   : > { %v14774_v12 = vunpack.i.h.bf16 %v14772_v60  ;;  %v14773_v44 = vunpack.i.l.bf16 %v14772_v60  ;;  %v7466_v52 = vsel %vm7302_vm8, %v15213_v55, 0 }
 0x305   : > { %v4392_v58 = vsel %vm597_vm7, %v14778_v35, %v14779_v5  ;;  %12926 = vmatprep.subr.msk.bf16.mxu1 %vm7302_vm8, %v15211_v47  ;;  %12928 = vmatprep.subr.msk.bf16.mxu0 %vm7302_vm8, %v15212_v23  ;;  %v15214_v5 = vpack.c.bf16 %v4386_v26, %v4386_v26 }
 0x306   : > { %v13261_v50 = vpack.c.bf16 %v4392_v58, %v4392_v58  ;;  %v17853_v9 = vsel %vm597_vm7, %v14774_v12, %v14778_v35  ;;  %v17856_v8 = vsel %vm597_vm7, %v14769_v7, %v14773_v44  ;;  %v17859_v42 = vsel %vm597_vm7, %v14773_v44, %v14774_v12  ;;  %v14787_v33 = vpop.permute.xlu1 %14786  ;;  %8689 = vmatpush1.bf16.msra.mxu1 %v7466_v52 }
 0x307   : > { %v14789_v16 = vunpack.i.h.bf16 %v14787_v33  ;;  %v14788_v60 = vunpack.i.l.bf16 %v14787_v33  ;;  %v14782_v54 = vpop.permute.xlu0 %14781  ;;  %v12570_v7 = vcombine.low %v15043_v14, %v5404_v46  ;;  %v7472_v47 = vsel %vm7302_vm8, %v15214_v5, 0  ;;  %8766 = vmatprep.subr.bf16.mxu1 %v12571_v25 }
 0x308   : > { %4707 = vst [vmem:[#allocation3 + $0x9f8] sm:$0xf] %v13261_v50  ;;  %v14784_v53 = vunpack.i.h.bf16 %v14782_v54  ;;  %v14783_v48 = vunpack.i.l.bf16 %v14782_v54  ;;  %v15044_v50 = vld [vmem:[#allocation3 + $0xf0] sm:$0xff]  ;;  %8732 = vmatpush1.bf16.msra.mxu0 %v7472_v47  ;;  %v15215_v25 = vpack.c.bf16 %v17604_v17, %v17551_v63 }
 0x309   : > { %v17864_v35 = vpop.f32.mrb[28].mxu1  ;;  %v17866_v12 = vpop.f32.mrb[32].mxu0  ;;  %v12573_v54 = vcombine.high %v15044_v50, %v17488_v31  ;;  %v12572_v52 = vcombine.low %v15044_v50, %v17488_v31  ;;  %12927 = vmatmul.mubr.msk.bf16.vlgmr.msra.gmra.mrb[52].mxu1 %vm7298_vm9, %v17501_v21  ;;  %v15216_v31 = vpack.c.bf16 %v17610_v45, %v17534_v19 }
 0x30a   : > { %21303 = vst [vmem:[#allocation63_spill] sm:$0xff] %v17864_v35  ;;  %21304 = vst [vmem:[#allocation64_spill] sm:$0xff] %v17866_v12  ;;  %v4750_v44 = vsel %vm324_vm0, %v14784_v53, %v14788_v60  ;;  %v4749_v58 = vsel %vm324_vm0, %v14783_v48, %v14784_v53  ;;  %v14797_v33 = vpop.permute.xlu1 %14796  ;;  %v17872_v23 = vpop.f32.mrb[29].mxu1  ;;  %v4751_v53 = vsel %vm324_vm0, %v14788_v60, %v14789_v16  ;;  %8767 = vmatpush1.bf16.msra.mxu1 %v12570_v7 }
 0x30b   : > { %21305 = vst [vmem:[#allocation65_spill] sm:$0xff] %v17872_v23  ;;  %v13267_v55 = vpack.c.bf16 %v4750_v44, %v4749_v58  ;;  %v14799_v26 = vunpack.i.h.bf16 %v14797_v33  ;;  %v14798_v46 = vunpack.i.l.bf16 %v14797_v33  ;;  %v14792_v14 = vpop.permute.xlu0 %14791  ;;  %v17875_v12 = vpop.f32.mrb[30].mxu1  ;;  %8809 = vmatprep.subr.bf16.mxu0 %v12573_v54  ;;  %v15217_v60 = vpack.c.bf16 %v17641_v59, %v17548_v30  ;;  %8798 = vmatprep.mubr.bf16.mxu1 %v21279_v3 }
 0x30c   : > { %21306 = vst [vmem:[#allocation66_spill] sm:$0xff] %v17875_v12  ;;  %v14794_v48 = vunpack.i.h.bf16 %v14792_v14  ;;  %v14793_v35 = vunpack.i.l.bf16 %v14792_v14  ;;  %v17882_v5 = vpop.f32.mrb[31].mxu1  ;;  %v17884_v44 = vpop.f32.mrb[33].mxu0  ;;  %v15218_v58 = vpack.c.bf16 %v17757_v10, %v17709_v49  ;;  %12929 = vmatmul.mubr.msk.bf16.vlgmr.msra.gmra.mrb[56].mxu0 %vm7298_vm9, %v17501_v21  ;;  %8768 = vmatprep.subr.bf16.mxu1 %v15215_v25  ;;  %v15219_v21 = vpack.c.bf16 %v17619_v62, %v17554_v37 }
 0x30d   : > { %21307 = vst [vmem:[#allocation67_spill] sm:$0xff] %v17882_v5  ;;  %21308 = vst [vmem:[#allocation68_spill] sm:$0xff] %v17884_v44  ;;  %v17893_v33 = vpop.f32.mrb[34].mxu0  ;;  %v4755_v30 = vsel %vm324_vm0, %v14798_v46, %v14799_v26  ;;  %8810 = vmatpush1.bf16.msra.mxu0 %v12572_v52  ;;  %8841 = vmatprep.mubr.bf16.mxu0 %v21279_v3  ;;  %v15220_v14 = vpack.c.bf16 %v17761_v18, %v17692_v20 }
 0x30e   : > { %5299 = vst [vmem:[#allocation3 + $0x21c] sm:$0xff] %v13267_v55  ;;  %21309 = vst [vmem:[#allocation69_spill] sm:$0xff] %v17893_v33  ;;  %v4754_v63 = vsel %vm324_vm0, %v14794_v48, %v14798_v46  ;;  %v4752_v17 = vsel %vm324_vm0, %v14789_v16, %v14793_v35  ;;  %v4753_v47 = vsel %vm324_vm0, %v14793_v35, %v14794_v48  ;;  %v14807_v7 = vpop.permute.xlu1 %14806  ;;  %v17900_v19 = vpop.f32.mrb[35].mxu0  ;;  %8811 = vmatprep.subr.bf16.mxu0 %v15217_v60  ;;  %v18589_v33 = vld [vmem:[#allocation9 + $0x8] sm:$0xff] }
 0x30f   : > { %21310 = vst [vmem:[#allocation70_spill] sm:$0xff] %v17900_v19  ;;  %v13268_v45 = vpack.c.bf16 %v4752_v17, %v4751_v53  ;;  %v13269_v59 = vpack.c.bf16 %v4754_v63, %v4753_v47  ;;  %v14802_v49 = vpop.permute.xlu0 %14801  ;;  %v14809_v10 = vunpack.i.h.bf16 %v14807_v7  ;;  %v14808_v50 = vunpack.i.l.bf16 %v14807_v7  ;;  %8769 = vmatpush1.bf16.msra.mxu1 %v15216_v31 }
 0x310   : > { %v14804_v16 = vunpack.i.h.bf16 %v14802_v49  ;;  %v14803_v54 = vunpack.i.l.bf16 %v14802_v49  ;;  %8770 = vmatprep.subr.bf16.mxu1 %v15218_v58  ;;  %v15221_v52 = vpack.c.bf16 %v17771_v34, %v17706_v1  ;;  %v15222_v37 = vpack.c.bf16 %v17827_v61, %v17801_v43 }
 0x311   : > { %5300 = vst [vmem:[#allocation3 + $0x224] sm:$0xff] %v13268_v45  ;;  %5301 = vst [vmem:[#allocation3 + $0x22c] sm:$0xff] %v13269_v59  ;;  %8812 = vmatpush1.bf16.msra.mxu0 %v15219_v21  ;;  %v4787_v62 = vsel %vm363_vm1, %v14808_v50, %v14809_v10  ;;  %v15223_v18 = vpack.c.bf16 %v17767_v11, %v17712_v24  ;;  %v15224_v1 = vpack.c.bf16 %v17831_v40, %v17793_v36 }
 0x312   : > { %v4756_v35 = vsel %vm324_vm0, %v14799_v26, %v14803_v54  ;;  %v4757_v55 = vsel %vm324_vm0, %v14803_v54, %v14804_v16  ;;  %v14817_v46 = vpop.permute.xlu1 %14816  ;;  %8813 = vmatprep.subr.bf16.mxu0 %v15221_v52  ;;  %v15225_v20 = vpack.c.bf16 %v17841_v4, %v17798_v57  ;;  %v15226_v17 = vpack.c.bf16 %v17849_v22, %v17849_v22 }
 0x313   : > { %v13270_v53 = vpack.c.bf16 %v4756_v35, %v4755_v30  ;;  %v13271_v48 = vpack.c.bf16 %v4757_v55, %v4757_v55  ;;  %v14818_v25 = vunpack.i.l.bf16 %v14817_v46  ;;  %v14812_v60 = vpop.permute.xlu0 %14811  ;;  %v14819_v26 = vunpack.i.h.bf16 %v14817_v46  ;;  %8771 = vmatpush1.bf16.msra.mxu1 %v15220_v14 }
 0x314   : > { %v14814_v31 = vunpack.i.h.bf16 %v14812_v60  ;;  %v14813_v63 = vunpack.i.l.bf16 %v14812_v60  ;;  %8772 = vmatprep.subr.bf16.mxu1 %v15222_v37  ;;  %v15227_v4 = vpack.c.bf16 %v17856_v8, %v17856_v8  ;;  %v15228_v22 = vpack.c.bf16 %v17836_v13, %v17804_v28 }
 0x315   : > { %5302 = vst [vmem:[#allocation3 + $0x234] sm:$0xff] %v13270_v53  ;;  %5303 = vst [vmem:[#allocation3 + $0x23c] sm:$0xf] %v13271_v48  ;;  %8814 = vmatpush1.bf16.msra.mxu0 %v15223_v18  ;;  %v4791_v36 = vsel %vm363_vm1, %v14818_v25, %v14819_v26  ;;  %v15229_v59 = vpack.c.bf16 %v17853_v9, %v17853_v9  ;;  %v15230_v49 = vpack.c.bf16 %v17859_v42, %v17859_v42  ;;  %v5406_v50 = vld [vmem:[#allocation3 + $0x218] sm:$0xff]  ;;  %v5371_v42 = vld [vmem:[#allocation3 + $0x100] sm:$0xff] }
 0x316   : > { %v4790_v34 = vsel %vm363_vm1, %v14814_v31, %v14818_v25  ;;  %v4788_v43 = vsel %vm363_vm1, %v14809_v10, %v14813_v63  ;;  %v4789_v61 = vsel %vm363_vm1, %v14813_v63, %v14814_v31  ;;  %v14827_v58 = vpop.permute.xlu1 %14826  ;;  %8815 = vmatprep.subr.bf16.mxu0 %v15225_v20  ;;  %v5370_v10 = vld [vmem:[#allocation3 + $0xf8] sm:$0xff]  ;;  %v7478_v9 = vsel %vm7302_vm8, %v15226_v17, 0 }
 0x317   : > { %v13272_v47 = vpack.c.bf16 %v4788_v43, %v4787_v62  ;;  %v13273_v24 = vpack.c.bf16 %v4790_v34, %v4789_v61  ;;  %v14829_v11 = vunpack.i.h.bf16 %v14827_v58  ;;  %v14828_v7 = vunpack.i.l.bf16 %v14827_v58  ;;  %v14822_v30 = vpop.permute.xlu0 %14821  ;;  %8773 = vmatpush1.bf16.msra.mxu1 %v15224_v1 }
 0x318   : > { %v14824_v57 = vunpack.i.h.bf16 %v14822_v30  ;;  %v14823_v40 = vunpack.i.l.bf16 %v14822_v30  ;;  %12930 = vmatprep.subr.msk.bf16.mxu1 %vm7302_vm8, %v15227_v4  ;;  %v5407_v14 = vld [vmem:[#allocation3 + $0x220] sm:$0xff]  ;;  %v12575_v25 = vcombine.high %v5370_v10, %v5406_v50  ;;  %v7484_v31 = vsel %vm7302_vm8, %v15230_v49, 0 }
 0x319   : > { %5304 = vst [vmem:[#allocation3 + $0x33c] sm:$0xff] %v13272_v47  ;;  %5305 = vst [vmem:[#allocation3 + $0x344] sm:$0xff] %v13273_v24  ;;  %v4795_v45 = vsel %vm363_vm1, %v14828_v7, %v14829_v11  ;;  %8816 = vmatpush1.bf16.msra.mxu0 %v15228_v22  ;;  %v12577_v63 = vcombine.high %v5371_v42, %v5407_v14  ;;  %v12574_v61 = vcombine.low %v5370_v10, %v5406_v50  ;;  %v17955_v11 = vld [vmem:[%s21039_s1] sm:$0xff]  }
 0x31a   : > { %v13276_v16 = vpack.c.bf16 %v4795_v45, %v4795_v45  ;;  %v4794_v54 = vsel %vm363_vm1, %v14824_v57, %v14828_v7  ;;  %v4792_v8 = vsel %vm363_vm1, %v14819_v26, %v14823_v40  ;;  %v4793_v21 = vsel %vm363_vm1, %v14823_v40, %v14824_v57  ;;  %v14837_v35 = vpop.permute.xlu1 %14836  ;;  %12932 = vmatprep.subr.msk.bf16.mxu0 %vm7302_vm8, %v15229_v59 }
 0x31b   : > { %v13274_v28 = vpack.c.bf16 %v4792_v8, %v4791_v36  ;;  %v13275_v13 = vpack.c.bf16 %v4794_v54, %v4793_v21  ;;  %v14838_v55 = vunpack.i.l.bf16 %v14837_v35  ;;  %v14832_v46 = vpop.permute.xlu0 %14831  ;;  %v14839_v52 = vunpack.i.h.bf16 %v14837_v35  ;;  %8775 = vmatpush1.bf16.msra.mxu1 %v7478_v9 }
 0x31c   : > { %5308 = vst [vmem:[#allocation3 + $0x35c] sm:$0xf] %v13276_v16  ;;  %v14834_v53 = vunpack.i.h.bf16 %v14832_v46  ;;  %v14833_v48 = vunpack.i.l.bf16 %v14832_v46  ;;  %8852 = vmatprep.subr.bf16.mxu1 %v12575_v25  ;;  %v12576_v30 = vcombine.low %v5371_v42, %v5407_v14  ;;  %vm11636_vm1 = vcmask 49200  }
 0x31d   : > { %5306 = vst [vmem:[#allocation3 + $0x34c] sm:$0xff] %v13274_v28  ;;  %5307 = vst [vmem:[#allocation3 + $0x354] sm:$0xff] %v13275_v13  ;;  %v17942_v60 = vpop.f32.mrb[32].mxu1  ;;  %8818 = vmatpush1.bf16.msra.mxu0 %v7484_v31  ;;  %v4827_v17 = vsel %vm402_vm2, %v14838_v55, %v14839_v52 }
 0x31e   : > { %21311 = vst [vmem:[#allocation71_spill] sm:$0xff] %v17942_v60  ;;  %v4826_v37 = vsel %vm402_vm2, %v14834_v53, %v14838_v55  ;;  %v4825_v62 = vsel %vm402_vm2, %v14833_v48, %v14834_v53  ;;  %v14847_v26 = vpop.permute.xlu1 %14846  ;;  %v17947_v18 = vpop.f32.mrb[33].mxu1  ;;  %8895 = vmatprep.subr.bf16.mxu0 %v12577_v63  ;;  %12931 = vmatmul.mubr.msk.bf16.vlgmr.msra.gmra.mrb[56].mxu1 %vm7298_vm9, %v17955_v11 }
 0x31f   : > { %21312 = vst [vmem:[#allocation72_spill] sm:$0xff] %v17947_v18  ;;  %v13277_v1 = vpack.c.bf16 %v4826_v37, %v4825_v62  ;;  %v14849_v20 = vunpack.i.h.bf16 %v14847_v26  ;;  %v14848_v34 = vunpack.i.l.bf16 %v14847_v26  ;;  %v14842_v43 = vpop.permute.xlu0 %14841  ;;  %v17949_v58 = vpop.f32.mrb[34].mxu1  ;;  %8853 = vmatpush1.bf16.msra.mxu1 %v12574_v61  ;;  %8884 = vmatprep.mubr.bf16.mxu1 %v21279_v3 }
 0x320   : > { %21313 = vst [vmem:[#allocation73_spill] sm:$0xff] %v17949_v58  ;;  %v14844_v47 = vunpack.i.h.bf16 %v14842_v43  ;;  %v14843_v24 = vunpack.i.l.bf16 %v14842_v43  ;;  %v17959_v7 = vpop.f32.mrb[35].mxu1  ;;  %12933 = vmatmul.mubr.msk.bf16.vlgmr.msra.gmra.mrb[60].mxu0 %vm7298_vm9, %v17955_v11  ;;  %v5442_v53 = vld [vmem:[#allocation3 + $0x338] sm:$0xff]  ;;  %v18586_v58 = vld [vmem:[#allocation9 + $0x48] sm:$0xff] }
 0x321   : > { %21314 = vst [vmem:[#allocation74_spill] sm:$0xff] %v17959_v7  ;;  %5309 = vst [vmem:[#allocation3 + $0x45c] sm:$0xff] %v13277_v1  ;;  %v4831_v45 = vsel %vm402_vm2, %v14848_v34, %v14849_v20  ;;  %8896 = vmatpush1.bf16.msra.mxu0 %v12576_v30  ;;  %8927 = vmatprep.mubr.bf16.mxu0 %v21279_v3  ;;  %v5443_v30 = vld [vmem:[#allocation3 + $0x340] sm:$0xff]  ;;  %v18596_v7 = vld [vmem:[#allocation9 + $0x10] sm:$0xff] }
 0x322   : > { %v4830_v36 = vsel %vm402_vm2, %v14844_v47, %v14848_v34  ;;  %v4828_v57 = vsel %vm402_vm2, %v14839_v52, %v14843_v24  ;;  %v4829_v40 = vsel %vm402_vm2, %v14843_v24, %v14844_v47  ;;  %v14857_v4 = vpop.permute.xlu1 %14856 }
 0x323   : > { %v13278_v22 = vpack.c.bf16 %v4828_v57, %v4827_v17  ;;  %v13279_v59 = vpack.c.bf16 %v4830_v36, %v4829_v40  ;;  %v14852_v49 = vpop.permute.xlu0 %14851  ;;  %v14859_v10 = vunpack.i.h.bf16 %v14857_v4  ;;  %v14858_v50 = vunpack.i.l.bf16 %v14857_v4 }
 0x324   : > { %v14854_v16 = vunpack.i.h.bf16 %v14852_v49  ;;  %v14853_v54 = vunpack.i.l.bf16 %v14852_v49 }
 0x325   : > { %5310 = vst [vmem:[#allocation3 + $0x464] sm:$0xff] %v13278_v22  ;;  %5311 = vst [vmem:[#allocation3 + $0x46c] sm:$0xff] %v13279_v59  ;;  %v4863_v9 = vsel %vm441_vm3, %v14858_v50, %v14859_v10 }
 0x326   : > { %v4832_v8 = vsel %vm402_vm2, %v14849_v20, %v14853_v54  ;;  %v4833_v21 = vsel %vm402_vm2, %v14853_v54, %v14854_v16  ;;  %v14867_v35 = vpop.permute.xlu1 %14866 }
 0x327   : > { %v13280_v28 = vpack.c.bf16 %v4832_v8, %v4831_v45  ;;  %v13281_v13 = vpack.c.bf16 %v4833_v21, %v4833_v21  ;;  %v14868_v55 = vunpack.i.l.bf16 %v14867_v35  ;;  %v14862_v46 = vpop.permute.xlu0 %14861  ;;  %v14869_v42 = vunpack.i.h.bf16 %v14867_v35 }
 0x328   : > { %v14864_v14 = vunpack.i.h.bf16 %v14862_v46  ;;  %v14863_v52 = vunpack.i.l.bf16 %v14862_v46  ;;  %v5478_v48 = vld [vmem:[#allocation3 + $0x458] sm:$0xff] }
 0x329   : > { %5312 = vst [vmem:[#allocation3 + $0x474] sm:$0xff] %v13280_v28  ;;  %5313 = vst [vmem:[#allocation3 + $0x47c] sm:$0xf] %v13281_v13  ;;  %v12646_v25 = vcombine.low %v5442_v53, %v5478_v48  ;;  %v12647_v37 = vcombine.high %v5442_v53, %v5478_v48  ;;  %v4867_v17 = vsel %vm441_vm3, %v14868_v55, %v14869_v42 }
 0x32a   : > { %v4866_v62 = vsel %vm441_vm3, %v14864_v14, %v14868_v55  ;;  %v4864_v26 = vsel %vm441_vm3, %v14859_v10, %v14863_v52  ;;  %v4865_v31 = vsel %vm441_vm3, %v14863_v52, %v14864_v14  ;;  %v14877_v63 = vpop.permute.xlu1 %14876 }
 0x32b   : > { %v13282_v1 = vpack.c.bf16 %v4864_v26, %v4863_v9  ;;  %v13283_v20 = vpack.c.bf16 %v4866_v62, %v4865_v31  ;;  %v14879_v34 = vunpack.i.h.bf16 %v14877_v63  ;;  %v14878_v43 = vunpack.i.l.bf16 %v14877_v63  ;;  %v14872_v61 = vpop.permute.xlu0 %14871  ;;  %8854 = vmatprep.subr.bf16.mxu1 %v12647_v37 }
 0x32c   : > { %v14874_v47 = vunpack.i.h.bf16 %v14872_v61  ;;  %v14873_v24 = vunpack.i.l.bf16 %v14872_v61  ;;  %8855 = vmatpush1.bf16.msra.mxu1 %v12646_v25  ;;  %v5479_v36 = vld [vmem:[#allocation3 + $0x460] sm:$0xff] }
 0x32d   : > { %5314 = vst [vmem:[#allocation3 + $0x57c] sm:$0xff] %v13282_v1  ;;  %5315 = vst [vmem:[#allocation3 + $0x584] sm:$0xff] %v13283_v20  ;;  %v4871_v57 = vsel %vm441_vm3, %v14878_v43, %v14879_v34  ;;  %v12648_v40 = vcombine.low %v5443_v30, %v5479_v36  ;;  %v12649_v4 = vcombine.high %v5443_v30, %v5479_v36 }
 0x32e   : > { %v13286_v45 = vpack.c.bf16 %v4871_v57, %v4871_v57  ;;  %v4870_v22 = vsel %vm441_vm3, %v14874_v47, %v14878_v43  ;;  %v4868_v59 = vsel %vm441_vm3, %v14869_v42, %v14873_v24  ;;  %v4869_v49 = vsel %vm441_vm3, %v14873_v24, %v14874_v47  ;;  %v14887_v10 = vpop.permute.xlu1 %14886 }
 0x32f   : > { %v13284_v50 = vpack.c.bf16 %v4868_v59, %v4867_v17  ;;  %v13285_v16 = vpack.c.bf16 %v4870_v22, %v4869_v49  ;;  %v14888_v54 = vunpack.i.l.bf16 %v14887_v10  ;;  %v14882_v8 = vpop.permute.xlu0 %14881  ;;  %8897 = vmatprep.subr.bf16.mxu0 %v12649_v4  ;;  %v14889_v28 = vunpack.i.h.bf16 %v14887_v10 }
 0x330   : > { %5318 = vst [vmem:[#allocation3 + $0x59c] sm:$0xf] %v13286_v45  ;;  %v14884_v21 = vunpack.i.h.bf16 %v14882_v8  ;;  %v14883_v35 = vunpack.i.l.bf16 %v14882_v8  ;;  %8898 = vmatpush1.bf16.msra.mxu0 %v12648_v40  ;;  %vm11981_vm3 = vcmask 57344  }
 0x331   : > { %5316 = vst [vmem:[#allocation3 + $0x58c] sm:$0xff] %v13284_v50  ;;  %5317 = vst [vmem:[#allocation3 + $0x594] sm:$0xff] %v13285_v16  ;;  %v4903_v52 = vsel %vm480_vm4, %v14888_v54, %v14889_v28 }
 0x332   : > { %v4902_v13 = vsel %vm480_vm4, %v14884_v21, %v14888_v54  ;;  %v4901_v55 = vsel %vm480_vm4, %v14883_v35, %v14884_v21  ;;  %v14897_v46 = vpop.permute.xlu1 %14896 }
 0x333   : > { %v13287_v9 = vpack.c.bf16 %v4902_v13, %v4901_v55  ;;  %v14898_v42 = vunpack.i.l.bf16 %v14897_v46  ;;  %v14899_v53 = vunpack.i.h.bf16 %v14897_v46 }
 0x334   : > { %v14892_v14 = vpop.permute.xlu0 %14891  ;;  %v5514_v4 = vld [vmem:[#allocation3 + $0x578] sm:$0xff] }
 0x335   : > { %5319 = vst [vmem:[#allocation3 + $0x69c] sm:$0xff] %v13287_v9  ;;  %v14894_v48 = vunpack.i.h.bf16 %v14892_v14  ;;  %v14893_v25 = vunpack.i.l.bf16 %v14892_v14  ;;  %v4907_v34 = vsel %vm480_vm4, %v14898_v42, %v14899_v53 }
 0x337   : > { %v4906_v37 = vsel %vm480_vm4, %v14894_v48, %v14898_v42  ;;  %v4904_v62 = vsel %vm480_vm4, %v14889_v28, %v14893_v25  ;;  %v4905_v26 = vsel %vm480_vm4, %v14893_v25, %v14894_v48 }
 0x338   : > { %v13288_v31 = vpack.c.bf16 %v4904_v62, %v4903_v52  ;;  %v13289_v63 = vpack.c.bf16 %v4906_v37, %v4905_v26  ;;  %v14907_v1 = vpop.permute.xlu1 %14906  ;;  %v14902_v20 = vpop.permute.xlu0 %14901  ;;  %v5515_v26 = vld [vmem:[#allocation3 + $0x580] sm:$0xff] }
 0x339   : > { %v14904_v43 = vunpack.i.h.bf16 %v14902_v20  ;;  %v14903_v61 = vunpack.i.l.bf16 %v14902_v20  ;;  %v14909_v17 = vunpack.i.h.bf16 %v14907_v1  ;;  %v14908_v47 = vunpack.i.l.bf16 %v14907_v1 }
 0x33a   : > { %5320 = vst [vmem:[#allocation3 + $0x6a4] sm:$0xff] %v13288_v31  ;;  %5321 = vst [vmem:[#allocation3 + $0x6ac] sm:$0xff] %v13289_v63 }
 0x33b   : > { %v4908_v24 = vsel %vm480_vm4, %v14899_v53, %v14903_v61  ;;  %v4909_v30 = vsel %vm480_vm4, %v14903_v61, %v14904_v43  ;;  %v4939_v54 = vsel %vm519_vm5, %v14908_v47, %v14909_v17 }
 0x33c   : > { %v13290_v36 = vpack.c.bf16 %v4908_v24, %v4907_v34  ;;  %v13291_v57 = vpack.c.bf16 %v4909_v30, %v4909_v30  ;;  %v14917_v40 = vpop.permute.xlu1 %14916  ;;  %v5550_v45 = vld [vmem:[#allocation3 + $0x698] sm:$0xff] }
 0x33d   : > { %v14919_v22 = vunpack.i.h.bf16 %v14917_v40  ;;  %v14918_v59 = vunpack.i.l.bf16 %v14917_v40  ;;  %v14912_v49 = vpop.permute.xlu0 %14911  ;;  %v12718_v10 = vcombine.low %v5514_v4, %v5550_v45  ;;  %v12719_v50 = vcombine.high %v5514_v4, %v5550_v45  ;;  %v17989_v16 = vpop.f32.mrb[36].mxu0 }
 0x33e   : > { %21315 = vst [vmem:[#allocation75_spill] sm:$0xff] %v17989_v16  ;;  %5322 = vst [vmem:[#allocation3 + $0x6b4] sm:$0xff] %v13290_v36  ;;  %v14914_v8 = vunpack.i.h.bf16 %v14912_v49  ;;  %v14913_v21 = vunpack.i.l.bf16 %v14912_v49  ;;  %v17992_v35 = vpop.f32.mrb[37].mxu0  ;;  %v18582_v16 = vld [vmem:[#allocation9] sm:$0xff] }
 0x33f   : > { %5323 = vst [vmem:[#allocation3 + $0x6bc] sm:$0xf] %v13291_v57  ;;  %21316 = vst [vmem:[#allocation76_spill] sm:$0xff] %v17992_v35  ;;  %8856 = vmatprep.subr.bf16.mxu1 %v12719_v50  ;;  %v17994_v28 = vpop.f32.mrb[36].mxu1  ;;  %v17996_v13 = vpop.f32.mrb[38].mxu0  ;;  %v4943_v55 = vsel %vm519_vm5, %v14918_v59, %v14919_v22 }
 0x340   : > { %21317 = vst [vmem:[#allocation77_spill] sm:$0xff] %v17994_v28  ;;  %21318 = vst [vmem:[#allocation78_spill] sm:$0xff] %v17996_v13  ;;  %v4942_v46 = vsel %vm519_vm5, %v14914_v8, %v14918_v59  ;;  %v4940_v9 = vsel %vm519_vm5, %v14909_v17, %v14913_v21  ;;  %v4941_v42 = vsel %vm519_vm5, %v14913_v21, %v14914_v8  ;;  %v14927_v14 = vpop.permute.xlu1 %14926  ;;  %8857 = vmatpush1.bf16.msra.mxu1 %v12718_v10  ;;  %v18002_v52 = vpop.f32.mrb[37].mxu1 }
 0x341   : > { %21319 = vst [vmem:[#allocation79_spill] sm:$0xff] %v18002_v52  ;;  %v13292_v53 = vpack.c.bf16 %v4940_v9, %v4939_v54  ;;  %v13293_v48 = vpack.c.bf16 %v4942_v46, %v4941_v42  ;;  %v14929_v25 = vunpack.i.h.bf16 %v14927_v14  ;;  %v14928_v37 = vunpack.i.l.bf16 %v14927_v14  ;;  %v14922_v62 = vpop.permute.xlu0 %14921  ;;  %v5551_v31 = vld [vmem:[#allocation3 + $0x6a0] sm:$0xff]  ;;  %v18004_v63 = vpop.f32.mrb[38].mxu1 }
 0x342   : > { %21320 = vst [vmem:[#allocation80_spill] sm:$0xff] %v18004_v63  ;;  %v14924_v1 = vunpack.i.h.bf16 %v14922_v62  ;;  %v14923_v20 = vunpack.i.l.bf16 %v14922_v62  ;;  %v12720_v34 = vcombine.low %v5515_v26, %v5551_v31  ;;  %v12721_v43 = vcombine.high %v5515_v26, %v5551_v31  ;;  %v18006_v61 = vpop.f32.mrb[39].mxu0  ;;  %v18008_v17 = vpop.f32.mrb[39].mxu1 }
 0x343   : > { %21321 = vst [vmem:[#allocation81_spill] sm:$0xff] %v18006_v61  ;;  %21322 = vst [vmem:[#allocation82_spill] sm:$0xff] %v18008_v17  ;;  %v4947_v47 = vsel %vm519_vm5, %v14928_v37, %v14929_v25 }
 0x344   : > { %5324 = vst [vmem:[#allocation3 + $0x7bc] sm:$0xff] %v13292_v53  ;;  %5325 = vst [vmem:[#allocation3 + $0x7c4] sm:$0xff] %v13293_v48  ;;  %v13296_v24 = vpack.c.bf16 %v4947_v47, %v4947_v47  ;;  %v4946_v30 = vsel %vm519_vm5, %v14924_v1, %v14928_v37  ;;  %v4944_v36 = vsel %vm519_vm5, %v14919_v22, %v14923_v20  ;;  %v14937_v40 = vpop.permute.xlu1 %14936  ;;  %8899 = vmatprep.subr.bf16.mxu0 %v12721_v43 }
 0x345   : > { %v4945_v57 = vsel %vm519_vm5, %v14923_v20, %v14924_v1  ;;  %v13294_v4 = vpack.c.bf16 %v4944_v36, %v4943_v55  ;;  %v14938_v59 = vunpack.i.l.bf16 %v14937_v40  ;;  %v14932_v49 = vpop.permute.xlu0 %14931  ;;  %8900 = vmatpush1.bf16.msra.mxu0 %v12720_v34  ;;  %v14939_v10 = vunpack.i.h.bf16 %v14937_v40 }
 0x346   : > { %v13295_v45 = vpack.c.bf16 %v4946_v30, %v4945_v57  ;;  %5328 = vst [vmem:[#allocation3 + $0x7dc] sm:$0xf] %v13296_v24  ;;  %v14934_v50 = vunpack.i.h.bf16 %v14932_v49  ;;  %v14933_v54 = vunpack.i.l.bf16 %v14932_v49 }
 0x347   : > { %5326 = vst [vmem:[#allocation3 + $0x7cc] sm:$0xff] %v13294_v4  ;;  %v4979_v55 = vsel %vm558_vm6, %v14938_v59, %v14939_v10 }
 0x348   : > { %5327 = vst [vmem:[#allocation3 + $0x7d4] sm:$0xff] %v13295_v45  ;;  %v4978_v8 = vsel %vm558_vm6, %v14934_v50, %v14938_v59  ;;  %v4977_v21 = vsel %vm558_vm6, %v14933_v54, %v14934_v50  ;;  %v14947_v22 = vpop.permute.xlu1 %14946 }
 0x349   : > { %v13297_v46 = vpack.c.bf16 %v4978_v8, %v4977_v21  ;;  %v14949_v9 = vunpack.i.h.bf16 %v14947_v22  ;;  %v14948_v42 = vunpack.i.l.bf16 %v14947_v22  ;;  %v14942_v14 = vpop.permute.xlu0 %14941 }
 0x34a   : > { %v14944_v53 = vunpack.i.h.bf16 %v14942_v14  ;;  %v14943_v48 = vunpack.i.l.bf16 %v14942_v14 }
 0x34b   : > { %5329 = vst [vmem:[#allocation3 + $0x8dc] sm:$0xff] %v13297_v46  ;;  %v4983_v31 = vsel %vm558_vm6, %v14948_v42, %v14949_v9  ;;  %v5586_v22 = vld [vmem:[#allocation3 + $0x7b8] sm:$0xff] }
 0x34c   : > { %v4982_v25 = vsel %vm558_vm6, %v14944_v53, %v14948_v42  ;;  %v4980_v37 = vsel %vm558_vm6, %v14939_v10, %v14943_v48  ;;  %v4981_v62 = vsel %vm558_vm6, %v14943_v48, %v14944_v53  ;;  %v14957_v26 = vpop.permute.xlu1 %14956 }
 0x34d   : > { %v13298_v1 = vpack.c.bf16 %v4980_v37, %v4979_v55  ;;  %v13299_v20 = vpack.c.bf16 %v4982_v25, %v4981_v62  ;;  %v14952_v34 = vpop.permute.xlu0 %14951  ;;  %v14959_v43 = vunpack.i.h.bf16 %v14957_v26  ;;  %v14958_v47 = vunpack.i.l.bf16 %v14957_v26 }
 0x34e   : > { %v14954_v24 = vunpack.i.h.bf16 %v14952_v34  ;;  %v14953_v30 = vunpack.i.l.bf16 %v14952_v34 }
 0x34f   : > { %5330 = vst [vmem:[#allocation3 + $0x8e4] sm:$0xff] %v13298_v1  ;;  %5331 = vst [vmem:[#allocation3 + $0x8ec] sm:$0xff] %v13299_v20  ;;  %v5015_v50 = vsel %vm597_vm7, %v14958_v47, %v14959_v43 }
 0x350   : > { %v4984_v36 = vsel %vm558_vm6, %v14949_v9, %v14953_v30  ;;  %v4985_v57 = vsel %vm558_vm6, %v14953_v30, %v14954_v24 }
 0x351   : > { %v14967_v40 = vpop.permute.xlu1 %14966  ;;  %v13300_v4 = vpack.c.bf16 %v4984_v36, %v4983_v31  ;;  %v13301_v45 = vpack.c.bf16 %v4985_v57, %v4985_v57  ;;  %v14962_v49 = vpop.permute.xlu0 %14961 }
 0x352   : > { %v14968_v59 = vunpack.i.l.bf16 %v14967_v40  ;;  %v18023_v10 = vpop.f32.mrb[40].mxu0  ;;  %v14969_v54 = vunpack.i.h.bf16 %v14967_v40  ;;  %v14964_v8 = vunpack.i.h.bf16 %v14962_v49  ;;  %v14963_v21 = vunpack.i.l.bf16 %v14962_v49  ;;  %v5622_v46 = vld [vmem:[#allocation3 + $0x8d8] sm:$0xff]  ;;  %v5587_v40 = vld [vmem:[#allocation3 + $0x7c0] sm:$0xff] }
 0x353   : > { %21323 = vst [vmem:[#allocation83_spill] sm:$0xff] %v18023_v10  ;;  %v18026_v42 = vpop.f32.mrb[41].mxu0  ;;  %5332 = vst [vmem:[#allocation3 + $0x8f4] sm:$0xff] %v13300_v4  ;;  %v12790_v9 = vcombine.low %v5586_v22, %v5622_v46  ;;  %v12791_v14 = vcombine.high %v5586_v22, %v5622_v46  ;;  %v18028_v55 = vpop.f32.mrb[40].mxu1 }
 0x354   : > { %21324 = vst [vmem:[#allocation84_spill] sm:$0xff] %v18026_v42  ;;  %5333 = vst [vmem:[#allocation3 + $0x8fc] sm:$0xf] %v13301_v45  ;;  %v18030_v53 = vpop.f32.mrb[42].mxu0  ;;  %v5018_v48 = vsel %vm597_vm7, %v14964_v8, %v14968_v59  ;;  %v5016_v25 = vsel %vm597_vm7, %v14959_v43, %v14963_v21  ;;  %v5017_v37 = vsel %vm597_vm7, %v14963_v21, %v14964_v8  ;;  %v18035_v26 = vpop.f32.mrb[41].mxu1 }
 0x355   : > { %21325 = vst [vmem:[#allocation85_spill] sm:$0xff] %v18028_v55  ;;  %21326 = vst [vmem:[#allocation86_spill] sm:$0xff] %v18030_v53  ;;  %v14977_v62 = vpop.permute.xlu1 %14976  ;;  %v13302_v31 = vpack.c.bf16 %v5016_v25, %v5015_v50  ;;  %v13303_v1 = vpack.c.bf16 %v5018_v48, %v5017_v37  ;;  %v14972_v47 = vpop.permute.xlu0 %14971  ;;  %8858 = vmatprep.subr.bf16.mxu1 %v12791_v14  ;;  %v5019_v30 = vsel %vm597_vm7, %v14968_v59, %v14969_v54  ;;  %v5372_v48 = vld [vmem:[#allocation3 + $0x108] sm:$0xff]  ;;  %v5373_v37 = vld [vmem:[#allocation3 + $0x110] sm:$0xff] }
 0x356   : > { %21327 = vst [vmem:[#allocation87_spill] sm:$0xff] %v18035_v26  ;;  %v14979_v20 = vunpack.i.h.bf16 %v14977_v62  ;;  %v14978_v34 = vunpack.i.l.bf16 %v14977_v62  ;;  %v18037_v24 = vpop.f32.mrb[42].mxu1  ;;  %v14974_v36 = vunpack.i.h.bf16 %v14972_v47  ;;  %v14973_v57 = vunpack.i.l.bf16 %v14972_v47  ;;  %8859 = vmatpush1.bf16.msra.mxu1 %v12790_v9  ;;  %v5623_v43 = vld [vmem:[#allocation3 + $0x8e0] sm:$0xff]  ;;  %v18040_v4 = vpop.f32.mrb[43].mxu0  ;;  %v5408_v25 = vld [vmem:[#allocation3 + $0x228] sm:$0xff] }
 0x357   : > { %21328 = vst [vmem:[#allocation88_spill] sm:$0xff] %v18037_v24  ;;  %21329 = vst [vmem:[#allocation89_spill] sm:$0xff] %v18040_v4  ;;  %v18042_v45 = vpop.f32.mrb[43].mxu1  ;;  %v12792_v50 = vcombine.low %v5587_v40, %v5623_v43  ;;  %v12793_v8 = vcombine.high %v5587_v40, %v5623_v43  ;;  %v5480_v43 = vld [vmem:[#allocation3 + $0x468] sm:$0xff] }
 0x358   : > { %21330 = vst [vmem:[#allocation90_spill] sm:$0xff] %v18042_v45  ;;  %5334 = vst [vmem:[#allocation3 + $0x9fc] sm:$0xff] %v13302_v31  ;;  %v5023_v49 = vsel %vm597_vm7, %v14978_v34, %v14979_v20  ;;  %v5022_v22 = vsel %vm597_vm7, %v14974_v36, %v14978_v34  ;;  %v5020_v59 = vsel %vm597_vm7, %v14969_v54, %v14973_v57  ;;  %v21404_v24 = vld [vmem:[#allocation33_spill] sm:$0xff]  ;;  %v21407_v45 = vld [vmem:[#allocation34_spill] sm:$0xff] }
 0x359   : > { %5335 = vst [vmem:[#allocation3 + $0xa04] sm:$0xff] %v13303_v1  ;;  %v13306_v21 = vpack.c.bf16 %v5023_v49, %v5023_v49  ;;  %v5021_v46 = vsel %vm597_vm7, %v14973_v57, %v14974_v36  ;;  %v13304_v9 = vpack.c.bf16 %v5020_v59, %v5019_v30  ;;  %8901 = vmatprep.subr.bf16.mxu0 %v12793_v8  ;;  %v5409_v1 = vld [vmem:[#allocation3 + $0x230] sm:$0xff] }
 0x35a   : > { %v13305_v14 = vpack.c.bf16 %v5022_v22, %v5021_v46  ;;  %8902 = vmatpush1.bf16.msra.mxu0 %v12792_v50  ;;  %v12579_v36 = vcombine.high %v5372_v48, %v5408_v25  ;;  %v12581_v57 = vcombine.high %v5373_v37, %v5409_v1  ;;  %v5481_v49 = vld [vmem:[#allocation3 + $0x470] sm:$0xff]  ;;  %v12578_v50 = vcombine.low %v5372_v48, %v5408_v25 }
 0x35b   : > { %5338 = vst [vmem:[#allocation3 + $0xa1c] sm:$0xf] %v13306_v21  ;;  %5336 = vst [vmem:[#allocation3 + $0xa0c] sm:$0xff] %v13304_v9  ;;  %v12580_v8 = vcombine.low %v5373_v37, %v5409_v1  ;;  %v5444_v21 = vld [vmem:[#allocation3 + $0x348] sm:$0xff]  ;;  %v5445_v22 = vld [vmem:[#allocation3 + $0x350] sm:$0xff] }
 0x35c   : > { %5337 = vst [vmem:[#allocation3 + $0xa14] sm:$0xff] %v13305_v14  ;;  %v12651_v59 = vcombine.high %v5444_v21, %v5480_v43  ;;  %v12653_v46 = vcombine.high %v5445_v22, %v5481_v49  ;;  %v5552_v14 = vld [vmem:[#allocation3 + $0x6a8] sm:$0xff]  ;;  %v12650_v25 = vcombine.low %v5444_v21, %v5480_v43  ;;  %v12652_v37 = vcombine.low %v5445_v22, %v5481_v49  ;;  %v5517_v1 = vld [vmem:[#allocation3 + $0x590] sm:$0xff] }
 0x35d   : > { %v5588_v49 = vld [vmem:[#allocation3 + $0x7c8] sm:$0xff] }
 0x35f   : > { %v5658_v62 = vld [vmem:[#allocation3 + $0x9f8] sm:$0xff] }
 0x360   : > { %v5659_v31 = vld [vmem:[#allocation3 + $0xa00] sm:$0xff]  ;;  %v12863_v20 = vcombine.high %v5658_v62, %v5658_v62  ;;  %v12862_v34 = vcombine.low %v5658_v62, %v5658_v62  ;;  %v5553_v62 = vld [vmem:[#allocation3 + $0x6b0] sm:$0xff] }
 0x361   : > { %v12865_v47 = vcombine.high %v5659_v31, %v5659_v31  ;;  %v12864_v40 = vcombine.low %v5659_v31, %v5659_v31  ;;  %v5516_v31 = vld [vmem:[#allocation3 + $0x588] sm:$0xff]  ;;  %v12724_v43 = vcombine.low %v5517_v1, %v5553_v62 }
 0x362   : > { %12934 = vmatprep.subr.msk.bf16.mxu1 %vm7302_vm8, %v12863_v20  ;;  %v7490_v54 = vsel %vm7302_vm8, %v12862_v34, 0  ;;  %v12725_v34 = vcombine.high %v5517_v1, %v5553_v62  ;;  %v5660_v22 = vld [vmem:[#allocation3 + $0xa08] sm:$0xff] }
 0x363   : > { %12936 = vmatprep.subr.msk.bf16.mxu0 %vm7302_vm8, %v12865_v47  ;;  %v7496_v30 = vsel %vm7302_vm8, %v12864_v40, 0  ;;  %8861 = vmatpush1.bf16.msra.mxu1 %v7490_v54  ;;  %v12723_v47 = vcombine.high %v5516_v31, %v5552_v14  ;;  %v5624_v54 = vld [vmem:[#allocation3 + $0x8e8] sm:$0xff] }
 0x364   : > { %8904 = vmatpush1.bf16.msra.mxu0 %v7496_v30  ;;  %8938 = vmatprep.subr.bf16.mxu1 %v12579_v36  ;;  %v5625_v30 = vld [vmem:[#allocation3 + $0x8f0] sm:$0xff]  ;;  %v12794_v62 = vcombine.low %v5588_v49, %v5624_v54 }
 0x365   : > { %8981 = vmatprep.subr.bf16.mxu0 %v12581_v57  ;;  %v12722_v57 = vcombine.low %v5516_v31, %v5552_v14 }
 0x366   : > { %12935 = vmatmul.mubr.msk.bf16.vlgmr.msra.gmra.mrb[60].mxu1 %vm7298_vm9, %v17955_v11  ;;  %v18056_v9 = vpop.permute.xlu0 %5665 }
 0x367   : > { %12937 = vmatmul.mubr.msk.bf16.vlgmr.msra.gmra.mrb[64].mxu0 %vm7298_vm9, %v17955_v11  ;;  %21331 = vst [vmem:[#allocation91_spill] sm:$0xff] %v18056_v9  ;;  %8939 = vmatpush1.bf16.msra.mxu1 %v12578_v50  ;;  %v18060_v48 = vadd.f32 %v17509_v0, %v18056_v9  ;;  %v18064_v20 = vadd.f32 %v17492_v2, %v18056_v9  ;;  %v5589_v50 = vld [vmem:[#allocation3 + $0x7d0] sm:$0xff] }
 0x368   : > { %8982 = vmatpush1.bf16.msra.mxu0 %v12580_v8  ;;  %8940 = vmatprep.subr.bf16.mxu1 %v12651_v59  ;;  %v18072_v36 = vadd.f32 %v17512_v41, %v18056_v9  ;;  %v18076_v2 = vadd.f32 %v17507_v6, %v18056_v9  ;;  %v12795_v41 = vcombine.high %v5588_v49, %v5624_v54  ;;  %v5661_v59 = vld [vmem:[#allocation3 + $0xa10] sm:$0xff]  ;;  %v5410_v54 = vld [vmem:[#allocation3 + $0x238] sm:$0xff] }
 0x369   : > { %8983 = vmatprep.subr.bf16.mxu0 %v12653_v46  ;;  %8970 = vmatprep.mubr.bf16.mxu1 %v21279_v3  ;;  %v21065_v40 = vmax.f32 %v18060_v48, 0.0  ;;  %v21066_v0 = vmax.f32 %v18064_v20, 0.0  ;;  %v12797_v8 = vcombine.high %v5589_v50, %v5625_v30  ;;  %v18088_v46 = vadd.f32 %v17545_v38, %v18056_v9 }
 0x36a   : > { %9013 = vmatprep.mubr.bf16.mxu0 %v21279_v3  ;;  %v21063_v6 = vmax.f32 %v18072_v36, 0.0  ;;  %v21064_v21 = vmax.f32 %v18076_v2, 0.0  ;;  %v18092_v14 = vadd.f32 %v17540_v15, %v18056_v9  ;;  %v12869_v31 = vcombine.high %v5661_v59, %v5661_v59 }
 0x36b   : > { %8941 = vmatpush1.bf16.msra.mxu1 %v12650_v25  ;;  %9393 = vrot.lane.b32.xlu0 %v21065_v40, %s15367_s25  ;;  %v12796_v25 = vcombine.low %v5589_v50, %v5625_v30  ;;  %v12866_v38 = vcombine.low %v5660_v22, %v5660_v22  ;;  %v12868_v1 = vcombine.low %v5661_v59, %v5661_v59  ;;  %v21061_v15 = vmax.f32 %v18088_v46, 0.0 }
 0x36c   : > { %8984 = vmatpush1.bf16.msra.mxu0 %v12652_v37  ;;  %8942 = vmatprep.subr.bf16.mxu1 %v12723_v47  ;;  %v12867_v37 = vcombine.high %v5660_v22, %v5660_v22  ;;  %v21062_v47 = vmax.f32 %v18092_v14, 0.0  ;;  %v18104_v30 = vadd.f32 %v17558_v29, %v18056_v9  ;;  %v18130_v59 = vadd.f32 %v17570_v27, %v18056_v9 }
 0x36d   : > { %8985 = vmatprep.subr.bf16.mxu0 %v12725_v34  ;;  %9391 = vrot.lane.b32.xlu1 %v21066_v0, %s15367_s25  ;;  %v5374_v34 = vld [vmem:[#allocation3 + $0x118] sm:$0xff]  ;;  %v7502_v29 = vsel %vm7302_vm8, %v12866_v38, 0  ;;  %v7508_v49 = vsel %vm7302_vm8, %v12868_v1, 0 }
 0x36e   : > { %v21050_v50 = vmax.f32 %v18104_v30, 0.0 }
 0x36f   : > { %8943 = vmatpush1.bf16.msra.mxu1 %v12722_v57  ;;  %9397 = vrot.lane.b32.xlu0 %v21063_v6, %s15367_s25  ;;  %v18108_v57 = vadd.f32 %v17543_v56, %v18056_v9  ;;  %v12583_v56 = vcombine.high %v5374_v34, %v5410_v54 }
 0x370   : > { %8986 = vmatpush1.bf16.msra.mxu0 %v12724_v43  ;;  %8944 = vmatprep.subr.bf16.mxu1 %v12795_v41  ;;  %v18110_v43 = vpop.permute.xlu1 %5670 }
 0x371   : > { %8987 = vmatprep.subr.bf16.mxu0 %v12797_v8  ;;  %9395 = vrot.lane.b32.xlu1 %v21064_v21, %s15367_s25  ;;  %v21054_v41 = vmax.f32 %v18108_v57, 0.0  ;;  %v5482_v8 = vld [vmem:[#allocation3 + $0x478] sm:$0xff]  ;;  %v18126_v22 = vadd.f32 %v17514_v32, %v18110_v43  ;;  %v18146_v38 = vadd.f32 %v17529_v51, %v18110_v43  ;;  %v18150_v1 = vadd.f32 %v17531_v39, %v18110_v43 }
 0x372   : > { %v18522_v4 = vadd.f32 %v21407_v45, %v18110_v43  ;;  %v21414_v45 = vld [vmem:[#allocation41_spill] sm:$0xff] }
 0x373   : > { %8945 = vmatpush1.bf16.msra.mxu1 %v12794_v62  ;;  %9401 = vrot.lane.b32.xlu0 %v21061_v15, %s15367_s25  ;;  %v12582_v62 = vcombine.low %v5374_v34, %v5410_v54  ;;  %v21049_v27 = vmax.f32 %v18126_v22, 0.0  ;;  %v5518_v54 = vld [vmem:[#allocation3 + $0x598] sm:$0xff]  ;;  %v21051_v51 = vmax.f32 %v18146_v38, 0.0  ;;  %v21052_v39 = vmax.f32 %v18150_v1, 0.0 }
 0x374   : > { %8988 = vmatpush1.bf16.msra.mxu0 %v12796_v25  ;;  %12938 = vmatprep.subr.msk.bf16.mxu1 %vm7302_vm8, %v12867_v37  ;;  %v5446_v25 = vld [vmem:[#allocation3 + $0x358] sm:$0xff]  ;;  %v21053_v37 = vmax.f32 %v18130_v59, 0.0  ;;  %v21080_v17 = vmax.f32 %v18522_v4, 0.0  ;;  %v18542_v63 = vadd.f32 %v21414_v45, %v18110_v43 }
 0x375   : > { %12940 = vmatprep.subr.msk.bf16.mxu0 %vm7302_vm8, %v12869_v31  ;;  %9399 = vrot.lane.b32.xlu1 %v21062_v47, %s15367_s25  ;;  %v12655_v32 = vcombine.high %v5446_v25, %v5482_v8  ;;  %v5554_v31 = vld [vmem:[#allocation3 + $0x6b8] sm:$0xff]  ;;  %v12654_v34 = vcombine.low %v5446_v25, %v5482_v8 }
 0x376   : > { %v21333_v8 = vld [vmem:[#allocation15_spill] sm:$0xff]  ;;  %v12726_v25 = vcombine.low %v5518_v54, %v5554_v31 }
 0x377   : > { %8947 = vmatpush1.bf16.msra.mxu1 %v7502_v29  ;;  %9405 = vrot.lane.b32.xlu0 %v21050_v50, %s15367_s25  ;;  %v12727_v29 = vcombine.high %v5518_v54, %v5554_v31  ;;  %v5662_v50 = vld [vmem:[#allocation3 + $0xa18] sm:$0xff]  ;;  %v21335_v31 = vld [vmem:[#allocation18_spill] sm:$0xff] }
 0x378   : > { %8990 = vmatpush1.bf16.msra.mxu0 %v7508_v49  ;;  %9024 = vmatprep.subr.bf16.mxu1 %v12583_v56  ;;  %v5626_v49 = vld [vmem:[#allocation3 + $0x8f8] sm:$0xff]  ;;  %v18183_v54 = vadd.f32 %v21335_v31, %v18110_v43 }
 0x379   : > { %9403 = vrot.lane.b32.xlu1 %v21054_v41, %s15367_s25  ;;  %v21336_v31 = vld [vmem:[#allocation23_spill] sm:$0xff] }
 0x37a   : > { %12939 = vmatmul.mubr.msk.bf16.vlgmr.msra.gmra.mrb[64].mxu1 %vm7298_vm9, %v17955_v11  ;;  %v18195_v41 = vadd.f32 %v21336_v31, %v18110_v43 }
 0x37b   : > { %12941 = vmatmul.mubr.msk.bf16.vlgmr.msra.gmra.mrb[68].mxu0 %vm7298_vm9, %v17955_v11  ;;  %9025 = vmatpush1.bf16.msra.mxu1 %v12582_v62  ;;  %v18167_v62 = vadd.f32 %v21333_v8, %v18110_v43  ;;  %v21334_v8 = vld [vmem:[#allocation17_spill] sm:$0xff] }
 0x37c   : > { %9056 = vmatprep.mubr.bf16.mxu1 %v21279_v3  ;;  %9026 = vmatprep.subr.bf16.mxu1 %v12655_v32  ;;  %v21332_v3 = vld [vmem:[#allocation16_spill] sm:$0xff] }
 0x37d   : > { %9409 = vrot.lane.b32.xlu0 %v21049_v27, %s15367_s25  ;;  %9407 = vrot.lane.b32.xlu1 %v21053_v37, %s15367_s25  ;;  %v18163_v56 = vadd.f32 %v21332_v3, %v18110_v43  ;;  %v5590_v32 = vld [vmem:[#allocation3 + $0x7d8] sm:$0xff]  ;;  %v21060_v27 = vmax.f32 %v18167_v62, 0.0  ;;  %v21057_v37 = vmax.f32 %v18183_v54, 0.0 }
 0x37f   : > { %9027 = vmatpush1.bf16.msra.mxu1 %v12654_v34  ;;  %v12799_v34 = vcombine.high %v5590_v32, %v5626_v49  ;;  %v21059_v3 = vmax.f32 %v18163_v56, 0.0 }
 0x380   : > { %9028 = vmatprep.subr.bf16.mxu1 %v12727_v29  ;;  %v18179_v29 = vadd.f32 %v21334_v8, %v18110_v43 }
 0x381   : > { %9413 = vrot.lane.b32.xlu0 %v21051_v51, %s15367_s25  ;;  %9411 = vrot.lane.b32.xlu1 %v21052_v39, %s15367_s25  ;;  %v12798_v51 = vcombine.low %v5590_v32, %v5626_v49  ;;  %v12870_v39 = vcombine.low %v5662_v50, %v5662_v50  ;;  %v21337_v49 = vld [vmem:[#allocation19_spill] sm:$0xff] }
 0x382   : > { %v21055_v8 = vmax.f32 %v18179_v29, 0.0  ;;  %v18199_v32 = vadd.f32 %v21337_v49, %v18110_v43 }
 0x383   : > { %9029 = vmatpush1.bf16.msra.mxu1 %v12726_v25  ;;  %v12871_v25 = vcombine.high %v5662_v50, %v5662_v50  ;;  %v7514_v50 = vsel %vm7302_vm8, %v12870_v39, 0 }
 0x384   : > { %9030 = vmatprep.subr.bf16.mxu1 %v12799_v34  ;;  %v21058_v34 = vmax.f32 %v18199_v32, 0.0 }
 0x385   : > { %9417 = vrot.lane.b32.xlu0 %v21059_v3, %s15367_s25  ;;  %9415 = vrot.lane.b32.xlu1 %v21060_v27, %s15367_s25 }
 0x387   : > { %9031 = vmatpush1.bf16.msra.mxu1 %v12798_v51  ;;  %v21056_v51 = vmax.f32 %v18195_v41, 0.0 }
 0x388   : > { %12942 = vmatprep.subr.msk.bf16.mxu1 %vm7302_vm8, %v12871_v25 }
 0x389   : > { %9421 = vrot.lane.b32.xlu0 %v21055_v8, %s15367_s25  ;;  %9419 = vrot.lane.b32.xlu1 %v21057_v37, %s15367_s25 }
 0x38b   : > { %9033 = vmatpush1.bf16.msra.mxu1 %v7514_v50 }
 0x38d   : > { %9425 = vrot.lane.b32.xlu0 %v21056_v51, %s15367_s25  ;;  %9423 = vrot.lane.b32.xlu1 %v21058_v34, %s15367_s25 }
 0x38e   : > { %12943 = vmatmul.mubr.msk.bf16.vlgmr.msra.gmra.mrb[68].mxu1 %vm7298_vm9, %v17955_v11 }
 0x397   : > { %v18219_v25 = vpop.f32.mrb[44].mxu0  ;;  %v18221_v31 = vpop.f32.mrb[44].mxu1 }
 0x398   : > { %21338 = vst [vmem:[#allocation16_spill] sm:$0xff] %v18219_v25  ;;  %21339 = vst [vmem:[#allocation15_spill] sm:$0xff] %v18221_v31  ;;  %v18223_v39 = vpop.f32.mrb[45].mxu0  ;;  %v18225_v49 = vpop.f32.mrb[45].mxu1  ;;  %v21401_v31 = vld [vmem:[#allocation24_spill] sm:$0xff] }
 0x399   : > { %21340 = vst [vmem:[#allocation17_spill] sm:$0xff] %v18223_v39  ;;  %21341 = vst [vmem:[#allocation18_spill] sm:$0xff] %v18225_v49  ;;  %v18227_v50 = vpop.f32.mrb[46].mxu0  ;;  %v18229_v8 = vpop.f32.mrb[46].mxu1  ;;  %v21402_v39 = vld [vmem:[#allocation26_spill] sm:$0xff] }
 0x39a   : > { %21342 = vst [vmem:[#allocation23_spill] sm:$0xff] %v18227_v50  ;;  %21343 = vst [vmem:[#allocation19_spill] sm:$0xff] %v18229_v8  ;;  %v18231_v51 = vpop.f32.mrb[47].mxu0  ;;  %v18233_v37 = vpop.f32.mrb[47].mxu1  ;;  %v21403_v50 = vld [vmem:[#allocation31_spill] sm:$0xff] }
 0x39b   : > { %21344 = vst [vmem:[#allocation92_spill] sm:$0xff] %v18231_v51  ;;  %21345 = vst [vmem:[#allocation93_spill] sm:$0xff] %v18233_v37 }
 0x3ab   : > { %v18235_v34 = vpop.f32.mrb[48].mxu0  ;;  %v18237_v3 = vpop.f32.mrb[48].mxu1 }
 0x3ac   : > { %21346 = vst [vmem:[#allocation94_spill] sm:$0xff] %v18235_v34  ;;  %21347 = vst [vmem:[#allocation95_spill] sm:$0xff] %v18237_v3  ;;  %v18239_v11 = vpop.f32.mrb[49].mxu0  ;;  %v18241_v27 = vpop.f32.mrb[49].mxu1 }
 0x3ad   : > { %21348 = vst [vmem:[#allocation96_spill] sm:$0xff] %v18239_v11  ;;  %21349 = vst [vmem:[#allocation97_spill] sm:$0xff] %v18241_v27  ;;  %v18243_v15 = vpop.f32.mrb[50].mxu0  ;;  %v18245_v47 = vpop.f32.mrb[50].mxu1 }
 0x3ae   : > { %21350 = vst [vmem:[#allocation98_spill] sm:$0xff] %v18243_v15  ;;  %21351 = vst [vmem:[#allocation99_spill] sm:$0xff] %v18245_v47  ;;  %v18247_v6 = vpop.f32.mrb[51].mxu0  ;;  %v18249_v21 = vpop.f32.mrb[51].mxu1  ;;  %v21359_v47 = vmax.f32 %v18064_v20, 0.0 }
 0x3af   : > { %21352 = vst [vmem:[#allocation100_spill] sm:$0xff] %v18247_v6  ;;  %21353 = vst [vmem:[#allocation101_spill] sm:$0xff] %v18249_v21 }
 0x3bf   : > { %v18251_v40 = vpop.f32.mrb[52].mxu0 }
 0x3c0   : > { %21354 = vst [vmem:[#allocation102_spill] sm:$0xff] %v18251_v40  ;;  %v18253_v0 = vpop.f32.mrb[53].mxu0 }
 0x3c1   : > { %21355 = vst [vmem:[#allocation103_spill] sm:$0xff] %v18253_v0  ;;  %v18255_v37 = vpop.f32.mrb[54].mxu0 }
 0x3c2   : > { %21356 = vst [vmem:[#allocation104_spill] sm:$0xff] %v18255_v37  ;;  %v18257_v8 = vpop.f32.mrb[55].mxu0 }
 0x3c3   : > { %21357 = vst [vmem:[#allocation105_spill] sm:$0xff] %v18257_v8 }
 0x3dc   : > { %v18260_v11 = vpop.f32.mrb[52].mxu1 }
 0x3dd   : > { %v9394_v51 = vpop.permute.xlu0 %9393  ;;  %21358 = vst [vmem:[#allocation106_spill] sm:$0xff] %v18260_v11  ;;  %v18266_v6 = vpop.f32.mrb[53].mxu1 }
 0x3de   : > { %21360 = vst [vmem:[#allocation107_spill] sm:$0xff] %v18266_v6  ;;  %v18270_v40 = vpop.f32.mrb[54].mxu1 }
 0x3df   : > { %v9392_v3 = vpop.permute.xlu1 %9391  ;;  %v18268_v21 = vpop.f32.mrb[56].mxu0  ;;  %21362 = vst [vmem:[#allocation109_spill] sm:$0xff] %v18270_v40 }
 0x3e0   : > { %v9427_v27 = vsel %vm324_vm0, %v9392_v3, %v9394_v51  ;;  %21361 = vst [vmem:[#allocation108_spill] sm:$0xff] %v18268_v21  ;;  %v18276_v11 = vpop.f32.mrb[57].mxu0  ;;  %v18278_v20 = vpop.f32.mrb[55].mxu1  ;;  %v21366_v21 = vmax.f32 %v18076_v2, 0.0  ;;  %v21369_v2 = vmax.f32 %v18072_v36, 0.0  ;;  %v21371_v36 = vmax.f32 %v18088_v46, 0.0 }
 0x3e1   : > { %v18264_v15 = vmax.f32 %v21359_v47, %v9427_v27  ;;  %v9398_v0 = vpop.permute.xlu0 %9397  ;;  %21363 = vst [vmem:[#allocation110_spill] sm:$0xff] %v18276_v11  ;;  %21364 = vst [vmem:[#allocation111_spill] sm:$0xff] %v18278_v20  ;;  %v21365_v47 = vmax.f32 %v18060_v48, 0.0  ;;  %v18288_v6 = vpop.f32.mrb[58].mxu0  ;;  %v21374_v46 = vmax.f32 %v18104_v30, 0.0  ;;  %v21377_v30 = vmax.f32 %v18150_v1, 0.0 }
 0x3e2   : > { %21367 = vst [vmem:[#allocation112_spill] sm:$0xff] %v18288_v6  ;;  %v18290_v34 = vpop.f32.mrb[59].mxu0 }
 0x3e3   : > { %9497 = vrot.lane.b32.xlu1 %v18264_v15, %s15369_s14  ;;  %v9396_v8 = vpop.permute.xlu1 %9395  ;;  %21368 = vst [vmem:[#allocation113_spill] sm:$0xff] %v18290_v34 }
 0x3e4   : > { %v9428_v37 = vsel %vm324_vm0, %v9394_v51, %v9396_v8  ;;  %v9429_v3 = vsel %vm324_vm0, %v9396_v8, %v9398_v0  ;;  %v21370_v51 = vmax.f32 %v18092_v14, 0.0  ;;  %v21372_v14 = vmax.f32 %v18108_v57, 0.0 }
 0x3e5   : > { %v18282_v27 = vmax.f32 %v21365_v47, %v9428_v37  ;;  %v18286_v40 = vmax.f32 %v21366_v21, %v9429_v3  ;;  %v9402_v49 = vpop.permute.xlu0 %9401 }
 0x3e7   : > { %9501 = vrot.lane.b32.xlu1 %v18286_v40, %s15369_s14  ;;  %9499 = vrot.lane.b32.xlu0 %v18282_v27, %s15369_s14  ;;  %v9400_v8 = vpop.permute.xlu1 %9399 }
 0x3e8   : > { %v9430_v48 = vsel %vm324_vm0, %v9398_v0, %v9400_v8  ;;  %v9431_v37 = vsel %vm324_vm0, %v9400_v8, %v9402_v49 }
 0x3e9   : > { %v18300_v21 = vmax.f32 %v21369_v2, %v9430_v48  ;;  %v18304_v3 = vmax.f32 %v21370_v51, %v9431_v37  ;;  %v9406_v47 = vpop.permute.xlu0 %9405 }
 0x3eb   : > { %9505 = vrot.lane.b32.xlu1 %v18304_v3, %s15369_s14  ;;  %9503 = vrot.lane.b32.xlu0 %v18300_v21, %s15369_s14  ;;  %v9404_v6 = vpop.permute.xlu1 %9403 }
 0x3ec   : > { %v9432_v0 = vsel %vm324_vm0, %v9402_v49, %v9404_v6  ;;  %v9433_v8 = vsel %vm324_vm0, %v9404_v6, %v9406_v47  ;;  %v21373_v6 = vmax.f32 %v18130_v59, 0.0  ;;  %v21376_v59 = vmax.f32 %v18126_v22, 0.0 }
 0x3ed   : > { %v18314_v48 = vmax.f32 %v21371_v36, %v9432_v0  ;;  %v18318_v37 = vmax.f32 %v21372_v14, %v9433_v8 }
 0x3ef   : > { %v9410_v2 = vpop.permute.xlu0 %9409  ;;  %9509 = vrot.lane.b32.xlu1 %v18318_v37, %s15369_s14  ;;  %9507 = vrot.lane.b32.xlu0 %v18314_v48, %s15369_s14  ;;  %v9408_v51 = vpop.permute.xlu1 %9407 }
 0x3f0   : > { %v9434_v49 = vsel %vm324_vm0, %v9406_v47, %v9408_v51  ;;  %v18327_v34 = vmax.f32 %v21373_v6, %v9408_v51 }
 0x3f1   : > { %v18331_v0 = vmax.f32 %v21374_v46, %v9434_v49  ;;  %v18339_v14 = vpop.f32.mrb[56].mxu1 }
 0x3f2   : > { %21375 = vst [vmem:[#allocation114_spill] sm:$0xff] %v18339_v14  ;;  %v18349_v6 = vpop.f32.mrb[57].mxu1 }
 0x3f3   : > { %v9414_v57 = vpop.permute.xlu0 %9413  ;;  %9513 = vrot.lane.b32.xlu1 %v18327_v34, %s15369_s14  ;;  %9511 = vrot.lane.b32.xlu0 %v18331_v0, %s15369_s14  ;;  %v9412_v8 = vpop.permute.xlu1 %9411  ;;  %21378 = vst [vmem:[#allocation115_spill] sm:$0xff] %v18349_v6 }
 0x3f4   : > { %v9435_v36 = vsel %vm324_vm0, %v9410_v2, %v9412_v8  ;;  %v9436_v47 = vsel %vm324_vm0, %v9412_v8, %v9414_v57  ;;  %v18351_v46 = vpop.f32.mrb[60].mxu0  ;;  %v18353_v20 = vpop.f32.mrb[58].mxu1 }
 0x3f5   : > { %v18343_v51 = vmax.f32 %v21376_v59, %v9435_v36  ;;  %v18347_v49 = vmax.f32 %v21377_v30, %v9436_v47  ;;  %21379 = vst [vmem:[#allocation116_spill] sm:$0xff] %v18351_v46  ;;  %21380 = vst [vmem:[#allocation117_spill] sm:$0xff] %v18353_v20  ;;  %v18361_v8 = vpop.f32.mrb[61].mxu0  ;;  %v18363_v36 = vpop.f32.mrb[59].mxu1  ;;  %v21383_v47 = vmax.f32 %v18146_v38, 0.0  ;;  %v21384_v30 = vmax.f32 %v18167_v62, 0.0 }
 0x3f6   : > { %21381 = vst [vmem:[#allocation118_spill] sm:$0xff] %v18361_v8  ;;  %21382 = vst [vmem:[#allocation119_spill] sm:$0xff] %v18363_v36  ;;  %v18373_v6 = vpop.f32.mrb[62].mxu0  ;;  %v21387_v62 = vmax.f32 %v18163_v56, 0.0  ;;  %v21389_v56 = vmax.f32 %v18179_v29, 0.0  ;;  %v21400_v36 = vld [vmem:[#allocation37_spill] sm:$0xff] }
 0x3f7   : > { %v9418_v11 = vpop.permute.xlu0 %9417  ;;  %9517 = vrot.lane.b32.xlu1 %v18347_v49, %s15369_s14  ;;  %9515 = vrot.lane.b32.xlu0 %v18343_v51, %s15369_s14  ;;  %v9416_v22 = vpop.permute.xlu1 %9415  ;;  %21385 = vst [vmem:[#allocation120_spill] sm:$0xff] %v18373_v6  ;;  %v21399_v6 = vld [vmem:[#allocation35_spill] sm:$0xff] }
 0x3f8   : > { %v9437_v2 = vsel %vm324_vm0, %v9414_v57, %v9416_v22  ;;  %v9438_v1 = vsel %vm324_vm0, %v9416_v22, %v9418_v11  ;;  %v18375_v14 = vpop.f32.mrb[63].mxu0 }
 0x3f9   : > { %v18367_v59 = vmax.f32 %v21383_v47, %v9437_v2  ;;  %v18371_v46 = vmax.f32 %v21384_v30, %v9438_v1  ;;  %21386 = vst [vmem:[#allocation121_spill] sm:$0xff] %v18375_v14  ;;  %v21388_v1 = vmax.f32 %v18183_v54, 0.0  ;;  %v21390_v54 = vmax.f32 %v18199_v32, 0.0  ;;  %v21393_v32 = vld [vmem:[#allocation20_spill] sm:$0xff]  ;;  %v21398_v14 = vld [vmem:[#allocation30_spill] sm:$0xff] }
 0x3fb   : > { %v9422_v20 = vpop.permute.xlu0 %9421  ;;  %9521 = vrot.lane.b32.xlu1 %v18371_v46, %s15369_s14  ;;  %9519 = vrot.lane.b32.xlu0 %v18367_v59, %s15369_s14  ;;  %v9420_v57 = vpop.permute.xlu1 %9419 }
 0x3fc   : > { %v9439_v38 = vsel %vm324_vm0, %v9418_v11, %v9420_v57  ;;  %v9440_v22 = vsel %vm324_vm0, %v9420_v57, %v9422_v20 }
 0x3fd   : > { %v18385_v2 = vmax.f32 %v21387_v62, %v9439_v38  ;;  %v18389_v47 = vmax.f32 %v21388_v1, %v9440_v22  ;;  %v21391_v62 = vmax.f32 %v18195_v41, 0.0 }
 0x3ff   : > { %v9426_v30 = vpop.permute.xlu0 %9425  ;;  %9525 = vrot.lane.b32.xlu1 %v18389_v47, %s15369_s14  ;;  %9523 = vrot.lane.b32.xlu0 %v18385_v2, %s15369_s14  ;;  %v9424_v8 = vpop.permute.xlu1 %9423 }
 0x400   : > { %v9441_v11 = vsel %vm324_vm0, %v9422_v20, %v9424_v8  ;;  %v9442_v57 = vsel %vm324_vm0, %v9424_v8, %v9426_v30  ;;  %v18411_v1 = vmax.f32 %v21391_v62, %v9426_v30  ;;  %v21392_v20 = vld [vmem:[#allocation21_spill] sm:$0xff]  ;;  %v21394_v30 = vld [vmem:[#allocation22_spill] sm:$0xff] }
 0x401   : > { %v18399_v38 = vmax.f32 %v21389_v56, %v9441_v11  ;;  %v18403_v22 = vmax.f32 %v21390_v54, %v9442_v57  ;;  %v18415_v8 = vadd.f32 %v21392_v20, %v18056_v9  ;;  %v18422_v11 = vadd.f32 %v21393_v32, %v18056_v9  ;;  %v21395_v54 = vld [vmem:[#allocation27_spill] sm:$0xff]  ;;  %v21396_v32 = vld [vmem:[#allocation29_spill] sm:$0xff] }
 0x402   : > { %v18430_v57 = vadd.f32 %v21394_v30, %v18056_v9  ;;  %v18438_v62 = vadd.f32 %v21395_v54, %v18056_v9  ;;  %v18446_v30 = vadd.f32 %v21396_v32, %v18056_v9  ;;  %v18462_v32 = vadd.f32 %v21398_v14, %v18056_v9 }
 0x403   : > { %9529 = vrot.lane.b32.xlu1 %v18403_v22, %s15369_s14  ;;  %9527 = vrot.lane.b32.xlu0 %v18399_v38, %s15369_s14  ;;  %v21067_v29 = vmax.f32 %v18415_v8, 0.0  ;;  %v21068_v41 = vmax.f32 %v18422_v11, 0.0  ;;  %v18478_v14 = vadd.f32 %v21400_v36, %v18056_v9  ;;  %v18494_v36 = vadd.f32 %v21402_v39, %v18110_v43 }
 0x404   : > { %v21069_v56 = vmax.f32 %v18430_v57, 0.0  ;;  %v21070_v20 = vmax.f32 %v18438_v62, 0.0  ;;  %v18510_v39 = vadd.f32 %v21404_v24, %v18110_v43 }
 0x407   : > { %9531 = vrot.lane.b32.xlu0 %v18411_v1, %s15369_s14 }
 0x40b   : > { %9718 = vrot.lane.b32.xlu0 %v21067_v29, %s15367_s25  ;;  %v21071_v29 = vmax.f32 %v18446_v30, 0.0 }
 0x40f   : > { %9720 = vrot.lane.b32.xlu0 %v21068_v41, %s15367_s25  ;;  %v21397_v41 = vld [vmem:[#allocation28_spill] sm:$0xff] }
 0x410   : > { %v18454_v54 = vadd.f32 %v21397_v41, %v18056_v9  ;;  %v18470_v41 = vadd.f32 %v21399_v6, %v18056_v9  ;;  %v18486_v6 = vadd.f32 %v21401_v31, %v18110_v43  ;;  %v18502_v31 = vadd.f32 %v21403_v50, %v18110_v43 }
 0x411   : > { %v21079_v50 = vmax.f32 %v18510_v39, 0.0 }
 0x413   : > { %9722 = vrot.lane.b32.xlu0 %v21069_v56, %s15367_s25  ;;  %v21072_v56 = vmax.f32 %v18454_v54, 0.0 }
 0x417   : > { %9724 = vrot.lane.b32.xlu0 %v21070_v20, %s15367_s25  ;;  %v21073_v20 = vmax.f32 %v18462_v32, 0.0 }
 0x41b   : > { %9726 = vrot.lane.b32.xlu0 %v21071_v29, %s15367_s25  ;;  %v21074_v29 = vmax.f32 %v18470_v41, 0.0 }
 0x41f   : > { %9728 = vrot.lane.b32.xlu0 %v21072_v56, %s15367_s25  ;;  %v21075_v56 = vmax.f32 %v18478_v14, 0.0 }
 0x423   : > { %9730 = vrot.lane.b32.xlu0 %v21073_v20, %s15367_s25  ;;  %v21076_v20 = vmax.f32 %v18486_v6, 0.0 }
 0x427   : > { %9732 = vrot.lane.b32.xlu0 %v21074_v29, %s15367_s25  ;;  %v21077_v29 = vmax.f32 %v18494_v36, 0.0 }
 0x42b   : > { %9734 = vrot.lane.b32.xlu0 %v21075_v56, %s15367_s25  ;;  %v21078_v56 = vmax.f32 %v18502_v31, 0.0 }
 0x42f   : > { %9738 = vrot.lane.b32.xlu0 %v21076_v20, %s15367_s25 }
 0x433   : > { %9740 = vrot.lane.b32.xlu0 %v21077_v29, %s15367_s25 }
 0x437   : > { %9742 = vrot.lane.b32.xlu0 %v21078_v56, %s15367_s25 }
 0x439   : > { %v18515_v20 = vpop.f32.mrb[60].mxu1 }
 0x43a   : > { %21405 = vst [vmem:[#allocation21_spill] sm:$0xff] %v18515_v20  ;;  %v18517_v13 = vpop.f32.mrb[64].mxu0  ;;  %v18524_v29 = vpop.f32.mrb[61].mxu1 }
 0x43b   : > { %21406 = vst [vmem:[#allocation20_spill] sm:$0xff] %v18517_v13  ;;  %21408 = vst [vmem:[#allocation22_spill] sm:$0xff] %v18524_v29  ;;  %v18526_v53 = vpop.f32.mrb[65].mxu0  ;;  %9744 = vrot.lane.b32.xlu0 %v21079_v50, %s15367_s25  ;;  %v18531_v24 = vpop.f32.mrb[62].mxu1  ;;  %v21081_v50 = vmax.f32 %v18542_v63, 0.0 }
 0x43c   : > { %21409 = vst [vmem:[#allocation27_spill] sm:$0xff] %v18526_v53  ;;  %21410 = vst [vmem:[#allocation29_spill] sm:$0xff] %v18531_v24  ;;  %v18533_v56 = vpop.f32.mrb[66].mxu0  ;;  %v18535_v20 = vpop.f32.mrb[63].mxu1 }
 0x43d   : > { %21411 = vst [vmem:[#allocation28_spill] sm:$0xff] %v18533_v56  ;;  %21412 = vst [vmem:[#allocation30_spill] sm:$0xff] %v18535_v20  ;;  %v18537_v13 = vpop.f32.mrb[67].mxu0 }
 0x43e   : > { %21413 = vst [vmem:[#allocation35_spill] sm:$0xff] %v18537_v13 }
 0x43f   : > { %9748 = vrot.lane.b32.xlu0 %v21080_v17, %s15367_s25 }
 0x443   : > { %9752 = vrot.lane.b32.xlu0 %v21081_v50, %s15367_s25 }
 0x44d   : > { %v18551_v24 = vpop.f32.mrb[64].mxu1 }
 0x44e   : > { %21415 = vst [vmem:[#allocation37_spill] sm:$0xff] %v18551_v24  ;;  %v18553_v20 = vpop.f32.mrb[68].mxu0  ;;  %v18555_v13 = vpop.f32.mrb[65].mxu1 }
 0x44f   : > { %21416 = vst [vmem:[#allocation24_spill] sm:$0xff] %v18553_v20  ;;  %21417 = vst [vmem:[#allocation26_spill] sm:$0xff] %v18555_v13  ;;  %v18557_v53 = vpop.f32.mrb[69].mxu0  ;;  %v18559_v45 = vpop.f32.mrb[66].mxu1 }
 0x450   : > { %21418 = vst [vmem:[#allocation31_spill] sm:$0xff] %v18557_v53  ;;  %21419 = vst [vmem:[#allocation33_spill] sm:$0xff] %v18559_v45  ;;  %v18561_v29 = vpop.f32.mrb[70].mxu0  ;;  %v18563_v56 = vpop.f32.mrb[67].mxu1 }
 0x451   : > { %21420 = vst [vmem:[#allocation34_spill] sm:$0xff] %v18561_v29  ;;  %21421 = vst [vmem:[#allocation41_spill] sm:$0xff] %v18563_v56  ;;  %v18565_v17 = vpop.f32.mrb[71].mxu0 }
 0x452   : > { %21422 = vst [vmem:[#allocation122_spill] sm:$0xff] %v18565_v17 }
 0x455   : > { %v9498_v61 = vpop.permute.xlu1 %9497 }
 0x459   : > { %v9500_v25 = vpop.permute.xlu0 %9499  ;;  %v9502_v26 = vpop.permute.xlu1 %9501 }
 0x45a   : > { %v9533_v56 = vsel %vm402_vm2, %v9498_v61, %v9500_v25  ;;  %v9534_v17 = vsel %vm402_vm2, %v9500_v25, %v9502_v26 }
 0x45b   : > { %v9567_v52 = vmax.f32 %v18264_v15, %v9533_v56 }
 0x45d   : > { %v9504_v50 = vpop.permute.xlu0 %9503  ;;  %v9506_v55 = vpop.permute.xlu1 %9505 }
 0x45e   : > { %v9535_v28 = vsel %vm402_vm2, %v9502_v26, %v9504_v50  ;;  %v9536_v35 = vsel %vm402_vm2, %v9504_v50, %v9506_v55  ;;  %v9585_v50 = vmul.f32 %v9567_v52, %v18582_v16 }
 0x45f   : > { %v9569_v15 = vmax.f32 %v18286_v40, %v9535_v28  ;;  %v9570_v26 = vmax.f32 %v18300_v21, %v9536_v35  ;;  %v18603_v28 = vld [vmem:[#allocation9 + $0x50] sm:$0xff] }
 0x461   : > { %v9508_v24 = vpop.permute.xlu0 %9507  ;;  %v9510_v42 = vpop.permute.xlu1 %9509 }
 0x462   : > { %v18567_v20 = vpop.f32.mrb[68].mxu1  ;;  %v9538_v25 = vsel %vm402_vm2, %v9508_v24, %v9510_v42 }
 0x463   : > { %21423 = vst [vmem:[#allocation123_spill] sm:$0xff] %v18567_v20  ;;  %v18569_v13 = vpop.f32.mrb[69].mxu1  ;;  %v9572_v52 = vmax.f32 %v18314_v48, %v9538_v25 }
 0x464   : > { %21424 = vst [vmem:[#allocation124_spill] sm:$0xff] %v18569_v13  ;;  %v18571_v53 = vpop.f32.mrb[70].mxu1 }
 0x465   : > { %21425 = vst [vmem:[#allocation125_spill] sm:$0xff] %v18571_v53  ;;  %v18573_v45 = vpop.f32.mrb[71].mxu1  ;;  %v9512_v29 = vpop.permute.xlu0 %9511  ;;  %v9568_v53 = vmax.f32 %v18282_v27, %v9534_v17  ;;  %v18598_v17 = vld [vmem:[#allocation9 + $0x18] sm:$0xff] }
 0x466   : > { %21426 = vst [vmem:[#allocation126_spill] sm:$0xff] %v18573_v45  ;;  %v18576_v10 = vpop.permute.xlu1 %9513  ;;  %v9537_v45 = vsel %vm402_vm2, %v9506_v55, %v9508_v24 }
 0x467   : > { %v9571_v27 = vmax.f32 %v18304_v3, %v9537_v45  ;;  %v9586_v21 = vmul.f32 %v9568_v53, %v18589_v33  ;;  %v9588_v45 = vmul.f32 %v9570_v26, %v18598_v17  ;;  %v9540_v48 = vsel %vm402_vm2, %v9512_v29, %v18576_v10  ;;  %v18628_v26 = vld [vmem:[#allocation9 + $0x40] sm:$0xff] }
 0x469   : > { %v9516_v20 = vpop.permute.xlu0 %9515 }
 0x46a   : > { %v9518_v13 = vpop.permute.xlu1 %9517 }
 0x46b   : > { %v9541_v61 = vsel %vm402_vm2, %v9516_v20, %v9518_v13  ;;  %v9539_v20 = vsel %vm402_vm2, %v9510_v42, %v9512_v29  ;;  %v9587_v42 = vmul.f32 %v9569_v15, %v18596_v7 }
 0x46c   : > { %v9576_v56 = vmax.f32 %v18343_v51, %v9541_v61  ;;  %v18607_v51 = vld [vmem:[#allocation9 + $0x20] sm:$0xff]  ;;  %v18611_v61 = vld [vmem:[#allocation9 + $0x58] sm:$0xff]  ;;  %v9573_v53 = vmax.f32 %v18318_v37, %v9539_v20 }
 0x46d   : > { %v9520_v55 = vpop.permute.xlu0 %9519  ;;  %v9589_v15 = vmul.f32 %v9571_v27, %v18607_v51 }
 0x46e   : > { %v9594_v19 = vmul.f32 %v9576_v56, %v18586_v58  ;;  %v9542_v35 = vsel %vm402_vm2, %v9518_v13, %v9520_v55  ;;  %v9522_v40 = vpop.permute.xlu1 %9521  ;;  %v18616_v56 = vld [vmem:[#allocation9 + $0x28] sm:$0xff] }
 0x46f   : > { %v9577_v24 = vmax.f32 %v18347_v49, %v9542_v35  ;;  %v9543_v3 = vsel %vm402_vm2, %v9520_v55, %v9522_v40  ;;  %v9575_v49 = vmax.f32 %v18327_v34, %v18576_v10  ;;  %v18626_v35 = vld [vmem:[#allocation9 + $0x30] sm:$0xff]  ;;  %v9590_v20 = vmul.f32 %v9572_v52, %v18616_v56 }
 0x470   : > { %v9603_v13 = vadd.f32 %v9594_v19, %v9585_v50  ;;  %v9578_v5 = vmax.f32 %v18367_v59, %v9543_v3  ;;  %21427 = vst [vmem:[#allocation127_spill] sm:$0xff] %v18626_v35  ;;  %v18631_v50 = vld [vmem:[#allocation9 + $0x60] sm:$0xff]  ;;  %v9574_v3 = vmax.f32 %v18331_v0, %v9540_v48  ;;  %v9591_v60 = vmul.f32 %v9573_v53, %v18626_v35  ;;  %v18647_v0 = vld [vmem:[#allocation9 + $0x70] sm:$0xff] }
 0x471   : > { %v9595_v25 = vmul.f32 %v9577_v24, %v18603_v28  ;;  %v9524_v55 = vpop.permute.xlu0 %9523  ;;  %21428 = vst [vmem:[#allocation128_spill] sm:$0xff] %v18631_v50  ;;  %v18636_v24 = vld [vmem:[#allocation9 + $0x68] sm:$0xff]  ;;  %21431 = vst [vmem:[#allocation131_spill] sm:$0xff] %v18647_v0 }
 0x472   : > { %v9604_v19 = vrot.slane %v9603_v13, 4  ;;  %v9596_v59 = vmul.f32 %v9578_v5, %v18611_v61  ;;  %v9544_v37 = vsel %vm402_vm2, %v9522_v40, %v9524_v55  ;;  %v9526_v29 = vpop.permute.xlu1 %9525  ;;  %21429 = vst [vmem:[#allocation129_spill] sm:$0xff] %v18636_v24  ;;  %v9593_v40 = vmul.f32 %v9575_v49, %v18628_v26  ;;  %v18651_v49 = vld [vmem:[#allocation9 + $0x78] sm:$0xff] }
 0x473   : > { %v9610_v10 = vadd.f32 %v9595_v25, %v9586_v21  ;;  %v9579_v34 = vmax.f32 %v18371_v46, %v9544_v37  ;;  %v9545_v27 = vsel %vm402_vm2, %v9524_v55, %v9526_v29  ;;  %v18644_v46 = vld [vmem:[#allocation9 + $0x38] sm:$0xff]  ;;  %21432 = vst [vmem:[#allocation132_spill] sm:$0xff] %v18651_v49 }
 0x474   : > { %v9605_v12 = vadd.f32 %v9604_v19, %v9603_v13  ;;  %v9617_v18 = vadd.f32 %v9596_v59, %v9587_v42  ;;  %v9580_v5 = vmax.f32 %v18385_v2, %v9545_v27  ;;  %21430 = vst [vmem:[#allocation130_spill] sm:$0xff] %v18644_v46 }
 0x475   : > { %v9611_v44 = vrot.slane %v9610_v10, 4  ;;  %v9597_v21 = vmul.f32 %v9579_v34, %v18631_v50  ;;  %v9528_v52 = vpop.permute.xlu0 %9527 }
 0x476   : > { %v9606_v25 = vrot.slane %v9605_v12, 2  ;;  %v9618_v37 = vrot.slane %v9617_v18, 4  ;;  %v9598_v55 = vmul.f32 %v9580_v5, %v18636_v24  ;;  %v9546_v42 = vsel %vm402_vm2, %v9526_v29, %v9528_v52  ;;  %v9530_v2 = vpop.permute.xlu1 %9529 }
 0x477   : > { %v9612_v13 = vadd.f32 %v9611_v44, %v9610_v10  ;;  %v9624_v53 = vadd.f32 %v9597_v21, %v9588_v45  ;;  %v9581_v48 = vmax.f32 %v18389_v47, %v9546_v42  ;;  %v9547_v19 = vsel %vm402_vm2, %v9528_v52, %v9530_v2 }
 0x478   : > { %v9607_v59 = vadd.f32 %v9606_v25, %v9605_v12  ;;  %v9619_v34 = vadd.f32 %v9618_v37, %v9617_v18  ;;  %v9631_v27 = vadd.f32 %v9598_v55, %v9589_v15  ;;  %v9582_v23 = vmax.f32 %v18399_v38, %v9547_v19  ;;  %v18661_v19 = vld [vmem:[#allocation9 + $0x88] sm:$0xff] }
 0x479   : > { %v9592_v5 = vmul.f32 %v9574_v3, %v18644_v46  ;;  %v9613_v24 = vrot.slane %v9612_v13, 2  ;;  %v9625_v35 = vrot.slane %v9624_v53, 4  ;;  %v9599_v29 = vmul.f32 %v9581_v48, %v18647_v0  ;;  %v9532_v50 = vpop.permute.xlu0 %9531  ;;  %v18659_v3 = vld [vmem:[#allocation9 + $0x80] sm:$0xff] }
 0x47a   : > { %v9608_v44 = vrot.slane %v9607_v59, 1  ;;  %v9620_v45 = vrot.slane %v9619_v34, 2  ;;  %v9632_v10 = vrot.slane %v9631_v27, 4  ;;  %v9600_v47 = vmul.f32 %v9582_v23, %v18651_v49 }
 0x47b   : > { %v9614_v21 = vadd.f32 %v9613_v24, %v9612_v13  ;;  %v9626_v42 = vadd.f32 %v9625_v35, %v9624_v53  ;;  %v9638_v52 = vadd.f32 %v9599_v29, %v9590_v20  ;;  %v9548_v12 = vsel %vm402_vm2, %v9530_v2, %v9532_v50 }
 0x47c   : > { %v9609_v18 = vadd.f32 %v9608_v44, %v9607_v59  ;;  %v9621_v15 = vadd.f32 %v9620_v45, %v9619_v34  ;;  %v9633_v38 = vadd.f32 %v9632_v10, %v9631_v27  ;;  %v9645_v25 = vadd.f32 %v9600_v47, %v9591_v60 }
 0x47d   : > { %v9615_v37 = vrot.slane %v9614_v21, 1  ;;  %v9627_v55 = vrot.slane %v9626_v42, 2  ;;  %v9639_v48 = vrot.slane %v9638_v52, 4  ;;  %v9583_v0 = vmax.f32 %v18403_v22, %v9548_v12  ;;  %v18664_v46 = vpop.permute.xlu0 %9718 }
 0x47e   : > { %v9622_v23 = vrot.slane %v9621_v15, 1  ;;  %v9634_v35 = vrot.slane %v9633_v38, 2  ;;  %v9646_v20 = vrot.slane %v9645_v25, 4  ;;  %v9584_v24 = vmax.f32 %v18411_v1, %v9532_v50 }
 0x47f   : > { %v9616_v2 = vadd.f32 %v9615_v37, %v9614_v21  ;;  %v9628_v13 = vadd.f32 %v9627_v55, %v9626_v42  ;;  %v9640_v53 = vadd.f32 %v9639_v48, %v9638_v52  ;;  %v9601_v60 = vmul.f32 %v9583_v0, %v18659_v3 }
 0x480   : > { %v9660_v59 = vsel %vm9659_vm10, %v9593_v40, 0.0  ;;  %v9635_v34 = vadd.f32 %v9634_v35, %v9633_v38  ;;  %v9647_v27 = vadd.f32 %v9646_v20, %v9645_v25  ;;  %v9602_v29 = vmul.f32 %v9584_v24, %v18661_v19 }
 0x481   : > { %v9669_v44 = vadd.f32 %v9616_v2, %v9609_v18  ;;  %v9629_v22 = vrot.slane %v9628_v13, 1  ;;  %v9641_v45 = vrot.slane %v9640_v53, 2  ;;  %v9652_v10 = vadd.f32 %v9601_v60, %v9592_v5  ;;  %v18670_v47 = vpop.permute.xlu0 %9720 }
 0x482   : > { %v9623_v12 = vadd.f32 %v9622_v23, %v9621_v15  ;;  %v9636_v49 = vrot.slane %v9635_v34, 1  ;;  %v9648_v1 = vrot.slane %v9647_v27, 2  ;;  %v9661_v50 = vsel %vm9659_vm10, %v9602_v29, 0.0 }
 0x483   : > { %v9630_v21 = vadd.f32 %v9629_v22, %v9628_v13  ;;  %v9642_v42 = vadd.f32 %v9641_v45, %v9640_v53  ;;  %v9653_v0 = vrot.slane %v9652_v10, 4  ;;  %v9662_v52 = vadd.f32 %v9661_v50, %v9660_v59 }
 0x484   : > { %v9649_v40 = vadd.f32 %v9648_v1, %v9647_v27  ;;  %v9670_v38 = vadd.f32 %v9669_v44, %v9623_v12  ;;  %v9637_v48 = vadd.f32 %v9636_v49, %v9635_v34  ;;  %v21433_v20 = vmax.f32 %v18422_v11, 0.0 }
 0x485   : > { %v9654_v25 = vadd.f32 %v9653_v0, %v9652_v10  ;;  %v9663_v37 = vrot.slane %v9662_v52, 4  ;;  %v9723_v55 = vpop.permute.xlu0 %9722  ;;  %v9643_v18 = vrot.slane %v9642_v42, 1  ;;  %v21434_v1 = vmax.f32 %v18438_v62, 0.0 }
 0x486   : > { %v9755_v5 = vsel %vm324_vm0, %v18670_v47, %v9723_v55  ;;  %v9650_v35 = vrot.slane %v9649_v40, 1  ;;  %v9671_v15 = vadd.f32 %v9670_v38, %v9630_v21 }
 0x487   : > { %v9664_v23 = vadd.f32 %v9663_v37, %v9662_v52  ;;  %v18677_v24 = vmax.f32 %v21433_v20, %v9755_v5  ;;  %v9644_v2 = vadd.f32 %v9643_v18, %v9642_v42  ;;  %v9655_v13 = vrot.slane %v9654_v25, 2 }
 0x488   : > { %v9672_v53 = vadd.f32 %v9671_v15, %v9637_v48  ;;  %v9651_v29 = vadd.f32 %v9650_v35, %v9649_v40  ;;  %v21435_v37 = vmax.f32 %v18454_v54, 0.0  ;;  %v21436_v35 = vmax.f32 %v18470_v41, 0.0 }
 0x489   : > { %9826 = vrot.lane.b32.xlu0 %v18677_v24, %s15369_s14  ;;  %v9725_v60 = vpop.permute.xlu0 %9724  ;;  %v9656_v59 = vadd.f32 %v9655_v13, %v9654_v25  ;;  %v9665_v27 = vrot.slane %v9664_v23, 2 }
 0x48a   : > { %v9673_v44 = vadd.f32 %v9672_v53, %v9644_v2  ;;  %v21438_v2 = vld [vmem:[#allocation32_spill] sm:$0xff] }
 0x48b   : > { %v9657_v22 = vrot.slane %v9656_v59, 1  ;;  %v9666_v49 = vadd.f32 %v9665_v27, %v9664_v23  ;;  %v21437_v23 = vld [vmem:[#allocation25_spill] sm:$0xff]  ;;  %v7859_v13 = vadd.f32 %v21438_v2, %v18110_v43 }
 0x48c   : > { %v9674_v34 = vadd.f32 %v9673_v44, %v9651_v29  ;;  %v7732_v20 = vadd.f32 %v21437_v23, %v18110_v43  ;;  %v9754_v29 = vsel %vm324_vm0, %v18664_v46, %v18670_v47  ;;  %v21440_v44 = vmax.f32 %v18415_v8, 0.0 }
 0x48d   : > { %v9727_v45 = vpop.permute.xlu0 %9726  ;;  %v9658_v10 = vadd.f32 %v9657_v22, %v9656_v59  ;;  %v9667_v12 = vrot.slane %v9666_v49, 1  ;;  %v9153_v53 = vmax.f32 %v7859_v13, 0.0  ;;  %v21439_v59 = vld [vmem:[#allocation39_spill] sm:$0xff]  ;;  %v21442_v8 = vmax.f32 %v18446_v30, 0.0 }
 0x48e   : > { %v9757_v11 = vsel %vm324_vm0, %v9725_v60, %v9727_v45  ;;  %v9148_v54 = vmax.f32 %v7732_v20, 0.0  ;;  %v7902_v27 = vadd.f32 %v21439_v59, %v18110_v43  ;;  %v18717_v22 = vmax.f32 %v21440_v44, %v9754_v29 }
 0x48f   : > { %v18684_v50 = vmax.f32 %v21434_v1, %v9757_v11  ;;  %v9668_v21 = vadd.f32 %v9667_v12, %v9666_v49  ;;  %v9675_v42 = vadd.f32 %v9674_v34, %v9658_v10  ;;  %v9756_v34 = vsel %vm324_vm0, %v9723_v55, %v9725_v60 }
 0x490   : > { %v9155_v41 = vmax.f32 %v7902_v27, 0.0  ;;  %v21441_v10 = vmax.f32 %v18430_v57, 0.0  ;;  %v21443_v55 = vmax.f32 %v18462_v32, 0.0  ;;  %v21448_v27 = vmax.f32 %v18510_v39, 0.0 }
 0x491   : > { %9830 = vrot.lane.b32.xlu0 %v18684_v50, %s15369_s14  ;;  %v9729_v0 = vpop.permute.xlu0 %9728  ;;  %v9676_v52 = vsel %vm9659_vm10, %v9668_v21, 0.0  ;;  %v21449_v44 = vmax.f32 %v18522_v4, 0.0  ;;  %v21450_v39 = vmax.f32 %v18542_v63, 0.0  ;;  %v21452_v4 = vld [vmem:[#allocation38_spill] sm:$0xff] }
 0x492   : > { %v9677_v40 = vadd.f32 %v9676_v52, %v9675_v42  ;;  %v18724_v12 = vmax.f32 %v21441_v10, %v9756_v34  ;;  %v9758_v11 = vsel %vm324_vm0, %v9727_v45, %v9729_v0  ;;  %v21444_v45 = vmax.f32 %v18478_v14, 0.0 }
 0x493   : > { %v18731_v46 = vmax.f32 %v21442_v8, %v9758_v11  ;;  %v21453_v8 = vld [vmem:[#allocation43_spill] sm:$0xff] }
 0x494   : > { %9678 = vadd.xlane.f32.xlu1 %v9677_v40  ;;  %v21446_v40 = vmax.f32 %v18502_v31, 0.0 }
 0x495   : > { %v9731_v38 = vpop.permute.xlu0 %9730 }
 0x496   : > { %v9759_v25 = vsel %vm324_vm0, %v9729_v0, %v9731_v38  ;;  %v21445_v0 = vmax.f32 %v18486_v6, 0.0 }
 0x497   : > { %v18692_v18 = vmax.f32 %v21435_v37, %v9759_v25 }
 0x499   : > { %9834 = vrot.lane.b32.xlu0 %v18692_v18, %s15369_s14  ;;  %v9733_v62 = vpop.permute.xlu0 %9732 }
 0x49a   : > { %v9760_v47 = vsel %vm324_vm0, %v9731_v38, %v9733_v62 }
 0x49b   : > { %v18738_v57 = vmax.f32 %v21443_v55, %v9760_v47  ;;  %v18819_v47 = vadd.f32 %v21453_v8, %v18056_v9 }
 0x49d   : > { %v9735_v5 = vpop.permute.xlu0 %9734  ;;  %v21095_v55 = vmax.f32 %v18819_v47, 0.0 }
 0x49e   : > { %v9761_v48 = vsel %vm324_vm0, %v9733_v62, %v9735_v5  ;;  %v18744_v21 = vmax.f32 %v21444_v45, %v9735_v5 }
 0x49f   : > { %v18699_v15 = vmax.f32 %v21436_v35, %v9761_v48  ;;  %v21447_v35 = vmax.f32 %v18494_v36, 0.0 }
 0x4a1   : > { %9838 = vrot.lane.b32.xlu0 %v18699_v15, %s15369_s14  ;;  %v9739_v49 = vpop.permute.xlu0 %9738 }
 0x4a5   : > { %9736 = vrot.lane.b32.xlu1 %v9148_v54, %s15367_s25  ;;  %v9741_v1 = vpop.permute.xlu0 %9740 }
 0x4a6   : > { %v9763_v30 = vsel %vm324_vm0, %v9739_v49, %v9741_v1 }
 0x4a7   : > { %v18751_v52 = vmax.f32 %v21445_v0, %v9763_v30 }
 0x4a9   : > { %9746 = vrot.lane.b32.xlu1 %v9153_v53, %s15367_s25  ;;  %v9743_v60 = vpop.permute.xlu0 %9742 }
 0x4aa   : > { %v9764_v5 = vsel %vm324_vm0, %v9741_v1, %v9743_v60  ;;  %v18811_v1 = vadd.f32 %v21452_v4, %v18056_v9  ;;  %v21462_v4 = vld [vmem:[#allocation49_spill] sm:$0xff] }
 0x4ab   : > { %v18771_v23 = vmax.f32 %v21447_v35, %v9764_v5  ;;  %v18891_v8 = vadd.f32 %v21462_v4, %v18110_v43 }
 0x4ac   : > { %v21102_v63 = vmax.f32 %v18811_v1, 0.0 }
 0x4ad   : > { %9750 = vrot.lane.b32.xlu1 %v9155_v41, %s15367_s25  ;;  %v9745_v42 = vpop.permute.xlu0 %9744 }
 0x4ae   : > { %v9765_v32 = vsel %vm324_vm0, %v9743_v60, %v9745_v42  ;;  %v21454_v60 = vld [vmem:[#allocation45_spill] sm:$0xff] }
 0x4af   : > { %v18758_v14 = vmax.f32 %v21446_v40, %v9765_v32  ;;  %v18827_v45 = vadd.f32 %v21454_v60, %v18056_v9  ;;  %v21456_v40 = vld [vmem:[#allocation46_spill] sm:$0xff]  ;;  %v21089_v60 = vmax.f32 %v18891_v8, 0.0 }
 0x4b1   : > { %9824 = vrot.lane.b32.xlu1 %v18717_v22, %s15369_s14  ;;  %v9749_v37 = vpop.permute.xlu0 %9748  ;;  %v21101_v30 = vmax.f32 %v18827_v45, 0.0 }
 0x4b5   : > { %9828 = vrot.lane.b32.xlu1 %v18724_v12, %s15369_s14  ;;  %v9753_v13 = vpop.permute.xlu0 %9752 }
 0x4b6   : > { %v18800_v34 = vmax.f32 %v21450_v39, %v9753_v13 }
 0x4b9   : > { %9832 = vrot.lane.b32.xlu1 %v18731_v46, %s15369_s14 }
 0x4bd   : > { %9836 = vrot.lane.b32.xlu1 %v18738_v57, %s15369_s14 }
 0x4c1   : > { %9840 = vrot.lane.b32.xlu1 %v18744_v21, %s15369_s14 }
 0x4c5   : > { %9844 = vrot.lane.b32.xlu1 %v18751_v52, %s15369_s14 }
 0x4c9   : > { %9848 = vrot.lane.b32.xlu1 %v18758_v14, %s15369_s14 }
 0x521   : > { %v9679_v38 = vpop.xlane.xlu1 %9678 }
 0x522   : > { %9681 = vst.msk [vmem:[#allocation4] sm:$0x1] %vm9680_vm11, %v9679_v38  ;;  %v18843_v38 = vadd.f32 %v21456_v40, %v18056_v9 }
 0x525   : > { %v9737_v25 = vpop.permute.xlu1 %9736 }
 0x526   : > { %v9762_v6 = vsel %vm324_vm0, %v9737_v25, %v9739_v49  ;;  %v21099_v25 = vmax.f32 %v18843_v38, 0.0 }
 0x527   : > { %v18763_v62 = vmax.f32 %v9148_v54, %v9762_v6  ;;  %v21457_v6 = vld [vmem:[#allocation51_spill] sm:$0xff] }
 0x529   : > { %9842 = vrot.lane.b32.xlu0 %v18763_v62, %s15369_s14  ;;  %v9747_v31 = vpop.permute.xlu1 %9746 }
 0x52a   : > { %v9767_v48 = vsel %vm324_vm0, %v9747_v31, %v9749_v37  ;;  %v9766_v2 = vsel %vm324_vm0, %v9745_v42, %v9747_v31  ;;  %v21455_v42 = vld [vmem:[#allocation44_spill] sm:$0xff] }
 0x52b   : > { %v18773_v20 = vmax.f32 %v9153_v53, %v9767_v48  ;;  %v18783_v29 = vmax.f32 %v21448_v27, %v9766_v2  ;;  %v18835_v0 = vadd.f32 %v21455_v42, %v18056_v9  ;;  %v21458_v31 = vld [vmem:[#allocation52_spill] sm:$0xff]  ;;  %v21459_v2 = vld [vmem:[#allocation55_spill] sm:$0xff] }
 0x52c   : > { %v18859_v48 = vadd.f32 %v21458_v31, %v18056_v9  ;;  %v21463_v42 = vld [vmem:[#allocation48_spill] sm:$0xff]  ;;  %v21465_v31 = vld [vmem:[#allocation53_spill] sm:$0xff] }
 0x52d   : > { %9846 = vrot.lane.b32.xlu0 %v18771_v23, %s15369_s14  ;;  %9852 = vrot.lane.b32.xlu1 %v18773_v20, %s15369_s14  ;;  %v9751_v54 = vpop.permute.xlu1 %9750  ;;  %v21094_v32 = vmax.f32 %v18835_v0, 0.0  ;;  %v18899_v40 = vadd.f32 %v21463_v42, %v18110_v43 }
 0x52e   : > { %v9769_v59 = vsel %vm324_vm0, %v9751_v54, %v9753_v13  ;;  %v9768_v53 = vsel %vm324_vm0, %v9749_v37, %v9751_v54  ;;  %v18851_v37 = vadd.f32 %v21457_v6, %v18056_v9  ;;  %v21098_v35 = vmax.f32 %v18859_v48, 0.0 }
 0x52f   : > { %v18785_v36 = vmax.f32 %v9155_v41, %v9769_v59  ;;  %v18794_v49 = vmax.f32 %v21449_v44, %v9768_v53  ;;  %v21451_v41 = vld [vmem:[#allocation36_spill] sm:$0xff]  ;;  %v18867_v13 = vadd.f32 %v21459_v2, %v18056_v9  ;;  %v21460_v59 = vld [vmem:[#allocation42_spill] sm:$0xff]  ;;  %v21461_v44 = vld [vmem:[#allocation47_spill] sm:$0xff]  ;;  %21464 = vst [vmem:[#allocation25_spill] sm:$0xff] %v18899_v40  ;;  %v21090_v6 = vmax.f32 %v18899_v40, 0.0 }
 0x530   : > { %v18804_v10 = vadd.f32 %v21451_v41, %v18056_v9  ;;  %v21093_v5 = vmax.f32 %v18851_v37, 0.0  ;;  %v18875_v27 = vadd.f32 %v21460_v59, %v18110_v43  ;;  %v18883_v39 = vadd.f32 %v21461_v44, %v18110_v43  ;;  %v21467_v44 = vld [vmem:[#allocation58_spill] sm:$0xff] }
 0x531   : > { %9850 = vrot.lane.b32.xlu0 %v18783_v29, %s15369_s14  ;;  %9856 = vrot.lane.b32.xlu1 %v18785_v36, %s15369_s14  ;;  %v21092_v54 = vmax.f32 %v18867_v13, 0.0  ;;  %v18907_v2 = vadd.f32 %v21465_v31, %v18110_v43  ;;  %v18915_v4 = vadd.f32 %v21467_v44, %v18110_v43  ;;  %v9825_v31 = vpop.permute.xlu1 %9824 }
 0x532   : > { %v21096_v11 = vmax.f32 %v18804_v10, 0.0  ;;  %v21091_v53 = vmax.f32 %v18875_v27, 0.0  ;;  %v21088_v41 = vmax.f32 %v18883_v39, 0.0 }
 0x533   : > { %21466 = vst [vmem:[#allocation32_spill] sm:$0xff] %v18907_v2  ;;  %v21097_v59 = vmax.f32 %v18907_v2, 0.0  ;;  %21468 = vst [vmem:[#allocation39_spill] sm:$0xff] %v18915_v4  ;;  %v21100_v42 = vmax.f32 %v18915_v4, 0.0 }
 0x535   : > { %9854 = vrot.lane.b32.xlu0 %v18794_v49, %s15369_s14 }
 0x539   : > { %9858 = vrot.lane.b32.xlu0 %v18800_v34, %s15369_s14 }
 0x53d   : > { %10044 = vrot.lane.b32.xlu0 %v21096_v11, %s15367_s25 }
 0x541   : > { %10046 = vrot.lane.b32.xlu0 %v21102_v63, %s15367_s25 }
 0x545   : > { %10048 = vrot.lane.b32.xlu0 %v21095_v55, %s15367_s25 }
 0x549   : > { %10050 = vrot.lane.b32.xlu0 %v21101_v30, %s15367_s25 }
 0x54d   : > { %10052 = vrot.lane.b32.xlu0 %v21094_v32, %s15367_s25 }
 0x551   : > { %10054 = vrot.lane.b32.xlu0 %v21099_v25, %s15367_s25 }
 0x555   : > { %10056 = vrot.lane.b32.xlu0 %v21093_v5, %s15367_s25 }
 0x559   : > { %10058 = vrot.lane.b32.xlu0 %v21098_v35, %s15367_s25 }
 0x55d   : > { %10060 = vrot.lane.b32.xlu0 %v21092_v54, %s15367_s25 }
 0x561   : > { %10064 = vrot.lane.b32.xlu0 %v21091_v53, %s15367_s25 }
 0x565   : > { %10066 = vrot.lane.b32.xlu0 %v21088_v41, %s15367_s25  ;;  %v9829_v41 = vpop.permute.xlu1 %9828 }
 0x569   : > { %10068 = vrot.lane.b32.xlu0 %v21089_v60, %s15367_s25  ;;  %v9833_v60 = vpop.permute.xlu1 %9832 }
 0x56d   : > { %10070 = vrot.lane.b32.xlu0 %v21090_v6, %s15367_s25  ;;  %v9827_v6 = vpop.permute.xlu0 %9826  ;;  %v9837_v53 = vpop.permute.xlu1 %9836 }
 0x56e   : > { %v9860_v11 = vsel %vm402_vm2, %v9825_v31, %v9827_v6 }
 0x56f   : > { %v9894_v35 = vmax.f32 %v18717_v22, %v9860_v11 }
 0x571   : > { %10074 = vrot.lane.b32.xlu0 %v21097_v59, %s15367_s25  ;;  %v9831_v54 = vpop.permute.xlu0 %9830  ;;  %v9841_v5 = vpop.permute.xlu1 %9840  ;;  %v9861_v59 = vsel %vm402_vm2, %v9827_v6, %v9829_v41  ;;  %v9912_v22 = vmul.f32 %v9894_v35, %v18582_v16 }
 0x572   : > { %v9862_v25 = vsel %vm402_vm2, %v9829_v41, %v9831_v54  ;;  %v9895_v63 = vmax.f32 %v18677_v24, %v9861_v59 }
 0x573   : > { %v9896_v31 = vmax.f32 %v18724_v12, %v9862_v25 }
 0x574   : > { %v9913_v24 = vmul.f32 %v9895_v63, %v18589_v33 }
 0x575   : > { %10078 = vrot.lane.b32.xlu0 %v21100_v42, %s15367_s25  ;;  %v9835_v32 = vpop.permute.xlu0 %9834  ;;  %v9845_v55 = vpop.permute.xlu1 %9844  ;;  %v9863_v42 = vsel %vm402_vm2, %v9831_v54, %v9833_v60 }
 0x576   : > { %v9864_v4 = vsel %vm402_vm2, %v9833_v60, %v9835_v32  ;;  %v9897_v6 = vmax.f32 %v18684_v50, %v9863_v42  ;;  %v9865_v11 = vsel %vm402_vm2, %v9835_v32, %v9837_v53  ;;  %v9914_v32 = vmul.f32 %v9896_v31, %v18596_v7  ;;  %v21469_v31 = vld [vmem:[#allocation128_spill] sm:$0xff] }
 0x577   : > { %v9899_v33 = vmax.f32 %v18692_v18, %v9865_v11  ;;  %v21470_v11 = vld [vmem:[#allocation127_spill] sm:$0xff] }
 0x579   : > { %v9839_v44 = vpop.permute.xlu0 %9838  ;;  %v9849_v2 = vpop.permute.xlu1 %9848 }
 0x57a   : > { %v9867_v63 = vsel %vm402_vm2, %v9839_v44, %v9841_v5 }
 0x59b   : > { %v9843_v30 = vpop.permute.xlu0 %9842 }
 0x59c   : > { %v9868_v9 = vsel %vm402_vm2, %v9843_v30, %v9845_v55  ;;  %v9898_v30 = vmax.f32 %v18731_v46, %v9864_v4  ;;  %v9902_v46 = vmax.f32 %v18744_v21, %v9841_v5  ;;  %v9917_v5 = vmul.f32 %v9899_v33, %v18616_v56 }
 0x59d   : > { %v9903_v40 = vmax.f32 %v18763_v62, %v9868_v9  ;;  %v9866_v9 = vsel %vm402_vm2, %v9837_v53, %v9839_v44 }
 0x59f   : > { %v9921_v54 = vmul.f32 %v9903_v40, %v18586_v58  ;;  %v9847_v41 = vpop.permute.xlu0 %9846  ;;  %v9853_v62 = vpop.permute.xlu1 %9852  ;;  %v9915_v58 = vmul.f32 %v9897_v6, %v18598_v17 }
 0x5a0   : > { %v9869_v60 = vsel %vm402_vm2, %v9845_v55, %v9847_v41  ;;  %v9870_v59 = vsel %vm402_vm2, %v9847_v41, %v9849_v2  ;;  %v21471_v41 = vld [vmem:[#allocation129_spill] sm:$0xff] }
 0x5a1   : > { %v9930_v12 = vadd.f32 %v9921_v54, %v9912_v22  ;;  %v9904_v50 = vmax.f32 %v18751_v52, %v9869_v60  ;;  %v9905_v16 = vmax.f32 %v18771_v23, %v9870_v59  ;;  %v9916_v52 = vmul.f32 %v9898_v30, %v18607_v51 }
 0x5a2   : > { %v9900_v23 = vmax.f32 %v18738_v57, %v9866_v9 }
 0x5a3   : > { %v9931_v55 = vrot.slane %v9930_v12, 4  ;;  %v9922_v25 = vmul.f32 %v9904_v50, %v18603_v28  ;;  %v9923_v35 = vmul.f32 %v9905_v16, %v18611_v61  ;;  %v9851_v53 = vpop.permute.xlu0 %9850  ;;  %v9901_v28 = vmax.f32 %v18699_v15, %v9867_v63  ;;  %v9857_v6 = vpop.permute.xlu1 %9856 }
 0x5a4   : > { %v9871_v7 = vsel %vm402_vm2, %v9849_v2, %v9851_v53  ;;  %v9872_v17 = vsel %vm402_vm2, %v9851_v53, %v9853_v62  ;;  %v9920_v61 = vmul.f32 %v9902_v46, %v18628_v26  ;;  %v9918_v54 = vmul.f32 %v9900_v23, %v21470_v11 }
 0x5a5   : > { %v9932_v40 = vadd.f32 %v9931_v55, %v9930_v12  ;;  %v9937_v18 = vadd.f32 %v9922_v25, %v9913_v24  ;;  %v9944_v4 = vadd.f32 %v9923_v35, %v9914_v32  ;;  %v9906_v21 = vmax.f32 %v18758_v14, %v9871_v7  ;;  %v21473_v55 = vld [vmem:[#allocation131_spill] sm:$0xff]  ;;  %v21474_v35 = vld [vmem:[#allocation132_spill] sm:$0xff] }
 0x5a6   : > { %v9907_v42 = vmax.f32 %v18783_v29, %v9872_v17  ;;  %v21472_v29 = vld [vmem:[#allocation130_spill] sm:$0xff]  ;;  %v9986_v16 = vsel %vm9659_vm10, %v9920_v61, 0.0 }
 0x5a7   : > { %v9933_v51 = vrot.slane %v9932_v40, 2  ;;  %v9938_v44 = vrot.slane %v9937_v18, 4  ;;  %v9945_v57 = vrot.slane %v9944_v4, 4  ;;  %v9924_v2 = vmul.f32 %v9906_v21, %v21469_v31  ;;  %v9855_v22 = vpop.permute.xlu0 %9854 }
 0x5a8   : > { %v9925_v24 = vmul.f32 %v9907_v42, %v21471_v41  ;;  %v9873_v14 = vsel %vm402_vm2, %v9853_v62, %v9855_v22  ;;  %v9874_v56 = vsel %vm402_vm2, %v9855_v22, %v9857_v6  ;;  %v9919_v59 = vmul.f32 %v9901_v28, %v21472_v29 }
 0x5a9   : > { %v9934_v15 = vadd.f32 %v9933_v51, %v9932_v40  ;;  %v9939_v30 = vadd.f32 %v9938_v44, %v9937_v18  ;;  %v9946_v26 = vadd.f32 %v9945_v57, %v9944_v4  ;;  %v9951_v60 = vadd.f32 %v9924_v2, %v9915_v58 }
 0x5aa   : > { %v9958_v9 = vadd.f32 %v9925_v24, %v9916_v52  ;;  %v9908_v12 = vmax.f32 %v18773_v20, %v9873_v14  ;;  %v9909_v50 = vmax.f32 %v18794_v49, %v9874_v56 }
 0x5ab   : > { %v9940_v32 = vrot.slane %v9939_v30, 2  ;;  %v9947_v33 = vrot.slane %v9946_v26, 2  ;;  %v9952_v46 = vrot.slane %v9951_v60, 4  ;;  %v9859_v63 = vpop.permute.xlu0 %9858  ;;  %v9935_v23 = vrot.slane %v9934_v15, 1 }
 0x5ac   : > { %v9959_v62 = vrot.slane %v9958_v9, 4  ;;  %v9926_v25 = vmul.f32 %v9908_v12, %v21473_v55  ;;  %v9927_v53 = vmul.f32 %v9909_v50, %v21474_v35  ;;  %v9875_v58 = vsel %vm402_vm2, %v9857_v6, %v9859_v63 }
 0x5ad   : > { %v9941_v7 = vadd.f32 %v9940_v32, %v9939_v30  ;;  %v9948_v52 = vadd.f32 %v9947_v33, %v9946_v26  ;;  %v9953_v17 = vadd.f32 %v9952_v46, %v9951_v60  ;;  %v9910_v18 = vmax.f32 %v18785_v36, %v9875_v58 }
 0x5ae   : > { %v9960_v20 = vadd.f32 %v9959_v62, %v9958_v9  ;;  %v9965_v40 = vadd.f32 %v9926_v25, %v9917_v5  ;;  %v9972_v49 = vadd.f32 %v9927_v53, %v9918_v54  ;;  %v9911_v61 = vmax.f32 %v18800_v34, %v9859_v63 }
 0x5af   : > { %v9942_v4 = vrot.slane %v9941_v7, 1  ;;  %v9949_v21 = vrot.slane %v9948_v52, 1  ;;  %v9954_v28 = vrot.slane %v9953_v17, 2  ;;  %v18975_v42 = vpop.permute.xlu0 %10044  ;;  %v9928_v31 = vmul.f32 %v9910_v18, %v18659_v3 }
 0x5b0   : > { %v9961_v51 = vrot.slane %v9960_v20, 2  ;;  %v9966_v44 = vrot.slane %v9965_v40, 4  ;;  %v9973_v57 = vrot.slane %v9972_v49, 4  ;;  %v9936_v2 = vadd.f32 %v9935_v23, %v9934_v15 }
 0x5b1   : > { %v9943_v6 = vadd.f32 %v9942_v4, %v9941_v7  ;;  %v9955_v22 = vadd.f32 %v9954_v28, %v9953_v17  ;;  %v9929_v5 = vmul.f32 %v9911_v61, %v18661_v19  ;;  %v9979_v41 = vadd.f32 %v9928_v31, %v9919_v59 }
 0x5b2   : > { %v9962_v11 = vadd.f32 %v9961_v51, %v9960_v20  ;;  %v9967_v54 = vadd.f32 %v9966_v44, %v9965_v40  ;;  %v9974_v36 = vadd.f32 %v9973_v57, %v9972_v49  ;;  %v9950_v24 = vadd.f32 %v9949_v21, %v9948_v52 }
 0x5b3   : > { %v9995_v14 = vadd.f32 %v9943_v6, %v9936_v2  ;;  %v9956_v56 = vrot.slane %v9955_v22, 1  ;;  %v9987_v34 = vsel %vm9659_vm10, %v9929_v5, 0.0  ;;  %v10047_v30 = vpop.permute.xlu0 %10046  ;;  %v9980_v9 = vrot.slane %v9979_v41, 4 }
 0x5b4   : > { %v9963_v26 = vrot.slane %v9962_v11, 1  ;;  %v9968_v60 = vrot.slane %v9967_v54, 2  ;;  %v9975_v29 = vrot.slane %v9974_v36, 2  ;;  %v9988_v15 = vadd.f32 %v9987_v34, %v9986_v16 }
 0x5b5   : > { %v9957_v3 = vadd.f32 %v9956_v56, %v9955_v22  ;;  %v9996_v12 = vadd.f32 %v9995_v14, %v9950_v24  ;;  %v9981_v32 = vadd.f32 %v9980_v9, %v9979_v41  ;;  %v21475_v53 = vmax.f32 %v18811_v1, 0.0 }
 0x5b6   : > { %v9969_v50 = vadd.f32 %v9968_v60, %v9967_v54  ;;  %v9989_v19 = vrot.slane %v9988_v15, 4  ;;  %v9964_v46 = vadd.f32 %v9963_v26, %v9962_v11  ;;  %v9976_v63 = vadd.f32 %v9975_v29, %v9974_v36  ;;  %v21479_v26 = vld [vmem:[#allocation40_spill] sm:$0xff]  ;;  %v21480_v29 = vld [vmem:[#allocation50_spill] sm:$0xff] }
 0x5b7   : > { %v10049_v33 = vpop.permute.xlu0 %10048  ;;  %v9997_v59 = vadd.f32 %v9996_v12, %v9957_v3  ;;  %v9982_v25 = vrot.slane %v9981_v32, 2  ;;  %v21476_v57 = vmax.f32 %v18827_v45, 0.0  ;;  %v21477_v36 = vmax.f32 %v18843_v38, 0.0 }
 0x5b8   : > { %v10081_v62 = vsel %vm324_vm0, %v10047_v30, %v10049_v33  ;;  %v9970_v55 = vrot.slane %v9969_v50, 1  ;;  %v9990_v35 = vadd.f32 %v9989_v19, %v9988_v15  ;;  %v9977_v23 = vrot.slane %v9976_v63, 1  ;;  %v21481_v15 = vld [vmem:[#allocation54_spill] sm:$0xff] }
 0x5b9   : > { %v18983_v58 = vmax.f32 %v21475_v53, %v10081_v62  ;;  %v9998_v7 = vadd.f32 %v9997_v59, %v9964_v46  ;;  %v9983_v52 = vadd.f32 %v9982_v25, %v9981_v32  ;;  %v21478_v56 = vmax.f32 %v18859_v48, 0.0 }
 0x5ba   : > { %v9971_v16 = vadd.f32 %v9970_v55, %v9969_v50  ;;  %v9991_v20 = vrot.slane %v9990_v35, 2  ;;  %v9978_v40 = vadd.f32 %v9977_v23, %v9976_v63  ;;  %v7945_v60 = vadd.f32 %v21479_v26, %v18110_v43  ;;  %v21496_v26 = vld [vmem:[#allocation91_spill] sm:$0xff] }
 0x5bb   : > { %10152 = vrot.lane.b32.xlu0 %v18983_v58, %s15369_s14  ;;  %v10051_v17 = vpop.permute.xlu0 %10050  ;;  %v9984_v49 = vrot.slane %v9983_v52, 1  ;;  %v8033_v9 = vadd.f32 %v21480_v29, %v18110_v43  ;;  %v8076_v12 = vadd.f32 %v21481_v15, %v18110_v43  ;;  %v10080_v50 = vsel %vm324_vm0, %v18975_v42, %v10047_v30 }
 0x5bc   : > { %v9999_v18 = vadd.f32 %v9998_v7, %v9971_v16  ;;  %v9992_v4 = vadd.f32 %v9991_v20, %v9990_v35  ;;  %v9157_v38 = vmax.f32 %v7945_v60, 0.0  ;;  %v21482_v32 = vmax.f32 %v18804_v10, 0.0  ;;  %v21497_v60 = vld [vmem:[#allocation57_spill] sm:$0xff] }
 0x5bd   : > { %v9985_v21 = vadd.f32 %v9984_v49, %v9983_v52  ;;  %v9162_v3 = vmax.f32 %v8033_v9, 0.0  ;;  %v9164_v48 = vmax.f32 %v8076_v12, 0.0  ;;  %v10082_v63 = vsel %vm324_vm0, %v10049_v33, %v10051_v17  ;;  %v21498_v9 = vld [vmem:[#allocation56_spill] sm:$0xff] }
 0x5be   : > { %v10000_v28 = vadd.f32 %v9999_v18, %v9978_v40  ;;  %v9993_v51 = vrot.slane %v9992_v4, 1  ;;  %v19022_v19 = vmax.f32 %v21482_v32, %v10080_v50  ;;  %v21483_v59 = vmax.f32 %v18819_v47, 0.0  ;;  %v21499_v12 = vld [vmem:[#allocation60_spill] sm:$0xff]  ;;  %v21500_v32 = vld [vmem:[#allocation63_spill] sm:$0xff] }
 0x5bf   : > { %v10053_v61 = vpop.permute.xlu0 %10052  ;;  %v21484_v10 = vmax.f32 %v18835_v0, 0.0  ;;  %v21485_v33 = vmax.f32 %v18851_v37, 0.0  ;;  %v21486_v53 = vmax.f32 %v18867_v13, 0.0  ;;  %v21487_v16 = vmax.f32 %v18875_v27, 0.0 }
 0x5c0   : > { %v10083_v1 = vsel %vm324_vm0, %v10051_v17, %v10053_v61  ;;  %v10001_v44 = vadd.f32 %v10000_v28, %v9985_v21  ;;  %v9994_v2 = vadd.f32 %v9993_v51, %v9992_v4  ;;  %v19029_v62 = vmax.f32 %v21483_v59, %v10082_v63  ;;  %v21501_v59 = vld [vmem:[#allocation65_spill] sm:$0xff] }
 0x5c1   : > { %v18990_v31 = vmax.f32 %v21476_v57, %v10083_v1  ;;  %v21488_v17 = vmax.f32 %v18891_v8, 0.0  ;;  %v21489_v28 = vmax.f32 %v18883_v39, 0.0 }
 0x5c2   : > { %v10002_v22 = vsel %vm9659_vm10, %v9994_v2, 0.0 }
 0x5c3   : > { %10156 = vrot.lane.b32.xlu0 %v18990_v31, %s15369_s14  ;;  %v10055_v6 = vpop.permute.xlu0 %10054  ;;  %v10003_v5 = vadd.f32 %v10002_v22, %v10001_v44 }
 0x5c4   : > { %v10084_v55 = vsel %vm324_vm0, %v10053_v61, %v10055_v6 }
 0x5c5   : > { %10004 = vadd.xlane.f32.xlu1 %v10003_v5  ;;  %v19036_v42 = vmax.f32 %v21484_v10, %v10084_v55  ;;  %v19140_v55 = vadd.f32 %v21501_v59, %v21496_v26  ;;  %v21502_v10 = vld [vmem:[#allocation64_spill] sm:$0xff] }
 0x5c7   : > { %v10057_v11 = vpop.permute.xlu0 %10056 }
 0x5c8   : > { %v10085_v54 = vsel %vm324_vm0, %v10055_v6, %v10057_v11  ;;  %v21490_v6 = vld [vmem:[#allocation25_spill] sm:$0xff] }
 0x5c9   : > { %v18998_v41 = vmax.f32 %v21477_v36, %v10085_v54  ;;  %v21491_v22 = vmax.f32 %v21490_v6, 0.0  ;;  %v21492_v54 = vld [vmem:[#allocation32_spill] sm:$0xff] }
 0x5ca   : > { %v21493_v36 = vmax.f32 %v21492_v54, 0.0 }
 0x5cb   : > { %10160 = vrot.lane.b32.xlu0 %v18998_v41, %s15369_s14  ;;  %v10059_v45 = vpop.permute.xlu0 %10058 }
 0x5cc   : > { %v10086_v30 = vsel %vm324_vm0, %v10057_v11, %v10059_v45 }
 0x5cd   : > { %v19043_v47 = vmax.f32 %v21485_v33, %v10086_v30  ;;  %v19148_v30 = vadd.f32 %v21502_v10, %v21496_v26 }
 0x5cf   : > { %v10061_v24 = vpop.permute.xlu0 %10060  ;;  %v21120_v33 = vmax.f32 %v19148_v30, 0.0 }
 0x5d0   : > { %v10087_v14 = vsel %vm324_vm0, %v10059_v45, %v10061_v24  ;;  %v19049_v23 = vmax.f32 %v21486_v53, %v10061_v24  ;;  %v21494_v24 = vld [vmem:[#allocation39_spill] sm:$0xff] }
 0x5d1   : > { %v19005_v34 = vmax.f32 %v21478_v56, %v10087_v14  ;;  %v21495_v14 = vmax.f32 %v21494_v24, 0.0  ;;  %v21511_v24 = vld [vmem:[#allocation74_spill] sm:$0xff] }
 0x5d3   : > { %10164 = vrot.lane.b32.xlu0 %v19005_v34, %s15369_s14  ;;  %v10065_v46 = vpop.permute.xlu0 %10064 }
 0x5d6   : > { %10062 = vrot.lane.b32.xlu1 %v9157_v38, %s15367_s25 }
 0x5d7   : > { %v10067_v25 = vpop.permute.xlu0 %10066 }
 0x5d8   : > { %v10089_v0 = vsel %vm324_vm0, %v10065_v46, %v10067_v25 }
 0x5d9   : > { %v19056_v52 = vmax.f32 %v21487_v16, %v10089_v0 }
 0x5da   : > { %10072 = vrot.lane.b32.xlu1 %v9162_v3, %s15367_s25 }
 0x5db   : > { %v10069_v35 = vpop.permute.xlu0 %10068 }
 0x5dc   : > { %v10090_v4 = vsel %vm324_vm0, %v10067_v25, %v10069_v35  ;;  %v21116_v25 = vmax.f32 %v19140_v55, 0.0 }
 0x5dd   : > { %v19076_v61 = vmax.f32 %v21489_v28, %v10090_v4 }
 0x5de   : > { %10076 = vrot.lane.b32.xlu1 %v9164_v48, %s15367_s25 }
 0x5df   : > { %v10071_v7 = vpop.permute.xlu0 %10070 }
 0x5e0   : > { %v10091_v37 = vsel %vm324_vm0, %v10069_v35, %v10071_v7  ;;  %v21503_v35 = vld [vmem:[#allocation68_spill] sm:$0xff] }
 0x5e1   : > { %v19063_v13 = vmax.f32 %v21488_v17, %v10091_v37  ;;  %v19156_v53 = vadd.f32 %v21503_v35, %v21496_v26  ;;  %v21505_v17 = vld [vmem:[#allocation72_spill] sm:$0xff] }
 0x5e2   : > { %10150 = vrot.lane.b32.xlu1 %v19022_v19, %s15369_s14 }
 0x5e3   : > { %v10075_v49 = vpop.permute.xlu0 %10074  ;;  %v21115_v0 = vmax.f32 %v19156_v53, 0.0 }
 0x5e6   : > { %10154 = vrot.lane.b32.xlu1 %v19029_v62, %s15369_s14 }
 0x5e7   : > { %v10079_v44 = vpop.permute.xlu0 %10078 }
 0x5e8   : > { %v19105_v56 = vmax.f32 %v21495_v14, %v10079_v44  ;;  %v19220_v14 = vadd.f32 %v21511_v24, %v18110_v43 }
 0x5ea   : > { %10158 = vrot.lane.b32.xlu1 %v19036_v42, %s15369_s14 }
 0x5ee   : > { %10162 = vrot.lane.b32.xlu1 %v19043_v47, %s15369_s14 }
 0x5f2   : > { %10166 = vrot.lane.b32.xlu1 %v19049_v23, %s15369_s14 }
 0x5f6   : > { %10170 = vrot.lane.b32.xlu1 %v19056_v52, %s15369_s14 }
 0x5fa   : > { %10174 = vrot.lane.b32.xlu1 %v19063_v13, %s15369_s14 }
 0x62d   : > { %v10153_v59 = vpop.permute.xlu0 %10152 }
 0x635   : > { %v10157_v35 = vpop.permute.xlu0 %10156 }
 0x652   : > { %v10005_v20 = vpop.xlane.xlu1 %10004 }
 0x653   : > { %10007 = vst.msk [vmem:[#allocation4] sm:$0x1] %vm10006_vm12, %v10005_v20  ;;  %v19172_v20 = vadd.f32 %v21505_v17, %v21496_v26  ;;  %v10161_v17 = vpop.permute.xlu0 %10160 }
 0x656   : > { %v10063_v40 = vpop.permute.xlu1 %10062 }
 0x657   : > { %v10088_v27 = vsel %vm324_vm0, %v10063_v40, %v10065_v46  ;;  %v19132_v46 = vadd.f32 %v21500_v32, %v21496_v26  ;;  %v21114_v40 = vmax.f32 %v19172_v20, 0.0 }
 0x658   : > { %v19068_v18 = vmax.f32 %v9157_v38, %v10088_v27  ;;  %v19109_v38 = vadd.f32 %v21497_v60, %v21496_v26  ;;  %v21506_v27 = vld [vmem:[#allocation61_spill] sm:$0xff]  ;;  %v21108_v60 = vmax.f32 %v19220_v14, 0.0 }
 0x659   : > { %v21121_v63 = vmax.f32 %v19132_v46, 0.0 }
 0x65a   : > { %10168 = vrot.lane.b32.xlu0 %v19068_v18, %s15369_s14  ;;  %v10073_v8 = vpop.permute.xlu1 %10072  ;;  %v21118_v29 = vmax.f32 %v19109_v38, 0.0 }
 0x65b   : > { %v10093_v21 = vsel %vm324_vm0, %v10073_v8, %v10075_v49  ;;  %v10092_v1 = vsel %vm324_vm0, %v10071_v7, %v10073_v8  ;;  %v21504_v7 = vld [vmem:[#allocation71_spill] sm:$0xff]  ;;  %v21507_v8 = vld [vmem:[#allocation62_spill] sm:$0xff] }
 0x65c   : > { %v19078_v51 = vmax.f32 %v9162_v3, %v10093_v21  ;;  %v19088_v5 = vmax.f32 %v21491_v22, %v10092_v1  ;;  %v19116_v3 = vadd.f32 %v21498_v9, %v21496_v26  ;;  %v19164_v16 = vadd.f32 %v21504_v7, %v21496_v26  ;;  %v21508_v1 = vld [vmem:[#allocation66_spill] sm:$0xff] }
 0x65d   : > { %v19188_v21 = vadd.f32 %v21507_v8, %v18110_v43 }
 0x65e   : > { %10172 = vrot.lane.b32.xlu0 %v19076_v61, %s15369_s14  ;;  %10178 = vrot.lane.b32.xlu1 %v19078_v51, %s15369_s14  ;;  %v10077_v57 = vpop.permute.xlu1 %10076  ;;  %v21122_v15 = vmax.f32 %v19116_v3, 0.0  ;;  %v21119_v37 = vmax.f32 %v19164_v16, 0.0 }
 0x65f   : > { %v10095_v2 = vsel %vm324_vm0, %v10077_v57, %v10079_v44  ;;  %v10094_v11 = vsel %vm324_vm0, %v10075_v49, %v10077_v57  ;;  %v19180_v49 = vadd.f32 %v21506_v27, %v18110_v43  ;;  %v21111_v28 = vmax.f32 %v19188_v21, 0.0  ;;  %v10165_v27 = vpop.permute.xlu0 %10164 }
 0x660   : > { %v19090_v39 = vmax.f32 %v9164_v48, %v10095_v2  ;;  %v19099_v45 = vmax.f32 %v21493_v36, %v10094_v11  ;;  %v19124_v48 = vadd.f32 %v21499_v12, %v21496_v26  ;;  %v19196_v44 = vadd.f32 %v21508_v1, %v18110_v43  ;;  %v21509_v2 = vld [vmem:[#allocation67_spill] sm:$0xff]  ;;  %v21510_v11 = vld [vmem:[#allocation70_spill] sm:$0xff] }
 0x661   : > { %v21113_v4 = vmax.f32 %v19180_v49, 0.0  ;;  %v19204_v6 = vadd.f32 %v21509_v2, %v18110_v43  ;;  %v19212_v54 = vadd.f32 %v21510_v11, %v18110_v43 }
 0x662   : > { %10176 = vrot.lane.b32.xlu0 %v19088_v5, %s15369_s14  ;;  %10182 = vrot.lane.b32.xlu1 %v19090_v39, %s15369_s14  ;;  %v21117_v50 = vmax.f32 %v19124_v48, 0.0  ;;  %v21112_v57 = vmax.f32 %v19196_v44, 0.0  ;;  %v10151_v9 = vpop.permute.xlu1 %10150 }
 0x663   : > { %v21110_v22 = vmax.f32 %v19204_v6, 0.0  ;;  %v21109_v36 = vmax.f32 %v19212_v54, 0.0  ;;  %v10186_v1 = vsel %vm402_vm2, %v10151_v9, %v10153_v59 }
 0x664   : > { %v10220_v11 = vmax.f32 %v19022_v19, %v10186_v1  ;;  %v19247_v1 = vld [vmem:[#allocation9 + $0x8] sm:$0xff] }
 0x666   : > { %10180 = vrot.lane.b32.xlu0 %v19099_v45, %s15369_s14  ;;  %v10155_v12 = vpop.permute.xlu1 %10154 }
 0x667   : > { %v10187_v2 = vsel %vm402_vm2, %v10153_v59, %v10155_v12  ;;  %v10188_v24 = vsel %vm402_vm2, %v10155_v12, %v10157_v35 }
 0x668   : > { %v10222_v9 = vmax.f32 %v19029_v62, %v10188_v24 }
 0x66a   : > { %10184 = vrot.lane.b32.xlu0 %v19105_v56, %s15369_s14  ;;  %v10159_v32 = vpop.permute.xlu1 %10158 }
 0x66e   : > { %10370 = vrot.lane.b32.xlu0 %v21118_v29, %s15367_s25  ;;  %v10163_v10 = vpop.permute.xlu1 %10162  ;;  %v19282_v29 = vld [vmem:[#allocation9 + $0x40] sm:$0xff] }
 0x66f   : > { %v10191_v12 = vsel %vm402_vm2, %v10161_v17, %v10163_v10 }
 0x672   : > { %10372 = vrot.lane.b32.xlu0 %v21122_v15, %s15367_s25  ;;  %v10167_v7 = vpop.permute.xlu1 %10166 }
 0x676   : > { %10374 = vrot.lane.b32.xlu0 %v21117_v50, %s15367_s25  ;;  %v10171_v8 = vpop.permute.xlu1 %10170 }
 0x67a   : > { %10376 = vrot.lane.b32.xlu0 %v21121_v63, %s15367_s25 }
 0x67e   : > { %10378 = vrot.lane.b32.xlu0 %v21116_v25, %s15367_s25  ;;  %v19259_v25 = vld [vmem:[#allocation9 + $0x18] sm:$0xff] }
 0x682   : > { %10380 = vrot.lane.b32.xlu0 %v21120_v33, %s15367_s25 }
 0x686   : > { %10382 = vrot.lane.b32.xlu0 %v21115_v0, %s15367_s25  ;;  %v19240_v0 = vld [vmem:[#allocation9] sm:$0xff] }
 0x687   : > { %v10238_v19 = vmul.f32 %v19240_v0, %v10220_v11 }
 0x68a   : > { %10384 = vrot.lane.b32.xlu0 %v21119_v37, %s15367_s25  ;;  %v19297_v37 = vld [vmem:[#allocation9 + $0x38] sm:$0xff] }
 0x68b   : > { %21515 = vst [vmem:[#allocation45_spill] sm:$0xff] %v19297_v37 }
 0x68e   : > { %10386 = vrot.lane.b32.xlu0 %v21114_v40, %s15367_s25 }
 0x692   : > { %10390 = vrot.lane.b32.xlu0 %v21113_v4, %s15367_s25  ;;  %v10175_v4 = vpop.permute.xlu1 %10174 }
 0x696   : > { %10392 = vrot.lane.b32.xlu0 %v21111_v28, %s15367_s25 }
 0x69a   : > { %10394 = vrot.lane.b32.xlu0 %v21112_v57, %s15367_s25  ;;  %v10190_v57 = vsel %vm402_vm2, %v10159_v32, %v10161_v17 }
 0x69e   : > { %10396 = vrot.lane.b32.xlu0 %v21110_v22, %s15367_s25  ;;  %v10221_v22 = vmax.f32 %v18983_v58, %v10187_v2 }
 0x6a2   : > { %10400 = vrot.lane.b32.xlu0 %v21109_v36, %s15367_s25 }
 0x6a6   : > { %10404 = vrot.lane.b32.xlu0 %v21108_v60, %s15367_s25  ;;  %v10189_v60 = vsel %vm402_vm2, %v10157_v35, %v10159_v32  ;;  %v19244_v35 = vld [vmem:[#allocation9 + $0x48] sm:$0xff]  ;;  %v10239_v32 = vmul.f32 %v19247_v1, %v10221_v22  ;;  %v10228_v22 = vmax.f32 %v19049_v23, %v10167_v7 }
 0x6a7   : > { %v10223_v59 = vmax.f32 %v18990_v31, %v10189_v60 }
 0x6cc   : > { %v10169_v36 = vpop.permute.xlu0 %10168 }
 0x6cd   : > { %v10194_v28 = vsel %vm402_vm2, %v10169_v36, %v10171_v8 }
 0x6ce   : > { %v10229_v40 = vmax.f32 %v19068_v18, %v10194_v28  ;;  %v10224_v18 = vmax.f32 %v19036_v42, %v10190_v57  ;;  %v10192_v28 = vsel %vm402_vm2, %v10163_v10, %v10165_v27  ;;  %v10241_v42 = vmul.f32 %v19259_v25, %v10223_v59 }
 0x6cf   : > { %v10225_v57 = vmax.f32 %v18998_v41, %v10191_v12  ;;  %v10193_v10 = vsel %vm402_vm2, %v10165_v27, %v10167_v7  ;;  %v10226_v41 = vmax.f32 %v19043_v47, %v10192_v28 }
 0x6d0   : > { %v10247_v58 = vmul.f32 %v19244_v35, %v10229_v40  ;;  %v10173_v36 = vpop.permute.xlu0 %10172  ;;  %v10179_v11 = vpop.permute.xlu1 %10178  ;;  %v19256_v40 = vld [vmem:[#allocation9 + $0x10] sm:$0xff]  ;;  %v10227_v50 = vmax.f32 %v19005_v34, %v10193_v10  ;;  %v19292_v34 = vld [vmem:[#allocation9 + $0x68] sm:$0xff] }
 0x6d1   : > { %v10195_v62 = vsel %vm402_vm2, %v10171_v8, %v10173_v36  ;;  %v10196_v31 = vsel %vm402_vm2, %v10173_v36, %v10175_v4  ;;  %v10240_v24 = vmul.f32 %v19256_v40, %v10222_v9  ;;  %v19271_v36 = vld [vmem:[#allocation9 + $0x20] sm:$0xff]  ;;  %21514 = vst [vmem:[#allocation43_spill] sm:$0xff] %v19292_v34 }
 0x6d2   : > { %v10256_v60 = vadd.f32 %v10247_v58, %v10238_v19  ;;  %v10230_v17 = vmax.f32 %v19056_v52, %v10195_v62  ;;  %v10231_v2 = vmax.f32 %v19076_v61, %v10196_v31  ;;  %v19265_v19 = vld [vmem:[#allocation9 + $0x50] sm:$0xff]  ;;  %v19268_v61 = vld [vmem:[#allocation9 + $0x58] sm:$0xff]  ;;  %v10242_v59 = vmul.f32 %v19271_v36, %v10224_v18 }
 0x6d3   : > { %v10246_v18 = vmul.f32 %v19282_v29, %v10228_v22 }
 0x6d4   : > { %v10257_v8 = vrot.slane %v10256_v60, 4  ;;  %v10248_v52 = vmul.f32 %v19265_v19, %v10230_v17  ;;  %v10249_v58 = vmul.f32 %v19268_v61, %v10231_v2  ;;  %v10177_v9 = vpop.permute.xlu0 %10176  ;;  %v19278_v17 = vld [vmem:[#allocation9 + $0x28] sm:$0xff] }
 0x6d5   : > { %v10197_v23 = vsel %vm402_vm2, %v10175_v4, %v10177_v9  ;;  %v10198_v7 = vsel %vm402_vm2, %v10177_v9, %v10179_v11  ;;  %v10243_v2 = vmul.f32 %v19278_v17, %v10225_v57  ;;  %v10312_v15 = vsel %vm9659_vm10, %v10246_v18, 0.0 }
 0x6d6   : > { %v10258_v27 = vadd.f32 %v10257_v8, %v10256_v60  ;;  %v10263_v12 = vadd.f32 %v10248_v52, %v10239_v32  ;;  %v10270_v62 = vadd.f32 %v10249_v58, %v10240_v24  ;;  %v10232_v31 = vmax.f32 %v19063_v13, %v10197_v23  ;;  %v19286_v60 = vld [vmem:[#allocation9 + $0x60] sm:$0xff]  ;;  %v10183_v13 = vpop.permute.xlu1 %10182  ;;  %v19289_v8 = vld [vmem:[#allocation9 + $0x30] sm:$0xff] }
 0x6d7   : > { %v10233_v47 = vmax.f32 %v19088_v5, %v10198_v7  ;;  %21512 = vst [vmem:[#allocation36_spill] sm:$0xff] %v19286_v60  ;;  %21513 = vst [vmem:[#allocation38_spill] sm:$0xff] %v19289_v8  ;;  %v10244_v57 = vmul.f32 %v19289_v8, %v10226_v41 }
 0x6d8   : > { %v10259_v4 = vrot.slane %v10258_v27, 2  ;;  %v10264_v28 = vrot.slane %v10263_v12, 4  ;;  %v10271_v9 = vrot.slane %v10270_v62, 4  ;;  %v10250_v32 = vmul.f32 %v19286_v60, %v10232_v31  ;;  %v10181_v24 = vpop.permute.xlu0 %10180 }
 0x6d9   : > { %v10251_v10 = vmul.f32 %v19292_v34, %v10233_v47  ;;  %v10199_v22 = vsel %vm402_vm2, %v10179_v11, %v10181_v24  ;;  %v10200_v5 = vsel %vm402_vm2, %v10181_v24, %v10183_v13  ;;  %v10245_v31 = vmul.f32 %v19297_v37, %v10227_v50 }
 0x6da   : > { %v10260_v52 = vadd.f32 %v10259_v4, %v10258_v27  ;;  %v10265_v58 = vadd.f32 %v10264_v28, %v10263_v12  ;;  %v10272_v23 = vadd.f32 %v10271_v9, %v10270_v62  ;;  %v10277_v7 = vadd.f32 %v10250_v32, %v10241_v42  ;;  %v19303_v27 = vld [vmem:[#allocation9 + $0x70] sm:$0xff]  ;;  %v19306_v12 = vld [vmem:[#allocation9 + $0x78] sm:$0xff] }
 0x6db   : > { %v10284_v33 = vadd.f32 %v10251_v10, %v10242_v59  ;;  %v10234_v63 = vmax.f32 %v19078_v51, %v10199_v22  ;;  %v10235_v41 = vmax.f32 %v19099_v45, %v10200_v5  ;;  %21516 = vst [vmem:[#allocation44_spill] sm:$0xff] %v19303_v27  ;;  %21517 = vst [vmem:[#allocation46_spill] sm:$0xff] %v19306_v12 }
 0x6dc   : > { %v10266_v47 = vrot.slane %v10265_v58, 2  ;;  %v10273_v34 = vrot.slane %v10272_v23, 2  ;;  %v10278_v11 = vrot.slane %v10277_v7, 4  ;;  %v10185_v8 = vpop.permute.xlu0 %10184  ;;  %v10261_v51 = vrot.slane %v10260_v52, 1 }
 0x6dd   : > { %v10285_v24 = vrot.slane %v10284_v33, 4  ;;  %v10252_v42 = vmul.f32 %v19303_v27, %v10234_v63  ;;  %v10253_v50 = vmul.f32 %v19306_v12, %v10235_v41  ;;  %v10201_v59 = vsel %vm402_vm2, %v10183_v13, %v10185_v8  ;;  %v19314_v13 = vld [vmem:[#allocation9 + $0x80] sm:$0xff] }
 0x6de   : > { %v10267_v62 = vadd.f32 %v10266_v47, %v10265_v58  ;;  %v10274_v45 = vadd.f32 %v10273_v34, %v10272_v23  ;;  %v10279_v4 = vadd.f32 %v10278_v11, %v10277_v7  ;;  %v10236_v32 = vmax.f32 %v19090_v39, %v10201_v59 }
 0x6df   : > { %v10286_v18 = vadd.f32 %v10285_v24, %v10284_v33  ;;  %v10291_v28 = vadd.f32 %v10252_v42, %v10243_v2  ;;  %v10298_v9 = vadd.f32 %v10253_v50, %v10244_v57  ;;  %v10237_v63 = vmax.f32 %v19105_v56, %v10185_v8  ;;  %v19317_v57 = vld [vmem:[#allocation9 + $0x88] sm:$0xff] }
 0x6e0   : > { %v10268_v10 = vrot.slane %v10267_v62, 1  ;;  %v10275_v22 = vrot.slane %v10274_v45, 1  ;;  %v10280_v5 = vrot.slane %v10279_v4, 2  ;;  %v19312_v27 = vpop.permute.xlu0 %10370  ;;  %v10254_v34 = vmul.f32 %v19314_v13, %v10236_v32 }
 0x6e1   : > { %v10287_v37 = vrot.slane %v10286_v18, 2  ;;  %v10292_v41 = vrot.slane %v10291_v28, 4  ;;  %v10299_v12 = vrot.slane %v10298_v9, 4  ;;  %v10262_v58 = vadd.f32 %v10261_v51, %v10260_v52 }
 0x6e2   : > { %v10269_v33 = vadd.f32 %v10268_v10, %v10267_v62  ;;  %v10281_v2 = vadd.f32 %v10280_v5, %v10279_v4  ;;  %v10255_v39 = vmul.f32 %v19317_v57, %v10237_v63  ;;  %v10305_v56 = vadd.f32 %v10254_v34, %v10245_v31 }
 0x6e3   : > { %v10288_v23 = vadd.f32 %v10287_v37, %v10286_v18  ;;  %v10293_v7 = vadd.f32 %v10292_v41, %v10291_v28  ;;  %v10300_v47 = vadd.f32 %v10299_v12, %v10298_v9  ;;  %v10276_v8 = vadd.f32 %v10275_v22, %v10274_v45 }
 0x6e4   : > { %v10321_v11 = vadd.f32 %v10269_v33, %v10262_v58  ;;  %v10282_v24 = vrot.slane %v10281_v2, 1  ;;  %v10313_v42 = vsel %vm9659_vm10, %v10255_v39, 0.0  ;;  %v10373_v50 = vpop.permute.xlu0 %10372  ;;  %v10306_v52 = vrot.slane %v10305_v56, 4 }
 0x6e5   : > { %v10289_v59 = vrot.slane %v10288_v23, 1  ;;  %v10294_v60 = vrot.slane %v10293_v7, 2  ;;  %v10301_v32 = vrot.slane %v10300_v47, 2  ;;  %v10314_v62 = vadd.f32 %v10313_v42, %v10312_v15 }
 0x6e6   : > { %v10283_v51 = vadd.f32 %v10282_v24, %v10281_v2  ;;  %v10322_v4 = vadd.f32 %v10321_v11, %v10276_v8  ;;  %v10307_v5 = vadd.f32 %v10306_v52, %v10305_v56  ;;  %v21518_v41 = vmax.f32 %v19116_v3, 0.0 }
 0x6e7   : > { %v10295_v10 = vadd.f32 %v10294_v60, %v10293_v7  ;;  %v10315_v63 = vrot.slane %v10314_v62, 4  ;;  %v10290_v18 = vadd.f32 %v10289_v59, %v10288_v23  ;;  %v10302_v12 = vadd.f32 %v10301_v32, %v10300_v47 }
 0x6e8   : > { %v10375_v37 = vpop.permute.xlu0 %10374  ;;  %v10323_v31 = vadd.f32 %v10322_v4, %v10283_v51  ;;  %v10308_v9 = vrot.slane %v10307_v5, 2  ;;  %v21519_v32 = vmax.f32 %v19132_v46, 0.0 }
 0x6e9   : > { %v10407_v45 = vsel %vm324_vm0, %v10373_v50, %v10375_v37  ;;  %v10296_v28 = vrot.slane %v10295_v10, 1  ;;  %v10316_v22 = vadd.f32 %v10315_v63, %v10314_v62  ;;  %v10303_v58 = vrot.slane %v10302_v12, 1 }
 0x6ea   : > { %v19324_v34 = vmax.f32 %v21518_v41, %v10407_v45  ;;  %v10324_v33 = vadd.f32 %v10323_v31, %v10290_v18  ;;  %v10309_v2 = vadd.f32 %v10308_v9, %v10307_v5  ;;  %v21520_v18 = vmax.f32 %v19148_v30, 0.0 }
 0x6eb   : > { %v10297_v15 = vadd.f32 %v10296_v28, %v10295_v10  ;;  %v10317_v39 = vrot.slane %v10316_v22, 2  ;;  %v10304_v23 = vadd.f32 %v10303_v58, %v10302_v12  ;;  %v21521_v28 = vmax.f32 %v19164_v16, 0.0  ;;  %v21523_v58 = vld [vmem:[#allocation69_spill] sm:$0xff] }
 0x6ec   : > { %10478 = vrot.lane.b32.xlu0 %v19324_v34, %s15369_s14  ;;  %v10377_v60 = vpop.permute.xlu0 %10376  ;;  %v10310_v7 = vrot.slane %v10309_v2, 1 }
 0x6ed   : > { %v10325_v47 = vadd.f32 %v10324_v33, %v10297_v15  ;;  %v10318_v56 = vadd.f32 %v10317_v39, %v10316_v22  ;;  %v21522_v22 = vld [vmem:[#allocation59_spill] sm:$0xff]  ;;  %v8246_v33 = vadd.f32 %v21523_v58, %v18110_v43 }
 0x6ee   : > { %v10311_v8 = vadd.f32 %v10310_v7, %v10309_v2  ;;  %v8119_v41 = vadd.f32 %v21522_v22, %v18110_v43  ;;  %v21524_v2 = vld [vmem:[#allocation73_spill] sm:$0xff]  ;;  %v21525_v7 = vmax.f32 %v19109_v38, 0.0  ;;  %v21527_v38 = vmax.f32 %v19140_v55, 0.0 }
 0x6ef   : > { %v10326_v11 = vadd.f32 %v10325_v47, %v10304_v23  ;;  %v10319_v42 = vrot.slane %v10318_v56, 1  ;;  %v9171_v15 = vmax.f32 %v8246_v33, 0.0  ;;  %v8289_v39 = vadd.f32 %v21524_v2, %v18110_v43 }
 0x6f0   : > { %v10379_v24 = vpop.permute.xlu0 %10378  ;;  %v9166_v30 = vmax.f32 %v8119_v41, 0.0  ;;  %v10406_v23 = vsel %vm324_vm0, %v19312_v27, %v10373_v50 }
 0x6f1   : > { %v10409_v3 = vsel %vm324_vm0, %v10377_v60, %v10379_v24  ;;  %v10327_v59 = vadd.f32 %v10326_v11, %v10311_v8  ;;  %v10320_v51 = vadd.f32 %v10319_v42, %v10318_v56  ;;  %v9173_v16 = vmax.f32 %v8289_v39, 0.0 }
 0x6f2   : > { %v19331_v52 = vmax.f32 %v21519_v32, %v10409_v3  ;;  %v19363_v47 = vmax.f32 %v21525_v7, %v10406_v23  ;;  %v10408_v8 = vsel %vm324_vm0, %v10375_v37, %v10377_v60  ;;  %v21526_v11 = vmax.f32 %v19124_v48, 0.0 }
 0x6f3   : > { %v10328_v4 = vsel %vm9659_vm10, %v10320_v51, 0.0  ;;  %v21528_v37 = vmax.f32 %v19156_v53, 0.0  ;;  %v21533_v39 = vmax.f32 %v19204_v6, 0.0  ;;  %v21534_v7 = vmax.f32 %v19212_v54, 0.0  ;;  %v21537_v54 = vld [vmem:[#allocation76_spill] sm:$0xff] }
 0x6f4   : > { %10482 = vrot.lane.b32.xlu0 %v19331_v52, %s15369_s14  ;;  %v10381_v62 = vpop.permute.xlu0 %10380  ;;  %v10329_v10 = vadd.f32 %v10328_v4, %v10327_v59  ;;  %v19370_v42 = vmax.f32 %v21526_v11, %v10408_v8  ;;  %v21535_v6 = vmax.f32 %v19220_v14, 0.0 }
 0x6f5   : > { %v10410_v3 = vsel %vm324_vm0, %v10379_v24, %v10381_v62  ;;  %v21529_v24 = vmax.f32 %v19172_v20, 0.0 }
 0x6f6   : > { %10330 = vadd.xlane.f32.xlu1 %v10329_v10  ;;  %v19377_v27 = vmax.f32 %v21527_v38, %v10410_v3  ;;  %v21531_v10 = vmax.f32 %v19196_v44, 0.0  ;;  %v21538_v38 = vld [vmem:[#allocation77_spill] sm:$0xff] }
 0x6f8   : > { %v10383_v5 = vpop.permute.xlu0 %10382 }
 0x6f9   : > { %v10411_v63 = vsel %vm324_vm0, %v10381_v62, %v10383_v5  ;;  %v21530_v62 = vmax.f32 %v19180_v49, 0.0 }
 0x6fa   : > { %v19339_v12 = vmax.f32 %v21520_v18, %v10411_v63 }
 0x6fc   : > { %10486 = vrot.lane.b32.xlu0 %v19339_v12, %s15369_s14  ;;  %v10385_v46 = vpop.permute.xlu0 %10384 }
 0x6fd   : > { %v10412_v50 = vsel %vm324_vm0, %v10383_v5, %v10385_v46 }
 0x6fe   : > { %v19384_v48 = vmax.f32 %v21528_v37, %v10412_v50  ;;  %v19465_v50 = vadd.f32 %v21538_v38, %v21496_v26 }
 0x700   : > { %v10387_v31 = vpop.permute.xlu0 %10386  ;;  %v21142_v37 = vmax.f32 %v19465_v50, 0.0 }
 0x701   : > { %v10413_v45 = vsel %vm324_vm0, %v10385_v46, %v10387_v31  ;;  %v19390_v32 = vmax.f32 %v21529_v24, %v10387_v31 }
 0x702   : > { %v19346_v9 = vmax.f32 %v21521_v28, %v10413_v45  ;;  %v21532_v28 = vmax.f32 %v19188_v21, 0.0 }
 0x704   : > { %10490 = vrot.lane.b32.xlu0 %v19346_v9, %s15369_s14  ;;  %v10391_v56 = vpop.permute.xlu0 %10390 }
 0x707   : > { %10388 = vrot.lane.b32.xlu1 %v9166_v30, %s15367_s25 }
 0x708   : > { %v10393_v59 = vpop.permute.xlu0 %10392 }
 0x709   : > { %v10415_v55 = vsel %vm324_vm0, %v10391_v56, %v10393_v59 }
 0x70a   : > { %v19397_v4 = vmax.f32 %v21530_v62, %v10415_v55 }
 0x70b   : > { %10398 = vrot.lane.b32.xlu1 %v9171_v15, %s15367_s25 }
 0x70c   : > { %v10395_v60 = vpop.permute.xlu0 %10394 }
 0x70d   : > { %v10416_v31 = vsel %vm324_vm0, %v10393_v59, %v10395_v60  ;;  %v19457_v59 = vadd.f32 %v21537_v54, %v21496_v26  ;;  %v21547_v54 = vld [vmem:[#allocation82_spill] sm:$0xff] }
 0x70e   : > { %v19417_v22 = vmax.f32 %v21532_v28, %v10416_v31  ;;  %v21543_v31 = vld [vmem:[#allocation87_spill] sm:$0xff]  ;;  %v19537_v38 = vadd.f32 %v21547_v54, %v18110_v43 }
 0x70f   : > { %10402 = vrot.lane.b32.xlu1 %v9173_v16, %s15367_s25  ;;  %v21135_v14 = vmax.f32 %v19457_v59, 0.0 }
 0x710   : > { %v10397_v51 = vpop.permute.xlu0 %10396 }
 0x711   : > { %v10417_v53 = vsel %vm324_vm0, %v10395_v60, %v10397_v51  ;;  %v21539_v60 = vld [vmem:[#allocation79_spill] sm:$0xff] }
 0x712   : > { %v19404_v20 = vmax.f32 %v21531_v10, %v10417_v53  ;;  %v19473_v24 = vadd.f32 %v21539_v60, %v21496_v26  ;;  %v21541_v53 = vld [vmem:[#allocation84_spill] sm:$0xff]  ;;  %v21548_v60 = vld [vmem:[#allocation86_spill] sm:$0xff] }
 0x713   : > { %10476 = vrot.lane.b32.xlu1 %v19363_v47, %s15369_s14  ;;  %v19488_v10 = vadd.f32 %v21541_v53, %v21496_v26  ;;  %v21134_v53 = vmax.f32 %v19537_v38, 0.0 }
 0x714   : > { %v10401_v18 = vpop.permute.xlu0 %10400  ;;  %v21133_v55 = vmax.f32 %v19473_v24, 0.0 }
 0x717   : > { %10480 = vrot.lane.b32.xlu1 %v19370_v42, %s15369_s14 }
 0x718   : > { %v10405_v33 = vpop.permute.xlu0 %10404 }
 0x719   : > { %v19446_v8 = vmax.f32 %v21535_v6, %v10405_v33 }
 0x71b   : > { %10484 = vrot.lane.b32.xlu1 %v19377_v27, %s15369_s14 }
 0x71f   : > { %10488 = vrot.lane.b32.xlu1 %v19384_v48, %s15369_s14 }
 0x723   : > { %10492 = vrot.lane.b32.xlu1 %v19390_v32, %s15369_s14 }
 0x727   : > { %10496 = vrot.lane.b32.xlu1 %v19397_v4, %s15369_s14 }
 0x72b   : > { %10500 = vrot.lane.b32.xlu1 %v19404_v20, %s15369_s14 }
 0x783   : > { %v10331_v5 = vpop.xlane.xlu1 %10330 }
 0x784   : > { %10333 = vst.msk [vmem:[#allocation4] sm:$0x1] %vm10332_vm13, %v10331_v5 }
 0x787   : > { %v10389_v63 = vpop.permute.xlu1 %10388 }
 0x788   : > { %v10414_v49 = vsel %vm324_vm0, %v10389_v63, %v10391_v56  ;;  %v21132_v63 = vmax.f32 %v19488_v10, 0.0 }
 0x789   : > { %v19409_v46 = vmax.f32 %v9166_v30, %v10414_v49  ;;  %v21542_v49 = vld [vmem:[#allocation85_spill] sm:$0xff] }
 0x78b   : > { %10494 = vrot.lane.b32.xlu0 %v19409_v46, %s15369_s14  ;;  %v10399_v44 = vpop.permute.xlu1 %10398 }
 0x78c   : > { %v10419_v45 = vsel %vm324_vm0, %v10399_v44, %v10401_v18  ;;  %v10418_v58 = vsel %vm324_vm0, %v10397_v51, %v10399_v44  ;;  %v21540_v51 = vld [vmem:[#allocation83_spill] sm:$0xff]  ;;  %v19504_v44 = vadd.f32 %v21543_v31, %v21496_v26  ;;  %v21550_v31 = vld [vmem:[#allocation89_spill] sm:$0xff] }
 0x78d   : > { %v19419_v41 = vmax.f32 %v9171_v15, %v10419_v45  ;;  %v19429_v23 = vmax.f32 %v21533_v39, %v10418_v58  ;;  %v19481_v62 = vadd.f32 %v21540_v51, %v21496_v26  ;;  %v21544_v58 = vld [vmem:[#allocation16_spill] sm:$0xff]  ;;  %v19544_v51 = vadd.f32 %v21548_v60, %v18110_v43 }
 0x78e   : > { %v21130_v28 = vmax.f32 %v19504_v44, 0.0 }
 0x78f   : > { %10498 = vrot.lane.b32.xlu0 %v19417_v22, %s15369_s14  ;;  %10504 = vrot.lane.b32.xlu1 %v19419_v41, %s15369_s14  ;;  %v10403_v30 = vpop.permute.xlu1 %10402  ;;  %v21140_v5 = vmax.f32 %v19481_v62, 0.0  ;;  %21549 = vst [vmem:[#allocation51_spill] sm:$0xff] %v19544_v51 }
 0x790   : > { %v10421_v2 = vsel %vm324_vm0, %v10403_v30, %v10405_v33  ;;  %v10420_v15 = vsel %vm324_vm0, %v10401_v18, %v10403_v30  ;;  %v19497_v18 = vadd.f32 %v21542_v49, %v21496_v26  ;;  %v19513_v33 = vadd.f32 %v21544_v58, %v21496_v26 }
 0x791   : > { %v19431_v21 = vmax.f32 %v9173_v16, %v10421_v2  ;;  %v19440_v56 = vmax.f32 %v21534_v7, %v10420_v15  ;;  %v21536_v16 = vld [vmem:[#allocation75_spill] sm:$0xff]  ;;  %v21545_v2 = vld [vmem:[#allocation81_spill] sm:$0xff]  ;;  %v21546_v7 = vld [vmem:[#allocation80_spill] sm:$0xff]  ;;  %v21131_v49 = vmax.f32 %v19544_v51, 0.0  ;;  %v19553_v58 = vadd.f32 %v21550_v31, %v18110_v43 }
 0x792   : > { %v19450_v11 = vadd.f32 %v21536_v16, %v21496_v26  ;;  %v21139_v45 = vmax.f32 %v19497_v18, 0.0  ;;  %v21137_v30 = vmax.f32 %v19513_v33, 0.0  ;;  %v19521_v39 = vadd.f32 %v21545_v2, %v18110_v43 }
 0x793   : > { %10502 = vrot.lane.b32.xlu0 %v19429_v23, %s15369_s14  ;;  %10508 = vrot.lane.b32.xlu1 %v19431_v21, %s15369_s14  ;;  %v19529_v6 = vadd.f32 %v21546_v7, %v18110_v43  ;;  %21551 = vst [vmem:[#allocation52_spill] sm:$0xff] %v19553_v58  ;;  %v21138_v2 = vmax.f32 %v19553_v58, 0.0  ;;  %v21552_v7 = vld [vmem:[#allocation90_spill] sm:$0xff]  ;;  %v10477_v31 = vpop.permute.xlu1 %10476 }
 0x794   : > { %v21143_v3 = vmax.f32 %v19450_v11, 0.0  ;;  %v21136_v15 = vmax.f32 %v19521_v39, 0.0  ;;  %v19561_v54 = vadd.f32 %v21552_v7, %v18110_v43 }
 0x795   : > { %v21129_v16 = vmax.f32 %v19529_v6, 0.0 }
 0x796   : > { %21553 = vst [vmem:[#allocation55_spill] sm:$0xff] %v19561_v54  ;;  %v21141_v60 = vmax.f32 %v19561_v54, 0.0 }
 0x797   : > { %10506 = vrot.lane.b32.xlu0 %v19440_v56, %s15369_s14 }
 0x79b   : > { %10510 = vrot.lane.b32.xlu0 %v19446_v8, %s15369_s14 }
 0x79f   : > { %10696 = vrot.lane.b32.xlu0 %v21143_v3, %s15367_s25 }
 0x7a3   : > { %10698 = vrot.lane.b32.xlu0 %v21135_v14, %s15367_s25 }
 0x7a7   : > { %10700 = vrot.lane.b32.xlu0 %v21142_v37, %s15367_s25 }
 0x7ab   : > { %10702 = vrot.lane.b32.xlu0 %v21133_v55, %s15367_s25 }
 0x7af   : > { %10704 = vrot.lane.b32.xlu0 %v21140_v5, %s15367_s25 }
 0x7b3   : > { %10706 = vrot.lane.b32.xlu0 %v21132_v63, %s15367_s25 }
 0x7b7   : > { %10708 = vrot.lane.b32.xlu0 %v21139_v45, %s15367_s25 }
 0x7bb   : > { %10710 = vrot.lane.b32.xlu0 %v21130_v28, %s15367_s25 }
 0x7bf   : > { %10712 = vrot.lane.b32.xlu0 %v21137_v30, %s15367_s25 }
 0x7c3   : > { %10716 = vrot.lane.b32.xlu0 %v21136_v15, %s15367_s25 }
 0x7c7   : > { %10718 = vrot.lane.b32.xlu0 %v21129_v16, %s15367_s25  ;;  %v10481_v16 = vpop.permute.xlu1 %10480 }
 0x7cb   : > { %10720 = vrot.lane.b32.xlu0 %v21134_v53, %s15367_s25  ;;  %v10485_v28 = vpop.permute.xlu1 %10484 }
 0x7cf   : > { %10722 = vrot.lane.b32.xlu0 %v21131_v49, %s15367_s25  ;;  %v10479_v49 = vpop.permute.xlu0 %10478  ;;  %v10489_v63 = vpop.permute.xlu1 %10488 }
 0x7d0   : > { %v10512_v30 = vsel %vm402_vm2, %v10477_v31, %v10479_v49 }
 0x7d1   : > { %v10546_v45 = vmax.f32 %v19363_v47, %v10512_v30 }
 0x7d3   : > { %10724 = vrot.lane.b32.xlu0 %v21138_v2, %s15367_s25  ;;  %v10483_v55 = vpop.permute.xlu0 %10482  ;;  %v10493_v53 = vpop.permute.xlu1 %10492  ;;  %v10513_v2 = vsel %vm402_vm2, %v10479_v49, %v10481_v16  ;;  %v10564_v47 = vmul.f32 %v19240_v0, %v10546_v45 }
 0x7d4   : > { %v10514_v5 = vsel %vm402_vm2, %v10481_v16, %v10483_v55  ;;  %v10547_v3 = vmax.f32 %v19324_v34, %v10513_v2 }
 0x7d5   : > { %v10548_v31 = vmax.f32 %v19370_v42, %v10514_v5 }
 0x7d6   : > { %v10565_v34 = vmul.f32 %v19247_v1, %v10547_v3 }
 0x7d7   : > { %10728 = vrot.lane.b32.xlu0 %v21141_v60, %s15367_s25  ;;  %v10487_v14 = vpop.permute.xlu0 %10486  ;;  %v10497_v15 = vpop.permute.xlu1 %10496  ;;  %v10515_v60 = vsel %vm402_vm2, %v10483_v55, %v10485_v28 }
 0x7d8   : > { %v10516_v54 = vsel %vm402_vm2, %v10485_v28, %v10487_v14  ;;  %v10549_v49 = vmax.f32 %v19331_v52, %v10515_v60  ;;  %v10517_v30 = vsel %vm402_vm2, %v10487_v14, %v10489_v63  ;;  %v10566_v14 = vmul.f32 %v19256_v40, %v10548_v31  ;;  %v21554_v31 = vld [vmem:[#allocation36_spill] sm:$0xff] }
 0x7d9   : > { %v10551_v1 = vmax.f32 %v19339_v12, %v10517_v30  ;;  %v21555_v30 = vld [vmem:[#allocation38_spill] sm:$0xff] }
 0x7db   : > { %v10491_v7 = vpop.permute.xlu0 %10490  ;;  %v10501_v51 = vpop.permute.xlu1 %10500 }
 0x7dc   : > { %v10519_v3 = vsel %vm402_vm2, %v10491_v7, %v10493_v53 }
 0x7fd   : > { %v10495_v37 = vpop.permute.xlu0 %10494 }
 0x7fe   : > { %v10520_v26 = vsel %vm402_vm2, %v10495_v37, %v10497_v15  ;;  %v10550_v37 = vmax.f32 %v19377_v27, %v10516_v54  ;;  %v10554_v27 = vmax.f32 %v19390_v32, %v10493_v53  ;;  %v10569_v53 = vmul.f32 %v19278_v17, %v10551_v1 }
 0x7ff   : > { %v10555_v58 = vmax.f32 %v19409_v46, %v10520_v26  ;;  %v10518_v26 = vsel %vm402_vm2, %v10489_v63, %v10491_v7 }
 0x801   : > { %v10573_v55 = vmul.f32 %v19244_v35, %v10555_v58  ;;  %v10499_v16 = vpop.permute.xlu0 %10498  ;;  %v10505_v46 = vpop.permute.xlu1 %10504  ;;  %v10567_v35 = vmul.f32 %v19259_v25, %v10549_v49 }
 0x802   : > { %v10521_v28 = vsel %vm402_vm2, %v10497_v15, %v10499_v16  ;;  %v10522_v2 = vsel %vm402_vm2, %v10499_v16, %v10501_v51  ;;  %v21556_v16 = vld [vmem:[#allocation43_spill] sm:$0xff] }
 0x803   : > { %v10582_v42 = vadd.f32 %v10573_v55, %v10564_v47  ;;  %v10556_v52 = vmax.f32 %v19397_v4, %v10521_v28  ;;  %v10557_v0 = vmax.f32 %v19417_v22, %v10522_v2  ;;  %v10568_v4 = vmul.f32 %v19271_v36, %v10550_v37 }
 0x804   : > { %v10552_v22 = vmax.f32 %v19384_v48, %v10518_v26 }
 0x805   : > { %v10583_v5 = vrot.slane %v10582_v42, 4  ;;  %v10574_v45 = vmul.f32 %v19265_v19, %v10556_v52  ;;  %v10575_v63 = vmul.f32 %v19268_v61, %v10557_v0  ;;  %v10503_v15 = vpop.permute.xlu0 %10502  ;;  %v10553_v19 = vmax.f32 %v19346_v9, %v10519_v3  ;;  %v10509_v49 = vpop.permute.xlu1 %10508 }
 0x806   : > { %v10523_v40 = vsel %vm402_vm2, %v10501_v51, %v10503_v15  ;;  %v10524_v25 = vsel %vm402_vm2, %v10503_v15, %v10505_v46  ;;  %v10572_v61 = vmul.f32 %v19282_v29, %v10554_v27  ;;  %v10570_v55 = vmul.f32 %v21555_v30, %v10552_v22  ;;  %v21559_v15 = vld [vmem:[#allocation46_spill] sm:$0xff] }
 0x807   : > { %v10584_v58 = vadd.f32 %v10583_v5, %v10582_v42  ;;  %v10589_v12 = vadd.f32 %v10574_v45, %v10565_v34  ;;  %v10596_v54 = vadd.f32 %v10575_v63, %v10566_v14  ;;  %v10558_v32 = vmax.f32 %v19404_v20, %v10523_v40  ;;  %v21558_v45 = vld [vmem:[#allocation44_spill] sm:$0xff] }
 0x808   : > { %v10559_v60 = vmax.f32 %v19429_v23, %v10524_v25  ;;  %v21557_v23 = vld [vmem:[#allocation45_spill] sm:$0xff]  ;;  %v10638_v14 = vsel %vm9659_vm10, %v10572_v61, 0.0 }
 0x809   : > { %v10585_v36 = vrot.slane %v10584_v58, 2  ;;  %v10590_v7 = vrot.slane %v10589_v12, 4  ;;  %v10597_v48 = vrot.slane %v10596_v54, 4  ;;  %v10576_v51 = vmul.f32 %v21554_v31, %v10558_v32  ;;  %v10507_v47 = vpop.permute.xlu0 %10506 }
 0x80a   : > { %v10577_v34 = vmul.f32 %v21556_v16, %v10559_v60  ;;  %v10525_v20 = vsel %vm402_vm2, %v10505_v46, %v10507_v47  ;;  %v10526_v17 = vsel %vm402_vm2, %v10507_v47, %v10509_v49  ;;  %v10571_v26 = vmul.f32 %v21557_v23, %v10553_v19 }
 0x80b   : > { %v10586_v9 = vadd.f32 %v10585_v36, %v10584_v58  ;;  %v10591_v37 = vadd.f32 %v10590_v7, %v10589_v12  ;;  %v10598_v28 = vadd.f32 %v10597_v48, %v10596_v54  ;;  %v10603_v2 = vadd.f32 %v10576_v51, %v10567_v35 }
 0x80c   : > { %v10610_v42 = vadd.f32 %v10577_v34, %v10568_v4  ;;  %v10560_v52 = vmax.f32 %v19419_v41, %v10525_v20  ;;  %v10561_v0 = vmax.f32 %v19440_v56, %v10526_v17 }
 0x80d   : > { %v10592_v1 = vrot.slane %v10591_v37, 2  ;;  %v10599_v27 = vrot.slane %v10598_v28, 2  ;;  %v10604_v3 = vrot.slane %v10603_v2, 4  ;;  %v10511_v5 = vpop.permute.xlu0 %10510  ;;  %v10587_v40 = vrot.slane %v10586_v9, 1 }
 0x80e   : > { %v10611_v46 = vrot.slane %v10610_v42, 4  ;;  %v10578_v63 = vmul.f32 %v21558_v45, %v10560_v52  ;;  %v10579_v22 = vmul.f32 %v21559_v15, %v10561_v0  ;;  %v10527_v35 = vsel %vm402_vm2, %v10509_v49, %v10511_v5 }
 0x80f   : > { %v10593_v25 = vadd.f32 %v10592_v1, %v10591_v37  ;;  %v10600_v4 = vadd.f32 %v10599_v27, %v10598_v28  ;;  %v10605_v58 = vadd.f32 %v10604_v3, %v10603_v2  ;;  %v10562_v54 = vmax.f32 %v19431_v21, %v10527_v35 }
 0x810   : > { %v10612_v41 = vadd.f32 %v10611_v46, %v10610_v42  ;;  %v10617_v12 = vadd.f32 %v10578_v63, %v10569_v53  ;;  %v10624_v56 = vadd.f32 %v10579_v22, %v10570_v55  ;;  %v10563_v60 = vmax.f32 %v19446_v8, %v10511_v5 }
 0x811   : > { %v10594_v32 = vrot.slane %v10593_v25, 1  ;;  %v10601_v19 = vrot.slane %v10600_v4, 1  ;;  %v10606_v61 = vrot.slane %v10605_v58, 2  ;;  %v10697_v36 = vpop.permute.xlu0 %10696  ;;  %v10580_v51 = vmul.f32 %v19314_v13, %v10562_v54 }
 0x812   : > { %v10613_v7 = vrot.slane %v10612_v41, 2  ;;  %v10618_v48 = vrot.slane %v10617_v12, 4  ;;  %v10625_v31 = vrot.slane %v10624_v56, 4  ;;  %v10588_v49 = vadd.f32 %v10587_v40, %v10586_v9 }
 0x813   : > { %v10595_v47 = vadd.f32 %v10594_v32, %v10593_v25  ;;  %v10607_v30 = vadd.f32 %v10606_v61, %v10605_v58  ;;  %v10581_v16 = vmul.f32 %v19317_v57, %v10563_v60  ;;  %v10631_v21 = vadd.f32 %v10580_v51, %v10571_v26 }
 0x814   : > { %v10614_v53 = vadd.f32 %v10613_v7, %v10612_v41  ;;  %v10619_v55 = vadd.f32 %v10618_v48, %v10617_v12  ;;  %v10626_v34 = vadd.f32 %v10625_v31, %v10624_v56  ;;  %v10602_v20 = vadd.f32 %v10601_v19, %v10600_v4 }
 0x815   : > { %v10647_v17 = vadd.f32 %v10595_v47, %v10588_v49  ;;  %v10608_v37 = vrot.slane %v10607_v30, 1  ;;  %v10639_v8 = vsel %vm9659_vm10, %v10581_v16, 0.0  ;;  %v19624_v28 = vpop.permute.xlu0 %10698  ;;  %v10632_v13 = vrot.slane %v10631_v21, 4 }
 0x816   : > { %v10615_v2 = vrot.slane %v10614_v53, 1  ;;  %v10620_v23 = vrot.slane %v10619_v55, 2  ;;  %v10627_v42 = vrot.slane %v10626_v34, 2  ;;  %v10640_v52 = vadd.f32 %v10639_v8, %v10638_v14 }
 0x817   : > { %v10609_v9 = vadd.f32 %v10608_v37, %v10607_v30  ;;  %v10732_v57 = vsel %vm324_vm0, %v10697_v36, %v19624_v28  ;;  %v10648_v0 = vadd.f32 %v10647_v17, %v10602_v20  ;;  %v10633_v27 = vadd.f32 %v10632_v13, %v10631_v21 }
 0x818   : > { %v10621_v1 = vadd.f32 %v10620_v23, %v10619_v55  ;;  %v21560_v26 = vmax.f32 %v19450_v11, 0.0  ;;  %v10641_v5 = vrot.slane %v10640_v52, 4  ;;  %v10616_v45 = vadd.f32 %v10615_v2, %v10614_v53  ;;  %v21565_v23 = vld [vmem:[#allocation78_spill] sm:$0xff] }
 0x819   : > { %v10701_v46 = vpop.permute.xlu0 %10700  ;;  %v10628_v63 = vadd.f32 %v10627_v42, %v10626_v34  ;;  %v10649_v15 = vadd.f32 %v10648_v0, %v10609_v9  ;;  %v10634_v14 = vrot.slane %v10633_v27, 2  ;;  %v21561_v19 = vmax.f32 %v19465_v50, 0.0  ;;  %v21566_v9 = vld [vmem:[#allocation88_spill] sm:$0xff] }
 0x81a   : > { %v19630_v3 = vmax.f32 %v21560_v26, %v10732_v57  ;;  %v10622_v22 = vrot.slane %v10621_v1, 1  ;;  %v10642_v35 = vadd.f32 %v10641_v5, %v10640_v52  ;;  %v21562_v50 = vmax.f32 %v19481_v62, 0.0 }
 0x81b   : > { %v10629_v40 = vrot.slane %v10628_v63, 1  ;;  %v10650_v25 = vadd.f32 %v10649_v15, %v10616_v45  ;;  %v10635_v58 = vadd.f32 %v10634_v14, %v10633_v27  ;;  %v21563_v17 = vmax.f32 %v19497_v18, 0.0 }
 0x81c   : > { %10802 = vrot.lane.b32.xlu0 %v19630_v3, %s15369_s14  ;;  %v10623_v4 = vadd.f32 %v10622_v22, %v10621_v1  ;;  %v10643_v12 = vrot.slane %v10642_v35, 2  ;;  %v21564_v62 = vmax.f32 %v19513_v33, 0.0  ;;  %v8332_v42 = vadd.f32 %v21565_v23, %v18110_v43  ;;  %v21567_v33 = vld [vmem:[#allocation23_spill] sm:$0xff]  ;;  %v21582_v23 = vld [vmem:[#allocation17_spill] sm:$0xff] }
 0x81d   : > { %v10703_v41 = vpop.permute.xlu0 %10702  ;;  %v10630_v56 = vadd.f32 %v10629_v40, %v10628_v63  ;;  %v10636_v54 = vrot.slane %v10635_v58, 1  ;;  %v8461_v18 = vadd.f32 %v21566_v9, %v18110_v43  ;;  %v8504_v27 = vadd.f32 %v21567_v33, %v18110_v43  ;;  %v21583_v9 = vld [vmem:[#allocation15_spill] sm:$0xff] }
 0x81e   : > { %v10734_v11 = vsel %vm324_vm0, %v10701_v46, %v10703_v41  ;;  %v10651_v32 = vadd.f32 %v10650_v25, %v10623_v4  ;;  %v10644_v60 = vadd.f32 %v10643_v12, %v10642_v35  ;;  %v9175_v52 = vmax.f32 %v8332_v42, 0.0 }
 0x81f   : > { %v19637_v61 = vmax.f32 %v21561_v19, %v10734_v11  ;;  %v10637_v36 = vadd.f32 %v10636_v54, %v10635_v58  ;;  %v9181_v1 = vmax.f32 %v8461_v18, 0.0  ;;  %v21568_v26 = vmax.f32 %v19521_v39, 0.0 }
 0x820   : > { %v10652_v7 = vadd.f32 %v10651_v32, %v10630_v56  ;;  %v10645_v31 = vrot.slane %v10644_v60, 1  ;;  %v9183_v63 = vmax.f32 %v8504_v27, 0.0  ;;  %v10733_v15 = vsel %vm324_vm0, %v19624_v28, %v10701_v46  ;;  %v21585_v27 = vld [vmem:[#allocation94_spill] sm:$0xff] }
 0x821   : > { %10806 = vrot.lane.b32.xlu0 %v19637_v61, %s15369_s14  ;;  %v10705_v48 = vpop.permute.xlu0 %10704  ;;  %v21569_v35 = vmax.f32 %v19457_v59, 0.0  ;;  %v21570_v40 = vmax.f32 %v19537_v38, 0.0  ;;  %v21571_v28 = vmax.f32 %v19473_v24, 0.0  ;;  %v21572_v38 = vmax.f32 %v19488_v10, 0.0 }
 0x822   : > { %v10653_v51 = vadd.f32 %v10652_v7, %v10637_v36  ;;  %v10646_v49 = vadd.f32 %v10645_v31, %v10644_v60  ;;  %v10735_v4 = vsel %vm324_vm0, %v10703_v41, %v10705_v48  ;;  %v21573_v12 = vmax.f32 %v19504_v44, 0.0 }
 0x823   : > { %v19683_v39 = vmax.f32 %v21569_v35, %v10733_v15  ;;  %v19696_v46 = vmax.f32 %v21571_v28, %v10735_v4  ;;  %v21574_v36 = vmax.f32 %v19529_v6, 0.0  ;;  %v21588_v4 = vld [vmem:[#allocation97_spill] sm:$0xff] }
 0x824   : > { %v10654_v30 = vsel %vm9659_vm10, %v10646_v49, 0.0 }
 0x825   : > { %v10707_v47 = vpop.permute.xlu0 %10706  ;;  %v10655_v53 = vadd.f32 %v10654_v30, %v10653_v51 }
 0x826   : > { %v10736_v16 = vsel %vm324_vm0, %v10705_v48, %v10707_v47  ;;  %v21575_v48 = vld [vmem:[#allocation52_spill] sm:$0xff] }
 0x827   : > { %v19645_v55 = vmax.f32 %v21562_v50, %v10736_v16  ;;  %10656 = vadd.xlane.f32.xlu1 %v10655_v53  ;;  %v21576_v31 = vmax.f32 %v21575_v48, 0.0  ;;  %v21577_v53 = vld [vmem:[#allocation51_spill] sm:$0xff] }
 0x828   : > { %v21578_v6 = vmax.f32 %v21577_v53, 0.0  ;;  %v21595_v53 = vld [vmem:[#allocation99_spill] sm:$0xff] }
 0x829   : > { %10810 = vrot.lane.b32.xlu0 %v19645_v55, %s15369_s14  ;;  %v10709_v34 = vpop.permute.xlu0 %10708 }
 0x82a   : > { %v10737_v59 = vsel %vm324_vm0, %v10707_v47, %v10709_v34 }
 0x82b   : > { %v19703_v58 = vmax.f32 %v21572_v38, %v10737_v59  ;;  %v21589_v38 = vld [vmem:[#allocation102_spill] sm:$0xff] }
 0x82d   : > { %v10711_v21 = vpop.permute.xlu0 %10710 }
 0x82e   : > { %v10738_v20 = vsel %vm324_vm0, %v10709_v34, %v10711_v21  ;;  %v21579_v34 = vld [vmem:[#allocation55_spill] sm:$0xff] }
 0x82f   : > { %v19652_v37 = vmax.f32 %v21563_v17, %v10738_v20 }
 0x831   : > { %10814 = vrot.lane.b32.xlu0 %v19652_v37, %s15369_s14  ;;  %v10713_v8 = vpop.permute.xlu0 %10712 }
 0x832   : > { %v19658_v2 = vmax.f32 %v21564_v62, %v10713_v8  ;;  %v10739_v41 = vsel %vm324_vm0, %v10711_v21, %v10713_v8  ;;  %v21580_v21 = vmax.f32 %v21579_v34, 0.0  ;;  %v21581_v62 = vld [vmem:[#allocation91_spill] sm:$0xff] }
 0x833   : > { %v19710_v11 = vmax.f32 %v21573_v12, %v10739_v41  ;;  %v19754_v42 = vadd.f32 %v21582_v23, %v21581_v62  ;;  %v19762_v18 = vadd.f32 %v21583_v9, %v21581_v62  ;;  %v19803_v28 = vadd.f32 %v21588_v4, %v21581_v62  ;;  %v21590_v12 = vld [vmem:[#allocation92_spill] sm:$0xff] }
 0x834   : > { %v19811_v41 = vadd.f32 %v21589_v38, %v21581_v62 }
 0x835   : > { %10818 = vrot.lane.b32.xlu0 %v19658_v2, %s15369_s14  ;;  %v10717_v13 = vpop.permute.xlu0 %10716  ;;  %v21150_v59 = vmax.f32 %v19803_v28, 0.0 }
 0x838   : > { %10714 = vrot.lane.b32.xlu1 %v9175_v52, %s15367_s25 }
 0x839   : > { %v10719_v57 = vpop.permute.xlu0 %10718 }
 0x83a   : > { %v10741_v0 = vsel %vm324_vm0, %v10717_v13, %v10719_v57 }
 0x83b   : > { %v19672_v5 = vmax.f32 %v21568_v26, %v10741_v0  ;;  %v21584_v0 = vld [vmem:[#allocation18_spill] sm:$0xff]  ;;  %v19779_v26 = vadd.f32 %v21585_v27, %v21581_v62 }
 0x83c   : > { %10726 = vrot.lane.b32.xlu1 %v9181_v1, %s15367_s25 }
 0x83d   : > { %10822 = vrot.lane.b32.xlu0 %v19672_v5, %s15369_s14  ;;  %v10721_v45 = vpop.permute.xlu0 %10720 }
 0x83e   : > { %v10742_v19 = vsel %vm324_vm0, %v10719_v57, %v10721_v45  ;;  %v21159_v57 = vmax.f32 %v19762_v18, 0.0 }
 0x83f   : > { %v19723_v7 = vmax.f32 %v21574_v36, %v10742_v19 }
 0x840   : > { %10730 = vrot.lane.b32.xlu1 %v9183_v63, %s15367_s25 }
 0x841   : > { %v10723_v22 = vpop.permute.xlu0 %10722 }
 0x842   : > { %v10743_v14 = vsel %vm324_vm0, %v10721_v45, %v10723_v22  ;;  %v21156_v45 = vmax.f32 %v19779_v26, 0.0 }
 0x843   : > { %v19687_v25 = vmax.f32 %v21570_v40, %v10743_v14 }
 0x844   : > { %10804 = vrot.lane.b32.xlu1 %v19683_v39, %s15369_s14 }
 0x845   : > { %10826 = vrot.lane.b32.xlu0 %v19687_v25, %s15369_s14  ;;  %v10725_v54 = vpop.permute.xlu0 %10724 }
 0x846   : > { %v10744_v49 = vsel %vm324_vm0, %v10723_v22, %v10725_v54  ;;  %v21587_v22 = vld [vmem:[#allocation95_spill] sm:$0xff] }
 0x847   : > { %v19737_v50 = vmax.f32 %v21578_v6, %v10744_v49  ;;  %v19794_v14 = vadd.f32 %v21587_v22, %v21581_v62  ;;  %v19858_v6 = vadd.f32 %v21595_v53, %v18110_v43 }
 0x848   : > { %10808 = vrot.lane.b32.xlu1 %v19696_v46, %s15369_s14 }
 0x849   : > { %v10729_v47 = vpop.permute.xlu0 %10728  ;;  %v21152_v40 = vmax.f32 %v19794_v14, 0.0 }
 0x84c   : > { %10812 = vrot.lane.b32.xlu1 %v19703_v58, %s15369_s14 }
 0x850   : > { %10816 = vrot.lane.b32.xlu1 %v19710_v11, %s15369_s14 }
 0x8b4   : > { %v10657_v24 = vpop.xlane.xlu1 %10656 }
 0x8b5   : > { %10659 = vst.msk [vmem:[#allocation4] sm:$0x1] %vm10658_vm14, %v10657_v24  ;;  %v19818_v24 = vadd.f32 %v21590_v12, %v18110_v43 }
 0x8b7   : > { %v21158_v19 = vmax.f32 %v19818_v24, 0.0 }
 0x8b8   : > { %v10715_v56 = vpop.permute.xlu1 %10714 }
 0x8b9   : > { %v10740_v10 = vsel %vm324_vm0, %v10715_v56, %v10717_v13  ;;  %v21148_v56 = vmax.f32 %v19811_v41, 0.0 }
 0x8ba   : > { %v19715_v32 = vmax.f32 %v9175_v52, %v10740_v10  ;;  %v9112_v52 = vmax.f32 %v19754_v42, 0.0  ;;  %v21591_v10 = vld [vmem:[#allocation19_spill] sm:$0xff] }
 0x8bc   : > { %10820 = vrot.lane.b32.xlu1 %v19715_v32, %s15369_s14  ;;  %v10727_v44 = vpop.permute.xlu1 %10726 }
 0x8bd   : > { %v10745_v60 = vsel %vm324_vm0, %v10725_v54, %v10727_v44  ;;  %v10746_v17 = vsel %vm324_vm0, %v10727_v44, %v10729_v47  ;;  %v19826_v54 = vadd.f32 %v21591_v10, %v18110_v43 }
 0x8be   : > { %v19727_v51 = vmax.f32 %v21576_v31, %v10745_v60  ;;  %v19748_v8 = vmax.f32 %v9181_v1, %v10746_v17  ;;  %v19771_v1 = vadd.f32 %v21584_v0, %v21581_v62  ;;  %v21592_v60 = vld [vmem:[#allocation93_spill] sm:$0xff]  ;;  %v21593_v31 = vld [vmem:[#allocation98_spill] sm:$0xff]  ;;  %v21596_v17 = vld [vmem:[#allocation104_spill] sm:$0xff]  ;;  %v10803_v0 = vpop.permute.xlu0 %10802 }
 0x8bf   : > { %v21160_v44 = vmax.f32 %v19826_v54, 0.0  ;;  %v19835_v36 = vadd.f32 %v21592_v60, %v18110_v43  ;;  %v19843_v49 = vadd.f32 %v21593_v31, %v18110_v43  ;;  %v19867_v23 = vadd.f32 %v21596_v17, %v18110_v43 }
 0x8c0   : > { %10824 = vrot.lane.b32.xlu1 %v19723_v7, %s15369_s14  ;;  %10830 = vrot.lane.b32.xlu0 %v19727_v51, %s15369_s14  ;;  %v10731_v30 = vpop.permute.xlu1 %10730  ;;  %v21183_v33 = vmax.f32 %v19771_v1, 0.0 }
 0x8c1   : > { %v10747_v16 = vsel %vm324_vm0, %v10729_v47, %v10731_v30  ;;  %v19756_v13 = vmax.f32 %v9183_v63, %v10731_v30  ;;  %v21586_v63 = vld [vmem:[#allocation96_spill] sm:$0xff]  ;;  %v21157_v48 = vmax.f32 %v19835_v36, 0.0  ;;  %v21155_v47 = vmax.f32 %v19843_v49, 0.0  ;;  %21597 = vst [vmem:[#allocation42_spill] sm:$0xff] %v19867_v23 }
 0x8c2   : > { %v19741_v20 = vmax.f32 %v21580_v21, %v10747_v16  ;;  %v19787_v15 = vadd.f32 %v21586_v63, %v21581_v62  ;;  %v21594_v30 = vld [vmem:[#allocation100_spill] sm:$0xff]  ;;  %v21151_v21 = vmax.f32 %v19858_v6, 0.0  ;;  %v21149_v9 = vmax.f32 %v19867_v23, 0.0  ;;  %v10807_v63 = vpop.permute.xlu0 %10806 }
 0x8c3   : > { %v19851_v16 = vadd.f32 %v21594_v30, %v18110_v43 }
 0x8c4   : > { %10828 = vrot.lane.b32.xlu1 %v19737_v50, %s15369_s14  ;;  %10834 = vrot.lane.b32.xlu0 %v19741_v20, %s15369_s14  ;;  %v21154_v35 = vmax.f32 %v19787_v15, 0.0  ;;  %v10805_v27 = vpop.permute.xlu1 %10804 }
 0x8c5   : > { %v21153_v34 = vmax.f32 %v19851_v16, 0.0  ;;  %v10838_v30 = vsel %vm402_vm2, %v10803_v0, %v10805_v27  ;;  %v10839_v17 = vsel %vm402_vm2, %v10805_v27, %v10807_v63 }
 0x8c6   : > { %v10811_v22 = vpop.permute.xlu0 %10810 }
 0x8c8   : > { %10832 = vrot.lane.b32.xlu1 %v19748_v8, %s15369_s14  ;;  %v10809_v4 = vpop.permute.xlu1 %10808 }
 0x8ca   : > { %v10815_v38 = vpop.permute.xlu0 %10814 }
 0x8cc   : > { %10836 = vrot.lane.b32.xlu1 %v19756_v13, %s15369_s14  ;;  %v10813_v12 = vpop.permute.xlu1 %10812 }
 0x8cd   : > { %v10842_v27 = vsel %vm402_vm2, %v10811_v22, %v10813_v12 }
 0x8ce   : > { %v10819_v10 = vpop.permute.xlu0 %10818 }
 0x8cf   : > { %v10880_v31 = vmax.f32 %v19658_v2, %v10819_v10  ;;  %v10873_v2 = vmax.f32 %v19683_v39, %v10839_v17 }
 0x8d0   : > { %11022 = vrot.lane.b32.xlu1 %v9112_v52, %s15367_s25  ;;  %v10817_v60 = vpop.permute.xlu1 %10816 }
 0x8d2   : > { %v10823_v53 = vpop.permute.xlu0 %10822 }
 0x8d4   : > { %11024 = vrot.lane.b32.xlu1 %v21159_v57, %s15367_s25 }
 0x8d8   : > { %11026 = vrot.lane.b32.xlu1 %v21183_v33, %s15367_s25 }
 0x8dc   : > { %11028 = vrot.lane.b32.xlu1 %v21156_v45, %s15367_s25  ;;  %v19887_v45 = vld [vmem:[#allocation9] sm:$0xff] }
 0x8dd   : > { %21598 = vst [vmem:[#allocation47_spill] sm:$0xff] %v19887_v45 }
 0x8e0   : > { %11030 = vrot.lane.b32.xlu1 %v21154_v35, %s15367_s25  ;;  %v10841_v35 = vsel %vm402_vm2, %v10809_v4, %v10811_v22 }
 0x8e4   : > { %11032 = vrot.lane.b32.xlu1 %v21152_v40, %s15367_s25 }
 0x8e8   : > { %11034 = vrot.lane.b32.xlu1 %v21150_v59, %s15367_s25 }
 0x8ec   : > { %11036 = vrot.lane.b32.xlu1 %v21148_v56, %s15367_s25  ;;  %v10872_v56 = vmax.f32 %v19630_v3, %v10838_v30  ;;  %v19903_v30 = vld [vmem:[#allocation9 + $0x8] sm:$0xff] }
 0x8ed   : > { %21600 = vst [vmem:[#allocation48_spill] sm:$0xff] %v19903_v30 }
 0x8ee   : > { %v10890_v3 = vmul.f32 %v19887_v45, %v10872_v56 }
 0x8f0   : > { %11040 = vrot.lane.b32.xlu1 %v21158_v19, %s15367_s25 }
 0x8f4   : > { %11042 = vrot.lane.b32.xlu1 %v21160_v44, %s15367_s25 }
 0x8f8   : > { %11044 = vrot.lane.b32.xlu1 %v21157_v48, %s15367_s25  ;;  %v15071_v48 = vld [vmem:[#allocation9 + $0x20] sm:$0xff] }
 0x8fc   : > { %11046 = vrot.lane.b32.xlu1 %v21155_v47, %s15367_s25 }
 0x900   : > { %11048 = vrot.lane.b32.xlu1 %v21153_v34, %s15367_s25  ;;  %v10827_v34 = vpop.permute.xlu0 %10826 }
 0x904   : > { %11050 = vrot.lane.b32.xlu1 %v21151_v21, %s15367_s25  ;;  %v10898_v21 = vmul.f32 %v19282_v29, %v10880_v31 }
 0x906   : > { %v19895_v31 = vsel %vm9659_vm10, %v10898_v21, 0.0  ;;  %v19906_v21 = vld [vmem:[#allocation9 + $0x10] sm:$0xff] }
 0x907   : > { %21601 = vst [vmem:[#allocation53_spill] sm:$0xff] %v19906_v21 }
 0x908   : > { %11054 = vrot.lane.b32.xlu1 %v21149_v9, %s15367_s25  ;;  %v10840_v9 = vsel %vm402_vm2, %v10807_v63, %v10809_v4  ;;  %v19891_v63 = vld [vmem:[#allocation9 + $0x48] sm:$0xff] }
 0x909   : > { %v10874_v0 = vmax.f32 %v19637_v61, %v10840_v9  ;;  %21599 = vst [vmem:[#allocation49_spill] sm:$0xff] %v19891_v63 }
 0x92e   : > { %v10821_v59 = vpop.permute.xlu1 %10820 }
 0x92f   : > { %v10846_v40 = vsel %vm402_vm2, %v10821_v59, %v10823_v53 }
 0x930   : > { %v10881_v47 = vmax.f32 %v19715_v32, %v10846_v40  ;;  %v10875_v32 = vmax.f32 %v19696_v46, %v10841_v35  ;;  %v10843_v40 = vsel %vm402_vm2, %v10813_v12, %v10815_v38  ;;  %v10892_v46 = vmul.f32 %v19906_v21, %v10874_v0 }
 0x931   : > { %v10876_v35 = vmax.f32 %v19645_v55, %v10842_v27  ;;  %v10845_v12 = vsel %vm402_vm2, %v10817_v60, %v10819_v10  ;;  %v10877_v0 = vmax.f32 %v19703_v58, %v10843_v40 }
 0x932   : > { %v10899_v29 = vmul.f32 %v19891_v63, %v10881_v47  ;;  %v10825_v59 = vpop.permute.xlu1 %10824  ;;  %v10831_v56 = vpop.permute.xlu0 %10830  ;;  %v10891_v47 = vmul.f32 %v19903_v30, %v10873_v2  ;;  %v21654_v30 = vld [vmem:[#allocation123_spill] sm:$0xff] }
 0x933   : > { %v10847_v39 = vsel %vm402_vm2, %v10823_v53, %v10825_v59  ;;  %v10848_v61 = vsel %vm402_vm2, %v10825_v59, %v10827_v34  ;;  %v10844_v53 = vsel %vm402_vm2, %v10815_v38, %v10817_v60  ;;  %v15070_v59 = vld [vmem:[#allocation9 + $0x18] sm:$0xff] }
 0x934   : > { %v10908_v9 = vadd.f32 %v10899_v29, %v10890_v3  ;;  %v10882_v22 = vmax.f32 %v19672_v5, %v10847_v39  ;;  %v10883_v4 = vmax.f32 %v19723_v7, %v10848_v61  ;;  %v19912_v3 = vld [vmem:[#allocation9 + $0x50] sm:$0xff]  ;;  %v19915_v7 = vld [vmem:[#allocation9 + $0x58] sm:$0xff]  ;;  %v10893_v39 = vmul.f32 %v15070_v59, %v10875_v32 }
 0x935   : > { %21602 = vst [vmem:[#allocation58_spill] sm:$0xff] %v19912_v3  ;;  %21603 = vst [vmem:[#allocation128_spill] sm:$0xff] %v19915_v7  ;;  %v10878_v19 = vmax.f32 %v19652_v37, %v10844_v53 }
 0x936   : > { %v10909_v17 = vrot.slane %v10908_v9, 4  ;;  %v10900_v5 = vmul.f32 %v19912_v3, %v10882_v22  ;;  %v10901_v29 = vmul.f32 %v19915_v7, %v10883_v4  ;;  %v10829_v2 = vpop.permute.xlu1 %10828  ;;  %v10894_v22 = vmul.f32 %v15071_v48, %v10876_v35  ;;  %v10835_v40 = vpop.permute.xlu0 %10834 }
 0x937   : > { %v10849_v55 = vsel %vm402_vm2, %v10827_v34, %v10829_v2  ;;  %v10850_v38 = vsel %vm402_vm2, %v10829_v2, %v10831_v56  ;;  %v10879_v4 = vmax.f32 %v19710_v11, %v10845_v12  ;;  %v15072_v34 = vld [vmem:[#allocation9 + $0x60] sm:$0xff] }
 0x938   : > { %v10910_v27 = vadd.f32 %v10909_v17, %v10908_v9  ;;  %v10915_v10 = vadd.f32 %v10900_v5, %v10891_v47  ;;  %v10922_v60 = vadd.f32 %v10901_v29, %v10892_v46  ;;  %v10884_v61 = vmax.f32 %v19687_v25, %v10849_v55  ;;  %v15073_v9 = vld [vmem:[#allocation9 + $0x28] sm:$0xff] }
 0x939   : > { %v10885_v57 = vmax.f32 %v19737_v50, %v10850_v38  ;;  %v10895_v47 = vmul.f32 %v15073_v9, %v10877_v0  ;;  %v15074_v46 = vld [vmem:[#allocation9 + $0x68] sm:$0xff]  ;;  %v15075_v50 = vld [vmem:[#allocation9 + $0x30] sm:$0xff]  ;;  %v15076_v38 = vld [vmem:[#allocation9 + $0x38] sm:$0xff] }
 0x93a   : > { %v10911_v32 = vrot.slane %v10910_v27, 2  ;;  %v10916_v59 = vrot.slane %v10915_v10, 4  ;;  %v10923_v58 = vrot.slane %v10922_v60, 4  ;;  %v10902_v44 = vmul.f32 %v15072_v34, %v10884_v61  ;;  %v10833_v2 = vpop.permute.xlu1 %10832 }
 0x93b   : > { %v10903_v17 = vmul.f32 %v15074_v46, %v10885_v57  ;;  %v10851_v25 = vsel %vm402_vm2, %v10831_v56, %v10833_v2  ;;  %v10852_v48 = vsel %vm402_vm2, %v10833_v2, %v10835_v40  ;;  %v10896_v12 = vmul.f32 %v15075_v50, %v10878_v19  ;;  %v15077_v46 = vld [vmem:[#allocation9 + $0x70] sm:$0xff] }
 0x93c   : > { %v10912_v37 = vadd.f32 %v10911_v32, %v10910_v27  ;;  %v10917_v35 = vadd.f32 %v10916_v59, %v10915_v10  ;;  %v10924_v11 = vadd.f32 %v10923_v58, %v10922_v60  ;;  %v10929_v53 = vadd.f32 %v10902_v44, %v10893_v39  ;;  %v15078_v27 = vld [vmem:[#allocation9 + $0x78] sm:$0xff] }
 0x93d   : > { %v10936_v5 = vadd.f32 %v10903_v17, %v10894_v22  ;;  %v10886_v29 = vmax.f32 %v19727_v51, %v10851_v25  ;;  %v10887_v55 = vmax.f32 %v19748_v8, %v10852_v48  ;;  %v10897_v61 = vmul.f32 %v15076_v38, %v10879_v4  ;;  %v15079_v38 = vld [vmem:[#allocation9 + $0x80] sm:$0xff] }
 0x93e   : > { %v10918_v0 = vrot.slane %v10917_v35, 2  ;;  %v10925_v34 = vrot.slane %v10924_v11, 2  ;;  %v10930_v57 = vrot.slane %v10929_v53, 4  ;;  %v10837_v9 = vpop.permute.xlu1 %10836  ;;  %v10913_v39 = vrot.slane %v10912_v37, 1 }
 0x93f   : > { %v10937_v56 = vrot.slane %v10936_v5, 4  ;;  %v10904_v2 = vmul.f32 %v15077_v46, %v10886_v29  ;;  %v10905_v10 = vmul.f32 %v15078_v27, %v10887_v55  ;;  %v10853_v44 = vsel %vm402_vm2, %v10835_v40, %v10837_v9 }
 0x940   : > { %v10919_v19 = vadd.f32 %v10918_v0, %v10917_v35  ;;  %v10926_v60 = vadd.f32 %v10925_v34, %v10924_v11  ;;  %v10931_v22 = vadd.f32 %v10930_v57, %v10929_v53  ;;  %v10888_v4 = vmax.f32 %v19741_v20, %v10853_v44  ;;  %v15080_v53 = vld [vmem:[#allocation9 + $0x88] sm:$0xff] }
 0x941   : > { %v10938_v51 = vadd.f32 %v10937_v56, %v10936_v5  ;;  %v10943_v32 = vadd.f32 %v10904_v2, %v10895_v47  ;;  %v10950_v8 = vadd.f32 %v10905_v10, %v10896_v12  ;;  %v10889_v25 = vmax.f32 %v19756_v13, %v10837_v9 }
 0x942   : > { %v10920_v59 = vrot.slane %v10919_v19, 1  ;;  %v10927_v58 = vrot.slane %v10926_v60, 1  ;;  %v10932_v17 = vrot.slane %v10931_v22, 2  ;;  %v11023_v48 = vpop.permute.xlu1 %11022  ;;  %v10906_v40 = vmul.f32 %v15079_v38, %v10888_v4  ;;  %v21606_v38 = vld [vmem:[#allocation110_spill] sm:$0xff] }
 0x943   : > { %v10939_v50 = vrot.slane %v10938_v51, 2  ;;  %v10944_v29 = vrot.slane %v10943_v32, 4  ;;  %v10951_v55 = vrot.slane %v10950_v8, 4  ;;  %v10914_v46 = vadd.f32 %v10913_v39, %v10912_v37 }
 0x944   : > { %v10921_v35 = vadd.f32 %v10920_v59, %v10919_v19  ;;  %v10933_v11 = vadd.f32 %v10932_v17, %v10931_v22  ;;  %v10907_v5 = vmul.f32 %v15080_v53, %v10889_v25  ;;  %v10957_v20 = vadd.f32 %v10906_v40, %v10897_v61  ;;  %v21604_v61 = vld [vmem:[#allocation107_spill] sm:$0xff] }
 0x945   : > { %v10940_v47 = vadd.f32 %v10939_v50, %v10938_v51  ;;  %v10945_v12 = vadd.f32 %v10944_v29, %v10943_v32  ;;  %v10952_v0 = vadd.f32 %v10951_v55, %v10950_v8  ;;  %v10928_v34 = vadd.f32 %v10927_v58, %v10926_v60 }
 0x946   : > { %v10973_v57 = vadd.f32 %v10921_v35, %v10914_v46  ;;  %v10934_v56 = vrot.slane %v10933_v11, 1  ;;  %v10965_v13 = vsel %vm9659_vm10, %v10907_v5, 0.0  ;;  %v19933_v9 = vpop.permute.xlu1 %11024  ;;  %v10958_v44 = vrot.slane %v10957_v20, 4 }
 0x947   : > { %v10941_v2 = vrot.slane %v10940_v47, 1  ;;  %v10946_v27 = vrot.slane %v10945_v12, 2  ;;  %v10953_v10 = vrot.slane %v10952_v0, 2  ;;  %v10966_v39 = vadd.f32 %v10965_v13, %v19895_v31 }
 0x948   : > { %v10935_v37 = vadd.f32 %v10934_v56, %v10933_v11  ;;  %v11058_v19 = vsel %vm324_vm0, %v11023_v48, %v19933_v9  ;;  %v10974_v22 = vadd.f32 %v10973_v57, %v10928_v34  ;;  %v19940_v60 = vadd.f32 %v21604_v61, %v21581_v62 }
 0x949   : > { %v10947_v51 = vadd.f32 %v10946_v27, %v10945_v12  ;;  %v10959_v32 = vadd.f32 %v10958_v44, %v10957_v20  ;;  %v19944_v8 = vmax.f32 %v9112_v52, %v11058_v19  ;;  %v10967_v4 = vrot.slane %v10966_v39, 4  ;;  %v21607_v12 = vld [vmem:[#allocation111_spill] sm:$0xff]  ;;  %v21608_v27 = vld [vmem:[#allocation113_spill] sm:$0xff]  ;;  %v21609_v19 = vld [vmem:[#allocation20_spill] sm:$0xff] }
 0x94a   : > { %v10942_v59 = vadd.f32 %v10941_v2, %v10940_v47  ;;  %v10954_v58 = vadd.f32 %v10953_v10, %v10952_v0  ;;  %v10975_v17 = vadd.f32 %v10974_v22, %v10935_v37  ;;  %v21179_v55 = vmax.f32 %v19940_v60, 0.0 }
 0x94b   : > { %21605 = vst [vmem:[#allocation127_spill] sm:$0xff] %v19944_v8  ;;  %11128 = vrot.lane.b32.xlu1 %v19944_v8, %s15369_s14  ;;  %v10948_v31 = vrot.slane %v10947_v51, 1  ;;  %v10960_v25 = vrot.slane %v10959_v32, 2  ;;  %v10968_v48 = vadd.f32 %v10967_v4, %v10966_v39  ;;  %v19951_v40 = vadd.f32 %v21606_v38, %v21581_v62  ;;  %v21611_v4 = vld [vmem:[#allocation28_spill] sm:$0xff]  ;;  %v21615_v38 = vld [vmem:[#allocation117_spill] sm:$0xff] }
 0x94c   : > { %v10955_v50 = vrot.slane %v10954_v58, 1  ;;  %v10976_v29 = vadd.f32 %v10975_v17, %v10942_v59  ;;  %v19959_v0 = vadd.f32 %v21607_v12, %v18110_v43  ;;  %v19967_v10 = vadd.f32 %v21608_v27, %v18110_v43  ;;  %v19994_v17 = vpop.permute.xlu1 %11026  ;;  %v21617_v12 = vld [vmem:[#allocation41_spill] sm:$0xff]  ;;  %v21620_v27 = vld [vmem:[#allocation119_spill] sm:$0xff] }
 0x94d   : > { %v10949_v42 = vadd.f32 %v10948_v31, %v10947_v51  ;;  %v10961_v52 = vadd.f32 %v10960_v25, %v10959_v32  ;;  %v10969_v46 = vrot.slane %v10968_v48, 2  ;;  %v21170_v47 = vmax.f32 %v19951_v40, 0.0  ;;  %v21610_v51 = vld [vmem:[#allocation37_spill] sm:$0xff] }
 0x94e   : > { %v10956_v35 = vadd.f32 %v10955_v50, %v10954_v58  ;;  %v21175_v2 = vmax.f32 %v19959_v0, 0.0  ;;  %v21171_v39 = vmax.f32 %v19967_v10, 0.0  ;;  %v19976_v22 = vadd.f32 %v21609_v19, %v21581_v62  ;;  %v21612_v25 = vld [vmem:[#allocation33_spill] sm:$0xff]  ;;  %v21613_v50 = vld [vmem:[#allocation103_spill] sm:$0xff] }
 0x94f   : > { %11350 = vrot.lane.b32.xlu1 %v21179_v55, %s15367_s25  ;;  %v10962_v11 = vrot.slane %v10961_v52, 1  ;;  %v10977_v53 = vadd.f32 %v10976_v29, %v10949_v42  ;;  %v10970_v5 = vadd.f32 %v10969_v46, %v10968_v48  ;;  %v19984_v32 = vadd.f32 %v21610_v51, %v21581_v62  ;;  %v21621_v51 = vld [vmem:[#allocation106_spill] sm:$0xff]  ;;  %v21635_v55 = vld [vmem:[#allocation29_spill] sm:$0xff] }
 0x950   : > { %v21174_v61 = vmax.f32 %v19976_v22, 0.0  ;;  %v19991_v59 = vadd.f32 %v21611_v4, %v18110_v43  ;;  %v20002_v48 = vadd.f32 %v21612_v25, %v18110_v43  ;;  %v20009_v29 = vadd.f32 %v21613_v50, %v21581_v62  ;;  %v20016_v46 = vpop.permute.xlu1 %11028  ;;  %v21622_v50 = vld [vmem:[#allocation34_spill] sm:$0xff] }
 0x951   : > { %v10963_v20 = vadd.f32 %v10962_v11, %v10961_v52  ;;  %v10978_v34 = vadd.f32 %v10977_v53, %v10956_v35  ;;  %v10971_v57 = vrot.slane %v10970_v5, 1  ;;  %v21168_v58 = vmax.f32 %v19984_v32, 0.0  ;;  %v21616_v35 = vld [vmem:[#allocation101_spill] sm:$0xff] }
 0x952   : > { %v21173_v31 = vmax.f32 %v19991_v59, 0.0  ;;  %21614 = vst [vmem:[#allocation129_spill] sm:$0xff] %v20009_v29  ;;  %v20013_v42 = vadd.f32 %v21615_v38, %v18110_v43  ;;  %v21169_v52 = vmax.f32 %v20002_v48, 0.0  ;;  %v20023_v11 = vadd.f32 %v21616_v35, %v18110_v43 }
 0x953   : > { %11354 = vrot.lane.b32.xlu1 %v21170_v47, %s15367_s25  ;;  %v10979_v56 = vadd.f32 %v10978_v34, %v10963_v20  ;;  %v10972_v13 = vadd.f32 %v10971_v57, %v10970_v5  ;;  %v21161_v53 = vmax.f32 %v20009_v29, 0.0  ;;  %v20029_v20 = vadd.f32 %v21617_v12, %v18110_v43 }
 0x954   : > { %v21166_v5 = vmax.f32 %v20013_v42, 0.0  ;;  %v20031_v34 = vpop.permute.xlu1 %11030  ;;  %v21162_v57 = vmax.f32 %v20023_v11, 0.0  ;;  %v20058_v4 = vadd.f32 %v21621_v51, %v21581_v62  ;;  %v20063_v38 = vadd.f32 %v21622_v50, %v18110_v43  ;;  %v21624_v51 = vld [vmem:[#allocation120_spill] sm:$0xff] }
 0x955   : > { %v10980_v44 = vsel %vm9659_vm10, %v10972_v13, 0.0  ;;  %v20080_v50 = vadd.f32 %v21624_v51, %v18110_v43  ;;  %v21669_v23 = vmax.f32 %v19940_v60, 0.0 }
 0x956   : > { %v10981_v37 = vadd.f32 %v10980_v44, %v10979_v56  ;;  %v21618_v56 = vld [vmem:[#allocation105_spill] sm:$0xff]  ;;  %v20046_v44 = vadd.f32 %v21620_v27, %v18110_v43  ;;  %v21180_v12 = vmax.f32 %v20058_v4, 0.0 }
 0x957   : > { %11368 = vrot.lane.b32.xlu1 %v21175_v2, %s15367_s25  ;;  %v20042_v13 = vadd.f32 %v21618_v56, %v18110_v43  ;;  %v21623_v56 = vld [vmem:[#allocation108_spill] sm:$0xff]  ;;  %v21172_v51 = vmax.f32 %v20080_v50, 0.0 }
 0x958   : > { %10982 = vadd.xlane.f32.xlu0 %v10981_v37  ;;  %v21165_v37 = vmax.f32 %v20029_v20, 0.0  ;;  %v21164_v25 = vmax.f32 %v20046_v44, 0.0  ;;  %v20065_v35 = vpop.permute.xlu1 %11032  ;;  %v20076_v27 = vadd.f32 %v21623_v56, %v21581_v62  ;;  %v21625_v56 = vld [vmem:[#allocation109_spill] sm:$0xff] }
 0x959   : > { %21619 = vst [vmem:[#allocation130_spill] sm:$0xff] %v20042_v13  ;;  %v21163_v19 = vmax.f32 %v20042_v13, 0.0 }
 0x95b   : > { %11372 = vrot.lane.b32.xlu1 %v21171_v39, %s15367_s25 }
 0x95f   : > { %11676 = vrot.lane.b32.xlu1 %v21174_v61, %s15367_s25  ;;  %v21632_v61 = vld [vmem:[#allocation125_spill] sm:$0xff] }
 0x960   : > { %v20133_v2 = vadd.f32 %v21632_v61, %v18110_v43  ;;  %v20150_v61 = vadd.f32 %v21635_v55, %v18110_v43  ;;  %v21638_v55 = vld [vmem:[#allocation126_spill] sm:$0xff] }
 0x961   : > { %v20167_v21 = vadd.f32 %v21638_v55, %v18110_v43  ;;  %v11060_v55 = vsel %vm324_vm0, %v19994_v17, %v20016_v46 }
 0x962   : > { %21633 = vst [vmem:[#allocation40_spill] sm:$0xff] %v20133_v2  ;;  %21636 = vst [vmem:[#allocation50_spill] sm:$0xff] %v20150_v61 }
 0x963   : > { %11680 = vrot.lane.b32.xlu1 %v21168_v58, %s15367_s25  ;;  %v21628_v58 = vld [vmem:[#allocation112_spill] sm:$0xff]  ;;  %21639 = vst [vmem:[#allocation54_spill] sm:$0xff] %v20167_v21 }
 0x967   : > { %11694 = vrot.lane.b32.xlu1 %v21173_v31, %s15367_s25  ;;  %v21631_v31 = vld [vmem:[#allocation22_spill] sm:$0xff] }
 0x96b   : > { %11698 = vrot.lane.b32.xlu1 %v21169_v52, %s15367_s25  ;;  %v21629_v52 = vld [vmem:[#allocation121_spill] sm:$0xff] }
 0x96c   : > { %v20114_v47 = vadd.f32 %v21629_v52, %v18110_v43  ;;  %v20129_v52 = vadd.f32 %v21631_v31, %v21581_v62 }
 0x96e   : > { %11038 = vrot.lane.b32.xlu0 %v21161_v53, %s15367_s25  ;;  %v21167_v53 = vmax.f32 %v20063_v38, 0.0  ;;  %21630 = vst [vmem:[#allocation132_spill] sm:$0xff] %v20114_v47 }
 0x96f   : > { %11374 = vrot.lane.b32.xlu1 %v21166_v5, %s15367_s25 }
 0x972   : > { %11052 = vrot.lane.b32.xlu0 %v21162_v57, %s15367_s25  ;;  %v20083_v57 = vpop.permute.xlu1 %11034 }
 0x973   : > { %11700 = vrot.lane.b32.xlu1 %v21165_v37, %s15367_s25  ;;  %v21626_v37 = vld [vmem:[#allocation122_spill] sm:$0xff] }
 0x974   : > { %v20099_v5 = vadd.f32 %v21626_v37, %v18110_v43 }
 0x976   : > { %11056 = vrot.lane.b32.xlu0 %v21163_v19, %s15367_s25  ;;  %v21176_v19 = vmax.f32 %v20076_v27, 0.0  ;;  %21627 = vst [vmem:[#allocation131_spill] sm:$0xff] %v20099_v5  ;;  %v21177_v37 = vmax.f32 %v20099_v5, 0.0  ;;  %v20117_v39 = vpop.permute.xlu1 %11036 }
 0x977   : > { %11376 = vrot.lane.b32.xlu1 %v21164_v25, %s15367_s25  ;;  %v20094_v25 = vadd.f32 %v21625_v56, %v18110_v43  ;;  %v20110_v56 = vadd.f32 %v21628_v58, %v18110_v43  ;;  %v21181_v58 = vmax.f32 %v20114_v47, 0.0 }
 0x97a   : > { %11348 = vrot.lane.b32.xlu0 %v21180_v12, %s15367_s25  ;;  %v21186_v12 = vmax.f32 %v20133_v2, 0.0 }
 0x97b   : > { %11702 = vrot.lane.b32.xlu1 %v21167_v53, %s15367_s25  ;;  %v21178_v53 = vmax.f32 %v20094_v25, 0.0 }
 0x97e   : > { %11352 = vrot.lane.b32.xlu0 %v21176_v19, %s15367_s25  ;;  %v20135_v19 = vpop.permute.xlu1 %11040 }
 0x97f   : > { %11378 = vrot.lane.b32.xlu1 %v21172_v51, %s15367_s25  ;;  %v21182_v51 = vmax.f32 %v20110_v56, 0.0 }
 0x982   : > { %11366 = vrot.lane.b32.xlu0 %v21178_v53, %s15367_s25  ;;  %v21634_v53 = vld [vmem:[#allocation27_spill] sm:$0xff]  ;;  %v11043_v7 = vpop.permute.xlu1 %11042 }
 0x983   : > { %11704 = vrot.lane.b32.xlu1 %v21177_v37, %s15367_s25  ;;  %v21187_v37 = vmax.f32 %v20129_v52, 0.0  ;;  %v20146_v31 = vadd.f32 %v21634_v53, %v21581_v62  ;;  %v21637_v53 = vld [vmem:[#allocation30_spill] sm:$0xff] }
 0x984   : > { %v20163_v33 = vadd.f32 %v21637_v53, %v18110_v43  ;;  %v21194_v53 = vmax.f32 %v20167_v21, 0.0  ;;  %v21645_v21 = vmax.f32 %v19826_v54, 0.0 }
 0x986   : > { %11370 = vrot.lane.b32.xlu0 %v21182_v51, %s15367_s25  ;;  %v21190_v51 = vmax.f32 %v20150_v61, 0.0  ;;  %v11045_v13 = vpop.permute.xlu1 %11044 }
 0x987   : > { %11380 = vrot.lane.b32.xlu1 %v21181_v58, %s15367_s25  ;;  %v21191_v58 = vmax.f32 %v20146_v31, 0.0  ;;  %v11067_v29 = vsel %vm324_vm0, %v11043_v7, %v11045_v13 }
 0x98a   : > { %11674 = vrot.lane.b32.xlu0 %v21187_v37, %s15367_s25  ;;  %v21640_v37 = vld [vmem:[#allocation35_spill] sm:$0xff] }
 0x98b   : > { %11706 = vrot.lane.b32.xlu1 %v21186_v12, %s15367_s25  ;;  %v21195_v12 = vmax.f32 %v20163_v33, 0.0  ;;  %v20178_v2 = vadd.f32 %v21640_v37, %v18110_v43  ;;  %v21642_v37 = vmax.f32 %v19771_v1, 0.0  ;;  %v20212_v1 = vmax.f32 %v21645_v21, %v11067_v29  ;;  %v21648_v21 = vld [vmem:[#allocation24_spill] sm:$0xff] }
 0x98c   : > { %v20230_v29 = vadd.f32 %v21648_v21, %v21581_v62 }
 0x98d   : > { %v21197_v43 = vmax.f32 %v20178_v2, 0.0  ;;  %v20197_v61 = vmax.f32 %v21642_v37, %v11060_v55  ;;  %21646 = vst [vmem:[#allocation32_spill] sm:$0xff] %v20212_v1  ;;  %v21647_v55 = vld [vmem:[#allocation115_spill] sm:$0xff] }
 0x98e   : > { %11678 = vrot.lane.b32.xlu0 %v21191_v58, %s15367_s25  ;;  %v20221_v37 = vadd.f32 %v21647_v55, %v21581_v62 }
 0x98f   : > { %11382 = vrot.lane.b32.xlu1 %v21190_v51, %s15367_s25  ;;  %v21641_v51 = vld [vmem:[#allocation114_spill] sm:$0xff]  ;;  %21643 = vst [vmem:[#allocation25_spill] sm:$0xff] %v20197_v61 }
 0x990   : > { %v20192_v58 = vadd.f32 %v21641_v51, %v21581_v62  ;;  %v21644_v51 = vld [vmem:[#allocation26_spill] sm:$0xff]  ;;  %v21201_v54 = vmax.f32 %v20221_v37, 0.0 }
 0x992   : > { %11692 = vrot.lane.b32.xlu0 %v21195_v12, %s15367_s25  ;;  %v20208_v12 = vadd.f32 %v21644_v51, %v21581_v62  ;;  %v21649_v51 = vld [vmem:[#allocation116_spill] sm:$0xff] }
 0x993   : > { %11708 = vrot.lane.b32.xlu1 %v21194_v53, %s15367_s25  ;;  %v21198_v53 = vmax.f32 %v20192_v58, 0.0  ;;  %v20237_v55 = vadd.f32 %v21649_v51, %v21581_v62 }
 0x996   : > { %11696 = vrot.lane.b32.xlu0 %v21197_v43, %s15367_s25  ;;  %v21199_v43 = vmax.f32 %v20208_v12, 0.0 }
 0x997   : > { %11132 = vrot.lane.b32.xlu1 %v20197_v61, %s15369_s14  ;;  %v21650_v61 = vld [vmem:[#allocation31_spill] sm:$0xff] }
 0x998   : > { %v20246_v21 = vadd.f32 %v21650_v61, %v21581_v62  ;;  %v20262_v61 = vadd.f32 %v21654_v30, %v21581_v62  ;;  %v21658_v30 = vld [vmem:[#allocation124_spill] sm:$0xff] }
 0x999   : > { %v20278_v63 = vadd.f32 %v21658_v30, %v21581_v62 }
 0x99a   : > { %11356 = vrot.lane.b32.xlu0 %v21198_v53, %s15367_s25  ;;  %v21204_v53 = vmax.f32 %v20230_v29, 0.0  ;;  %21651 = vst [vmem:[#allocation39_spill] sm:$0xff] %v20246_v21  ;;  %v21210_v3 = vmax.f32 %v20246_v21, 0.0  ;;  %21655 = vst [vmem:[#allocation56_spill] sm:$0xff] %v20262_v61  ;;  %v21216_v47 = vmax.f32 %v20262_v61, 0.0 }
 0x99b   : > { %11148 = vrot.lane.b32.xlu1 %v20212_v1, %s15369_s14  ;;  %21659 = vst [vmem:[#allocation63_spill] sm:$0xff] %v20278_v63 }
 0x99e   : > { %11682 = vrot.lane.b32.xlu0 %v21199_v43, %s15367_s25  ;;  %v21207_v43 = vmax.f32 %v20237_v55, 0.0 }
 0x9a2   : > { %11358 = vrot.lane.b32.xlu0 %v21201_v54, %s15367_s25  ;;  %v21652_v54 = vld [vmem:[#allocation118_spill] sm:$0xff] }
 0x9a3   : > { %v20253_v51 = vadd.f32 %v21652_v54, %v21581_v62  ;;  %v21656_v54 = vld [vmem:[#allocation21_spill] sm:$0xff] }
 0x9a4   : > { %v20269_v1 = vadd.f32 %v21656_v54, %v21581_v62  ;;  %v21220_v54 = vmax.f32 %v20278_v63, 0.0  ;;  %v21660_v62 = vmax.f32 %v19762_v18, 0.0  ;;  %v21664_v18 = vmax.f32 %v19835_v36, 0.0 }
 0x9a5   : > { %21653 = vst [vmem:[#allocation57_spill] sm:$0xff] %v20253_v51 }
 0x9a6   : > { %11684 = vrot.lane.b32.xlu0 %v21204_v53, %s15367_s25  ;;  %v21215_v53 = vmax.f32 %v20253_v51, 0.0  ;;  %21657 = vst [vmem:[#allocation60_spill] sm:$0xff] %v20269_v1 }
 0x9aa   : > { %11360 = vrot.lane.b32.xlu0 %v21207_v43, %s15367_s25  ;;  %v11047_v43 = vpop.permute.xlu1 %11046 }
 0x9ae   : > { %11686 = vrot.lane.b32.xlu0 %v21210_v3, %s15367_s25  ;;  %v21218_v3 = vmax.f32 %v20269_v1, 0.0  ;;  %v20280_v45 = vpop.permute.xlu1 %11048  ;;  %v11066_v1 = vsel %vm324_vm0, %v20135_v19, %v11043_v7 }
 0x9b2   : > { %11362 = vrot.lane.b32.xlu0 %v21215_v53, %s15367_s25  ;;  %v11059_v53 = vsel %vm324_vm0, %v19933_v9, %v19994_v17  ;;  %v11068_v9 = vsel %vm324_vm0, %v11045_v13, %v11047_v43 }
 0x9b3   : > { %v20296_v30 = vmax.f32 %v21660_v62, %v11059_v53  ;;  %v20313_v53 = vmax.f32 %v21664_v18, %v11068_v9 }
 0x9b5   : > { %21661 = vst [vmem:[#allocation65_spill] sm:$0xff] %v20296_v30  ;;  %21665 = vst [vmem:[#allocation68_spill] sm:$0xff] %v20313_v53 }
 0x9b6   : > { %11688 = vrot.lane.b32.xlu0 %v21216_v47, %s15367_s25  ;;  %v20292_v47 = vpop.permute.xlu1 %11050 }
 0x9ba   : > { %11364 = vrot.lane.b32.xlu0 %v21218_v3, %s15367_s25  ;;  %v21662_v3 = vmax.f32 %v19818_v24, 0.0  ;;  %v20307_v17 = vpop.permute.xlu1 %11054 }
 0x9bc   : > { %v20304_v61 = vmax.f32 %v21662_v3, %v11066_v1 }
 0x9be   : > { %11690 = vrot.lane.b32.xlu0 %v21220_v54, %s15367_s25  ;;  %21663 = vst [vmem:[#allocation64_spill] sm:$0xff] %v20304_v61  ;;  %v20315_v62 = vpop.permute.xlu1 %11128  ;;  %s12944_s25 = sshll.u32 %s15431_s4, 4  ;;  %s15376_s4 = smov [#allocation11]  }
 0x9bf   : > { %s20994_s18 = scalar_lea.hbm %s21043_s5, %s12944_s25  ;;  %s15293_s24 = sshll.u32 %s15376_s4, 4  ;;  %s15294_s24 = int_to_ptr.vmem [resolvable:$false] %s15293_s24 }
 0x9c0   : > { %s15295_s27 = scalar_lea.vmem %s15294_s24, 32 }
 0x9c2   : > { %11130 = vrot.lane.b32.xlu0 %v20296_v30, %s15369_s14  ;;  %v11351_v7 = vpop.permute.xlu1 %11350 }
 0x9c6   : > { %11146 = vrot.lane.b32.xlu0 %v20304_v61, %s15369_s14  ;;  %v20319_v24 = vpop.permute.xlu1 %11354 }
 0x9ca   : > { %11150 = vrot.lane.b32.xlu0 %v20313_v53, %s15369_s14  ;;  %v11369_v3 = vpop.permute.xlu1 %11368 }
 0x9ce   : > { %v20321_v19 = vpop.permute.xlu1 %11372 }
 0x9d2   : > { %v11677_v1 = vpop.permute.xlu1 %11676 }
 0x9d6   : > { %v20325_v36 = vpop.permute.xlu1 %11680 }
 0x9da   : > { %v11695_v63 = vpop.permute.xlu1 %11694 }
 0x9de   : > { %v20341_v21 = vpop.permute.xlu1 %11698 }
 0x9e5   : > { %v10983_v13 = vpop.xlane.xlu0 %10982 }
 0x9e6   : > { %10985 = vst.msk [vmem:[#allocation4] sm:$0x1] %vm10984_vm15, %v10983_v13  ;;  %v21668_v13 = vmax.f32 %v20058_v4, 0.0 }
 0x9e9   : > { %v20323_v54 = vpop.permute.xlu0 %11038 }
 0x9ed   : > { %v20327_v9 = vpop.permute.xlu0 %11052 }
 0x9f1   : > { %v20329_v18 = vpop.permute.xlu0 %11056 }
 0x9f2   : > { %21666 = vst [vmem:[#allocation71_spill] sm:$0xff] %v20329_v18  ;;  %v20334_v53 = vsel %vm324_vm0, %v20307_v17, %v20329_v18 }
 0x9f3   : > { %21667 = vst [vmem:[#allocation72_spill] sm:$0xff] %v20334_v53 }
 0x9f5   : > { %v11349_v51 = vpop.permute.xlu0 %11348 }
 0x9f6   : > { %v11384_v30 = vsel %vm324_vm0, %v11349_v51, %v11351_v7  ;;  %v21670_v51 = vmax.f32 %v20076_v27, 0.0 }
 0x9f7   : > { %v20339_v61 = vmax.f32 %v21668_v13, %v11384_v30  ;;  %v20361_v13 = vpop.permute.xlu1 %11374 }
 0x9f9   : > { %v11353_v5 = vpop.permute.xlu0 %11352  ;;  %11454 = vrot.lane.b32.xlu1 %v20339_v61, %s15369_s14 }
 0x9fa   : > { %v11385_v8 = vsel %vm324_vm0, %v11351_v7, %v11353_v5  ;;  %v11386_v18 = vsel %vm324_vm0, %v11353_v5, %v20319_v24  ;;  %v21672_v5 = vmax.f32 %v20094_v25, 0.0  ;;  %v11061_v25 = vsel %vm324_vm0, %v20016_v46, %v20031_v34 }
 0x9fb   : > { %v20350_v53 = vmax.f32 %v21669_v23, %v11385_v8  ;;  %v20354_v4 = vmax.f32 %v21670_v51, %v11386_v18  ;;  %v21673_v18 = vmax.f32 %v19959_v0, 0.0  ;;  %v21675_v0 = vmax.f32 %v19779_v26, 0.0 }
 0x9fc   : > { %v21677_v26 = vmax.f32 %v20129_v52, 0.0  ;;  %v21679_v52 = vmax.f32 %v20146_v31, 0.0 }
 0x9fd   : > { %21671 = vst [vmem:[#allocation61_spill] sm:$0xff] %v20354_v4  ;;  %v11367_v30 = vpop.permute.xlu0 %11366  ;;  %11456 = vrot.lane.b32.xlu0 %v20350_v53, %s15369_s14  ;;  %11458 = vrot.lane.b32.xlu1 %v20354_v4, %s15369_s14 }
 0x9fe   : > { %v11392_v7 = vsel %vm324_vm0, %v11367_v30, %v11369_v3  ;;  %v21674_v30 = vmax.f32 %v20110_v56, 0.0  ;;  %v20393_v56 = vmax.f32 %v21675_v0, %v11061_v25 }
 0x9ff   : > { %v20365_v60 = vmax.f32 %v21672_v5, %v11392_v7  ;;  %v11069_v7 = vsel %vm324_vm0, %v11047_v43, %v20280_v45  ;;  %v20385_v5 = vpop.permute.xlu1 %11700 }
 0xa01   : > { %v11371_v23 = vpop.permute.xlu0 %11370  ;;  %11472 = vrot.lane.b32.xlu0 %v20365_v60, %s15369_s14 }
 0xa02   : > { %v11393_v8 = vsel %vm324_vm0, %v11369_v3, %v11371_v23  ;;  %v11394_v27 = vsel %vm324_vm0, %v11371_v23, %v20321_v19  ;;  %v21676_v23 = vmax.f32 %v19843_v49, 0.0  ;;  %v21678_v49 = vmax.f32 %v19976_v22, 0.0 }
 0xa03   : > { %v20374_v51 = vmax.f32 %v21673_v18, %v11393_v8  ;;  %v20378_v4 = vmax.f32 %v21674_v30, %v11394_v27  ;;  %v20405_v18 = vpop.permute.xlu1 %11376  ;;  %v21680_v22 = vmax.f32 %v20163_v33, 0.0  ;;  %v21682_v33 = vmax.f32 %v20178_v2, 0.0 }
 0xa04   : > { %v20397_v8 = vmax.f32 %v21676_v23, %v11069_v7 }
 0xa05   : > { %v11675_v3 = vpop.permute.xlu0 %11674  ;;  %11474 = vrot.lane.b32.xlu1 %v20374_v51, %s15369_s14  ;;  %11476 = vrot.lane.b32.xlu0 %v20378_v4, %s15369_s14 }
 0xa06   : > { %v11710_v46 = vsel %vm324_vm0, %v11675_v3, %v11677_v1 }
 0xa07   : > { %v20409_v30 = vmax.f32 %v21677_v26, %v11710_v46  ;;  %v20430_v46 = vpop.permute.xlu1 %11702  ;;  %v21681_v26 = vmax.f32 %v19991_v59, 0.0  ;;  %v21683_v59 = vmax.f32 %v19967_v10, 0.0  ;;  %v21685_v10 = vmax.f32 %v19787_v15, 0.0 }
 0xa08   : > { %v21687_v15 = vmax.f32 %v20002_v48, 0.0  ;;  %v21689_v48 = vmax.f32 %v20013_v42, 0.0  ;;  %v21691_v42 = vmax.f32 %v19794_v14, 0.0  ;;  %v21693_v14 = vmax.f32 %v20029_v20, 0.0 }
 0xa09   : > { %v11679_v43 = vpop.permute.xlu0 %11678  ;;  %11134 = vrot.lane.b32.xlu1 %v20393_v56, %s15369_s14  ;;  %11152 = vrot.lane.b32.xlu0 %v20397_v8, %s15369_s14  ;;  %v21695_v20 = vmax.f32 %v20046_v44, 0.0  ;;  %v21697_v44 = vmax.f32 %v19803_v28, 0.0  ;;  %v21699_v28 = vmax.f32 %v20063_v38, 0.0  ;;  %v21701_v38 = vmax.f32 %v20080_v50, 0.0 }
 0xa0a   : > { %v11711_v27 = vsel %vm324_vm0, %v11677_v1, %v11679_v43  ;;  %v11712_v7 = vsel %vm324_vm0, %v11679_v43, %v20325_v36 }
 0xa0b   : > { %v20413_v25 = vmax.f32 %v21678_v49, %v11711_v27  ;;  %v20424_v0 = vmax.f32 %v21679_v52, %v11712_v7  ;;  %v20460_v2 = vpop.permute.xlu1 %11378 }
 0xa0d   : > { %v11693_v3 = vpop.permute.xlu0 %11692  ;;  %11782 = vrot.lane.b32.xlu0 %v20413_v25, %s15369_s14  ;;  %11780 = vrot.lane.b32.xlu1 %v20409_v30, %s15369_s14 }
 0xa0e   : > { %v11718_v1 = vsel %vm324_vm0, %v11693_v3, %v11695_v63  ;;  %v11395_v3 = vsel %vm324_vm0, %v20321_v19, %v20361_v13  ;;  %v11062_v19 = vsel %vm324_vm0, %v20031_v34, %v20065_v35  ;;  %v11721_v34 = vsel %vm324_vm0, %v20341_v21, %v20385_v5 }
 0xa0f   : > { %v20428_v23 = vmax.f32 %v21680_v22, %v11718_v1  ;;  %v20458_v52 = vmax.f32 %v21683_v59, %v11395_v3  ;;  %v21684_v22 = vmax.f32 %v19951_v40, 0.0  ;;  %v20478_v40 = vmax.f32 %v21685_v10, %v11062_v19 }
 0xa11   : > { %v11697_v43 = vpop.permute.xlu0 %11696  ;;  %11784 = vrot.lane.b32.xlu1 %v20424_v0, %s15369_s14  ;;  %11798 = vrot.lane.b32.xlu0 %v20428_v23, %s15369_s14 }
 0xa12   : > { %v11719_v27 = vsel %vm324_vm0, %v11695_v63, %v11697_v43  ;;  %v11720_v31 = vsel %vm324_vm0, %v11697_v43, %v20341_v21  ;;  %v11396_v21 = vsel %vm324_vm0, %v20361_v13, %v20405_v18  ;;  %v11063_v13 = vsel %vm324_vm0, %v20065_v35, %v20083_v57 }
 0xa13   : > { %v20441_v49 = vmax.f32 %v21681_v26, %v11719_v27  ;;  %v20445_v7 = vmax.f32 %v21682_v33, %v11720_v31  ;;  %v11070_v27 = vsel %vm324_vm0, %v20280_v45, %v20292_v47  ;;  %v20489_v33 = vpop.permute.xlu1 %11704  ;;  %v20513_v19 = vmax.f32 %v21689_v48, %v11396_v21 }
 0xa14   : > { %v11722_v35 = vsel %vm324_vm0, %v20385_v5, %v20430_v46  ;;  %v21694_v21 = vmax.f32 %v20208_v12, 0.0  ;;  %v11397_v5 = vsel %vm324_vm0, %v20405_v18, %v20460_v2  ;;  %v11064_v18 = vsel %vm324_vm0, %v20083_v57, %v20117_v39 }
 0xa15   : > { %v11357_v1 = vpop.permute.xlu0 %11356  ;;  %11800 = vrot.lane.b32.xlu1 %v20441_v49, %s15369_s14  ;;  %11802 = vrot.lane.b32.xlu0 %v20445_v7, %s15369_s14  ;;  %v11723_v57 = vsel %vm324_vm0, %v20430_v46, %v20489_v33 }
 0xa16   : > { %v11387_v63 = vsel %vm324_vm0, %v20319_v24, %v11357_v1  ;;  %v21686_v24 = vmax.f32 %v19851_v16, 0.0  ;;  %v20497_v16 = vmax.f32 %v21687_v15, %v11721_v34  ;;  %v21692_v34 = vmax.f32 %v19858_v6, 0.0 }
 0xa17   : > { %v20464_v43 = vmax.f32 %v21684_v22, %v11387_v63  ;;  %v21688_v63 = vmax.f32 %v19984_v32, 0.0  ;;  %v20515_v32 = vpop.permute.xlu1 %11380  ;;  %v20551_v6 = vmax.f32 %v21693_v14, %v11722_v35  ;;  %v21700_v14 = vmax.f32 %v20230_v29, 0.0 }
 0xa18   : > { %v20482_v26 = vmax.f32 %v21686_v24, %v11070_v27  ;;  %v21690_v27 = vmax.f32 %v20192_v58, 0.0  ;;  %v20533_v58 = vmax.f32 %v21691_v42, %v11063_v13  ;;  %v21696_v13 = vmax.f32 %v20221_v37, 0.0 }
 0xa19   : > { %v11683_v31 = vpop.permute.xlu0 %11682  ;;  %11460 = vrot.lane.b32.xlu1 %v20464_v43, %s15369_s14  ;;  %11478 = vrot.lane.b32.xlu0 %v20458_v52, %s15369_s14  ;;  %v20589_v37 = vmax.f32 %v21697_v44, %v11064_v18  ;;  %v11398_v46 = vsel %vm324_vm0, %v20460_v2, %v20515_v32  ;;  %v11065_v2 = vsel %vm324_vm0, %v20117_v39, %v20323_v54  ;;  %v21705_v18 = vmax.f32 %v19811_v41, 0.0  ;;  %v21708_v44 = vld [vmem:[#allocation42_spill] sm:$0xff] }
 0xa1a   : > { %v11713_v45 = vsel %vm324_vm0, %v20325_v36, %v11683_v31 }
 0xa1b   : > { %v20501_v59 = vmax.f32 %v21688_v63, %v11713_v45  ;;  %v20543_v15 = vpop.permute.xlu1 %11706 }
 0xa1c   : > { %v11724_v39 = vsel %vm324_vm0, %v20489_v33, %v20543_v15 }
 0xa1d   : > { %v11359_v3 = vpop.permute.xlu0 %11358  ;;  %11136 = vrot.lane.b32.xlu1 %v20478_v40, %s15369_s14  ;;  %11154 = vrot.lane.b32.xlu0 %v20482_v26, %s15369_s14 }
 0xa1e   : > { %v11388_v36 = vsel %vm324_vm0, %v11357_v1, %v11359_v3  ;;  %v11071_v1 = vsel %vm324_vm0, %v20292_v47, %v20327_v9 }
 0xa1f   : > { %v20519_v10 = vmax.f32 %v21690_v27, %v11388_v36  ;;  %v20537_v45 = vmax.f32 %v21692_v34, %v11071_v1  ;;  %v20567_v27 = vmax.f32 %v21695_v20, %v11397_v5  ;;  %v20569_v12 = vpop.permute.xlu1 %11382  ;;  %v21698_v34 = vmax.f32 %v20023_v11, 0.0 }
 0xa20   : > { %v20609_v11 = vmax.f32 %v21699_v28, %v11723_v57  ;;  %v21703_v20 = vmax.f32 %v20237_v55, 0.0  ;;  %v21707_v55 = vld [vmem:[#allocation72_spill] sm:$0xff] }
 0xa21   : > { %v11685_v22 = vpop.permute.xlu0 %11684  ;;  %11786 = vrot.lane.b32.xlu1 %v20501_v59, %s15369_s14  ;;  %11804 = vrot.lane.b32.xlu0 %v20497_v16, %s15369_s14 }
 0xa22   : > { %v11714_v47 = vsel %vm324_vm0, %v11683_v31, %v11685_v22 }
 0xa23   : > { %v20555_v36 = vmax.f32 %v21694_v21, %v11714_v47 }
 0xa25   : > { %v11361_v24 = vpop.permute.xlu0 %11360  ;;  %11462 = vrot.lane.b32.xlu1 %v20519_v10, %s15369_s14  ;;  %11480 = vrot.lane.b32.xlu0 %v20513_v19, %s15369_s14 }
 0xa26   : > { %v11389_v31 = vsel %vm324_vm0, %v11359_v3, %v11361_v24  ;;  %v11072_v3 = vsel %vm324_vm0, %v20327_v9, %v20307_v17  ;;  %v20599_v9 = vpop.permute.xlu1 %11708 }
 0xa27   : > { %v20573_v1 = vmax.f32 %v21696_v13, %v11389_v31  ;;  %v20593_v35 = vmax.f32 %v21698_v34, %v11072_v3  ;;  %v20627_v31 = vmax.f32 %v21701_v38, %v11398_v46  ;;  %v20646_v3 = vmax.f32 %v21705_v18, %v11065_v2  ;;  %v21712_v38 = vld [vmem:[#allocation131_spill] sm:$0xff] }
 0xa28   : > { %v21709_v34 = vmax.f32 %v21708_v44, 0.0  ;;  %v21713_v33 = vmax.f32 %v21712_v38, 0.0  ;;  %v11399_v44 = vsel %vm324_vm0, %v20515_v32, %v20569_v12  ;;  %v21720_v38 = vld [vmem:[#allocation49_spill] sm:$0xff] }
 0xa29   : > { %v11687_v63 = vpop.permute.xlu0 %11686  ;;  %11138 = vrot.lane.b32.xlu1 %v20533_v58, %s15369_s14  ;;  %11156 = vrot.lane.b32.xlu0 %v20537_v45, %s15369_s14  ;;  %21702 = vst [vmem:[#allocation62_spill] sm:$0xff] %v20627_v31  ;;  %21706 = vst [vmem:[#allocation67_spill] sm:$0xff] %v20646_v3 }
 0xa2a   : > { %v11715_v17 = vsel %vm324_vm0, %v11685_v22, %v11687_v63  ;;  %v20629_v29 = vpop.permute.xlu1 %11132  ;;  %v20651_v57 = vmax.f32 %v21709_v34, %v21707_v55 }
 0xa2b   : > { %v20613_v21 = vmax.f32 %v21700_v14, %v11715_v17  ;;  %v21711_v14 = vld [vmem:[#allocation127_spill] sm:$0xff] }
 0xa2c   : > { %21710 = vst [vmem:[#allocation70_spill] sm:$0xff] %v20651_v57 }
 0xa2d   : > { %v11363_v48 = vpop.permute.xlu0 %11362  ;;  %11788 = vrot.lane.b32.xlu1 %v20555_v36, %s15369_s14  ;;  %11806 = vrot.lane.b32.xlu0 %v20551_v6, %s15369_s14 }
 0xa2e   : > { %v11390_v22 = vsel %vm324_vm0, %v11361_v24, %v11363_v48  ;;  %v11149_v28 = vpop.permute.xlu1 %11148 }
 0xa2f   : > { %v20633_v13 = vmax.f32 %v21703_v20, %v11390_v22  ;;  %v20668_v20 = vmax.f32 %v21713_v33, %v11724_v39 }
 0xa31   : > { %v20581_v42 = vpop.permute.xlu0 %11688  ;;  %11464 = vrot.lane.b32.xlu1 %v20573_v1, %s15369_s14  ;;  %11482 = vrot.lane.b32.xlu0 %v20567_v27, %s15369_s14  ;;  %21704 = vst [vmem:[#allocation66_spill] sm:$0xff] %v20633_v13 }
 0xa32   : > { %v11716_v17 = vsel %vm324_vm0, %v11687_v63, %v20581_v42  ;;  %v21714_v63 = vld [vmem:[#allocation39_spill] sm:$0xff] }
 0xa33   : > { %v21715_v2 = vmax.f32 %v21714_v63, 0.0 }
 0xa35   : > { %v20601_v47 = vpop.permute.xlu0 %11364  ;;  %11140 = vrot.lane.b32.xlu1 %v20589_v37, %s15369_s14  ;;  %11158 = vrot.lane.b32.xlu0 %v20593_v35, %s15369_s14  ;;  %v20672_v18 = vmax.f32 %v21715_v2, %v11716_v17  ;;  %v21721_v17 = vld [vmem:[#allocation132_spill] sm:$0xff] }
 0xa36   : > { %v11391_v34 = vsel %vm324_vm0, %v11363_v48, %v20601_v47 }
 0xa37   : > { %21716 = vst [vmem:[#allocation74_spill] sm:$0xff] %v20672_v18 }
 0xa39   : > { %v20619_v5 = vpop.permute.xlu0 %11690  ;;  %11790 = vrot.lane.b32.xlu1 %v20613_v21, %s15369_s14  ;;  %11808 = vrot.lane.b32.xlu0 %v20609_v11, %s15369_s14 }
 0xa3d   : > { %v11131_v24 = vpop.permute.xlu0 %11130  ;;  %11466 = vrot.lane.b32.xlu1 %v20633_v13, %s15369_s14  ;;  %11484 = vrot.lane.b32.xlu0 %v20627_v31, %s15369_s14  ;;  %v21728_v13 = vld [vmem:[#allocation58_spill] sm:$0xff] }
 0xa3e   : > { %v11164_v50 = vsel %vm402_vm2, %v20315_v62, %v11131_v24  ;;  %v11165_v41 = vsel %vm402_vm2, %v11131_v24, %v20629_v29  ;;  %v21718_v24 = vld [vmem:[#allocation65_spill] sm:$0xff] }
 0xa3f   : > { %v11198_v46 = vmax.f32 %v21711_v14, %v11164_v50  ;;  %v21717_v50 = vld [vmem:[#allocation64_spill] sm:$0xff]  ;;  %v11199_v14 = vmax.f32 %v21718_v24, %v11165_v41  ;;  %v21723_v41 = vld [vmem:[#allocation57_spill] sm:$0xff] }
 0xa40   : > { %v21724_v63 = vmax.f32 %v21723_v41, 0.0  ;;  %v21727_v24 = vld [vmem:[#allocation48_spill] sm:$0xff]  ;;  %v11725_v41 = vsel %vm324_vm0, %v20543_v15, %v20599_v9 }
 0xa41   : > { %v11147_v62 = vpop.permute.xlu0 %11146  ;;  %11142 = vrot.lane.b32.xlu1 %v20646_v3, %s15369_s14  ;;  %11160 = vrot.lane.b32.xlu0 %v20651_v57, %s15369_s14  ;;  %v11217_v57 = vmul.f32 %v21727_v24, %v11199_v14 }
 0xa42   : > { %v11172_v22 = vsel %vm402_vm2, %v11147_v62, %v11149_v28  ;;  %v21719_v62 = vld [vmem:[#allocation47_spill] sm:$0xff] }
 0xa43   : > { %v11207_v55 = vmax.f32 %v21717_v50, %v11172_v22  ;;  %v11216_v3 = vmul.f32 %v21719_v62, %v11198_v46  ;;  %v21722_v22 = vmax.f32 %v21721_v17, 0.0  ;;  %v20697_v46 = vmax.f32 %v21724_v63, %v11391_v34  ;;  %v21726_v50 = vld [vmem:[#allocation32_spill] sm:$0xff]  ;;  %v21731_v34 = vld [vmem:[#allocation71_spill] sm:$0xff] }
 0xa44   : > { %v11717_v63 = vsel %vm324_vm0, %v20581_v42, %v20619_v5  ;;  %v21740_v42 = vld [vmem:[#allocation50_spill] sm:$0xff]  ;;  %vm11310_vm0 = vcmask 41000  }
 0xa45   : > { %v11225_v39 = vmul.f32 %v21720_v38, %v11207_v55  ;;  %v20683_v33 = vpop.permute.xlu0 %11150  ;;  %11792 = vrot.lane.b32.xlu1 %v20672_v18, %s15369_s14  ;;  %11810 = vrot.lane.b32.xlu0 %v20668_v20, %s15369_s14  ;;  %v20693_v48 = vmax.f32 %v21722_v22, %v11399_v44  ;;  %21725 = vst [vmem:[#allocation59_spill] sm:$0xff] %v20697_v46 }
 0xa46   : > { %v11173_v32 = vsel %vm402_vm2, %v11149_v28, %v20683_v33  ;;  %v21729_v28 = vld [vmem:[#allocation129_spill] sm:$0xff] }
 0xa47   : > { %v11234_v2 = vadd.f32 %v11225_v39, %v11216_v3  ;;  %v11208_v55 = vmax.f32 %v21726_v50, %v11173_v32  ;;  %v21730_v44 = vmax.f32 %v21729_v28, 0.0  ;;  %v21732_v3 = vld [vmem:[#allocation130_spill] sm:$0xff] }
 0xa48   : > { %v21733_v39 = vmax.f32 %v21732_v3, 0.0  ;;  %v21741_v3 = vmax.f32 %v21740_v42, 0.0 }
 0xa49   : > { %v11235_v18 = vrot.slane %v11234_v2, 4  ;;  %v11226_v31 = vmul.f32 %v21728_v13, %v11208_v55  ;;  %11468 = vrot.lane.b32.xlu1 %v20697_v46, %s15369_s14  ;;  %11486 = vrot.lane.b32.xlu0 %v20693_v48, %s15369_s14  ;;  %v20709_v17 = vmax.f32 %v21730_v44, %v20323_v54  ;;  %v21734_v54 = vld [vmem:[#allocation40_spill] sm:$0xff] }
 0xa4a   : > { %v20714_v32 = vmax.f32 %v21733_v39, %v21731_v34  ;;  %v21735_v28 = vmax.f32 %v21734_v54, 0.0  ;;  %v20741_v39 = vmax.f32 %v21741_v3, %v20569_v12  ;;  %v21748_v12 = vld [vmem:[#allocation63_spill] sm:$0xff] }
 0xa4b   : > { %v11236_v14 = vadd.f32 %v11235_v18, %v11234_v2  ;;  %v11241_v22 = vadd.f32 %v11226_v31, %v11217_v57  ;;  %v21737_v31 = vld [vmem:[#allocation56_spill] sm:$0xff] }
 0xa4c   : > { %v20728_v18 = vmax.f32 %v21735_v28, %v11725_v41  ;;  %v21738_v57 = vmax.f32 %v21737_v31, 0.0  ;;  %v21742_v41 = vld [vmem:[#allocation60_spill] sm:$0xff] }
 0xa4d   : > { %v11237_v50 = vrot.slane %v11236_v14, 2  ;;  %v11242_v55 = vrot.slane %v11241_v22, 4  ;;  %11144 = vrot.lane.b32.xlu1 %v20709_v17, %s15369_s14  ;;  %11162 = vrot.lane.b32.xlu0 %v20714_v32, %s15369_s14  ;;  %v21743_v54 = vmax.f32 %v21742_v41, 0.0 }
 0xa4e   : > { %21736 = vst [vmem:[#allocation69_spill] sm:$0xff] %v20728_v18  ;;  %v20732_v2 = vmax.f32 %v21738_v57, %v11717_v63  ;;  %v21749_v57 = vmax.f32 %v21748_v12, 0.0 }
 0xa4f   : > { %v11238_v15 = vadd.f32 %v11237_v50, %v11236_v14  ;;  %v11243_v44 = vadd.f32 %v11242_v55, %v11241_v22  ;;  %v20746_v28 = vmax.f32 %v21743_v54, %v20601_v47  ;;  %v21745_v50 = vld [vmem:[#allocation54_spill] sm:$0xff] }
 0xa50   : > { %21739 = vst [vmem:[#allocation73_spill] sm:$0xff] %v20732_v2  ;;  %v21746_v55 = vmax.f32 %v21745_v50, 0.0  ;;  %v20760_v42 = vmax.f32 %v21749_v57, %v20619_v5 }
 0xa51   : > { %v11244_v34 = vrot.slane %v11243_v44, 2  ;;  %11794 = vrot.lane.b32.xlu1 %v20732_v2, %s15369_s14  ;;  %11812 = vrot.lane.b32.xlu0 %v20728_v18, %s15369_s14  ;;  %21744 = vst [vmem:[#allocation75_spill] sm:$0xff] %v20746_v28  ;;  %v11239_v63 = vrot.slane %v11238_v15, 1 }
 0xa52   : > { %v20755_v31 = vmax.f32 %v21746_v55, %v20599_v9  ;;  %21750 = vst [vmem:[#allocation77_spill] sm:$0xff] %v20760_v42 }
 0xa53   : > { %v11245_v14 = vadd.f32 %v11244_v34, %v11243_v44  ;;  %v11240_v47 = vadd.f32 %v11239_v63, %v11238_v15 }
 0xa54   : > { %21747 = vst [vmem:[#allocation76_spill] sm:$0xff] %v20755_v31 }
 0xa55   : > { %v11246_v22 = vrot.slane %v11245_v14, 1  ;;  %11470 = vrot.lane.b32.xlu1 %v20746_v28, %s15369_s14  ;;  %11488 = vrot.lane.b32.xlu0 %v20741_v39, %s15369_s14  ;;  %v15084_v28 = vld [vmem:[#allocation9 + $0x50] sm:$0xff] }
 0xa57   : > { %v11247_v3 = vadd.f32 %v11246_v22, %v11245_v14 }
 0xa59   : > { %v20762_v44 = vadd.f32 %v11247_v3, %v11240_v47  ;;  %11796 = vrot.lane.b32.xlu1 %v20760_v42, %s15369_s14  ;;  %11814 = vrot.lane.b32.xlu0 %v20755_v31, %s15369_s14  ;;  %s259_s14 = scalar_lea.vmem [#allocation11], %s15549_s17 }
 0xa5a   : > { %s11996_s13 = sshll.u32 %s259_s14, 4  ;;  %s20996_s13 = int_to_ptr.vmem [resolvable:$true] %s11996_s13 }
 0xa5b   : > { %s15289_s12 = scalar_lea.vmem %s20996_s13, 16  ;;  %p15296_p10 = scmp.lt.s32.totalorder %s20996_s13, %s15294_s24 }
 0xa5c   : > { %p15290_p4 = scmp.ne.s32.totalorder %s20996_s13, %s15289_s12  ;;  %p15297_p13 = scmp.lt.s32.totalorder %s15295_s27, %s15289_s12 }
 0xa5e   : > { %p15291_p6 = pnand %p15290_p4, %p15501_p12  ;;  %p15298_p3 = por %p15297_p13, %p15296_p10 }
 0xa60   : > { %p15292_p8 = pneg %p15291_p6 }
 0xa62   : > { %p15299_p7 = pnand %p15298_p3, %p15292_p8 }
 0xa6b   : > { %v11455_v34 = vpop.permute.xlu1 %11454 }
 0xa6f   : > { %v11457_v41 = vpop.permute.xlu0 %11456  ;;  %v20768_v54 = vpop.permute.xlu1 %11458 }
 0xa70   : > { %v11490_v9 = vsel %vm402_vm2, %v11455_v34, %v11457_v41  ;;  %v11491_v5 = vsel %vm402_vm2, %v11457_v41, %v20768_v54 }
 0xa71   : > { %v11524_v15 = vmax.f32 %v20339_v61, %v11490_v9  ;;  %v11525_v63 = vmax.f32 %v20350_v53, %v11491_v5 }
 0xa73   : > { %v11473_v50 = vpop.permute.xlu0 %11472  ;;  %v11542_v3 = vmul.f32 %v21719_v62, %v11524_v15  ;;  %v11543_v34 = vmul.f32 %v21727_v24, %v11525_v63  ;;  %v21752_v15 = vld [vmem:[#allocation25_spill] sm:$0xff] }
 0xa77   : > { %v20775_v14 = vpop.permute.xlu0 %11476  ;;  %v11475_v22 = vpop.permute.xlu1 %11474 }
 0xa78   : > { %v11498_v55 = vsel %vm402_vm2, %v11473_v50, %v11475_v22  ;;  %v11499_v12 = vsel %vm402_vm2, %v11475_v22, %v20775_v14  ;;  %v21751_v50 = vld [vmem:[#allocation68_spill] sm:$0xff] }
 0xa79   : > { %v11533_v57 = vmax.f32 %v20365_v60, %v11498_v55  ;;  %v11534_v47 = vmax.f32 %v20374_v51, %v11499_v12  ;;  %v21753_v22 = vld [vmem:[#allocation128_spill] sm:$0xff]  ;;  %v21754_v12 = vld [vmem:[#allocation53_spill] sm:$0xff] }
 0xa7b   : > { %v11551_v61 = vmul.f32 %v21720_v38, %v11533_v57  ;;  %v11552_v53 = vmul.f32 %v21728_v13, %v11534_v47  ;;  %v20786_v41 = vpop.permute.xlu0 %11152  ;;  %v20788_v9 = vpop.permute.xlu1 %11134 }
 0xa7c   : > { %v11174_v5 = vsel %vm402_vm2, %v20683_v33, %v20786_v41  ;;  %v11166_v60 = vsel %vm402_vm2, %v20629_v29, %v20788_v9 }
 0xa7d   : > { %v11560_v51 = vadd.f32 %v11551_v61, %v11542_v3  ;;  %v11567_v62 = vadd.f32 %v11552_v53, %v11543_v34  ;;  %v11209_v24 = vmax.f32 %v21751_v50, %v11174_v5  ;;  %v11200_v38 = vmax.f32 %v21752_v15, %v11166_v60 }
 0xa7f   : > { %v11561_v63 = vrot.slane %v11560_v51, 4  ;;  %v11568_v13 = vrot.slane %v11567_v62, 4  ;;  %v11227_v55 = vmul.f32 %v21753_v22, %v11209_v24  ;;  %v11218_v57 = vmul.f32 %v21754_v12, %v11200_v38  ;;  %v11783_v47 = vpop.permute.xlu0 %11782  ;;  %v11781_v2 = vpop.permute.xlu1 %11780 }
 0xa80   : > { %v11816_v33 = vsel %vm402_vm2, %v11781_v2, %v11783_v47 }
 0xa81   : > { %v11562_v42 = vadd.f32 %v11561_v63, %v11560_v51  ;;  %v11569_v31 = vadd.f32 %v11568_v13, %v11567_v62  ;;  %v11248_v18 = vadd.f32 %v11227_v55, %v11218_v57  ;;  %v11850_v2 = vmax.f32 %v20409_v30, %v11816_v33  ;;  %v15082_v33 = vld [vmem:[#allocation9 + $0x48] sm:$0xff] }
 0xa83   : > { %v11563_v29 = vrot.slane %v11562_v42, 2  ;;  %v11570_v3 = vrot.slane %v11569_v31, 2  ;;  %v11249_v34 = vrot.slane %v11248_v18, 4  ;;  %v11799_v61 = vpop.permute.xlu0 %11798  ;;  %v20801_v53 = vpop.permute.xlu1 %11784 }
 0xa84   : > { %v11817_v24 = vsel %vm402_vm2, %v11783_v47, %v20801_v53 }
 0xa85   : > { %v11564_v5 = vadd.f32 %v11563_v29, %v11562_v42  ;;  %v11571_v60 = vadd.f32 %v11570_v3, %v11569_v31  ;;  %v11250_v50 = vadd.f32 %v11249_v34, %v11248_v18  ;;  %v11851_v63 = vmax.f32 %v20413_v25, %v11817_v24  ;;  %v15081_v3 = vld [vmem:[#allocation9] sm:$0xff]  ;;  %v15083_v24 = vld [vmem:[#allocation9 + $0x8] sm:$0xff] }
 0xa86   : > { %v11868_v30 = vmul.f32 %v15081_v3, %v11850_v2 }
 0xa87   : > { %v11565_v15 = vrot.slane %v11564_v5, 1  ;;  %v11572_v38 = vrot.slane %v11571_v60, 1  ;;  %v11251_v22 = vrot.slane %v11250_v50, 2  ;;  %v11803_v51 = vpop.permute.xlu0 %11802  ;;  %v11801_v62 = vpop.permute.xlu1 %11800 }
 0xa88   : > { %v11824_v13 = vsel %vm402_vm2, %v11799_v61, %v11801_v62  ;;  %v11825_v55 = vsel %vm402_vm2, %v11801_v62, %v11803_v51  ;;  %v11869_v61 = vmul.f32 %v15083_v24, %v11851_v63  ;;  %v15085_v63 = vld [vmem:[#allocation9 + $0x58] sm:$0xff] }
 0xa89   : > { %v11566_v12 = vadd.f32 %v11565_v15, %v11564_v5  ;;  %v11573_v42 = vadd.f32 %v11572_v38, %v11571_v60  ;;  %v11252_v31 = vadd.f32 %v11251_v22, %v11250_v50  ;;  %v11859_v18 = vmax.f32 %v20428_v23, %v11824_v13  ;;  %v21755_v15 = vld [vmem:[#allocation61_spill] sm:$0xff] }
 0xa8a   : > { %v11860_v57 = vmax.f32 %v20441_v49, %v11825_v55 }
 0xa8b   : > { %v20811_v47 = vadd.f32 %v11573_v42, %v11566_v12  ;;  %v11253_v29 = vrot.slane %v11252_v31, 1  ;;  %v11877_v34 = vmul.f32 %v15082_v33, %v11859_v18  ;;  %v11479_v46 = vpop.permute.xlu0 %11478  ;;  %v11461_v25 = vpop.permute.xlu1 %11460 }
 0xa8c   : > { %v11878_v62 = vmul.f32 %v15084_v28, %v11860_v57  ;;  %v11500_v5 = vsel %vm402_vm2, %v20775_v14, %v11479_v46  ;;  %v11492_v23 = vsel %vm402_vm2, %v20768_v54, %v11461_v25  ;;  %v15086_v28 = vld [vmem:[#allocation9 + $0x10] sm:$0xff] }
 0xa8d   : > { %v11254_v49 = vadd.f32 %v11253_v29, %v11252_v31  ;;  %v11886_v60 = vadd.f32 %v11877_v34, %v11868_v30  ;;  %v11535_v50 = vmax.f32 %v20378_v4, %v11500_v5  ;;  %v11526_v38 = vmax.f32 %v21755_v15, %v11492_v23  ;;  %v15087_v34 = vld [vmem:[#allocation9 + $0x60] sm:$0xff] }
 0xa8e   : > { %v11893_v22 = vadd.f32 %v11878_v62, %v11869_v61  ;;  %v20828_v61 = vld [vmem:[#allocation9 + $0x18] sm:$0xff] }
 0xa8f   : > { %v20820_v2 = vadd.f32 %v20762_v44, %v11254_v49  ;;  %v11887_v13 = vrot.slane %v11886_v60, 4  ;;  %v11553_v55 = vmul.f32 %v15085_v63, %v11535_v50  ;;  %v11544_v12 = vmul.f32 %v15086_v28, %v11526_v38  ;;  %v11155_v42 = vpop.permute.xlu0 %11154  ;;  %v11137_v14 = vpop.permute.xlu1 %11136 }
 0xa90   : > { %v11894_v18 = vrot.slane %v11893_v22, 4  ;;  %v11175_v54 = vsel %vm402_vm2, %v20786_v41, %v11155_v42  ;;  %v11167_v4 = vsel %vm402_vm2, %v20788_v9, %v11137_v14 }
 0xa91   : > { %v11888_v31 = vadd.f32 %v11887_v13, %v11886_v60  ;;  %v11574_v57 = vadd.f32 %v11553_v55, %v11544_v12  ;;  %v11210_v29 = vmax.f32 %v20397_v8, %v11175_v54  ;;  %v11201_v44 = vmax.f32 %v20393_v56, %v11167_v4 }
 0xa92   : > { %v11895_v3 = vadd.f32 %v11894_v18, %v11893_v22 }
 0xa93   : > { %v11889_v30 = vrot.slane %v11888_v31, 2  ;;  %v11575_v33 = vrot.slane %v11574_v57, 4  ;;  %v11228_v24 = vmul.f32 %v15087_v34, %v11210_v29  ;;  %v11219_v62 = vmul.f32 %v20828_v61, %v11201_v44  ;;  %v11805_v5 = vpop.permute.xlu0 %11804  ;;  %v11787_v41 = vpop.permute.xlu1 %11786 }
 0xa94   : > { %v11896_v23 = vrot.slane %v11895_v3, 2  ;;  %v11826_v9 = vsel %vm402_vm2, %v11803_v51, %v11805_v5  ;;  %v11818_v49 = vsel %vm402_vm2, %v20801_v53, %v11787_v41 }
 0xa95   : > { %v11890_v8 = vadd.f32 %v11889_v30, %v11888_v31  ;;  %v11576_v60 = vadd.f32 %v11575_v33, %v11574_v57  ;;  %v11861_v56 = vmax.f32 %v20445_v7, %v11826_v9  ;;  %v11255_v15 = vadd.f32 %v11228_v24, %v11219_v62 }
 0xa96   : > { %v11897_v50 = vadd.f32 %v11896_v23, %v11895_v3  ;;  %v11852_v38 = vmax.f32 %v20424_v0, %v11818_v49 }
 0xa97   : > { %v11891_v22 = vrot.slane %v11890_v8, 1  ;;  %v11577_v13 = vrot.slane %v11576_v60, 2  ;;  %v11879_v55 = vmul.f32 %v15085_v63, %v11861_v56  ;;  %v11481_v12 = vpop.permute.xlu0 %11480  ;;  %v11463_v18 = vpop.permute.xlu1 %11462  ;;  %v11256_v44 = vrot.slane %v11255_v15, 4 }
 0xa98   : > { %v11898_v54 = vrot.slane %v11897_v50, 1  ;;  %v11870_v4 = vmul.f32 %v15086_v28, %v11852_v38  ;;  %v11501_v51 = vsel %vm402_vm2, %v11479_v46, %v11481_v12  ;;  %v11493_v29 = vsel %vm402_vm2, %v11461_v25, %v11463_v18 }
 0xa99   : > { %v11892_v53 = vadd.f32 %v11891_v22, %v11890_v8  ;;  %v11578_v31 = vadd.f32 %v11577_v13, %v11576_v60  ;;  %v11536_v57 = vmax.f32 %v20458_v52, %v11501_v51  ;;  %v11527_v0 = vmax.f32 %v20464_v43, %v11493_v29 }
 0xa9a   : > { %v11899_v7 = vadd.f32 %v11898_v54, %v11897_v50  ;;  %v11900_v3 = vadd.f32 %v11879_v55, %v11870_v4  ;;  %v11257_v49 = vadd.f32 %v11256_v44, %v11255_v15  ;;  %v15089_v50 = vld [vmem:[#allocation9 + $0x68] sm:$0xff]  ;;  %v15090_v54 = vld [vmem:[#allocation9 + $0x20] sm:$0xff] }
 0xa9b   : > { %v11579_v30 = vrot.slane %v11578_v31, 1  ;;  %v11554_v33 = vmul.f32 %v15087_v34, %v11536_v57  ;;  %v11157_v63 = vpop.permute.xlu0 %11156  ;;  %v11139_v24 = vpop.permute.xlu1 %11138  ;;  %v11545_v46 = vmul.f32 %v20828_v61, %v11527_v0 }
 0xa9c   : > { %v20840_v62 = vadd.f32 %v11899_v7, %v11892_v53  ;;  %v11901_v28 = vrot.slane %v11900_v3, 4  ;;  %v11176_v25 = vsel %vm402_vm2, %v11155_v42, %v11157_v63  ;;  %v11168_v52 = vsel %vm402_vm2, %v11137_v14, %v11139_v24 }
 0xa9d   : > { %v11580_v23 = vadd.f32 %v11579_v30, %v11578_v31  ;;  %v11211_v9 = vmax.f32 %v20482_v26, %v11176_v25  ;;  %v11581_v8 = vadd.f32 %v11554_v33, %v11545_v46  ;;  %v11202_v43 = vmax.f32 %v20478_v40, %v11168_v52 }
 0xa9e   : > { %v11902_v56 = vadd.f32 %v11901_v28, %v11900_v3  ;;  %v11258_v15 = vrot.slane %v11257_v49, 2 }
 0xa9f   : > { %v20848_v60 = vadd.f32 %v20811_v47, %v11580_v23  ;;  %v11229_v38 = vmul.f32 %v15089_v50, %v11211_v9  ;;  %v11807_v22 = vpop.permute.xlu0 %11806  ;;  %v11789_v13 = vpop.permute.xlu1 %11788  ;;  %v11582_v55 = vrot.slane %v11581_v8, 4  ;;  %v11220_v42 = vmul.f32 %v15090_v54, %v11202_v43 }
 0xaa0   : > { %v11827_v4 = vsel %vm402_vm2, %v11805_v5, %v11807_v22  ;;  %v11819_v14 = vsel %vm402_vm2, %v11787_v41, %v11789_v13  ;;  %v11903_v47 = vrot.slane %v11902_v56, 2  ;;  %v11259_v0 = vadd.f32 %v11258_v15, %v11257_v49 }
 0xaa1   : > { %v11862_v26 = vmax.f32 %v20497_v16, %v11827_v4  ;;  %v11262_v51 = vadd.f32 %v11229_v38, %v11220_v42  ;;  %v11853_v40 = vmax.f32 %v20501_v59, %v11819_v14  ;;  %v11583_v57 = vadd.f32 %v11582_v55, %v11581_v8  ;;  %v20863_v42 = vld [vmem:[#allocation9 + $0x70] sm:$0xff] }
 0xaa2   : > { %v11904_v41 = vadd.f32 %v11903_v47, %v11902_v56  ;;  %v11260_v52 = vrot.slane %v11259_v0, 1 }
 0xaa3   : > { %v11880_v29 = vmul.f32 %v15087_v34, %v11862_v26  ;;  %v11483_v53 = vpop.permute.xlu0 %11482  ;;  %v11465_v31 = vpop.permute.xlu1 %11464  ;;  %v11263_v7 = vrot.slane %v11262_v51, 4  ;;  %v11871_v44 = vmul.f32 %v20828_v61, %v11853_v40  ;;  %v11584_v46 = vrot.slane %v11583_v57, 2 }
 0xaa4   : > { %v11502_v3 = vsel %vm402_vm2, %v11481_v12, %v11483_v53  ;;  %v11494_v5 = vsel %vm402_vm2, %v11463_v18, %v11465_v31  ;;  %v11905_v43 = vrot.slane %v11904_v41, 1 }
 0xaa5   : > { %v11264_v16 = vadd.f32 %v11263_v7, %v11262_v51  ;;  %v11907_v30 = vadd.f32 %v11880_v29, %v11871_v44  ;;  %v11537_v33 = vmax.f32 %v20513_v19, %v11502_v3  ;;  %v11528_v59 = vmax.f32 %v20519_v10, %v11494_v5 }
 0xaa6   : > { %v11585_v55 = vadd.f32 %v11584_v46, %v11583_v57  ;;  %v11261_v51 = vadd.f32 %v11260_v52, %v11259_v0  ;;  %v11906_v29 = vadd.f32 %v11905_v43, %v11904_v41 }
 0xaa7   : > { %v11159_v28 = vpop.permute.xlu0 %11158  ;;  %v11141_v34 = vpop.permute.xlu1 %11140  ;;  %v11908_v25 = vrot.slane %v11907_v30, 4  ;;  %v11555_v23 = vmul.f32 %v15089_v50, %v11537_v33  ;;  %v11546_v9 = vmul.f32 %v15090_v54, %v11528_v59  ;;  %v11265_v18 = vrot.slane %v11264_v16, 2 }
 0xaa8   : > { %v11177_v61 = vsel %vm402_vm2, %v11157_v63, %v11159_v28  ;;  %v11169_v12 = vsel %vm402_vm2, %v11139_v24, %v11141_v34  ;;  %v20867_v24 = vld [vmem:[#allocation9 + $0x28] sm:$0xff]  ;;  %v11586_v5 = vrot.slane %v11585_v55, 1 }
 0xaa9   : > { %v11909_v49 = vadd.f32 %v11908_v25, %v11907_v30  ;;  %v11212_v8 = vmax.f32 %v20537_v45, %v11177_v61  ;;  %v11588_v56 = vadd.f32 %v11555_v23, %v11546_v9  ;;  %v11203_v19 = vmax.f32 %v20533_v58, %v11169_v12 }
 0xaaa   : > { %v11266_v58 = vadd.f32 %v11265_v18, %v11264_v16  ;;  %v11301_v25 = vadd.f32 %v20820_v2, %v11261_v51  ;;  %v11587_v52 = vadd.f32 %v11586_v5, %v11585_v55 }
 0xaab   : > { %v11809_v10 = vpop.permute.xlu0 %11808  ;;  %v11791_v38 = vpop.permute.xlu1 %11790  ;;  %v11230_v4 = vmul.f32 %v20863_v42, %v11212_v8  ;;  %v11589_v26 = vrot.slane %v11588_v56, 4  ;;  %v11221_v14 = vmul.f32 %v20867_v24, %v11203_v19  ;;  %v11910_v40 = vrot.slane %v11909_v49, 2 }
 0xaac   : > { %v11828_v63 = vsel %vm402_vm2, %v11807_v22, %v11809_v10  ;;  %v11820_v15 = vsel %vm402_vm2, %v11789_v13, %v11791_v38  ;;  %v11267_v16 = vrot.slane %v11266_v58, 1 }
 0xaad   : > { %v11863_v45 = vmax.f32 %v20551_v6, %v11828_v63  ;;  %v11854_v47 = vmax.f32 %v20555_v36, %v11820_v15  ;;  %v11590_v57 = vadd.f32 %v11589_v26, %v11588_v56  ;;  %v11269_v7 = vadd.f32 %v11230_v4, %v11221_v14 }
 0xaae   : > { %v11911_v36 = vadd.f32 %v11910_v40, %v11909_v49  ;;  %v11268_v8 = vadd.f32 %v11267_v16, %v11266_v58  ;;  %v21757_v16 = vld [vmem:[#allocation66_spill] sm:$0xff] }
 0xaaf   : > { %v11881_v44 = vmul.f32 %v15089_v50, %v11863_v45  ;;  %v11485_v3 = vpop.permute.xlu0 %11484  ;;  %v11467_v22 = vpop.permute.xlu1 %11466  ;;  %v11872_v30 = vmul.f32 %v15090_v54, %v11854_v47  ;;  %v11591_v6 = vrot.slane %v11590_v57, 2  ;;  %v11270_v46 = vrot.slane %v11269_v7, 4  ;;  %v20894_v45 = vld [vmem:[#allocation9 + $0x30] sm:$0xff] }
 0xab0   : > { %v11503_v33 = vsel %vm402_vm2, %v11483_v53, %v11485_v3  ;;  %v11495_v59 = vsel %vm402_vm2, %v11465_v31, %v11467_v22  ;;  %v20881_v31 = vadd.f32 %v20840_v62, %v11906_v29  ;;  %v11912_v4 = vrot.slane %v11911_v36, 1  ;;  %v20887_v62 = vld [vmem:[#allocation9 + $0x78] sm:$0xff] }
 0xab1   : > { %v11538_v13 = vmax.f32 %v20567_v27, %v11503_v33  ;;  %v11529_v0 = vmax.f32 %v20573_v1, %v11495_v59  ;;  %v11914_v41 = vadd.f32 %v11881_v44, %v11872_v30  ;;  %v11592_v50 = vadd.f32 %v11591_v6, %v11590_v57 }
 0xab2   : > { %v11271_v23 = vadd.f32 %v11270_v46, %v11269_v7  ;;  %v11627_v47 = vadd.f32 %v20848_v60, %v11587_v52  ;;  %v20904_v5 = vadd.f32 %v11912_v4, %v11911_v36 }
 0xab3   : > { %v11556_v9 = vmul.f32 %v20863_v42, %v11538_v13  ;;  %v11547_v54 = vmul.f32 %v20867_v24, %v11529_v0  ;;  %v11161_v53 = vpop.permute.xlu0 %11160  ;;  %v11143_v61 = vpop.permute.xlu1 %11142  ;;  %v11915_v12 = vrot.slane %v11914_v41, 4  ;;  %v11593_v43 = vrot.slane %v11592_v50, 1  ;;  %v21756_v13 = vld [vmem:[#allocation62_spill] sm:$0xff] }
 0xab4   : > { %v11178_v27 = vsel %vm402_vm2, %v11159_v28, %v11161_v53  ;;  %v11170_v1 = vsel %vm402_vm2, %v11141_v34, %v11143_v61  ;;  %v11272_v18 = vrot.slane %v11271_v23, 2 }
 0xab5   : > { %v11595_v49 = vadd.f32 %v11556_v9, %v11547_v54  ;;  %v11213_v2 = vmax.f32 %v20593_v35, %v11178_v27  ;;  %v11916_v56 = vadd.f32 %v11915_v12, %v11914_v41  ;;  %v11204_v19 = vmax.f32 %v20589_v37, %v11170_v1 }
 0xab6   : > { %v11273_v63 = vadd.f32 %v11272_v18, %v11271_v23  ;;  %v11594_v29 = vadd.f32 %v11593_v43, %v11592_v50 }
 0xab7   : > { %v11596_v26 = vrot.slane %v11595_v49, 4  ;;  %v11231_v14 = vmul.f32 %v20887_v62, %v11213_v2  ;;  %v20890_v28 = vpop.permute.xlu0 %11810  ;;  %v20892_v34 = vpop.permute.xlu1 %11792  ;;  %v11917_v55 = vrot.slane %v11916_v56, 2  ;;  %v11222_v35 = vmul.f32 %v20894_v45, %v11204_v19 }
 0xab8   : > { %v11829_v15 = vsel %vm402_vm2, %v11809_v10, %v20890_v28  ;;  %v11821_v37 = vsel %vm402_vm2, %v11791_v38, %v20892_v34  ;;  %v11274_v57 = vrot.slane %v11273_v63, 1  ;;  %v20918_v23 = vadd.f32 %v11627_v47, %v11594_v29  ;;  %v15098_v47 = vld [vmem:[#allocation9 + $0x40] sm:$0xff] }
 0xab9   : > { %v11597_v51 = vadd.f32 %v11596_v26, %v11595_v49  ;;  %v11864_v58 = vmax.f32 %v20609_v11, %v11829_v15  ;;  %v11855_v40 = vmax.f32 %v20613_v21, %v11821_v37  ;;  %v11918_v7 = vadd.f32 %v11917_v55, %v11916_v56  ;;  %v21759_v56 = vld [vmem:[#allocation67_spill] sm:$0xff]  ;;  %v20931_v26 = vld [vmem:[#allocation9 + $0x88] sm:$0xff] }
 0xaba   : > { %v11276_v44 = vadd.f32 %v11231_v14, %v11222_v35  ;;  %v11275_v50 = vadd.f32 %v11274_v57, %v11273_v63 }
 0xabb   : > { %v11598_v30 = vrot.slane %v11597_v51, 2  ;;  %v11882_v33 = vmul.f32 %v20863_v42, %v11864_v58  ;;  %v11873_v10 = vmul.f32 %v20867_v24, %v11855_v40  ;;  %v20908_v59 = vpop.permute.xlu0 %11486  ;;  %v20910_v38 = vpop.permute.xlu1 %11468  ;;  %v11919_v11 = vrot.slane %v11918_v7, 1 }
 0xabc   : > { %v11277_v6 = vrot.slane %v11276_v44, 4  ;;  %v11504_v21 = vsel %vm402_vm2, %v11485_v3, %v20908_v59  ;;  %v11496_v60 = vsel %vm402_vm2, %v11467_v22, %v20910_v38  ;;  %v11302_v42 = vadd.f32 %v11301_v25, %v11268_v8  ;;  %v21758_v8 = vld [vmem:[#allocation70_spill] sm:$0xff] }
 0xabd   : > { %v11921_v46 = vadd.f32 %v11882_v33, %v11873_v10  ;;  %v11539_v0 = vmax.f32 %v21756_v13, %v11504_v21  ;;  %v11530_v36 = vmax.f32 %v21757_v16, %v11496_v60  ;;  %v11599_v41 = vadd.f32 %v11598_v30, %v11597_v51 }
 0xabe   : > { %v11278_v24 = vadd.f32 %v11277_v6, %v11276_v44  ;;  %v20920_v9 = vadd.f32 %v11919_v11, %v11918_v7  ;;  %v20944_v33 = vadd.f32 %v11302_v42, %v11275_v50  ;;  %v21760_v6 = vld [vmem:[#allocation74_spill] sm:$0xff] }
 0xabf   : > { %v11922_v54 = vrot.slane %v11921_v46, 4  ;;  %v11557_v12 = vmul.f32 %v20887_v62, %v11539_v0  ;;  %v11548_v3 = vmul.f32 %v20894_v45, %v11530_v36  ;;  %v11163_v27 = vpop.permute.xlu0 %11162  ;;  %v11145_v22 = vpop.permute.xlu1 %11144  ;;  %v11600_v4 = vrot.slane %v11599_v41, 1 }
 0xac0   : > { %v11279_v1 = vrot.slane %v11278_v24, 2  ;;  %v11179_v52 = vsel %vm402_vm2, %v11161_v53, %v11163_v27  ;;  %v11215_v18 = vmax.f32 %v20714_v32, %v11163_v27  ;;  %v11171_v25 = vsel %vm402_vm2, %v11143_v61, %v11145_v22  ;;  %v15096_v32 = vld [vmem:[#allocation9 + $0x80] sm:$0xff]  ;;  %v20935_v61 = vld [vmem:[#allocation9 + $0x38] sm:$0xff] }
 0xac1   : > { %v11923_v49 = vadd.f32 %v11922_v54, %v11921_v46  ;;  %v11602_v2 = vadd.f32 %v11557_v12, %v11548_v3  ;;  %v11214_v43 = vmax.f32 %v21758_v8, %v11179_v52  ;;  %v11205_v19 = vmax.f32 %v21759_v56, %v11171_v25  ;;  %v21762_v25 = vld [vmem:[#allocation59_spill] sm:$0xff] }
 0xac2   : > { %v20929_v63 = vadd.f32 %v11279_v1, %v11278_v24  ;;  %v11233_v14 = vmul.f32 %v20931_v26, %v11215_v18  ;;  %v11206_v55 = vmax.f32 %v20709_v17, %v11145_v22  ;;  %v20950_v60 = vadd.f32 %v11600_v4, %v11599_v41  ;;  %v21761_v1 = vld [vmem:[#allocation75_spill] sm:$0xff]  ;;  %v21763_v4 = vld [vmem:[#allocation69_spill] sm:$0xff] }
 0xac3   : > { %v11924_v53 = vrot.slane %v11923_v49, 2  ;;  %v11603_v35 = vrot.slane %v11602_v2, 4  ;;  %v11232_v15 = vmul.f32 %v15096_v32, %v11214_v43  ;;  %v11223_v37 = vmul.f32 %v20935_v61, %v11205_v19  ;;  %v11813_v51 = vpop.permute.xlu0 %11812  ;;  %v11795_v58 = vpop.permute.xlu1 %11794 }
 0xac4   : > { %v11291_v40 = vsel %vm9659_vm10, %v11233_v14, 0.0  ;;  %v11224_v29 = vmul.f32 %v15098_v47, %v11206_v55  ;;  %v11830_v57 = vsel %vm402_vm2, %v20890_v28, %v11813_v51  ;;  %v11822_v17 = vsel %vm402_vm2, %v20892_v34, %v11795_v58  ;;  %v21764_v14 = vld [vmem:[#allocation76_spill] sm:$0xff] }
 0xac5   : > { %v11604_v7 = vadd.f32 %v11603_v35, %v11602_v2  ;;  %v11283_v44 = vadd.f32 %v11232_v15, %v11223_v37  ;;  %v11865_v30 = vmax.f32 %v20668_v20, %v11830_v57  ;;  %v20946_v10 = vadd.f32 %v11924_v53, %v11923_v49  ;;  %v21765_v37 = vld [vmem:[#allocation77_spill] sm:$0xff] }
 0xac6   : > { %v11290_v11 = vsel %vm9659_vm10, %v11224_v29, 0.0  ;;  %v11856_v21 = vmax.f32 %v21760_v6, %v11822_v17  ;;  %v11281_v34 = vrot.slane %v20929_v63, 1 }
 0xac7   : > { %v11605_v46 = vrot.slane %v11604_v7, 2  ;;  %v11284_v13 = vrot.slane %v11283_v44, 4  ;;  %v11292_v28 = vadd.f32 %v11291_v40, %v11290_v11  ;;  %v11489_v0 = vpop.permute.xlu0 %11488  ;;  %v11471_v16 = vpop.permute.xlu1 %11470  ;;  %v11883_v36 = vmul.f32 %v20887_v62, %v11865_v30 }
 0xac8   : > { %v11874_v20 = vmul.f32 %v20894_v45, %v11856_v21  ;;  %v11505_v42 = vsel %vm402_vm2, %v20908_v59, %v11489_v0  ;;  %v11541_v24 = vmax.f32 %v20741_v39, %v11489_v0  ;;  %v11497_v22 = vsel %vm402_vm2, %v20910_v38, %v11471_v16 }
 0xac9   : > { %v11606_v50 = vadd.f32 %v11605_v46, %v11604_v7  ;;  %v11285_v54 = vadd.f32 %v11284_v13, %v11283_v44  ;;  %v11293_v41 = vrot.slane %v11292_v28, 4  ;;  %v11540_v12 = vmax.f32 %v20693_v48, %v11505_v42  ;;  %v21766_v44 = vld [vmem:[#allocation73_spill] sm:$0xff] }
 0xaca   : > { %v11928_v3 = vadd.f32 %v11883_v36, %v11874_v20  ;;  %v11559_v27 = vmul.f32 %v20931_v26, %v11541_v24  ;;  %v11532_v62 = vmax.f32 %v21761_v1, %v11471_v16  ;;  %v11531_v59 = vmax.f32 %v21762_v25, %v11497_v22 }
 0xacb   : > { %v11286_v52 = vrot.slane %v11285_v54, 2  ;;  %v11294_v45 = vadd.f32 %v11293_v41, %v11292_v28  ;;  %v11558_v18 = vmul.f32 %v15096_v32, %v11540_v12  ;;  %v11815_v49 = vpop.permute.xlu0 %11814  ;;  %v11797_v39 = vpop.permute.xlu1 %11796  ;;  %v11282_v6 = vadd.f32 %v11281_v34, %v20929_v63 }
 0xacc   : > { %v11929_v2 = vrot.slane %v11928_v3, 4  ;;  %v11617_v8 = vsel %vm9659_vm10, %v11559_v27, 0.0  ;;  %v11550_v43 = vmul.f32 %v15098_v47, %v11532_v62  ;;  %v11831_v48 = vsel %vm402_vm2, %v11813_v51, %v11815_v49 }
 0xacd   : > { %v11295_v56 = vrot.slane %v11294_v45, 2  ;;  %v11549_v19 = vmul.f32 %v20935_v61, %v11531_v59  ;;  %v11866_v38 = vmax.f32 %v21763_v4, %v11831_v48  ;;  %v11867_v55 = vmax.f32 %v21764_v14, %v11815_v49 }
 0xace   : > { %v11930_v53 = vadd.f32 %v11929_v2, %v11928_v3  ;;  %v11616_v35 = vsel %vm9659_vm10, %v11550_v43, 0.0  ;;  %v11823_v15 = vsel %vm402_vm2, %v11795_v58, %v11797_v39  ;;  %v11858_v40 = vmax.f32 %v21765_v37, %v11797_v39 }
 0xacf   : > { %v11609_v29 = vadd.f32 %v11558_v18, %v11549_v19  ;;  %v11618_v57 = vadd.f32 %v11617_v8, %v11616_v35  ;;  %v11884_v17 = vmul.f32 %v15096_v32, %v11866_v38  ;;  %v11885_v7 = vmul.f32 %v20931_v26, %v11867_v55 }
 0xad0   : > { %v11931_v51 = vrot.slane %v11930_v53, 2  ;;  %v11857_v30 = vmax.f32 %v21766_v44, %v11823_v15  ;;  %v11876_v11 = vmul.f32 %v15098_v47, %v11858_v40  ;;  %v11287_v28 = vadd.f32 %v11286_v52, %v11285_v54 }
 0xad1   : > { %v11610_v21 = vrot.slane %v11609_v29, 4  ;;  %v11619_v46 = vrot.slane %v11618_v57, 4  ;;  %v11943_v13 = vsel %vm9659_vm10, %v11885_v7, 0.0  ;;  %v11296_v36 = vadd.f32 %v11295_v56, %v11294_v45 }
 0xad2   : > { %v11932_v0 = vadd.f32 %v11931_v51, %v11930_v53  ;;  %v11875_v58 = vmul.f32 %v20935_v61, %v11857_v30  ;;  %v11942_v16 = vsel %vm9659_vm10, %v11876_v11, 0.0  ;;  %v11288_v42 = vrot.slane %v11287_v28, 1  ;;  %v11965_v51 = vld [vmem:[#allocation5] sm:$0x1] }
 0xad3   : > { %v11611_v32 = vadd.f32 %v11610_v21, %v11609_v29  ;;  %v11620_v20 = vadd.f32 %v11619_v46, %v11618_v57  ;;  %v11944_v26 = vadd.f32 %v11943_v13, %v11942_v16  ;;  %v11297_v41 = vrot.slane %v11296_v36, 1 }
 0xad4   : > { %v11935_v24 = vadd.f32 %v11884_v17, %v11875_v58  ;;  %v11304_v47 = vadd.f32 %v20944_v33, %v11282_v6  ;;  %v11607_v63 = vrot.slane %v11606_v50, 1  ;;  %v11289_v27 = vadd.f32 %v11288_v42, %v11287_v28 }
 0xad5   : > { %v11612_v34 = vrot.slane %v11611_v32, 2  ;;  %v11621_v12 = vrot.slane %v11620_v20, 2  ;;  %v11945_v3 = vrot.slane %v11944_v26, 4  ;;  %v11926_v54 = vrot.slane %v20946_v10, 1 }
 0xad6   : > { %v11936_v22 = vrot.slane %v11935_v24, 4  ;;  %v11298_v61 = vadd.f32 %v11297_v41, %v11296_v36  ;;  %v11608_v1 = vadd.f32 %v11607_v63, %v11606_v50  ;;  %v11305_v52 = vadd.f32 %v11304_v47, %v11289_v27 }
 0xad7   : > { %v11946_v62 = vadd.f32 %v11945_v3, %v11944_v26  ;;  %v11613_v45 = vadd.f32 %v11612_v34, %v11611_v32  ;;  %v11622_v18 = vadd.f32 %v11621_v12, %v11620_v20  ;;  %v11629_v33 = vadd.f32 %v20918_v23, %v20950_v60 }
 0xad8   : > { %v11937_v25 = vadd.f32 %v11936_v22, %v11935_v24  ;;  %v11306_v59 = vsel %vm9659_vm10, %v11298_v61, 0.0  ;;  %v11933_v49 = vrot.slane %v11932_v0, 1  ;;  %v11927_v56 = vadd.f32 %v11926_v54, %v20946_v10 }
 0xad9   : > { %v11947_v39 = vrot.slane %v11946_v62, 2  ;;  %v11307_v2 = vadd.f32 %v11306_v59, %v11305_v52  ;;  %v11614_v8 = vrot.slane %v11613_v45, 1  ;;  %v11623_v43 = vrot.slane %v11622_v18, 1 }
 0xada   : > { %v11938_v48 = vrot.slane %v11937_v25, 2  ;;  %v11953_v50 = vadd.f32 %v20881_v31, %v20904_v5  ;;  %v11630_v38 = vadd.f32 %v11629_v33, %v11608_v1  ;;  %v11934_v55 = vadd.f32 %v11933_v49, %v11932_v0 }
 0xadb   : > { %11308 = vadd.xlane.f32.xlu1 %v11307_v2  ;;  %v11615_v19 = vadd.f32 %v11614_v8, %v11613_v45  ;;  %v11624_v4 = vadd.f32 %v11623_v43, %v11622_v18  ;;  %v11948_v14 = vadd.f32 %v11947_v39, %v11946_v62  ;;  %v11971_v30 = vlaneseq }
 0xadc   : > { %v11939_v53 = vadd.f32 %v11938_v48, %v11937_v25  ;;  %v11954_v23 = vadd.f32 %v11953_v50, %v20920_v9  ;;  %vm11962_vm2 = vcmask 57400  }
 0xadd   : > { %v11631_v60 = vadd.f32 %v11630_v38, %v11615_v19  ;;  %v11632_v35 = vsel %vm9659_vm10, %v11624_v4, 0.0  ;;  %v11949_v15 = vrot.slane %v11948_v14, 1  ;;  %v11972_v6 = vshrl.u32 %v11971_v30, 7 }
 0xade   : > { %v11940_v37 = vrot.slane %v11939_v53, 1  ;;  %v11955_v40 = vadd.f32 %v11954_v23, %v11927_v56 }
 0xadf   : > { %v11633_v29 = vadd.f32 %v11632_v35, %v11631_v60  ;;  %v11950_v10 = vadd.f32 %v11949_v15, %v11948_v14  ;;  %v11973_v21 = vsub.s32 0, %v11972_v6 }
 0xae0   : > { %v11941_v57 = vadd.f32 %v11940_v37, %v11939_v53  ;;  %v11956_v17 = vadd.f32 %v11955_v40, %v11934_v55 }
 0xae1   : > { %11634 = vadd.xlane.f32.xlu0 %v11633_v29  ;;  %v11958_v31 = vsel %vm9659_vm10, %v11950_v10, 0.0 }
 0xae2   : > { %v11957_v5 = vadd.f32 %v11956_v17, %v11941_v57 }
 0xae4   : > { %v11959_v7 = vadd.f32 %v11958_v31, %v11957_v5 }
 0xae6   : > { %11960 = vadd.xlane.f32.xlu0 %v11959_v7 }
 0xafc   : > { %11968 = vperm.xlu0 %14980, %v11965_v51  }
 0xb68   : > { %v11309_v9 = vpop.xlane.xlu1 %11308 }
 0xb69   : > { %11311 = vst.msk [vmem:[#allocation4] sm:$0x1] %vm11310_vm0, %v11309_v9 }
 0xb6e   : > { %v11635_v44 = vpop.xlane.xlu0 %11634 }
 0xb6f   : > { %11637 = vst.msk [vmem:[#allocation4] sm:$0x1] %vm11636_vm1, %v11635_v44 }
 0xb73   : > { %v11961_v11 = vpop.xlane.xlu0 %11960 }
 0xb74   : > { %11963 = vst.msk [vmem:[#allocation4] sm:$0x1] %vm11962_vm2, %v11961_v11 }
 0xb7b   : > { %v11969_v46 = vpop.permute.xlu0 %11968  ;;  %v11964_v28 = vld [vmem:[#allocation4] sm:$0x1] }
 0xb7c   : > { %v11974_v13 = vrot.slane %v11969_v46, %v11973_v21 }
 0xb7e   : > { %v11975_v0 = vadd.f32 %v11974_v13, %v11964_v28 }
 0xb80   : > { %v11976_v58 = vsub.f32 0.0, %v11975_v0 }
 0xb82   : > { %v11977_v16 = vmul.f32 1.442695, %v11976_v58 }
 0xb84   : > { %15023 = vpow2.f32 %v11977_v16 }
 0xb8e   : > { %v15024_v36 = vpop.eup %15023 }
 0xb8f   : > { %v11979_v32 = vadd.f32 1.0, %v15024_v36 }
 0xb91   : > { %15025 = vrcp.f32 %v11979_v32 }
 0xb9b   : > { %v15026_v20 = vpop.eup %15025 }
 0xb9c   : > { %11982 = vst.msk [vmem:[%s259_s14] sm:$0x1] %vm11981_vm3, %v15026_v20 }
 0xb9d   : > { %15302 = shalt.err (!%p15299_p7)
}
 0xb9e   : > { %s15303_s17 = scalar_lea.hbm %s20994_s18, 16  ;;  %s15307_s15 = scalar_lea.hbm %s21043_s5, 32 }
 0xb9f   : > { %p15304_p9 = scmp.ne.s32.totalorder %s20994_s18, %s15303_s17  ;;  %p15308_p5 = scmp.lt.u32.totalorder %s20994_s18, %s21043_s5 }
 0xba0   : > { %p15309_p11 = scmp.lt.u32.totalorder %s15307_s15, %s15303_s17  ;;  %p15311_p4 = scmp.lt.u32.totalorder %s15303_s17, %s20994_s18 }
 0xba1   : > { %p15305_p2 = pnand %p15304_p9, %p15501_p12 }
 0xba2   : > { %p15310_p1 = por %p15309_p11, %p15308_p5 }
 0xba3   : > { %p15306_p0 = pneg %p15305_p2 }
 0xba4   : > { %p15312_p6 = por %p15311_p4, %p15310_p1 }
 0xba6   : > { %p15313_p8 = pnand %p15312_p6, %p15306_p0 }
 0xba8   : > { %15316 = shalt.err (!%p15313_p8)
}
 0xba9   : > { %13316 = dma.vmem_to_hbm [thread:$0]  (%p15501_p12), %s20996_s13, 16, %s20994_s18, %s11984_s19  }
 0xbaa PF: > { %s12008_s30 = sand.u32 1, %s15347_s20   ;;  %p21767_p10 = scmp.ne.s32.totalorder %s21244_s26, 0 }
 0xbab   : > { %p21768_p13 = scmp.ge.s32.totalorder %s15359_s23, 2  ;;  %s12009_s25 = scalar_lea.sflag [#allocation8], %s12008_s30 }
 0xbad   : > { %p13327_p3 = pnand %p21768_p13, %p21767_p10 }
 0xbaf   : > { %15342 = dma.done.wait (!%p13327_p3), %s12009_s25, 16  }
 0xbb0   : > { %15344 = vsyncadd (!%p13327_p3), %s12009_s25, 4294967280  ;;  %p21_p7 = scmp.ge.s32.totalorder %s15466_s6, 4   ;;  %s21769_s20 = smov %s15351_s21 }
 0xbb1   : > { %s21770_s21 = smov %s15355_s22  ;;  %s21771_s22 = smov %s15497_s28 }
 0xbb2   : > { %s21772_s23 = smov %s15466_s6  ;;  %23 = sbr.rel (!%p21_p7) target bundleno = 9 (0x9), region = 96 }
 0xbb9   :  { %12013 = vsyncpa [#allocation7], 1 }
 0xbba   :  { %12015 = vsyncpa [#allocation7 + $0x1], 1 }
 0xbbb   :  { %12016 = vsyncpa [#allocation10], 1 }
 0xbbc   :  { %12017 = vsyncpa [#allocation8], 1 }
 0xbbd   :  { %12019 = vsyncpa [#allocation8 + $0x1], 1 }

</bundles_post_ra>
